<compile_context>
chip_gen: v6e
topology: v6e:2x2x1
jax: 0.10.0
libtpu: 0.0.40
codegen_flags: <defaults>
</compile_context>

<pallas_src>
import functools

import jax
import jax.numpy as jnp
from jax.experimental import pallas as pl
from jax.experimental.pallas import tpu as pltpu

H = W = 32
HW = H * W                   # 1024 flattened spatial positions (lane axis)
C_OUT = 16                   # conv output channels (sublane axis)
KSIZE = 3
FC_IN = C_OUT * HW           # 16384
FC_OUT = 2
OUT_LANES = 128              # lane-dense logits row; lanes [0, FC_OUT) are real
PADL = 128                   # lane-aligned pad; covers every tap shift in [-33, 33]
PADDED = HW + 2 * PADL       # 1280
MAX_BB = 8                   # max images per grid step


# ------------------------------ Pallas kernel ------------------------------ #

def fused_forward_kernel(x_ref, w1_ref, b1_ref, masks_ref, w2v_ref, sel_ref,
                         b2_ref, o_ref, pad_ref):
    """conv3x3(pad=1) + bias + ReLU + Linear for a block of BB images.

    x_ref    : (BB, 1, HW)          images, row-major flatten p = y*W + x
    w1_ref   : (C_OUT, 9)           conv weight, k = ky*3 + kx
    b1_ref   : (C_OUT, 1)           conv bias
    masks_ref: (2, HW)              f32 x-masks (row 0: dx=-1 valid, row 1: dx=+1)
    w2v_ref  : (HW, 32)             fc weight, column j = n*C_OUT + c
    sel_ref  : (FC_OUT, C_OUT, 32)  one-hot selectors, sel[n, c, n*C_OUT+c] = 1
    b2_ref   : (1, OUT_LANES)       fc bias padded to 128 lanes
    o_ref    : (BB, 1, OUT_LANES)   logits in lanes [0, FC_OUT)
    pad_ref  : (1, PADDED)          VMEM scratch with zeroed lane pads
    """
    bb = x_ref.shape[0]

    # Zero the two pad regions every grid step (2 vregs of stores; no reliance
    # on program_id == 0 running on every core -> megacore-safe).
    pad_ref[:, :PADL] = jnp.zeros((1, PADL), jnp.float32)
    pad_ref[:, PADL + HW:] = jnp.zeros((1, PADL), jnp.float32)

    w1 = w1_ref[...]                                    # (C_OUT, 9)
    b1 = b1_ref[...]                                    # (C_OUT, 1)
    mask_l = masks_ref[0:1, :]                          # (1, HW)  dx = -1
    mask_r = masks_ref[1:2, :]                          # (1, HW)  dx = +1
    w2v = w2v_ref[...]                                  # (HW, 32)
    b2 = b2_ref[...]                                    # (1, OUT_LANES)
    lane = jax.lax.broadcasted_iota(jnp.int32, (1, OUT_LANES), 1)

    def one_image(i, carry):
        # Stage image i into the lane-aligned padded scratch (aligned vst).
        pad_ref[:, PADL:PADL + HW] = x_ref[i]           # (1, HW)

        # 3x3 conv as 9 shifted multiply-accumulates; activation layout is
        # (channels on sublanes, flattened spatial on lanes) -- lane dense.
        acc = jnp.zeros((C_OUT, HW), jnp.float32)
        for ky in range(KSIZE):
            for kx in range(KSIZE):
                dy, dx = ky - 1, kx - 1
                start = PADL + dy * W + dx              # static lane offset
                window = pad_ref[:, start:start + HW]   # (1, HW)
                # y-out-of-range taps land in the zeroed pad; only the x wrap
                # needs masking, as a single f32 multiply fused into the MAC.
                if dx == -1:
                    window = window * mask_l
                elif dx == 1:
                    window = window * mask_r
                k = ky * KSIZE + kx
                acc = acc + w1[:, k:k + 1] * window     # (C_OUT, HW)

        h = jnp.maximum(acc + b1, 0.0)                  # (C_OUT, HW)

        # FC on the MXU: hw[c, n*16 + c'] = sum_p h[c, p] * fc_w[n, c'*HW + p]
        hw = jnp.dot(h, w2v, preferred_element_type=jnp.float32,
                     precision=jax.lax.Precision.HIGHEST)      # (C_OUT, 32)

        row = b2
        for n in range(FC_OUT):
            picked = jnp.sum(hw * sel_ref[n], axis=1, keepdims=True)   # (C_OUT, 1)
            logit_n = jnp.sum(picked, axis=0, keepdims=True)           # (1, 1)
            row = row + jnp.where(lane == n, logit_n, 0.0)
        o_ref[i] = row                                  # (1, OUT_LANES)
        return carry

    jax.lax.fori_loop(0, bb, one_image, 0, unroll=2)


# ------------------------------ Wrappers ----------------------------------- #

def prepare_params(conv_w, conv_b, fc_w, fc_b):
    """One-time repacking of the PyTorch parameters (reshapes + tiny constants)."""
    w1 = conv_w.reshape(C_OUT, KSIZE * KSIZE).astype(jnp.float32)
    b1 = conv_b.reshape(C_OUT, 1).astype(jnp.float32)

    xx = jnp.arange(HW, dtype=jnp.int32) % W
    masks = jnp.stack([(xx >= 1).astype(jnp.float32),          # dx = -1 valid
                       (xx < W - 1).astype(jnp.float32)])      # dx = +1 valid

    # fc_w is (FC_OUT, C_OUT*HW) in NCHW-flatten order (c*HW + p).
    # w2v[p, n*C_OUT + c] = fc_w[n, c*HW + p]  -> MXU contraction over p.
    w2 = fc_w.reshape(FC_OUT, C_OUT, HW).astype(jnp.float32)
    w2v = jnp.transpose(w2, (2, 0, 1)).reshape(HW, FC_OUT * C_OUT)

    # One-hot selectors picking hw's "diagonal" entries for each logit.
    c_idx = jnp.arange(C_OUT)
    sel = jnp.zeros((FC_OUT, C_OUT, FC_OUT * C_OUT), jnp.float32)
    for n in range(FC_OUT):
        sel = sel.at[n, c_idx, n * C_OUT + c_idx].set(1.0)

    b2 = jnp.zeros((1, OUT_LANES), jnp.float32)
    b2 = b2.at[0, :FC_OUT].set(fc_b.astype(jnp.float32))
    return w1, b1, masks, w2v, sel, b2


def _pick_bb(batch):
    """Images per grid step: large enough to amortize per-step overhead, small
    enough to keep >= 2 (parallel) grid steps for v7x's two TensorCores."""
    bb = min(MAX_BB, max(1, batch))
    while bb > 1 and pl.cdiv(batch, bb) < 2:
        bb = max(1, bb // 2)
    return bb


@functools.partial(jax.jit, static_argnames=("bb",))
def _fused_call(xf, w1, b1, masks, w2v, sel, b2, *, bb):
    bp = xf.shape[0]
    steps = bp // bb
    flops = 2 * bp * (HW * C_OUT * KSIZE * KSIZE + FC_IN * FC_OUT)
    bytes_accessed = 4 * (xf.size + w1.size + b1.size + masks.size + w2v.size
                          + sel.size + b2.size + bp * OUT_LANES)
    return pl.pallas_call(
        fused_forward_kernel,
        out_shape=jax.ShapeDtypeStruct((bp, 1, OUT_LANES), jnp.float32),
        grid_spec=pltpu.PrefetchScalarGridSpec(
            num_scalar_prefetch=0,
            grid=(steps,),
            in_specs=[
                pl.BlockSpec((bb, 1, HW), lambda b: (b, 0, 0)),
                pl.BlockSpec((C_OUT, KSIZE * KSIZE), lambda b: (0, 0)),
                pl.BlockSpec((C_OUT, 1), lambda b: (0, 0)),
                pl.BlockSpec((2, HW), lambda b: (0, 0)),
                pl.BlockSpec((HW, FC_OUT * C_OUT), lambda b: (0, 0)),
                pl.BlockSpec((FC_OUT, C_OUT, FC_OUT * C_OUT),
                             lambda b: (0, 0, 0)),
                pl.BlockSpec((1, OUT_LANES), lambda b: (0, 0)),
            ],
            out_specs=pl.BlockSpec((bb, 1, OUT_LANES), lambda b: (b, 0, 0)),
            scratch_shapes=[pltpu.VMEM((1, PADDED), jnp.float32)],
        ),
        compiler_params=pltpu.CompilerParams(
            dimension_semantics=("parallel",),   # batch blocks across v7x cores
        ),
        cost_estimate=pl.CostEstimate(
            flops=flops, transcendentals=0, bytes_accessed=bytes_accessed),
    )(xf, w1, b1, masks, w2v, sel, b2)


def simple_nn_forward(x, params):
    """x: (B, 1, 32, 32) float32 NCHW -> (B, 2) logits (PyTorch semantics)."""
    batch = x.shape[0]
    bb = _pick_bb(batch)
    bp = pl.cdiv(batch, bb) * bb
    xf = x.reshape(batch, 1, HW)                 # free row-major flatten
    if bp != batch:                              # only when B % bb != 0
        xf = jnp.pad(xf, ((0, bp - batch), (0, 0), (0, 0)))
    out = _fused_call(xf, *params, bb=bb)        # (bp, 1, OUT_LANES)
    return out[:batch, 0, :FC_OUT]


# ------------------------------ Reference ----------------------------------- #

def simple_nn_reference(x, conv_w, conv_b, fc_w, fc_b):
    y = jax.lax.conv_general_dilated(
        x, conv_w, window_strides=(1, 1), padding=((1, 1), (1, 1)),
        dimension_numbers=("NCHW", "OIHW", "NCHW"))
    y = y + conv_b.reshape(1, C_OUT, 1, 1)
    y = jnp.maximum(y, 0.0)
    y = y.reshape(x.shape[0], -1)                # NCHW flatten: c*HW + y*W + x
    return jnp.dot(y, fc_w.T, precision=jax.lax.Precision.HIGHEST) + fc_b


# --------------------------------- Main ------------------------------------- #

if __name__ == "__main__":
    key = jax.random.PRNGKey(0)
    kx, kw1, kb1, kw2, kb2 = jax.random.split(key, 5)

    B = 4
    x = jax.random.normal(kx, (B, 1, H, W), dtype=jnp.float32)

    # Deterministic synthetic parameters (shapes match nn.Conv2d / nn.Linear).
    conv_w = 0.1 * jax.random.normal(kw1, (C_OUT, 1, KSIZE, KSIZE), dtype=jnp.float32)
    conv_b = 0.1 * jax.random.normal(kb1, (C_OUT,), dtype=jnp.float32)
    fc_w = 0.01 * jax.random.normal(kw2, (FC_OUT, FC_IN), dtype=jnp.float32)
    fc_b = 0.1 * jax.random.normal(kb2, (FC_OUT,), dtype=jnp.float32)

    params = prepare_params(conv_w, conv_b, fc_w, fc_b)   # hoisted weight prep
    out = simple_nn_forward(x, params)
    out = jax.block_until_ready(out)

    ref = simple_nn_reference(x, conv_w, conv_b, fc_w, fc_b)
    assert out.shape == (B, FC_OUT), out.shape
    assert jnp.allclose(out, ref, rtol=2e-3, atol=2e-3), (out, ref)

    print("KERNEL_OK")
</pallas_src>

<mosaic_0001>
module attributes {stable_mosaic.version = 11 : i64} {
  func.func @fused_forward_kernel(%arg0: i32, %arg1: memref<2x1x1024xf32, #tpu.memory_space<vmem>>, %arg2: memref<16x9xf32, #tpu.memory_space<vmem>>, %arg3: memref<16x1xf32, #tpu.memory_space<vmem>>, %arg4: memref<2x1024xf32, #tpu.memory_space<vmem>>, %arg5: memref<1024x32xf32, #tpu.memory_space<vmem>>, %arg6: memref<2x16x32xf32, #tpu.memory_space<vmem>>, %arg7: memref<1x128xf32, #tpu.memory_space<vmem>>, %arg8: memref<2x1x128xf32, #tpu.memory_space<vmem>>, %arg9: memref<1x1280xf32, #tpu.memory_space<vmem>>) attributes {dimension_semantics = [#tpu.dimension_semantics<parallel>], iteration_bounds = array<i64: 2>, scalar_prefetch = 0 : i64, scratch_operands = 1 : i64, tpu.core_type = #tpu.core_type<tc>, window_params = [{transform_indices = @transform_0, window_bounds = array<i64: 2, 1, 1024>}, {pipeline_mode = #tpu.pipeline_mode<synchronous>, transform_indices = @transform_1, window_bounds = array<i64: 16, 9>}, {pipeline_mode = #tpu.pipeline_mode<synchronous>, transform_indices = @transform_2, window_bounds = array<i64: 16, 1>}, {pipeline_mode = #tpu.pipeline_mode<synchronous>, transform_indices = @transform_3, window_bounds = array<i64: 2, 1024>}, {pipeline_mode = #tpu.pipeline_mode<synchronous>, transform_indices = @transform_4, window_bounds = array<i64: 1024, 32>}, {pipeline_mode = #tpu.pipeline_mode<synchronous>, transform_indices = @transform_5, window_bounds = array<i64: 2, 16, 32>}, {pipeline_mode = #tpu.pipeline_mode<synchronous>, transform_indices = @transform_6, window_bounds = array<i64: 1, 128>}, {transform_indices = @transform_7, window_bounds = array<i64: 2, 1, 128>}]} {
    %cst = arith.constant 0.000000e+00 : f32
    %0 = vector.broadcast %cst : f32 to vector<1x128xf32>
    %c0 = arith.constant 0 : index
    %c0_0 = arith.constant 0 : index
    %1 = vector.load %arg9[%c0, %c0_0] : memref<1x1280xf32, #tpu.memory_space<vmem>>, vector<1x128xf32>
    tpu.vector_store %arg9[%c0, %c0_0], %0 {strides = array<i32>} : memref<1x1280xf32, #tpu.memory_space<vmem>>, vector<1x128xf32>,
    %cst_1 = arith.constant 0.000000e+00 : f32
    %2 = vector.broadcast %cst_1 : f32 to vector<1x128xf32>
    %c0_2 = arith.constant 0 : index
    %c1152 = arith.constant 1152 : index
    %3 = vector.load %arg9[%c0_2, %c1152] : memref<1x1280xf32, #tpu.memory_space<vmem>>, vector<1x128xf32>
    tpu.vector_store %arg9[%c0_2, %c1152], %2 {strides = array<i32>} : memref<1x1280xf32, #tpu.memory_space<vmem>>, vector<1x128xf32>,
    %c0_3 = arith.constant 0 : index
    %c0_4 = arith.constant 0 : index
    %4 = vector.load %arg2[%c0_3, %c0_4] : memref<16x9xf32, #tpu.memory_space<vmem>>, vector<16x9xf32>
    %c0_5 = arith.constant 0 : index
    %c0_6 = arith.constant 0 : index
    %5 = vector.load %arg3[%c0_5, %c0_6] : memref<16x1xf32, #tpu.memory_space<vmem>>, vector<16x1xf32>
    %c0_7 = arith.constant 0 : index
    %c0_8 = arith.constant 0 : index
    %6 = vector.load %arg4[%c0_7, %c0_8] : memref<2x1024xf32, #tpu.memory_space<vmem>>, vector<1x1024xf32>
    %c1 = arith.constant 1 : index
    %c0_9 = arith.constant 0 : index
    %7 = vector.load %arg4[%c1, %c0_9] : memref<2x1024xf32, #tpu.memory_space<vmem>>, vector<1x1024xf32>
    %c0_10 = arith.constant 0 : index
    %c0_11 = arith.constant 0 : index
    %8 = vector.load %arg5[%c0_10, %c0_11] : memref<1024x32xf32, #tpu.memory_space<vmem>>, vector<1024x32xf32>
    %c0_12 = arith.constant 0 : index
    %c0_13 = arith.constant 0 : index
    %9 = vector.load %arg7[%c0_12, %c0_13] : memref<1x128xf32, #tpu.memory_space<vmem>>, vector<1x128xf32>
    %10 = tpu.iota {dimensions = array<i32: 1>} : vector<1x128xi32>
    %c0_i32 = arith.constant 0 : i32
    %11 = arith.index_cast %c0_i32 : i32 to index
    %c0_14 = arith.constant 0 : index
    %c0_15 = arith.constant 0 : index
    %12 = vector.load %arg1[%11, %c0_14, %c0_15] : memref<2x1x1024xf32, #tpu.memory_space<vmem>>, vector<1x1x1024xf32>
    %13 = vector.shape_cast %12 : vector<1x1x1024xf32> to vector<1x1024xf32>
    %c0_16 = arith.constant 0 : index
    %c128 = arith.constant 128 : index
    %14 = vector.load %arg9[%c0_16, %c128] : memref<1x1280xf32, #tpu.memory_space<vmem>>, vector<1x1024xf32>
    tpu.vector_store %arg9[%c0_16, %c128], %13 {strides = array<i32>} : memref<1x1280xf32, #tpu.memory_space<vmem>>, vector<1x1024xf32>,
    %cst_17 = arith.constant 0.000000e+00 : f32
    %15 = vector.broadcast %cst_17 : f32 to vector<16x1024xf32>
    %c0_18 = arith.constant 0 : index
    %c95 = arith.constant 95 : index
    %16 = vector.load %arg9[%c0_18, %c95] : memref<1x1280xf32, #tpu.memory_space<vmem>>, vector<1x1024xf32>
    %17 = arith.mulf %16, %6 : vector<1x1024xf32>
    %18 = vector.extract_strided_slice %4 {offsets = [0, 0], sizes = [16, 1], strides = [1, 1]} : vector<16x9xf32> to vector<16x1xf32>
    %19 = vector.broadcast %18 : vector<16x1xf32> to vector<16x1024xf32>
    %20 = vector.broadcast %17 : vector<1x1024xf32> to vector<16x1024xf32>
    %21 = arith.mulf %19, %20 : vector<16x1024xf32>
    %22 = arith.addf %15, %21 : vector<16x1024xf32>
    %c0_19 = arith.constant 0 : index
    %c96 = arith.constant 96 : index
    %23 = vector.load %arg9[%c0_19, %c96] : memref<1x1280xf32, #tpu.memory_space<vmem>>, vector<1x1024xf32>
    %24 = vector.extract_strided_slice %4 {offsets = [0, 1], sizes = [16, 1], strides = [1, 1]} : vector<16x9xf32> to vector<16x1xf32>
    %25 = vector.broadcast %24 : vector<16x1xf32> to vector<16x1024xf32>
    %26 = vector.broadcast %23 : vector<1x1024xf32> to vector<16x1024xf32>
    %27 = arith.mulf %25, %26 : vector<16x1024xf32>
    %28 = arith.addf %22, %27 : vector<16x1024xf32>
    %c0_20 = arith.constant 0 : index
    %c97 = arith.constant 97 : index
    %29 = vector.load %arg9[%c0_20, %c97] : memref<1x1280xf32, #tpu.memory_space<vmem>>, vector<1x1024xf32>
    %30 = arith.mulf %29, %7 : vector<1x1024xf32>
    %31 = vector.extract_strided_slice %4 {offsets = [0, 2], sizes = [16, 1], strides = [1, 1]} : vector<16x9xf32> to vector<16x1xf32>
    %32 = vector.broadcast %31 : vector<16x1xf32> to vector<16x1024xf32>
    %33 = vector.broadcast %30 : vector<1x1024xf32> to vector<16x1024xf32>
    %34 = arith.mulf %32, %33 : vector<16x1024xf32>
    %35 = arith.addf %28, %34 : vector<16x1024xf32>
    %c0_21 = arith.constant 0 : index
    %c127 = arith.constant 127 : index
    %36 = vector.load %arg9[%c0_21, %c127] : memref<1x1280xf32, #tpu.memory_space<vmem>>, vector<1x1024xf32>
    %37 = arith.mulf %36, %6 : vector<1x1024xf32>
    %38 = vector.extract_strided_slice %4 {offsets = [0, 3], sizes = [16, 1], strides = [1, 1]} : vector<16x9xf32> to vector<16x1xf32>
    %39 = vector.broadcast %38 : vector<16x1xf32> to vector<16x1024xf32>
    %40 = vector.broadcast %37 : vector<1x1024xf32> to vector<16x1024xf32>
    %41 = arith.mulf %39, %40 : vector<16x1024xf32>
    %42 = arith.addf %35, %41 : vector<16x1024xf32>
    %c0_22 = arith.constant 0 : index
    %c128_23 = arith.constant 128 : index
    %43 = vector.load %arg9[%c0_22, %c128_23] : memref<1x1280xf32, #tpu.memory_space<vmem>>, vector<1x1024xf32>
    %44 = vector.extract_strided_slice %4 {offsets = [0, 4], sizes = [16, 1], strides = [1, 1]} : vector<16x9xf32> to vector<16x1xf32>
    %45 = vector.broadcast %44 : vector<16x1xf32> to vector<16x1024xf32>
    %46 = vector.broadcast %43 : vector<1x1024xf32> to vector<16x1024xf32>
    %47 = arith.mulf %45, %46 : vector<16x1024xf32>
    %48 = arith.addf %42, %47 : vector<16x1024xf32>
    %c0_24 = arith.constant 0 : index
    %c129 = arith.constant 129 : index
    %49 = vector.load %arg9[%c0_24, %c129] : memref<1x1280xf32, #tpu.memory_space<vmem>>, vector<1x1024xf32>
    %50 = arith.mulf %49, %7 : vector<1x1024xf32>
    %51 = vector.extract_strided_slice %4 {offsets = [0, 5], sizes = [16, 1], strides = [1, 1]} : vector<16x9xf32> to vector<16x1xf32>
    %52 = vector.broadcast %51 : vector<16x1xf32> to vector<16x1024xf32>
    %53 = vector.broadcast %50 : vector<1x1024xf32> to vector<16x1024xf32>
    %54 = arith.mulf %52, %53 : vector<16x1024xf32>
    %55 = arith.addf %48, %54 : vector<16x1024xf32>
    %c0_25 = arith.constant 0 : index
    %c159 = arith.constant 159 : index
    %56 = vector.load %arg9[%c0_25, %c159] : memref<1x1280xf32, #tpu.memory_space<vmem>>, vector<1x1024xf32>
    %57 = arith.mulf %56, %6 : vector<1x1024xf32>
    %58 = vector.extract_strided_slice %4 {offsets = [0, 6], sizes = [16, 1], strides = [1, 1]} : vector<16x9xf32> to vector<16x1xf32>
    %59 = vector.broadcast %58 : vector<16x1xf32> to vector<16x1024xf32>
    %60 = vector.broadcast %57 : vector<1x1024xf32> to vector<16x1024xf32>
    %61 = arith.mulf %59, %60 : vector<16x1024xf32>
    %62 = arith.addf %55, %61 : vector<16x1024xf32>
    %c0_26 = arith.constant 0 : index
    %c160 = arith.constant 160 : index
    %63 = vector.load %arg9[%c0_26, %c160] : memref<1x1280xf32, #tpu.memory_space<vmem>>, vector<1x1024xf32>
    %64 = vector.extract_strided_slice %4 {offsets = [0, 7], sizes = [16, 1], strides = [1, 1]} : vector<16x9xf32> to vector<16x1xf32>
    %65 = vector.broadcast %64 : vector<16x1xf32> to vector<16x1024xf32>
    %66 = vector.broadcast %63 : vector<1x1024xf32> to vector<16x1024xf32>
    %67 = arith.mulf %65, %66 : vector<16x1024xf32>
    %68 = arith.addf %62, %67 : vector<16x1024xf32>
    %c0_27 = arith.constant 0 : index
    %c161 = arith.constant 161 : index
    %69 = vector.load %arg9[%c0_27, %c161] : memref<1x1280xf32, #tpu.memory_space<vmem>>, vector<1x1024xf32>
    %70 = arith.mulf %69, %7 : vector<1x1024xf32>
    %71 = vector.extract_strided_slice %4 {offsets = [0, 8], sizes = [16, 1], strides = [1, 1]} : vector<16x9xf32> to vector<16x1xf32>
    %72 = vector.broadcast %71 : vector<16x1xf32> to vector<16x1024xf32>
    %73 = vector.broadcast %70 : vector<1x1024xf32> to vector<16x1024xf32>
    %74 = arith.mulf %72, %73 : vector<16x1024xf32>
    %75 = arith.addf %68, %74 : vector<16x1024xf32>
    %76 = vector.broadcast %5 : vector<16x1xf32> to vector<16x1024xf32>
    %77 = arith.addf %75, %76 : vector<16x1024xf32>
    %cst_28 = arith.constant 0.000000e+00 : f32
    %78 = vector.broadcast %cst_28 : f32 to vector<16x1024xf32>
    %79 = arith.maximumf %77, %78 : vector<16x1024xf32>
    %cst_29 = arith.constant dense<0.000000e+00> : vector<16x32xf32>
    %80 = tpu.matmul %79, %8, %cst_29 {dimension_numbers = #tpu.dot_dimension_numbers<[1], [0], [0], [1], [0, 0, 1, 1], [], []>, precision = #tpu.contract_precision<fp32>} : vector<16x1024xf32>, vector<1024x32xf32>, vector<16x32xf32> -> vector<16x32xf32>
    %c0_30 = arith.constant 0 : index
    %c0_31 = arith.constant 0 : index
    %c0_32 = arith.constant 0 : index
    %81 = vector.load %arg6[%c0_30, %c0_31, %c0_32] : memref<2x16x32xf32, #tpu.memory_space<vmem>>, vector<1x16x32xf32>
    %82 = vector.shape_cast %81 : vector<1x16x32xf32> to vector<16x32xf32>
    %83 = arith.mulf %80, %82 : vector<16x32xf32>
    %cst_33 = arith.constant dense<0.000000e+00> : vector<16xf32>
    %84 = vector.multi_reduction <add>, %83, %cst_33 [1] : vector<16x32xf32> to vector<16xf32>
    %85 = vector.shape_cast %84 : vector<16xf32> to vector<16x1xf32>
    %cst_34 = arith.constant dense<0.000000e+00> : vector<1xf32>
    %86 = vector.multi_reduction <add>, %85, %cst_34 [0] : vector<16x1xf32> to vector<1xf32>
    %87 = vector.shape_cast %86 : vector<1xf32> to vector<1x1xf32>
    %c0_i32_35 = arith.constant 0 : i32
    %88 = vector.broadcast %c0_i32_35 : i32 to vector<1x128xi32>
    %89 = arith.cmpi eq, %10, %88 : vector<1x128xi32>
    %cst_36 = arith.constant 0.000000e+00 : f32
    %90 = vector.shape_cast %87 : vector<1x1xf32> to vector<1x1xf32>
    %91 = vector.broadcast %90 : vector<1x1xf32> to vector<1x128xf32>
    %92 = vector.broadcast %cst_36 : f32 to vector<1x128xf32>
    %93 = arith.select %89, %91, %92 : vector<1x128xi1>, vector<1x128xf32>
    %94 = arith.addf %9, %93 : vector<1x128xf32>
    %c1_37 = arith.constant 1 : index
    %c0_38 = arith.constant 0 : index
    %c0_39 = arith.constant 0 : index
    %95 = vector.load %arg6[%c1_37, %c0_38, %c0_39] : memref<2x16x32xf32, #tpu.memory_space<vmem>>, vector<1x16x32xf32>
    %96 = vector.shape_cast %95 : vector<1x16x32xf32> to vector<16x32xf32>
    %97 = arith.mulf %80, %96 : vector<16x32xf32>
    %cst_40 = arith.constant dense<0.000000e+00> : vector<16xf32>
    %98 = vector.multi_reduction <add>, %97, %cst_40 [1] : vector<16x32xf32> to vector<16xf32>
    %99 = vector.shape_cast %98 : vector<16xf32> to vector<16x1xf32>
    %cst_41 = arith.constant dense<0.000000e+00> : vector<1xf32>
    %100 = vector.multi_reduction <add>, %99, %cst_41 [0] : vector<16x1xf32> to vector<1xf32>
    %101 = vector.shape_cast %100 : vector<1xf32> to vector<1x1xf32>
    %c1_i32 = arith.constant 1 : i32
    %102 = vector.broadcast %c1_i32 : i32 to vector<1x128xi32>
    %103 = arith.cmpi eq, %10, %102 : vector<1x128xi32>
    %cst_42 = arith.constant 0.000000e+00 : f32
    %104 = vector.shape_cast %101 : vector<1x1xf32> to vector<1x1xf32>
    %105 = vector.broadcast %104 : vector<1x1xf32> to vector<1x128xf32>
    %106 = vector.broadcast %cst_42 : f32 to vector<1x128xf32>
    %107 = arith.select %103, %105, %106 : vector<1x128xi1>, vector<1x128xf32>
    %108 = arith.addf %94, %107 : vector<1x128xf32>
    %109 = arith.index_cast %c0_i32 : i32 to index
    %c0_43 = arith.constant 0 : index
    %c0_44 = arith.constant 0 : index
    %110 = vector.load %arg8[%109, %c0_43, %c0_44] : memref<2x1x128xf32, #tpu.memory_space<vmem>>, vector<1x1x128xf32>
    %111 = vector.shape_cast %110 : vector<1x1x128xf32> to vector<1x128xf32>
    %112 = vector.shape_cast %108 : vector<1x128xf32> to vector<1x1x128xf32>
    tpu.vector_store %arg8[%109, %c0_43, %c0_44], %112 {strides = array<i32>} : memref<2x1x128xf32, #tpu.memory_space<vmem>>, vector<1x1x128xf32>,
    %c1_i32_45 = arith.constant 1 : i32
    %113 = arith.index_cast %c1_i32_45 : i32 to index
    %c0_46 = arith.constant 0 : index
    %c0_47 = arith.constant 0 : index
    %114 = vector.load %arg1[%113, %c0_46, %c0_47] : memref<2x1x1024xf32, #tpu.memory_space<vmem>>, vector<1x1x1024xf32>
    %115 = vector.shape_cast %114 : vector<1x1x1024xf32> to vector<1x1024xf32>
    %c0_48 = arith.constant 0 : index
    %c128_49 = arith.constant 128 : index
    %116 = vector.load %arg9[%c0_48, %c128_49] : memref<1x1280xf32, #tpu.memory_space<vmem>>, vector<1x1024xf32>
    tpu.vector_store %arg9[%c0_48, %c128_49], %115 {strides = array<i32>} : memref<1x1280xf32, #tpu.memory_space<vmem>>, vector<1x1024xf32>,
    %cst_50 = arith.constant 0.000000e+00 : f32
    %117 = vector.broadcast %cst_50 : f32 to vector<16x1024xf32>
    %c0_51 = arith.constant 0 : index
    %c95_52 = arith.constant 95 : index
    %118 = vector.load %arg9[%c0_51, %c95_52] : memref<1x1280xf32, #tpu.memory_space<vmem>>, vector<1x1024xf32>
    %119 = arith.mulf %118, %6 : vector<1x1024xf32>
    %120 = vector.extract_strided_slice %4 {offsets = [0, 0], sizes = [16, 1], strides = [1, 1]} : vector<16x9xf32> to vector<16x1xf32>
    %121 = vector.broadcast %120 : vector<16x1xf32> to vector<16x1024xf32>
    %122 = vector.broadcast %119 : vector<1x1024xf32> to vector<16x1024xf32>
    %123 = arith.mulf %121, %122 : vector<16x1024xf32>
    %124 = arith.addf %117, %123 : vector<16x1024xf32>
    %c0_53 = arith.constant 0 : index
    %c96_54 = arith.constant 96 : index
    %125 = vector.load %arg9[%c0_53, %c96_54] : memref<1x1280xf32, #tpu.memory_space<vmem>>, vector<1x1024xf32>
    %126 = vector.extract_strided_slice %4 {offsets = [0, 1], sizes = [16, 1], strides = [1, 1]} : vector<16x9xf32> to vector<16x1xf32>
    %127 = vector.broadcast %126 : vector<16x1xf32> to vector<16x1024xf32>
    %128 = vector.broadcast %125 : vector<1x1024xf32> to vector<16x1024xf32>
    %129 = arith.mulf %127, %128 : vector<16x1024xf32>
    %130 = arith.addf %124, %129 : vector<16x1024xf32>
    %c0_55 = arith.constant 0 : index
    %c97_56 = arith.constant 97 : index
    %131 = vector.load %arg9[%c0_55, %c97_56] : memref<1x1280xf32, #tpu.memory_space<vmem>>, vector<1x1024xf32>
    %132 = arith.mulf %131, %7 : vector<1x1024xf32>
    %133 = vector.extract_strided_slice %4 {offsets = [0, 2], sizes = [16, 1], strides = [1, 1]} : vector<16x9xf32> to vector<16x1xf32>
    %134 = vector.broadcast %133 : vector<16x1xf32> to vector<16x1024xf32>
    %135 = vector.broadcast %132 : vector<1x1024xf32> to vector<16x1024xf32>
    %136 = arith.mulf %134, %135 : vector<16x1024xf32>
    %137 = arith.addf %130, %136 : vector<16x1024xf32>
    %c0_57 = arith.constant 0 : index
    %c127_58 = arith.constant 127 : index
    %138 = vector.load %arg9[%c0_57, %c127_58] : memref<1x1280xf32, #tpu.memory_space<vmem>>, vector<1x1024xf32>
    %139 = arith.mulf %138, %6 : vector<1x1024xf32>
    %140 = vector.extract_strided_slice %4 {offsets = [0, 3], sizes = [16, 1], strides = [1, 1]} : vector<16x9xf32> to vector<16x1xf32>
    %141 = vector.broadcast %140 : vector<16x1xf32> to vector<16x1024xf32>
    %142 = vector.broadcast %139 : vector<1x1024xf32> to vector<16x1024xf32>
    %143 = arith.mulf %141, %142 : vector<16x1024xf32>
    %144 = arith.addf %137, %143 : vector<16x1024xf32>
    %c0_59 = arith.constant 0 : index
    %c128_60 = arith.constant 128 : index
    %145 = vector.load %arg9[%c0_59, %c128_60] : memref<1x1280xf32, #tpu.memory_space<vmem>>, vector<1x1024xf32>
    %146 = vector.extract_strided_slice %4 {offsets = [0, 4], sizes = [16, 1], strides = [1, 1]} : vector<16x9xf32> to vector<16x1xf32>
    %147 = vector.broadcast %146 : vector<16x1xf32> to vector<16x1024xf32>
    %148 = vector.broadcast %145 : vector<1x1024xf32> to vector<16x1024xf32>
    %149 = arith.mulf %147, %148 : vector<16x1024xf32>
    %150 = arith.addf %144, %149 : vector<16x1024xf32>
    %c0_61 = arith.constant 0 : index
    %c129_62 = arith.constant 129 : index
    %151 = vector.load %arg9[%c0_61, %c129_62] : memref<1x1280xf32, #tpu.memory_space<vmem>>, vector<1x1024xf32>
    %152 = arith.mulf %151, %7 : vector<1x1024xf32>
    %153 = vector.extract_strided_slice %4 {offsets = [0, 5], sizes = [16, 1], strides = [1, 1]} : vector<16x9xf32> to vector<16x1xf32>
    %154 = vector.broadcast %153 : vector<16x1xf32> to vector<16x1024xf32>
    %155 = vector.broadcast %152 : vector<1x1024xf32> to vector<16x1024xf32>
    %156 = arith.mulf %154, %155 : vector<16x1024xf32>
    %157 = arith.addf %150, %156 : vector<16x1024xf32>
    %c0_63 = arith.constant 0 : index
    %c159_64 = arith.constant 159 : index
    %158 = vector.load %arg9[%c0_63, %c159_64] : memref<1x1280xf32, #tpu.memory_space<vmem>>, vector<1x1024xf32>
    %159 = arith.mulf %158, %6 : vector<1x1024xf32>
    %160 = vector.extract_strided_slice %4 {offsets = [0, 6], sizes = [16, 1], strides = [1, 1]} : vector<16x9xf32> to vector<16x1xf32>
    %161 = vector.broadcast %160 : vector<16x1xf32> to vector<16x1024xf32>
    %162 = vector.broadcast %159 : vector<1x1024xf32> to vector<16x1024xf32>
    %163 = arith.mulf %161, %162 : vector<16x1024xf32>
    %164 = arith.addf %157, %163 : vector<16x1024xf32>
    %c0_65 = arith.constant 0 : index
    %c160_66 = arith.constant 160 : index
    %165 = vector.load %arg9[%c0_65, %c160_66] : memref<1x1280xf32, #tpu.memory_space<vmem>>, vector<1x1024xf32>
    %166 = vector.extract_strided_slice %4 {offsets = [0, 7], sizes = [16, 1], strides = [1, 1]} : vector<16x9xf32> to vector<16x1xf32>
    %167 = vector.broadcast %166 : vector<16x1xf32> to vector<16x1024xf32>
    %168 = vector.broadcast %165 : vector<1x1024xf32> to vector<16x1024xf32>
    %169 = arith.mulf %167, %168 : vector<16x1024xf32>
    %170 = arith.addf %164, %169 : vector<16x1024xf32>
    %c0_67 = arith.constant 0 : index
    %c161_68 = arith.constant 161 : index
    %171 = vector.load %arg9[%c0_67, %c161_68] : memref<1x1280xf32, #tpu.memory_space<vmem>>, vector<1x1024xf32>
    %172 = arith.mulf %171, %7 : vector<1x1024xf32>
    %173 = vector.extract_strided_slice %4 {offsets = [0, 8], sizes = [16, 1], strides = [1, 1]} : vector<16x9xf32> to vector<16x1xf32>
    %174 = vector.broadcast %173 : vector<16x1xf32> to vector<16x1024xf32>
    %175 = vector.broadcast %172 : vector<1x1024xf32> to vector<16x1024xf32>
    %176 = arith.mulf %174, %175 : vector<16x1024xf32>
    %177 = arith.addf %170, %176 : vector<16x1024xf32>
    %178 = vector.broadcast %5 : vector<16x1xf32> to vector<16x1024xf32>
    %179 = arith.addf %177, %178 : vector<16x1024xf32>
    %cst_69 = arith.constant 0.000000e+00 : f32
    %180 = vector.broadcast %cst_69 : f32 to vector<16x1024xf32>
    %181 = arith.maximumf %179, %180 : vector<16x1024xf32>
    %cst_70 = arith.constant dense<0.000000e+00> : vector<16x32xf32>
    %182 = tpu.matmul %181, %8, %cst_70 {dimension_numbers = #tpu.dot_dimension_numbers<[1], [0], [0], [1], [0, 0, 1, 1], [], []>, precision = #tpu.contract_precision<fp32>} : vector<16x1024xf32>, vector<1024x32xf32>, vector<16x32xf32> -> vector<16x32xf32>
    %c0_71 = arith.constant 0 : index
    %c0_72 = arith.constant 0 : index
    %c0_73 = arith.constant 0 : index
    %183 = vector.load %arg6[%c0_71, %c0_72, %c0_73] : memref<2x16x32xf32, #tpu.memory_space<vmem>>, vector<1x16x32xf32>
    %184 = vector.shape_cast %183 : vector<1x16x32xf32> to vector<16x32xf32>
    %185 = arith.mulf %182, %184 : vector<16x32xf32>
    %cst_74 = arith.constant dense<0.000000e+00> : vector<16xf32>
    %186 = vector.multi_reduction <add>, %185, %cst_74 [1] : vector<16x32xf32> to vector<16xf32>
    %187 = vector.shape_cast %186 : vector<16xf32> to vector<16x1xf32>
    %cst_75 = arith.constant dense<0.000000e+00> : vector<1xf32>
    %188 = vector.multi_reduction <add>, %187, %cst_75 [0] : vector<16x1xf32> to vector<1xf32>
    %189 = vector.shape_cast %188 : vector<1xf32> to vector<1x1xf32>
    %c0_i32_76 = arith.constant 0 : i32
    %190 = vector.broadcast %c0_i32_76 : i32 to vector<1x128xi32>
    %191 = arith.cmpi eq, %10, %190 : vector<1x128xi32>
    %cst_77 = arith.constant 0.000000e+00 : f32
    %192 = vector.shape_cast %189 : vector<1x1xf32> to vector<1x1xf32>
    %193 = vector.broadcast %192 : vector<1x1xf32> to vector<1x128xf32>
    %194 = vector.broadcast %cst_77 : f32 to vector<1x128xf32>
    %195 = arith.select %191, %193, %194 : vector<1x128xi1>, vector<1x128xf32>
    %196 = arith.addf %9, %195 : vector<1x128xf32>
    %c1_78 = arith.constant 1 : index
    %c0_79 = arith.constant 0 : index
    %c0_80 = arith.constant 0 : index
    %197 = vector.load %arg6[%c1_78, %c0_79, %c0_80] : memref<2x16x32xf32, #tpu.memory_space<vmem>>, vector<1x16x32xf32>
    %198 = vector.shape_cast %197 : vector<1x16x32xf32> to vector<16x32xf32>
    %199 = arith.mulf %182, %198 : vector<16x32xf32>
    %cst_81 = arith.constant dense<0.000000e+00> : vector<16xf32>
    %200 = vector.multi_reduction <add>, %199, %cst_81 [1] : vector<16x32xf32> to vector<16xf32>
    %201 = vector.shape_cast %200 : vector<16xf32> to vector<16x1xf32>
    %cst_82 = arith.constant dense<0.000000e+00> : vector<1xf32>
    %202 = vector.multi_reduction <add>, %201, %cst_82 [0] : vector<16x1xf32> to vector<1xf32>
    %203 = vector.shape_cast %202 : vector<1xf32> to vector<1x1xf32>
    %c1_i32_83 = arith.constant 1 : i32
    %204 = vector.broadcast %c1_i32_83 : i32 to vector<1x128xi32>
    %205 = arith.cmpi eq, %10, %204 : vector<1x128xi32>
    %cst_84 = arith.constant 0.000000e+00 : f32
    %206 = vector.shape_cast %203 : vector<1x1xf32> to vector<1x1xf32>
    %207 = vector.broadcast %206 : vector<1x1xf32> to vector<1x128xf32>
    %208 = vector.broadcast %cst_84 : f32 to vector<1x128xf32>
    %209 = arith.select %205, %207, %208 : vector<1x128xi1>, vector<1x128xf32>
    %210 = arith.addf %196, %209 : vector<1x128xf32>
    %211 = arith.index_cast %c1_i32_45 : i32 to index
    %c0_85 = arith.constant 0 : index
    %c0_86 = arith.constant 0 : index
    %212 = vector.load %arg8[%211, %c0_85, %c0_86] : memref<2x1x128xf32, #tpu.memory_space<vmem>>, vector<1x1x128xf32>
    %213 = vector.shape_cast %212 : vector<1x1x128xf32> to vector<1x128xf32>
    %214 = vector.shape_cast %210 : vector<1x128xf32> to vector<1x1x128xf32>
    tpu.vector_store %arg8[%211, %c0_85, %c0_86], %214 {strides = array<i32>} : memref<2x1x128xf32, #tpu.memory_space<vmem>>, vector<1x1x128xf32>,
    %c2_i32 = arith.constant 2 : i32
    return
  }
  func.func @transform_0(%arg0: i32) -> (i32, i32, i32) {
    %c0_i32 = arith.constant 0 : i32
    %c0_i32_0 = arith.constant 0 : i32
    %c0_i32_1 = arith.constant 0 : i32
    return %arg0, %c0_i32, %c0_i32_0 : i32, i32, i32
  }
  func.func @transform_1(%arg0: i32) -> (i32, i32) {
    %c0_i32 = arith.constant 0 : i32
    %c0_i32_0 = arith.constant 0 : i32
    %c0_i32_1 = arith.constant 0 : i32
    return %c0_i32, %c0_i32_0 : i32, i32
  }
  func.func @transform_2(%arg0: i32) -> (i32, i32) {
    %c0_i32 = arith.constant 0 : i32
    %c0_i32_0 = arith.constant 0 : i32
    %c0_i32_1 = arith.constant 0 : i32
    return %c0_i32, %c0_i32_0 : i32, i32
  }
  func.func @transform_3(%arg0: i32) -> (i32, i32) {
    %c0_i32 = arith.constant 0 : i32
    %c0_i32_0 = arith.constant 0 : i32
    %c0_i32_1 = arith.constant 0 : i32
    return %c0_i32, %c0_i32_0 : i32, i32
  }
  func.func @transform_4(%arg0: i32) -> (i32, i32) {
    %c0_i32 = arith.constant 0 : i32
    %c0_i32_0 = arith.constant 0 : i32
    %c0_i32_1 = arith.constant 0 : i32
    return %c0_i32, %c0_i32_0 : i32, i32
  }
  func.func @transform_5(%arg0: i32) -> (i32, i32, i32) {
    %c0_i32 = arith.constant 0 : i32
    %c0_i32_0 = arith.constant 0 : i32
    %c0_i32_1 = arith.constant 0 : i32
    %c0_i32_2 = arith.constant 0 : i32
    return %c0_i32, %c0_i32_0, %c0_i32_1 : i32, i32, i32
  }
  func.func @transform_6(%arg0: i32) -> (i32, i32) {
    %c0_i32 = arith.constant 0 : i32
    %c0_i32_0 = arith.constant 0 : i32
    %c0_i32_1 = arith.constant 0 : i32
    return %c0_i32, %c0_i32_0 : i32, i32
  }
  func.func @transform_7(%arg0: i32) -> (i32, i32, i32) {
    %c0_i32 = arith.constant 0 : i32
    %c0_i32_0 = arith.constant 0 : i32
    %c0_i32_1 = arith.constant 0 : i32
    return %arg0, %c0_i32, %c0_i32_0 : i32, i32, i32
  }
}

</mosaic_0001>

<bundles_post_ra>
// kernel: _fused_call.1
= control target key start
LH: loop header
LB: loop body
LE: loop exit
PB: predicated region body
PF: predicated region fallthrough
CT: control target
= control target key end

     0   :  { %12 = vsyncpa [#allocation4], 0  ;;  %s20428_s0 = inlined_call_operand.vmem [shape: f32[4,1,1024], index: 0, kind: input, shape index: {}]   ;;  %s20429_s1 = inlined_call_operand.vmem [shape: f32[16,9], index: 1, kind: input, shape index: {}]   ;;  %s20430_s2 = inlined_call_operand.vmem [shape: f32[16,1], index: 2, kind: input, shape index: {}]   ;;  %s20431_s3 = inlined_call_operand.vmem [shape: f32[2,1024], index: 3, kind: input, shape index: {}]   ;;  %s20432_s4 = inlined_call_operand.vmem [shape: f32[1024,32], index: 4, kind: input, shape index: {}]   ;;  %s20433_s5 = inlined_call_operand.vmem [shape: f32[2,16,32], index: 5, kind: input, shape index: {}]   ;;  %s20434_s6 = inlined_call_operand.vmem [shape: f32[1,128], index: 6, kind: input, shape index: {}]   ;;  %s20435_s7 = inlined_call_operand.hbm [shape: f32[4,1,128], index: 7, kind: output, shape index: {}]  }
   0x1   :  { %14 = vsyncpa [#allocation4 + $0x1], 0  ;;  %s13269_s24 = smov 0   ;;  %s13271_s25 = smov 0  }
   0x2   :  { %s13273_s26 = smov 0   ;;  %s13275_s27 = smov 0  }
   0x3 LB: > { %s13290_s28 = sadd.s32 4294967295, %s13203_s27   ;;  %s11214_s29 = sadd.s32 4294967294, %s13203_s27   ;;  %s13203_s27 = sphi %s13275_s27, %s23694_s27   ;;  %s13199_s26 = sphi %s13273_s26, %s23693_s26   ;;  %s13195_s25 = sphi %s13271_s25, %s23692_s25   ;;  %s13191_s24 = sphi %s13269_s24, %s23691_s24  }
   0x4   : > { %s13294_s30 = sadd.s32 1, %s13203_s27   ;;  %s179_s8 = sadd.s32 1, %s13199_s26 }
   0x5   : > { %s176_s9 = ssub.s32 %s13203_s27, %s13294_s30  ;;  %p189_p0 = scmp.ne.s32.totalorder %s13199_s26, %s13195_s25 }
   0x6   : > { %p177_p1 = scmp.eq.s32.totalorder %s176_s9, 0  ;;  %p190_p2 = scmp.eq.s32.totalorder %s13290_s28, 1 }
   0x7   : > { %p195_p3 = scmp.ne.s32.totalorder %s13195_s25, %s13191_s24  ;;  %p196_p4 = scmp.eq.s32.totalorder %s11214_s29, 1 }
   0x8   : > { %s13305_s10 = scalar_select %p177_p1, %s13199_s26, %s179_s8  }
   0x9   : > { %p13307_p5 = por %p190_p2, %p189_p0  ;;  %p13311_p6 = por %p196_p4, %p195_p3 }
   0xa   : > { %p11217_p7 = scmp.ge.s32.totalorder %s13203_s27, 1  ;;  %p241_p8 = scmp.lt.s32.totalorder %s13203_s27, 3 }
   0xc   : > { %p242_p9 = pnand %p11217_p7, %p241_p8 }
   0xe   : > { %245 = sbr.rel (%p242_p9) target bundleno = 2172 (0x87c), region = 48 }
  0x13   : > { %v11221_v0 = vld [vmem:[%s20431_s3 + $0x1] ss:$2 sm:$0xff]  ;;  %v20436_v2 = vlaneseq  ;;  %v13205_v3 = vmov 2   ;;  %s13206_s17 = smov 97   ;;  %v13207_v4 = vmov 3   ;;  %s11219_s20 = sshll.u32 %s13290_s28, 1 }
  0x14   : > { %v286_v1 = vld [vmem:[%s20429_s1] sm:$0xff]  ;;  %13120 = vset.pattern.permute.xlu1 %v13205_v3  ;;  %712 = vrot.lane.b32.xlu0 %v11221_v0, %s13206_s17  ;;  %p274_p10 = scmp.lt.s32.totalorder %s11219_s20, 3  ;;  %v13208_v6 = vmov 0.0   ;;  %s13209_s21 = smov 127   ;;  %v13210_v7 = vmov 4   ;;  %v13211_v8 = vmov 5  }
  0x15   : > { %722 = vperm.xlu1 %13120, %v286_v1   ;;  %13121 = vset.pattern.permute.xlu0 %v13207_v4  ;;  %v13326_v5 = vld [vmem:[%s20431_s3] ss:$2 sm:$0xff]  ;;  %vm282_vm0 = vcmp.lt.s32.totalorder %v20436_v2, 128  ;;  %v13212_v10 = vmov 1   ;;  %s20459_s9 = smov 1   ;;  %v13214_v11 = vmov 6  }
  0x16   : > { %284 = vst.msk [vmem:[#allocation2] sm:$0x1] %vm282_vm0, %v13208_v6  ;;  %285 = vst.msk [vmem:[#allocation2 + $0x9] sm:$0x1] %vm282_vm0, %v13208_v6  ;;  %s23696_s20 = smov (!%p274_p10, %s11219_s20), 3  ;;  %v287_v12 = vld [vmem:[%s20429_s1 + $0x8] sm:$0xff] }
  0x17   : > { %s11220_s22 = sshll.u32 %s23696_s20, 3  ;;  %s13215_s15 = smov 31   ;;  %v13217_v16 = vmov 8   ;;  %v13218_v17 = vmov 7   ;;  %v13219_v18 = vmov 0   ;;  %v288_v19 = vld [vmem:[%s20430_s2] sm:$0xff] }
  0x18   : > { %910 = vperm.xlu0 %13121, %v286_v1   ;;  %s277_s8 = scalar_lea.vmem %s20428_s0, %s11220_s22  ;;  %s13216_s16 = smov 33   ;;  %v13358_v23 = vshrl.u32 %v20436_v2, 7  ;;  %vm715_vm1 = vcmask 793600   ;;  %vm658_vm2 = vcmask 1039360   ;;  %vm1258_vm3 = vcmask 7168  }
  0x19   : > { %901 = vrot.lane.b32.xlu1 %v13326_v5, %s13209_s21  ;;  %v13335_v9 = vld [vmem:[%s277_s8] sm:$0xff]  ;;  %v11224_v13 = vld [vmem:[%s277_s8 + $0x8] sm:$0xff]  ;;  %s13220_s19 = smov 95   ;;  %s20460_s20 = smov 126   ;;  %vm1447_vm4 = vcmask 252928   ;;  %vm1816_vm5 = vcmask 269312  }
  0x1a   : > { %13122 = vset.pattern.permute.xlu1 %v13210_v7  ;;  %21733 = vst [vmem:[#allocation6_spill] sm:$0xff] %v13335_v9  ;;  %425 = vst [vmem:[#allocation2 + $0x1] sm:$0xff] %v13335_v9  ;;  %v13363_v25 = vsub.s32 1, %v13358_v23  ;;  %v13366_v26 = vsub.s32 3, %v13358_v23  ;;  %v13384_v33 = vsub.s32 2, %v13358_v23  ;;  %v13405_v40 = vsub.s32 0, %v13358_v23 }
  0x1b   : > { %s13222_s22 = smov 96   ;;  %s13223_s23 = smov 94   ;;  %vm432_vm6 = vcmask 777216   ;;  %vm848_vm7 = vcmask 1031168   ;;  %vm1036_vm8 = vcmask 785408   ;;  %vm1391_vm9 = vcmask 769024  }
  0x1c   : > { %13123 = vset.pattern.permute.xlu0 %v13211_v8  ;;  %21739 = vst [vmem:[#allocation12_spill] sm:$0xff] %v13363_v25  ;;  %21740 = vst [vmem:[#allocation13_spill] sm:$0xff] %v13366_v26  ;;  %v13465_v59 = vrot.slane %v13335_v9, %v13405_v40  ;;  %s13224_s29 = smov 64   ;;  %s13225_s8 = smov 63   ;;  %vm1580_vm10 = vcmask 523264   ;;  %vm1760_vm11 = vcmask 515072  }
  0x1d   : > { %1265 = vperm.xlu0 %13123, %v286_v1   ;;  %1091 = vperm.xlu1 %13122, %v286_v1   ;;  %21744 = vst [vmem:[#allocation17_spill] sm:$0xff] %v13384_v33  ;;  %21748 = vst [vmem:[#allocation21_spill] sm:$0xff] %v13405_v40  ;;  %s13226_s13 = smov 62   ;;  %vm1949_vm12 = vcmask 506880   ;;  %s21916_s14 = smov 126   ;;  %vm5810_vm13 = vcmask 261120  }
  0x21   : > { %13124 = vset.pattern.permute.xlu0 %v13212_v10  ;;  %1255 = vrot.lane.b32.xlu1 %v11221_v0, %s20459_s9  ;;  %v13343_v14 = vld [vmem:[#allocation2] sm:$0xff]  ;;  %v13345_v15 = vld [vmem:[#allocation2 + $0x8] sm:$0x1]  ;;  %s11233_s9 = sshll.u32 %s13290_s28, 5 }
  0x22   : > { %532 = vperm.xlu0 %13124, %v286_v1   ;;  %13125 = vset.pattern.permute.xlu1 %v13214_v11  ;;  %21734 = vst [vmem:[#allocation7_spill] sm:$0xff] %v13343_v14  ;;  %21735 = vst [vmem:[#allocation8_spill] sm:$0xff] %v13345_v15  ;;  %v13375_v30 = vrot.slane %v13343_v14, %v13366_v26  ;;  %v13379_v31 = vrot.slane %v13343_v14, %v13363_v25 }
  0x23   : > { %5851 = vst [vmem:[#allocation2 + $0x1] sm:$0xff] %v11224_v13  ;;  %v13398_v38 = vrot.slane %v13343_v14, %v13384_v33  ;;  %v13425_v46 = vrot.slane %v13343_v14, %v13405_v40 }
  0x25   : > { %1444 = vrot.lane.b32.xlu1 %v13326_v5, %s13215_s15 }
  0x26   : > { %536 = vperm.xlu0 %13124, %v287_v12  }
  0x29   : > { %1454 = vperm.xlu1 %13125, %v286_v1  }
  0x2a   : > { %13129 = vset.pattern.permute.xlu0 %v13210_v7  ;;  %v13497_v7 = vrot.slane %v13335_v9, %v13384_v33 }
  0x2b   : > { %1095 = vperm.xlu0 %13129, %v287_v12  }
  0x2d   : > { %1813 = vrot.lane.b32.xlu1 %v11221_v0, %s13216_s16 }
  0x2e   : > { %13126 = vset.pattern.permute.xlu1 %v13217_v16 }
  0x2f   : > { %13130 = vset.pattern.permute.xlu0 %v13218_v17 }
  0x30   : > { %1634 = vperm.xlu0 %13130, %v286_v1  }
  0x31   : > { %1823 = vperm.xlu1 %13126, %v286_v1  }
  0x34   : > { %1638 = vperm.xlu0 %13130, %v287_v12  }
  0x35   : > { %13127 = vset.pattern.permute.xlu1 %v13205_v3 }
  0x36   : > { %726 = vperm.xlu1 %13127, %v287_v12  }
  0x38   : > { %13134 = vset.pattern.permute.xlu0 %v13219_v18 }
  0x39   : > { %440 = vperm.xlu0 %13134, %v286_v1  }
  0x3a   : > { %13128 = vset.pattern.permute.xlu1 %v13207_v4 }
  0x3b   : > { %914 = vperm.xlu1 %13128, %v287_v12  }
  0x3d   : > { %2004 = vperm.xlu0 %13134, %v288_v19  }
  0x3f   : > { %13131 = vset.pattern.permute.xlu1 %v13211_v8 }
  0x40   : > { %1269 = vperm.xlu1 %13131, %v287_v12  }
  0x41   : > { %445 = vperm.xlu0 %13134, %v287_v12  }
  0x44   : > { %13132 = vset.pattern.permute.xlu1 %v13214_v11 }
  0x45   : > { %1458 = vperm.xlu1 %13132, %v287_v12  }
  0x49   : > { %13133 = vset.pattern.permute.xlu1 %v13217_v16  ;;  %v13519_v16 = vrot.slane %v13335_v9, %v13363_v25 }
  0x4a   : > { %1827 = vperm.xlu1 %13133, %v287_v12  }
  0x4e   : > { %429 = vrot.lane.b32.xlu1 %v13326_v5, %s13220_s19 }
  0x4f   : > { %13135 = vset.pattern.permute.xlu1 %v13219_v18 }
  0x86   : > { %v713_v20 = vpop.permute.xlu0 %712 }
  0x87   : > { %v13360_v24 = vrot.slane %v713_v20, 7 }
  0x89   : > { %21738 = vst [vmem:[#allocation11_spill] sm:$0xff] %v13360_v24  ;;  %v13371_v29 = vsel %vm715_vm1, %v13360_v24, %v713_v20 }
  0x8a   : > { %21742 = vst [vmem:[#allocation15_spill] sm:$0xff] %v13371_v29  ;;  %v13388_v34 = vmul.f32 %v13371_v29, %v13343_v14 }
  0x8c   : > { %21745 = vst [vmem:[#allocation18_spill] sm:$0xff] %v13388_v34  ;;  %v13413_v42 = vrot.slane %v13388_v34, %v13363_v25  ;;  %v13431_v47 = vrot.slane %v13388_v34, %v13366_v26  ;;  %v13445_v52 = vrot.slane %v13388_v34, %v13384_v33  ;;  %v13461_v58 = vrot.slane %v13388_v34, %v13405_v40 }
  0x90   : > { %v13353_v21 = vpop.permute.xlu1 %722 }
  0x91   : > { %21736 = vst [vmem:[#allocation9_spill] sm:$0xff] %v13353_v21  ;;  %v777_v44 = vmul.f32 %v13413_v42, %v13353_v21  ;;  %v779_v49 = vmul.f32 %v13431_v47, %v13353_v21  ;;  %v778_v54 = vmul.f32 %v13445_v52, %v13353_v21  ;;  %v776_v62 = vmul.f32 %v13461_v58, %v13353_v21 }
  0x93   : > { %v13355_v22 = vpop.permute.xlu0 %910 }
  0x94   : > { %21737 = vst [vmem:[#allocation10_spill] sm:$0xff] %v13355_v22  ;;  %v902_v27 = vpop.permute.xlu1 %901 }
  0x95   : > { %v13381_v32 = vrot.slane %v902_v27, 7 }
  0x97   : > { %21743 = vst [vmem:[#allocation16_spill] sm:$0xff] %v13381_v32  ;;  %v13402_v39 = vsel %vm658_vm2, %v13381_v32, %v902_v27  ;;  %v13783_v32 = vrot.slane %v13335_v9, %v13366_v26 }
  0x98   : > { %v13368_v28 = vpop.permute.xlu0 %1265  ;;  %21747 = vst [vmem:[#allocation20_spill] sm:$0xff] %v13402_v39  ;;  %v13407_v41 = vpop.permute.xlu1 %1091  ;;  %v13417_v43 = vmul.f32 %v13402_v39, %v13343_v14 }
  0x99   : > { %21741 = vst [vmem:[#allocation14_spill] sm:$0xff] %v13368_v28  ;;  %21749 = vst [vmem:[#allocation22_spill] sm:$0xff] %v13407_v41  ;;  %v1139_v1 = vmul.f32 %v13465_v59, %v13407_v41  ;;  %v1141_v11 = vmul.f32 %v13497_v7, %v13407_v41 }
  0x9a   : > { %21750 = vst [vmem:[#allocation23_spill] sm:$0xff] %v13417_v43  ;;  %v13439_v51 = vrot.slane %v13417_v43, %v13363_v25  ;;  %v13453_v55 = vrot.slane %v13417_v43, %v13366_v26  ;;  %v13475_v63 = vrot.slane %v13417_v43, %v13384_v33  ;;  %v13501_v8 = vrot.slane %v13417_v43, %v13405_v40 }
  0x9c   : > { %v1256_v48 = vpop.permute.xlu1 %1255  ;;  %v965_v53 = vmul.f32 %v13439_v51, %v13355_v22  ;;  %v967_v61 = vmul.f32 %v13453_v55, %v13355_v22  ;;  %v966_v6 = vmul.f32 %v13475_v63, %v13355_v22  ;;  %v964_v12 = vmul.f32 %v13501_v8, %v13355_v22 }
  0x9d   : > { %v13390_v35 = vpop.permute.xlu0 %532  ;;  %v13455_v56 = vrot.slane %v1256_v48, 7 }
  0x9e   : > { %21746 = vst [vmem:[#allocation19_spill] sm:$0xff] %v13390_v35  ;;  %v589_v36 = vmul.f32 %v13375_v30, %v13390_v35  ;;  %v587_v37 = vmul.f32 %v13379_v31, %v13390_v35  ;;  %v588_v45 = vmul.f32 %v13398_v38, %v13390_v35  ;;  %v586_v50 = vmul.f32 %v13425_v46, %v13390_v35 }
  0x9f   : > { %21751 = vst [vmem:[#allocation24_spill] sm:$0xff] %v13455_v56  ;;  %v13478_v0 = vsel %vm1258_vm3, %v13455_v56, %v1256_v48 }
  0xa0   : > { %628 = vrot.lane.b32.xlu0 %v589_v36, %s13209_s21  ;;  %624 = vrot.lane.b32.xlu1 %v587_v37, %s13209_s21  ;;  %v1445_v57 = vpop.permute.xlu1 %1444  ;;  %21753 = vst [vmem:[#allocation26_spill] sm:$0xff] %v13478_v0  ;;  %v13489_v4 = vmul.f32 %v13478_v0, %v13335_v9  ;;  %v1140_v36 = vmul.f32 %v13519_v16, %v13407_v41 }
  0xa1   : > { %v13467_v60 = vrot.slane %v1445_v57, 7  ;;  %v13521_v17 = vpop.permute.xlu0 %536 }
  0xa2   : > { %21755 = vst [vmem:[#allocation28_spill] sm:$0xff] %v13489_v4  ;;  %v13515_v13 = vrot.slane %v13489_v4, %v13363_v25  ;;  %21758 = vst [vmem:[#allocation31_spill] sm:$0xff] %v13521_v17  ;;  %v13537_v37 = vrot.slane %v13489_v4, %v13405_v40 }
  0xa3   : > { %21752 = vst [vmem:[#allocation25_spill] sm:$0xff] %v13467_v60  ;;  %v13485_v3 = vsel %vm1447_vm4, %v13467_v60, %v1445_v57 }
  0xa4   : > { %814 = vrot.lane.b32.xlu0 %v777_v44, %s20460_s20  ;;  %626 = vrot.lane.b32.xlu1 %v588_v45, %s13209_s21  ;;  %21754 = vst [vmem:[#allocation27_spill] sm:$0xff] %v13485_v3  ;;  %v13491_v5 = vpop.permute.xlu1 %1454  ;;  %v13505_v10 = vmul.f32 %v13485_v3, %v13335_v9  ;;  %v1320_v27 = vmul.f32 %v13515_v13, %v13368_v28 }
  0xa5   : > { %21756 = vst [vmem:[#allocation29_spill] sm:$0xff] %v13491_v5 }
  0xa6   : > { %21757 = vst [vmem:[#allocation30_spill] sm:$0xff] %v13505_v10  ;;  %v13527_v19 = vrot.slane %v13505_v10, %v13405_v40  ;;  %v13539_v44 = vpop.permute.xlu0 %1095 }
  0xa7   : > { %21760 = vst [vmem:[#allocation33_spill] sm:$0xff] %v13539_v44 }
  0xa8   : > { %818 = vrot.lane.b32.xlu0 %v779_v49, %s20460_s20  ;;  %622 = vrot.lane.b32.xlu1 %v586_v50, %s13209_s21  ;;  %v1814_v18 = vpop.permute.xlu1 %1813  ;;  %v1508_v45 = vmul.f32 %v13527_v19, %v13491_v5  ;;  %v1319_v49 = vmul.f32 %v13537_v37, %v13368_v28  ;;  %v13553_v50 = vrot.slane %v13505_v10, %v13384_v33 }
  0xa9   : > { %v13529_v20 = vrot.slane %v1814_v18, 7 }
  0xab   : > { %21759 = vst [vmem:[#allocation32_spill] sm:$0xff] %v13529_v20  ;;  %v13547_v48 = vsel %vm1816_vm5, %v13529_v20, %v1814_v18  ;;  %v13563_v57 = vpop.permute.xlu0 %1634 }
  0xac   : > { %1002 = vrot.lane.b32.xlu0 %v965_v53, %s13222_s22  ;;  %816 = vrot.lane.b32.xlu1 %v778_v54, %s20460_s20  ;;  %21761 = vst [vmem:[#allocation34_spill] sm:$0xff] %v13547_v48  ;;  %v1285_v53 = vrot.slane %v13489_v4, %v13384_v33  ;;  %v13559_v54 = vmul.f32 %v13547_v48, %v13335_v9  ;;  %21763 = vst [vmem:[#allocation36_spill] sm:$0xff] %v13563_v57  ;;  %v13579_v18 = vpop.permute.xlu1 %1823 }
  0xad   : > { %21764 = vst [vmem:[#allocation37_spill] sm:$0xff] %v13579_v18 }
  0xae   : > { %21762 = vst [vmem:[#allocation35_spill] sm:$0xff] %v13559_v54 }
  0xb0   : > { %1006 = vrot.lane.b32.xlu0 %v967_v61, %s13222_s22  ;;  %812 = vrot.lane.b32.xlu1 %v776_v62, %s20460_s20  ;;  %v1510_v61 = vmul.f32 %v13553_v50, %v13491_v5  ;;  %v1321_v62 = vmul.f32 %v1285_v53, %v13368_v28 }
  0xb4   : > { %1171 = vrot.lane.b32.xlu0 %v1139_v1, %s13220_s19  ;;  %1004 = vrot.lane.b32.xlu1 %v966_v6, %s13222_s22  ;;  %v1470_v1 = vrot.slane %v13505_v10, %v13363_v25  ;;  %v1689_v6 = vmul.f32 %v13563_v57, %v13519_v16 }
  0xb8   : > { %1175 = vrot.lane.b32.xlu0 %v1141_v11, %s13220_s19  ;;  %1000 = vrot.lane.b32.xlu1 %v964_v12, %s13222_s22  ;;  %v13576_v11 = vrot.slane %v13559_v54, %v13363_v25  ;;  %v1509_v12 = vmul.f32 %v1470_v1, %v13491_v5 }
  0xbc   : > { %1357 = vrot.lane.b32.xlu0 %v1320_v27, %s13223_s23  ;;  %1173 = vrot.lane.b32.xlu1 %v1140_v36, %s13220_s19  ;;  %v1878_v27 = vmul.f32 %v13576_v11, %v13579_v18  ;;  %v1688_v36 = vmul.f32 %v13563_v57, %v13465_v59 }
  0xc0   : > { %1544 = vrot.lane.b32.xlu0 %v1508_v45, %s13224_s29  ;;  %1355 = vrot.lane.b32.xlu1 %v1319_v49, %s13223_s23  ;;  %v597_v45 = vmul.f32 %v13398_v38, %v13521_v17  ;;  %v1690_v49 = vmul.f32 %v13563_v57, %v13497_v7 }
  0xc4   : > { %1548 = vrot.lane.b32.xlu0 %v1510_v61, %s13224_s29  ;;  %1359 = vrot.lane.b32.xlu1 %v1321_v62, %s13223_s23  ;;  %v1835_v61 = vrot.slane %v13559_v54, %v13405_v40  ;;  %v595_v62 = vmul.f32 %v13425_v46, %v13521_v17 }
  0xc8   : > { %1726 = vrot.lane.b32.xlu0 %v1689_v6, %s13225_s8  ;;  %1546 = vrot.lane.b32.xlu1 %v1509_v12, %s13224_s29  ;;  %v1877_v6 = vmul.f32 %v1835_v61, %v13579_v18  ;;  %v1843_v12 = vrot.slane %v13559_v54, %v13384_v33 }
  0xcc   : > { %1915 = vrot.lane.b32.xlu0 %v1878_v27, %s13226_s13  ;;  %1724 = vrot.lane.b32.xlu1 %v1688_v36, %s13225_s8  ;;  %v13602_v27 = vpop.permute.xlu1 %726  ;;  %v1879_v36 = vmul.f32 %v1843_v12, %v13579_v18 }
  0xcd   : > { %21765 = vst [vmem:[#allocation38_spill] sm:$0xff] %v13602_v27  ;;  %v787_v38 = vmul.f32 %v13445_v52, %v13602_v27  ;;  %v785_v46 = vmul.f32 %v13461_v58, %v13602_v27 }
  0xd0   : > { %644 = vrot.lane.b32.xlu0 %v597_v45, %s13209_s21  ;;  %1728 = vrot.lane.b32.xlu1 %v1690_v49, %s13225_s8  ;;  %v596_v45 = vmul.f32 %v13379_v31, %v13521_v17  ;;  %v13615_v49 = vpop.permute.xlu1 %914  ;;  %v786_v31 = vmul.f32 %v13413_v42, %v13602_v27 }
  0xd1   : > { %21766 = vst [vmem:[#allocation39_spill] sm:$0xff] %v13615_v49  ;;  %v975_v52 = vmul.f32 %v13475_v63, %v13615_v49  ;;  %v973_v58 = vmul.f32 %v13501_v8, %v13615_v49  ;;  %v1148_v63 = vmul.f32 %v13519_v16, %v13539_v44  ;;  %v974_v42 = vmul.f32 %v13439_v51, %v13615_v49 }
  0xd2   : > { %v1147_v51 = vmul.f32 %v13465_v59, %v13539_v44 }
  0xd4   : > { %640 = vrot.lane.b32.xlu0 %v595_v62, %s13209_s21  ;;  %1913 = vrot.lane.b32.xlu1 %v1877_v6, %s13226_s13  ;;  %v598_v62 = vmul.f32 %v13375_v30, %v13521_v17  ;;  %v788_v30 = vmul.f32 %v13431_v47, %v13602_v27  ;;  %v13635_v6 = vpop.permute.xlu1 %1269  ;;  %v976_v47 = vmul.f32 %v13453_v55, %v13615_v49 }
  0xd5   : > { %21767 = vst [vmem:[#allocation40_spill] sm:$0xff] %v13635_v6  ;;  %v1328_v8 = vmul.f32 %v13537_v37, %v13635_v6 }
  0xd8   : > { %834 = vrot.lane.b32.xlu0 %v787_v38, %s20460_s20  ;;  %1917 = vrot.lane.b32.xlu1 %v1879_v36, %s13226_s13  ;;  %v1330_v38 = vmul.f32 %v1285_v53, %v13635_v6  ;;  %v13648_v36 = vpop.permute.xlu1 %1458  ;;  %v1149_v53 = vmul.f32 %v13497_v7, %v13539_v44 }
  0xd9   : > { %21768 = vst [vmem:[#allocation41_spill] sm:$0xff] %v13648_v36  ;;  %v1518_v37 = vmul.f32 %v1470_v1, %v13648_v36 }
  0xdc   : > { %830 = vrot.lane.b32.xlu0 %v785_v46, %s20460_s20  ;;  %642 = vrot.lane.b32.xlu1 %v596_v45, %s13209_s21  ;;  %v13655_v46 = vpop.permute.xlu0 %1638  ;;  %v1329_v45 = vmul.f32 %v13515_v13, %v13635_v6 }
  0xdd   : > { %21769 = vst [vmem:[#allocation42_spill] sm:$0xff] %v13655_v46  ;;  %v1697_v55 = vmul.f32 %v13655_v46, %v13465_v59  ;;  %v1699_v1 = vmul.f32 %v13655_v46, %v13497_v7 }
  0xe0   : > { %1022 = vrot.lane.b32.xlu0 %v975_v52, %s13222_s22  ;;  %646 = vrot.lane.b32.xlu1 %v598_v62, %s13209_s21  ;;  %v13669_v52 = vpop.permute.xlu1 %1827  ;;  %v1517_v62 = vmul.f32 %v13527_v19, %v13648_v36  ;;  %v13681_v7 = vpop.permute.xlu0 %440 }
  0xe1   : > { %21770 = vst [vmem:[#allocation43_spill] sm:$0xff] %v13669_v52  ;;  %v1886_v59 = vmul.f32 %v1835_v61, %v13669_v52  ;;  %21772 = vst [vmem:[#allocation45_spill] sm:$0xff] %v13681_v7  ;;  %v1888_v13 = vmul.f32 %v1843_v12, %v13669_v52  ;;  %v289_v12 = vld [vmem:[%s20430_s2 + $0x8] sm:$0xff] }
  0xe4   : > { %1018 = vrot.lane.b32.xlu0 %v973_v58, %s13222_s22  ;;  %832 = vrot.lane.b32.xlu1 %v786_v31, %s20460_s20  ;;  %v13677_v58 = vsub.s32 4, %v13358_v23  ;;  %v1519_v31 = vmul.f32 %v13553_v50, %v13648_v36 }
  0xe6   : > { %21771 = vst [vmem:[#allocation44_spill] sm:$0xff] %v13677_v58  ;;  %v13688_v61 = vrot.slane %v13343_v14, %v13677_v58  ;;  %v13702_v50 = vrot.slane %v13388_v34, %v13677_v58 }
  0xe8   : > { %1189 = vrot.lane.b32.xlu0 %v1148_v63, %s13220_s19  ;;  %836 = vrot.lane.b32.xlu1 %v788_v30, %s20460_s20  ;;  %v590_v19 = vmul.f32 %v13688_v61, %v13390_v35  ;;  %v1698_v63 = vmul.f32 %v13655_v46, %v13519_v16  ;;  %v13696_v30 = vpop.permute.xlu0 %2004  ;;  %v13711_v16 = vrot.slane %v13417_v43, %v13677_v58 }
  0xe9   : > { %21773 = vst [vmem:[#allocation46_spill] sm:$0xff] %v13696_v30 }
  0xec   : > { %1373 = vrot.lane.b32.xlu0 %v1328_v8, %s13223_s23  ;;  %1020 = vrot.lane.b32.xlu1 %v974_v42, %s13222_s22  ;;  %v780_v8 = vmul.f32 %v13702_v50, %v13353_v21  ;;  %v13714_v42 = vsub.s32 5, %v13358_v23 }
  0xee   : > { %21774 = vst [vmem:[#allocation47_spill] sm:$0xff] %v13714_v42 }
  0xf0   : > { %1377 = vrot.lane.b32.xlu0 %v1330_v38, %s13223_s23  ;;  %1024 = vrot.lane.b32.xlu1 %v976_v47, %s13222_s22  ;;  %v13717_v38 = vpop.permute.xlu0 %445  ;;  %v430_v47 = vpop.permute.xlu1 %429 }
  0xf1   : > { %21775 = vst [vmem:[#allocation48_spill] sm:$0xff] %v13717_v38 }
  0xf4   : > { %1564 = vrot.lane.b32.xlu0 %v1518_v37, %s13224_s29  ;;  %1187 = vrot.lane.b32.xlu1 %v1147_v51, %s13220_s19  ;;  %v968_v37 = vmul.f32 %v13711_v16, %v13355_v22  ;;  %v1887_v51 = vmul.f32 %v13576_v11, %v13669_v52  ;;  %v13738_v11 = vrot.slane %v430_v47, 7 }
  0xf6   : > { %21777 = vst [vmem:[#allocation50_spill] sm:$0xff] %v13738_v11 }
  0xf8   : > { %1742 = vrot.lane.b32.xlu0 %v1697_v55, %s13225_s8  ;;  %1191 = vrot.lane.b32.xlu1 %v1149_v53, %s13220_s19  ;;  %v13725_v55 = vrot.slane %v13343_v14, %v13714_v42 }
  0xfc   : > { %1746 = vrot.lane.b32.xlu0 %v1699_v1, %s13225_s8  ;;  %1375 = vrot.lane.b32.xlu1 %v1329_v45, %s13223_s23  ;;  %v591_v45 = vmul.f32 %v13725_v55, %v13390_v35 }
 0x100   : > { %1931 = vrot.lane.b32.xlu0 %v1886_v59, %s13226_s13  ;;  %1562 = vrot.lane.b32.xlu1 %v1517_v62, %s13224_s29  ;;  %v13736_v59 = vrot.slane %v13388_v34, %v13714_v42 }
 0x104   : > { %1935 = vrot.lane.b32.xlu0 %v1888_v13, %s13226_s13  ;;  %1566 = vrot.lane.b32.xlu1 %v1519_v31, %s13224_s29  ;;  %v781_v31 = vmul.f32 %v13736_v59, %v13353_v21 }
 0x108   : > { %630 = vrot.lane.b32.xlu0 %v590_v19, %s13209_s21  ;;  %1744 = vrot.lane.b32.xlu1 %v1698_v63, %s13225_s8  ;;  %v13745_v19 = vsel %vm432_vm6, %v13738_v11, %v430_v47 }
 0x109   : > { %21778 = vst [vmem:[#allocation51_spill] sm:$0xff] %v13745_v19 }
 0x10c   : > { %820 = vrot.lane.b32.xlu0 %v780_v8, %s20460_s20  ;;  %2009 = vperm.xlu1 %13135, %v289_v12   ;;  %v13751_v8 = vmul.f32 %v13745_v19, %v13343_v14 }
 0x10e   : > { %21780 = vst [vmem:[#allocation53_spill] sm:$0xff] %v13751_v8  ;;  %v13763_v47 = vrot.slane %v13751_v8, %v13405_v40 }
 0x110   : > { %1008 = vrot.lane.b32.xlu0 %v968_v37, %s13222_s22  ;;  %1933 = vrot.lane.b32.xlu1 %v1887_v51, %s13226_s13 }
 0x112   : > { %v13729_v53 = vpop.permute.xlu0 %628  ;;  %v625_v1 = vpop.permute.xlu1 %624 }
 0x113   : > { %21776 = vst [vmem:[#allocation49_spill] sm:$0xff] %v13729_v53 }
 0x114   : > { %632 = vrot.lane.b32.xlu1 %v591_v45, %s13209_s21  ;;  %v13755_v45 = vrot.slane %v13751_v8, %v13363_v25 }
 0x116   : > { %v815_v62 = vpop.permute.xlu0 %814  ;;  %v627_v13 = vpop.permute.xlu1 %626  ;;  %v496_v0 = vmul.f32 %v13755_v45, %v13681_v7 }
 0x117   : > { %v660_v19 = vsel %vm658_vm2, %v625_v1, %v627_v13  ;;  %v661_v3 = vsel %vm658_vm2, %v627_v13, %v13729_v53 }
 0x118   : > { %822 = vrot.lane.b32.xlu1 %v781_v31, %s20460_s20  ;;  %v13759_v31 = vrot.slane %v13751_v8, %v13384_v33  ;;  %v495_v33 = vmul.f32 %v13763_v47, %v13681_v7  ;;  %v694_v13 = vadd.f32 %v660_v19, %v496_v0 }
 0x11a   : > { %v13747_v63 = vpop.permute.xlu0 %818  ;;  %v623_v12 = vpop.permute.xlu1 %622  ;;  %v497_v39 = vmul.f32 %v13759_v31, %v13681_v7 }
 0x11b   : > { %21779 = vst [vmem:[#allocation52_spill] sm:$0xff] %v13747_v63  ;;  %v659_v29 = vsel %vm658_vm2, %v623_v12, %v625_v1  ;;  %v324_v1 = vld [vmem:[%s20432_s4 + $0xf8] sm:$0xff] }
 0x11c   : > { %v695_v56 = vadd.f32 %v661_v3, %v497_v39  ;;  %v308_v12 = vld [vmem:[%s20432_s4 + $0x78] sm:$0xff]  ;;  %v693_v0 = vadd.f32 %v659_v29, %v495_v33  ;;  %v13795_v3 = vand.u32 4294901760, %v324_v1 }
 0x11e   : > { %v1003_v37 = vpop.permute.xlu0 %1002  ;;  %v817_v51 = vpop.permute.xlu1 %816  ;;  %21782 = vst [vmem:[#allocation55_spill] sm:$0xff] %v13795_v3  ;;  %v13806_v29 = vsub.f32 %v324_v1, %v13795_v3  ;;  %11234 = vmatprep.subr.mxu0 %v13795_v3  ;;  %v306_v1 = vld [vmem:[%s20432_s4 + $0x68] sm:$0xff] }
 0x11f   : > { %v850_v25 = vsel %vm848_vm7, %v815_v62, %v817_v51  ;;  %v851_v11 = vsel %vm848_vm7, %v817_v51, %v13747_v63  ;;  %v323_v51 = vld [vmem:[%s20432_s4 + $0xf0] sm:$0xff]  ;;  %v13846_v8 = vand.u32 4294901760, %v306_v1 }
 0x120   : > { %v885_v19 = vadd.f32 %v851_v11, %v695_v56  ;;  %v13799_v15 = vand.u32 4294901760, %v323_v51  ;;  %21786 = vst [vmem:[#allocation59_spill] sm:$0xff] %v13806_v29 }
 0x121   : > { %21795 = vst [vmem:[#allocation68_spill] sm:$0xff] %v13846_v8  ;;  %v13892_v14 = vsub.f32 %v306_v1, %v13846_v8 }
 0x122   : > { %v13765_v2 = vpop.permute.xlu0 %1006  ;;  %v813_v48 = vpop.permute.xlu1 %812  ;;  %21784 = vst [vmem:[#allocation57_spill] sm:$0xff] %v13799_v15 }
 0x123   : > { %21781 = vst [vmem:[#allocation54_spill] sm:$0xff] %v13765_v2  ;;  %v849_v24 = vsel %vm848_vm7, %v813_v48, %v815_v62  ;;  %v13797_v48 = vand.u32 4294901760, %v308_v12  ;;  %v884_v62 = vadd.f32 %v850_v25, %v694_v13  ;;  %v307_v25 = vld [vmem:[%s20432_s4 + $0x70] sm:$0xff]  ;;  %v322_v13 = vld [vmem:[%s20432_s4 + $0xe8] sm:$0xff]  ;;  %21803 = vst [vmem:[#allocation76_spill] sm:$0xff] %v13892_v14 }
 0x124   : > { %v883_v40 = vadd.f32 %v849_v24, %v693_v0  ;;  %v13819_v11 = vand.u32 4294901760, %v307_v25  ;;  %v13837_v0 = vand.u32 4294901760, %v322_v13 }
 0x125   : > { %21783 = vst [vmem:[#allocation56_spill] sm:$0xff] %v13797_v48  ;;  %v13809_v33 = vsub.f32 %v308_v12, %v13797_v48  ;;  %v321_v12 = vld [vmem:[%s20432_s4 + $0xe0] sm:$0xff]  ;;  %11235 = vmatpush3.msra.mxu0 %v13797_v48 }
 0x126   : > { %v1172_v20 = vpop.permute.xlu0 %1171  ;;  %v1005_v60 = vpop.permute.xlu1 %1004  ;;  %21789 = vst [vmem:[#allocation62_spill] sm:$0xff] %v13819_v11  ;;  %21792 = vst [vmem:[#allocation65_spill] sm:$0xff] %v13837_v0  ;;  %11236 = vmatprep.subr.mxu0 %v13799_v15 }
 0x127   : > { %v1038_v39 = vsel %vm1036_vm8, %v1003_v37, %v1005_v60  ;;  %v1039_v63 = vsel %vm1036_vm8, %v1005_v60, %v13765_v2  ;;  %21787 = vst [vmem:[#allocation60_spill] sm:$0xff] %v13809_v33  ;;  %v13817_v60 = vsub.f32 %v323_v51, %v13799_v15  ;;  %v13835_v51 = vand.u32 4294901760, %v13809_v33  ;;  %11237 = vmatpush3.msra.mxu0 %v13819_v11 }
 0x128   : > { %v1072_v56 = vadd.f32 %v1038_v39, %v884_v62  ;;  %v1073_v39 = vadd.f32 %v1039_v63, %v885_v19  ;;  %v13844_v2 = vsub.f32 %v307_v25, %v13819_v11  ;;  %v13856_v63 = vsub.f32 %v322_v13, %v13837_v0  ;;  %11238 = vmatprep.subr.mxu0 %v13837_v0  ;;  %v320_v13 = vld [vmem:[%s20432_s4 + $0xd8] sm:$0xff] }
 0x129   : > { %21788 = vst [vmem:[#allocation61_spill] sm:$0xff] %v13817_v60  ;;  %21791 = vst [vmem:[#allocation64_spill] sm:$0xff] %v13835_v51  ;;  %v13841_v62 = vand.u32 4294901760, %v13817_v60  ;;  %v2265_v15 = vsub.f32 %v13809_v33, %v13835_v51  ;;  %v13858_v19 = vand.u32 4294901760, %v321_v12  ;;  %v305_v51 = vld [vmem:[%s20432_s4 + $0x60] sm:$0xff]  ;;  %11239 = vmatpush3.msra.mxu0 %v13846_v8 }
 0x12a   : > { %v13803_v7 = vpop.permute.xlu0 %1175  ;;  %v1001_v53 = vpop.permute.xlu1 %1000  ;;  %21794 = vst [vmem:[#allocation67_spill] sm:$0xff] %v13844_v2  ;;  %21796 = vst [vmem:[#allocation69_spill] sm:$0xff] %v13856_v63  ;;  %v13865_v34 = vand.u32 4294901760, %v13844_v2  ;;  %v13889_v35 = vand.u32 4294901760, %v13856_v63 }
 0x12b   : > { %21785 = vst [vmem:[#allocation58_spill] sm:$0xff] %v13803_v7  ;;  %v1037_v24 = vsel %vm1036_vm8, %v1001_v53, %v1003_v37  ;;  %v13832_v37 = vand.u32 4294901760, %v13806_v29  ;;  %21793 = vst [vmem:[#allocation66_spill] sm:$0xff] %v13841_v62  ;;  %v2384_v11 = vsub.f32 %v13817_v60, %v13841_v62  ;;  %v13881_v60 = vand.u32 4294901760, %v2265_v15  ;;  %11240 = vmatprep.subr.mxu0 %v13858_v19 }
 0x12c   : > { %v1071_v53 = vadd.f32 %v1037_v24, %v883_v40  ;;  %21797 = vst [vmem:[#allocation70_spill] sm:$0xff] %v13858_v19  ;;  %21798 = vst [vmem:[#allocation71_spill] sm:$0xff] %v13865_v34  ;;  %v2272_v0 = vsub.f32 %v13844_v2, %v13865_v34  ;;  %v13896_v15 = vsub.f32 %v321_v12, %v13858_v19  ;;  %v319_v12 = vld [vmem:[%s20432_s4 + $0xd0] sm:$0xff]  ;;  %v13916_v19 = vand.u32 4294901760, %v13892_v14 }
 0x12d   : > { %21790 = vst [vmem:[#allocation63_spill] sm:$0xff] %v13832_v37  ;;  %v2377_v48 = vsub.f32 %v13806_v29, %v13832_v37  ;;  %21800 = vst [vmem:[#allocation73_spill] sm:$0xff] %v13881_v60  ;;  %v13884_v33 = vand.u32 4294901760, %v2384_v11 }
 0x12e   : > { %v13849_v40 = vpop.permute.xlu0 %1357  ;;  %v1174_v24 = vpop.permute.xlu1 %1173  ;;  %v1235_v25 = vadd.f32 %v1172_v20, %v1071_v53  ;;  %v304_v53 = vld [vmem:[%s20432_s4 + $0x58] sm:$0xff]  ;;  %21802 = vst [vmem:[#allocation75_spill] sm:$0xff] %v13889_v35  ;;  %21804 = vst [vmem:[#allocation77_spill] sm:$0xff] %v13896_v15  ;;  %v13907_v1 = vand.u32 4294901760, %v2272_v0 }
 0x12f   : > { %v1203_v21 = vsel %vm432_vm6, %v1172_v20, %v1174_v24  ;;  %v1204_v20 = vsel %vm432_vm6, %v1174_v24, %v13803_v7  ;;  %v13879_v37 = vand.u32 4294901760, %v2377_v48  ;;  %21801 = vst [vmem:[#allocation74_spill] sm:$0xff] %v13884_v33  ;;  %v13898_v48 = vand.u32 4294901760, %v305_v51  ;;  %21809 = vst [vmem:[#allocation82_spill] sm:$0xff] %v13916_v19 }
 0x130   : > { %v1236_v62 = vadd.f32 %v1203_v21, %v1072_v56  ;;  %v13900_v56 = vand.u32 4294901760, %v320_v13  ;;  %v13902_v11 = vand.u32 4294901760, %v304_v53  ;;  %21808 = vst [vmem:[#allocation81_spill] sm:$0xff] %v13907_v1  ;;  %v1237_v7 = vadd.f32 %v1204_v20, %v1073_v39 }
 0x131   : > { %21799 = vst [vmem:[#allocation72_spill] sm:$0xff] %v13879_v37  ;;  %11272 = vmatprep.subr.mxu1 %v13879_v37  ;;  %21805 = vst [vmem:[#allocation78_spill] sm:$0xff] %v13898_v48  ;;  %v2391_v37 = vsub.f32 %v13856_v63, %v13889_v35  ;;  %v13922_v0 = vsub.f32 %v305_v51, %v13898_v48  ;;  %11241 = vmatpush3.msra.mxu0 %v13898_v48 }
 0x132   : > { %v1545_v24 = vpop.permute.xlu0 %1544  ;;  %v1356_v21 = vpop.permute.xlu1 %1355  ;;  %21806 = vst [vmem:[#allocation79_spill] sm:$0xff] %v13900_v56  ;;  %21807 = vst [vmem:[#allocation80_spill] sm:$0xff] %v13902_v11  ;;  %11273 = vmatpush3.msra.mxu1 %v13881_v60  ;;  %v13932_v20 = vsub.f32 %v320_v13, %v13900_v56  ;;  %11242 = vmatprep.subr.mxu0 %v13900_v56  ;;  %v2279_v63 = vsub.f32 %v13892_v14, %v13916_v19 }
 0x133   : > { %v1392_v34 = vsel %vm1391_vm9, %v1356_v21, %v13849_v40  ;;  %v1426_v2 = vadd.f32 %v1356_v21, %v1235_v25  ;;  %11274 = vmatprep.subr.mxu1 %v13884_v33  ;;  %v13919_v25 = vand.u32 4294901760, %v13896_v15  ;;  %21811 = vst [vmem:[#allocation84_spill] sm:$0xff] %v13922_v0  ;;  %v303_v21 = vld [vmem:[%s20432_s4 + $0x50] sm:$0xff]  ;;  %v13929_v39 = vand.u32 4294901760, %v2391_v37  ;;  %11243 = vmatpush3.msra.mxu0 %v13902_v11 }
 0x134   : > { %v1427_v60 = vadd.f32 %v1392_v34, %v1236_v62  ;;  %11275 = vmatpush3.msra.mxu1 %v13907_v1  ;;  %21813 = vst [vmem:[#allocation86_spill] sm:$0xff] %v13932_v20  ;;  %v13935_v33 = vsub.f32 %v304_v53, %v13902_v11  ;;  %v13947_v37 = vand.u32 4294901760, %v13922_v0  ;;  %v13949_v62 = vand.u32 4294901760, %v319_v12 }
 0x135   : > { %21810 = vst [vmem:[#allocation83_spill] sm:$0xff] %v13919_v25  ;;  %21812 = vst [vmem:[#allocation85_spill] sm:$0xff] %v13929_v39  ;;  %v2398_v34 = vsub.f32 %v13896_v15, %v13919_v25  ;;  %v1615_v13 = vadd.f32 %v1545_v24, %v1426_v2  ;;  %11276 = vmatprep.subr.mxu1 %v13929_v39  ;;  %v13954_v53 = vand.u32 4294901760, %v13932_v20  ;;  %v13959_v19 = vand.u32 4294901760, %v303_v21  ;;  %v318_v25 = vld [vmem:[%s20432_s4 + $0xc8] sm:$0xff]  ;;  %v317_v2 = vld [vmem:[%s20432_s4 + $0xc0] sm:$0xff] }
 0x136   : > { %21814 = vst [vmem:[#allocation87_spill] sm:$0xff] %v13935_v33  ;;  %v13938_v51 = vpop.permute.xlu0 %1548  ;;  %v13940_v35 = vpop.permute.xlu1 %1359  ;;  %21817 = vst [vmem:[#allocation90_spill] sm:$0xff] %v13947_v37  ;;  %v13957_v1 = vand.u32 4294901760, %v13935_v33  ;;  %v302_v15 = vld [vmem:[%s20432_s4 + $0x48] sm:$0xff]  ;;  %v13973_v14 = vand.u32 4294901760, %v2279_v63  ;;  %v2286_v56 = vsub.f32 %v13922_v0, %v13947_v37  ;;  %11244 = vmatprep.subr.mxu0 %v13949_v62  ;;  %v13985_v52 = vsub.f32 %v319_v12, %v13949_v62  ;;  %v301_v12 = vld [vmem:[%s20432_s4 + $0x40] sm:$0xff] }
 0x137   : > { %21815 = vst [vmem:[#allocation88_spill] sm:$0xff] %v13938_v51  ;;  %21816 = vst [vmem:[#allocation89_spill] sm:$0xff] %v13940_v35  ;;  %v1393_v39 = vsel %vm1391_vm9, %v13849_v40, %v13940_v35  ;;  %v13975_v11 = vand.u32 4294901760, %v2398_v34  ;;  %v2405_v48 = vsub.f32 %v13932_v20, %v13954_v53  ;;  %v13988_v40 = vsub.f32 %v303_v21, %v13959_v19  ;;  %v300_v35 = vld [vmem:[%s20432_s4 + $0x38] sm:$0xff] }
 0x138   : > { %21818 = vst [vmem:[#allocation91_spill] sm:$0xff] %v13949_v62  ;;  %21819 = vst [vmem:[#allocation92_spill] sm:$0xff] %v13954_v53  ;;  %v2293_v8 = vsub.f32 %v13935_v33, %v13957_v1  ;;  %11245 = vmatpush3.msra.mxu0 %v13959_v19  ;;  %11277 = vmatpush3.msra.mxu1 %v13973_v14  ;;  %v13994_v37 = vand.u32 4294901760, %v2286_v56  ;;  %v13996_v0 = vand.u32 4294901760, %v318_v25  ;;  %v13998_v53 = vand.u32 4294901760, %v302_v15  ;;  %v316_v56 = vld [vmem:[%s20432_s4 + $0xb8] sm:$0xff] }
 0x139   : > { %21820 = vst [vmem:[#allocation93_spill] sm:$0xff] %v13957_v1  ;;  %21821 = vst [vmem:[#allocation94_spill] sm:$0xff] %v13959_v19  ;;  %v14000_v1 = vand.u32 4294901760, %v317_v2  ;;  %v1428_v21 = vadd.f32 %v1393_v39, %v1237_v7  ;;  %11278 = vmatprep.subr.mxu1 %v13975_v11  ;;  %v14007_v20 = vand.u32 4294901760, %v2405_v48 }
 0x13a   : > { %21822 = vst [vmem:[#allocation95_spill] sm:$0xff] %v13973_v14  ;;  %21823 = vst [vmem:[#allocation96_spill] sm:$0xff] %v13975_v11  ;;  %v13991_v63 = vpop.permute.xlu0 %1726  ;;  %v1547_v34 = vpop.permute.xlu1 %1546  ;;  %v14009_v14 = vand.u32 4294901760, %v2293_v8  ;;  %11279 = vmatpush3.msra.mxu1 %v13994_v37  ;;  %v14024_v8 = vand.u32 4294901760, %v13988_v40  ;;  %11246 = vmatprep.subr.mxu0 %v13996_v0  ;;  %v14029_v48 = vsub.f32 %v318_v25, %v13996_v0  ;;  %v14049_v11 = vand.u32 4294901760, %v300_v35 }
 0x13b   : > { %21824 = vst [vmem:[#allocation97_spill] sm:$0xff] %v13985_v52  ;;  %21825 = vst [vmem:[#allocation98_spill] sm:$0xff] %v13988_v40  ;;  %v1581_v33 = vsel %vm1580_vm10, %v1545_v24, %v1547_v34  ;;  %v1582_v19 = vsel %vm1580_vm10, %v1547_v34, %v13938_v51  ;;  %v14021_v24 = vand.u32 4294901760, %v13985_v52  ;;  %11280 = vmatprep.subr.mxu1 %v14007_v20  ;;  %11247 = vmatpush3.msra.mxu0 %v13998_v53 }
 0x13c   : > { %21826 = vst [vmem:[#allocation99_spill] sm:$0xff] %v13994_v37  ;;  %21827 = vst [vmem:[#allocation100_spill] sm:$0xff] %v13996_v0  ;;  %v1616_v7 = vadd.f32 %v1581_v33, %v1427_v60  ;;  %v14032_v39 = vsub.f32 %v302_v15, %v13998_v53  ;;  %v14035_v33 = vsub.f32 %v317_v2, %v14000_v1  ;;  %v14037_v60 = vand.u32 4294901760, %v301_v12 }
 0x13d   : > { %21828 = vst [vmem:[#allocation101_spill] sm:$0xff] %v13998_v53  ;;  %21829 = vst [vmem:[#allocation102_spill] sm:$0xff] %v14000_v1  ;;  %11281 = vmatpush3.msra.mxu1 %v14009_v14  ;;  %v2300_v25 = vsub.f32 %v13988_v40, %v14024_v8  ;;  %v14047_v15 = vand.u32 4294901760, %v316_v56  ;;  %11248 = vmatprep.subr.mxu0 %v14000_v1  ;;  %v1617_v2 = vadd.f32 %v1582_v19, %v1428_v21 }
 0x13e   : > { %21830 = vst [vmem:[#allocation103_spill] sm:$0xff] %v14007_v20  ;;  %21831 = vst [vmem:[#allocation104_spill] sm:$0xff] %v14009_v14  ;;  %v14040_v34 = vpop.permute.xlu0 %1915  ;;  %v1725_v37 = vpop.permute.xlu1 %1724  ;;  %v2412_v20 = vsub.f32 %v13985_v52, %v14021_v24  ;;  %v14055_v53 = vand.u32 4294901760, %v14029_v48  ;;  %v14058_v14 = vand.u32 4294901760, %v14032_v39  ;;  %11249 = vmatpush3.msra.mxu0 %v14037_v60  ;;  %v14072_v52 = vand.u32 4294901760, %v14035_v33 }
 0x13f   : > { %21832 = vst [vmem:[#allocation105_spill] sm:$0xff] %v14021_v24  ;;  %21833 = vst [vmem:[#allocation106_spill] sm:$0xff] %v14024_v8  ;;  %v1761_v51 = vsel %vm1760_vm11, %v1725_v37, %v13991_v63  ;;  %v315_v8 = vld [vmem:[%s20432_s4 + $0xb0] sm:$0xff]  ;;  %v1795_v19 = vadd.f32 %v1725_v37, %v1615_v13  ;;  %v14069_v40 = vand.u32 4294901760, %v2300_v25  ;;  %11250 = vmatprep.subr.mxu0 %v14047_v15 }
 0x140   : > { %21834 = vst [vmem:[#allocation107_spill] sm:$0xff] %v14029_v48  ;;  %21835 = vst [vmem:[#allocation108_spill] sm:$0xff] %v14032_v39  ;;  %v299_v24 = vld [vmem:[%s20432_s4 + $0x30] sm:$0xff]  ;;  %v14067_v21 = vand.u32 4294901760, %v2412_v20  ;;  %v2419_v1 = vsub.f32 %v14029_v48, %v14055_v53  ;;  %v2307_v0 = vsub.f32 %v14032_v39, %v14058_v14  ;;  %v14080_v62 = vsub.f32 %v301_v12, %v14037_v60 }
 0x141   : > { %21836 = vst [vmem:[#allocation109_spill] sm:$0xff] %v14035_v33  ;;  %21837 = vst [vmem:[#allocation110_spill] sm:$0xff] %v14037_v60  ;;  %v14083_v37 = vsub.f32 %v316_v56, %v14047_v15  ;;  %11251 = vmatpush3.msra.mxu0 %v14049_v11  ;;  %v2426_v25 = vsub.f32 %v14035_v33, %v14072_v52  ;;  %v14098_v12 = vand.u32 4294901760, %v299_v24  ;;  %v314_v56 = vld [vmem:[%s20432_s4 + $0xa8] sm:$0xff]  ;;  %v313_v33 = vld [vmem:[%s20432_s4 + $0xa0] sm:$0xff] }
 0x142   : > { %21838 = vst [vmem:[#allocation111_spill] sm:$0xff] %v14047_v15  ;;  %21839 = vst [vmem:[#allocation112_spill] sm:$0xff] %v14049_v11  ;;  %v14086_v20 = vpop.permute.xlu0 %644  ;;  %v14088_v13 = vpop.permute.xlu1 %1728  ;;  %11282 = vmatprep.subr.mxu1 %v14067_v21  ;;  %v1796_v39 = vadd.f32 %v1761_v51, %v1616_v7  ;;  %v14104_v48 = vand.u32 4294901760, %v2419_v1 }
 0x143   : > { %21840 = vst [vmem:[#allocation113_spill] sm:$0xff] %v14055_v53  ;;  %21841 = vst [vmem:[#allocation114_spill] sm:$0xff] %v14058_v14  ;;  %v14094_v53 = vsub.f32 %v300_v35, %v14049_v11  ;;  %v14096_v14 = vand.u32 4294901760, %v315_v8  ;;  %11283 = vmatpush3.msra.mxu1 %v14069_v40  ;;  %v298_v35 = vld [vmem:[%s20432_s4 + $0x28] sm:$0xff]  ;;  %v1762_v51 = vsel %vm1760_vm11, %v13991_v63, %v14088_v13  ;;  %v14120_v7 = vand.u32 4294901760, %v2426_v25 }
 0x144   : > { %21842 = vst [vmem:[#allocation115_spill] sm:$0xff] %v14067_v21  ;;  %21843 = vst [vmem:[#allocation116_spill] sm:$0xff] %v14069_v40  ;;  %v14106_v21 = vand.u32 4294901760, %v2307_v0  ;;  %v14123_v1 = vand.u32 4294901760, %v14083_v37  ;;  %11284 = vmatprep.subr.mxu1 %v14104_v48  ;;  %v14136_v63 = vsub.f32 %v299_v24, %v14098_v12  ;;  %v14138_v25 = vand.u32 4294901760, %v314_v56 }
 0x145   : > { %21844 = vst [vmem:[#allocation117_spill] sm:$0xff] %v14072_v52  ;;  %21845 = vst [vmem:[#allocation118_spill] sm:$0xff] %v14080_v62  ;;  %v14109_v52 = vand.u32 4294901760, %v14080_v62  ;;  %v14126_v0 = vand.u32 4294901760, %v14094_v53  ;;  %11252 = vmatprep.subr.mxu0 %v14096_v14  ;;  %v14133_v11 = vsub.f32 %v315_v8, %v14096_v14  ;;  %v14148_v8 = vand.u32 4294901760, %v298_v35 }
 0x146   : > { %21846 = vst [vmem:[#allocation119_spill] sm:$0xff] %v14083_v37  ;;  %21847 = vst [vmem:[#allocation120_spill] sm:$0xff] %v14088_v13  ;;  %11253 = vmatpush3.msra.mxu0 %v14098_v12  ;;  %v14141_v15 = vpop.permute.xlu0 %640  ;;  %v1914_v13 = vpop.permute.xlu1 %1913  ;;  %11285 = vmatpush3.msra.mxu1 %v14106_v21 }
 0x147   : > { %21848 = vst [vmem:[#allocation121_spill] sm:$0xff] %v14094_v53  ;;  %21849 = vst [vmem:[#allocation122_spill] sm:$0xff] %v14096_v14  ;;  %v2314_v40 = vsub.f32 %v14080_v62, %v14109_v52  ;;  %v14150_v62 = vand.u32 4294901760, %v313_v33  ;;  %v1950_v24 = vsel %vm1949_vm12, %v1914_v13, %v14040_v34  ;;  %v1984_v14 = vadd.f32 %v1914_v13, %v1795_v19 }
 0x148   : > { %21850 = vst [vmem:[#allocation123_spill] sm:$0xff] %v14098_v12  ;;  %21851 = vst [vmem:[#allocation124_spill] sm:$0xff] %v14104_v48  ;;  %v2433_v48 = vsub.f32 %v14083_v37, %v14123_v1  ;;  %11286 = vmatprep.subr.mxu1 %v14120_v7  ;;  %11254 = vmatprep.subr.mxu0 %v14138_v25  ;;  %v14169_v19 = vand.u32 4294901760, %v14136_v63 }
 0x149   : > { %21852 = vst [vmem:[#allocation125_spill] sm:$0xff] %v14106_v21  ;;  %21853 = vst [vmem:[#allocation126_spill] sm:$0xff] %v14109_v52  ;;  %v2321_v52 = vsub.f32 %v14094_v53, %v14126_v0  ;;  %v14155_v12 = vand.u32 4294901760, %v2314_v40  ;;  %v14158_v21 = vand.u32 4294901760, %v14133_v11  ;;  %11255 = vmatpush3.msra.mxu0 %v14148_v8  ;;  %v1797_v40 = vadd.f32 %v1762_v51, %v1617_v2 }
 0x14a   : > { %21854 = vst [vmem:[#allocation127_spill] sm:$0xff] %v14120_v7  ;;  %21855 = vst [vmem:[#allocation128_spill] sm:$0xff] %v14123_v1  ;;  %v297_v1 = vld [vmem:[%s20432_s4 + $0x20] sm:$0xff]  ;;  %v14164_v53 = vand.u32 4294901760, %v2433_v48  ;;  %v14176_v7 = vsub.f32 %v314_v56, %v14138_v25  ;;  %v14181_v48 = vpop.permute.xlu0 %834  ;;  %v2328_v2 = vsub.f32 %v14136_v63, %v14169_v19  ;;  %v14190_v51 = vsub.f32 %v313_v33, %v14150_v62  ;;  %v312_v56 = vld [vmem:[%s20432_s4 + $0x98] sm:$0xff] }
 0x14b   : > { %21856 = vst [vmem:[#allocation129_spill] sm:$0xff] %v14126_v0  ;;  %21857 = vst [vmem:[#allocation130_spill] sm:$0xff] %v14133_v11  ;;  %v1985_v0 = vadd.f32 %v1950_v24, %v1796_v39  ;;  %v14166_v37 = vand.u32 4294901760, %v2321_v52  ;;  %11287 = vmatpush3.msra.mxu1 %v14155_v12  ;;  %v2440_v13 = vsub.f32 %v14133_v11, %v14158_v21  ;;  %v14183_v52 = vpop.permute.xlu1 %1917  ;;  %11256 = vmatprep.subr.mxu0 %v14150_v62 }
 0x14c   : > { %21858 = vst [vmem:[#allocation131_spill] sm:$0xff] %v14136_v63  ;;  %21859 = vst [vmem:[#allocation132_spill] sm:$0xff] %v14138_v25  ;;  %v14179_v39 = vsub.f32 %v298_v35, %v14148_v8  ;;  %11288 = vmatprep.subr.mxu1 %v14164_v53  ;;  %v1951_v35 = vsel %vm1949_vm12, %v14040_v34, %v14183_v52  ;;  %v14206_v33 = vand.u32 4294901760, %v14176_v7  ;;  %v14214_v34 = vand.u32 4294901760, %v2328_v2 }
 0x14d   : > { %21860 = vst [vmem:[#allocation133_spill] sm:$0xff] %v14148_v8  ;;  %21861 = vst [vmem:[#allocation134_spill] sm:$0xff] %v14150_v62  ;;  %v2013_v24 = vadd.f32 %v13696_v30, %v1985_v0  ;;  %v2012_v0 = vadd.f32 %v13696_v30, %v1984_v14  ;;  %11289 = vmatpush3.msra.mxu1 %v14166_v37  ;;  %v1986_v63 = vadd.f32 %v1951_v35, %v1797_v40 }
 0x14e   : > { %21862 = vst [vmem:[#allocation135_spill] sm:$0xff] %v14155_v12  ;;  %21863 = vst [vmem:[#allocation136_spill] sm:$0xff] %v14158_v21  ;;  %v14192_v12 = vand.u32 4294901760, %v297_v1  ;;  %v311_v21 = vld [vmem:[%s20432_s4 + $0x90] sm:$0xff]  ;;  %v14217_v14 = vand.u32 4294901760, %v14179_v39  ;;  %v14229_v40 = vand.u32 4294901760, %v312_v56 }
 0x14f   : > { %21864 = vst [vmem:[#allocation137_spill] sm:$0xff] %v14164_v53  ;;  %21865 = vst [vmem:[#allocation138_spill] sm:$0xff] %v14166_v37  ;;  %v14203_v53 = vand.u32 4294901760, %v2440_v13  ;;  %v2031_v11 = vmax.f32 %v2013_v24, 0.0  ;;  %v2447_v13 = vsub.f32 %v14176_v7, %v14206_v33  ;;  %v14224_v37 = vand.u32 4294901760, %v14190_v51  ;;  %v14231_v24 = vpop.permute.xlu1 %642 }
 0x150   : > { %21866 = vst [vmem:[#allocation139_spill] sm:$0xff] %v14169_v19  ;;  %21867 = vst [vmem:[#allocation140_spill] sm:$0xff] %v14176_v7  ;;  %v296_v19 = vld [vmem:[%s20432_s4 + $0x18] sm:$0xff]  ;;  %11257 = vmatpush3.msra.mxu0 %v14192_v12  ;;  %v14227_v62 = vsub.f32 %v297_v1, %v14192_v12  ;;  %v2014_v2 = vadd.f32 %v13696_v30, %v1986_v63  ;;  %v2335_v35 = vsub.f32 %v14179_v39, %v14217_v14  ;;  %v14242_v7 = vpop.permute.xlu0 %830 }
 0x151   : > { %21868 = vst [vmem:[#allocation141_spill] sm:$0xff] %v14179_v39  ;;  %21869 = vst [vmem:[#allocation142_spill] sm:$0xff] %v14190_v51  ;;  %11290 = vmatprep.subr.mxu1 %v14203_v53  ;;  %2068 = vrot.lane.b32.xlu1 %v2031_v11, %s13216_s16  ;;  %v1142_v1 = vmul.f32 %v13783_v32, %v13407_v41  ;;  %v14250_v11 = vand.u32 4294901760, %v2447_v13  ;;  %v2454_v63 = vsub.f32 %v14190_v51, %v14224_v37  ;;  %v294_v39 = vld [vmem:[%s20432_s4 + $0x8] sm:$0xff] }
 0x152   : > { %21870 = vst [vmem:[#allocation143_spill] sm:$0xff] %v14192_v12  ;;  %21871 = vst [vmem:[#allocation144_spill] sm:$0xff] %v14203_v53  ;;  %11291 = vmatpush3.msra.mxu1 %v14214_v34  ;;  %v14238_v53 = vand.u32 4294901760, %v296_v19  ;;  %v14248_v12 = vrot.slane %v13335_v9, %v13677_v58  ;;  %11258 = vmatprep.subr.mxu0 %v14229_v40  ;;  %v2032_v9 = vmax.f32 %v2014_v2, 0.0  ;;  %v2030_v13 = vmax.f32 %v2012_v0, 0.0 }
 0x153   : > { %21872 = vst [vmem:[#allocation145_spill] sm:$0xff] %v14206_v33  ;;  %21873 = vst [vmem:[#allocation146_spill] sm:$0xff] %v14214_v34  ;;  %v14240_v33 = vand.u32 4294901760, %v311_v21  ;;  %v295_v34 = vld [vmem:[%s20432_s4 + $0x10] sm:$0xff]  ;;  %v14266_v30 = vrot.slane %v13417_v43, %v13714_v42  ;;  %11292 = vmatprep.subr.mxu1 %v14250_v11  ;;  %v14272_v51 = vand.u32 4294901760, %v2454_v63  ;;  %v14275_v8 = vand.u32 4294901760, %v14227_v62  ;;  %v14284_v2 = vpop.permute.xlu1 %646 }
 0x154   : > { %21874 = vst [vmem:[#allocation147_spill] sm:$0xff] %v14217_v14  ;;  %21875 = vst [vmem:[#allocation148_spill] sm:$0xff] %v14224_v37  ;;  %v310_v14 = vld [vmem:[%s20432_s4 + $0x88] sm:$0xff]  ;;  %v14268_v37 = vand.u32 4294901760, %v2335_v35  ;;  %11259 = vmatpush3.msra.mxu0 %v14238_v53  ;;  %v14278_v25 = vsub.f32 %v312_v56, %v14229_v40  ;;  %v14281_v0 = vsub.f32 %v296_v19, %v14238_v53  ;;  %2070 = vrot.lane.b32.xlu0 %v2032_v9, %s13216_s16  ;;  %v309_v42 = vld [vmem:[%s20432_s4 + $0x80] sm:$0xff] }
 0x155   : > { %21876 = vst [vmem:[#allocation149_spill] sm:$0xff] %v14227_v62  ;;  %21877 = vst [vmem:[#allocation150_spill] sm:$0xff] %v14229_v40  ;;  %11260 = vmatprep.subr.mxu0 %v14240_v33  ;;  %2066 = vrot.lane.b32.xlu1 %v2030_v13, %s13216_s16  ;;  %v14289_v35 = vsub.f32 %v311_v21, %v14240_v33  ;;  %v14291_v63 = vand.u32 4294901760, %v295_v34  ;;  %v14295_v56 = vand.u32 4294901760, %v294_v39 }
 0x156   : > { %21878 = vst [vmem:[#allocation151_spill] sm:$0xff] %v14238_v53  ;;  %21879 = vst [vmem:[#allocation152_spill] sm:$0xff] %v14240_v33  ;;  %v14299_v19 = vrot.slane %v13489_v4, %v13366_v26  ;;  %11293 = vmatpush3.msra.mxu1 %v14268_v37  ;;  %v2342_v9 = vsub.f32 %v14227_v62, %v14275_v8  ;;  %v14305_v13 = vand.u32 4294901760, %v14278_v25  ;;  %v14308_v21 = vand.u32 4294901760, %v14281_v0  ;;  %v14326_v53 = vpop.permute.xlu0 %1022 }
 0x157   : > { %21880 = vst [vmem:[#allocation153_spill] sm:$0xff] %v14250_v11  ;;  %21881 = vst [vmem:[#allocation154_spill] sm:$0xff] %v14268_v37  ;;  %v14293_v11 = vand.u32 4294901760, %v310_v14  ;;  %v969_v33 = vmul.f32 %v14266_v30, %v13355_v22  ;;  %11294 = vmatprep.subr.mxu1 %v14272_v51  ;;  %v14317_v37 = vand.u32 4294901760, %v14289_v35  ;;  %11261 = vmatpush3.msra.mxu0 %v14291_v63 }
 0x158   : > { %21882 = vst [vmem:[#allocation155_spill] sm:$0xff] %v14272_v51  ;;  %21883 = vst [vmem:[#allocation156_spill] sm:$0xff] %v14275_v8  ;;  %v14320_v8 = vsub.f32 %v295_v34, %v14291_v63  ;;  %v14328_v43 = vand.u32 4294901760, %v2342_v9  ;;  %v2461_v22 = vsub.f32 %v14278_v25, %v14305_v13  ;;  %v2349_v51 = vsub.f32 %v14281_v0, %v14308_v21  ;;  %v14338_v34 = vpop.permute.xlu1 %832 }
 0x159   : > { %21884 = vst [vmem:[#allocation157_spill] sm:$0xff] %v14278_v25  ;;  %21885 = vst [vmem:[#allocation158_spill] sm:$0xff] %v14281_v0  ;;  %v14323_v62 = vsub.f32 %v310_v14, %v14293_v11  ;;  %v14335_v40 = vsub.f32 %v294_v39, %v14295_v56  ;;  %11262 = vmatprep.subr.mxu0 %v14293_v11  ;;  %1177 = vrot.lane.b32.xlu0 %v1142_v1, %s13220_s19  ;;  %v293_v39 = vld [vmem:[%s20432_s4] sm:$0xff] }
 0x15a   : > { %21886 = vst [vmem:[#allocation159_spill] sm:$0xff] %v14289_v35  ;;  %21887 = vst [vmem:[#allocation160_spill] sm:$0xff] %v14291_v63  ;;  %1010 = vrot.lane.b32.xlu1 %v969_v33, %s13222_s22  ;;  %v2468_v14 = vsub.f32 %v14289_v35, %v14317_v37  ;;  %v14345_v9 = vand.u32 4294901760, %v14320_v8  ;;  %v1322_v1 = vmul.f32 %v14299_v19, %v13368_v28  ;;  %11295 = vmatpush3.msra.mxu1 %v14328_v43 }
 0x15b   : > { %21888 = vst [vmem:[#allocation161_spill] sm:$0xff] %v14293_v11  ;;  %21889 = vst [vmem:[#allocation162_spill] sm:$0xff] %v14295_v56  ;;  %v1143_v33 = vmul.f32 %v14248_v12, %v13407_v41  ;;  %v14362_v35 = vand.u32 4294901760, %v2349_v51  ;;  %11263 = vmatpush3.msra.mxu0 %v14295_v56  ;;  %v14367_v0 = vrot.slane %v13505_v10, %v13366_v26  ;;  %v14382_v51 = vand.u32 4294901760, %v14335_v40 }
 0x15c   : > { %21890 = vst [vmem:[#allocation163_spill] sm:$0xff] %v14305_v13  ;;  %21891 = vst [vmem:[#allocation164_spill] sm:$0xff] %v14308_v21  ;;  %v14348_v13 = vand.u32 4294901760, %v14323_v62  ;;  %v14350_v21 = vand.u32 4294901760, %v309_v42  ;;  %v14371_v25 = vrot.slane %v13489_v4, %v13677_v58  ;;  %v14373_v11 = vand.u32 4294901760, %v2468_v14  ;;  %v14389_v14 = vpop.permute.xlu1 %836 }
 0x15d   : > { %21892 = vst [vmem:[#allocation165_spill] sm:$0xff] %v14317_v37  ;;  %21893 = vst [vmem:[#allocation166_spill] sm:$0xff] %v14320_v8  ;;  %v14360_v37 = vand.u32 4294901760, %v2461_v22  ;;  %v2356_v41 = vsub.f32 %v14320_v8, %v14345_v9  ;;  %v14387_v4 = vand.u32 4294901760, %v293_v39  ;;  %1361 = vrot.lane.b32.xlu0 %v1322_v1, %s13223_s23 }
 0x15e   : > { %21894 = vst [vmem:[#allocation167_spill] sm:$0xff] %v14323_v62  ;;  %21895 = vst [vmem:[#allocation168_spill] sm:$0xff] %v14328_v43  ;;  %11264 = vmatprep.subr.mxu0 %v14350_v21  ;;  %v2475_v22 = vsub.f32 %v14323_v62, %v14348_v13  ;;  %v14385_v43 = vsub.f32 %v309_v42, %v14350_v21  ;;  %1179 = vrot.lane.b32.xlu1 %v1143_v33, %s13220_s19 }
 0x15f   : > { %21896 = vst [vmem:[#allocation169_spill] sm:$0xff] %v14335_v40  ;;  %21897 = vst [vmem:[#allocation170_spill] sm:$0xff] %v14345_v9  ;;  %11296 = vmatprep.subr.mxu1 %v14360_v37  ;;  %v14393_v9 = vand.u32 4294901760, %v2356_v41  ;;  %v2363_v42 = vsub.f32 %v14335_v40, %v14382_v51  ;;  %11265 = vmatpush3.msra.mxu0 %v14387_v4  ;;  %v1511_v41 = vmul.f32 %v14367_v0, %v13491_v5 }
 0x160   : > { %21898 = vst [vmem:[#allocation171_spill] sm:$0xff] %v14348_v13  ;;  %21899 = vst [vmem:[#allocation172_spill] sm:$0xff] %v14350_v21  ;;  %v14397_v13 = vrot.slane %v13505_v10, %v13677_v58  ;;  %11297 = vmatpush3.msra.mxu1 %v14362_v35  ;;  %v14400_v62 = vand.u32 4294901760, %v2475_v22  ;;  %v14405_v8 = vand.u32 4294901760, %v14385_v43  ;;  %v1323_v1 = vmul.f32 %v14371_v25, %v13368_v28 }
 0x161   : > { %21900 = vst [vmem:[#allocation173_spill] sm:$0xff] %v14360_v37  ;;  %21901 = vst [vmem:[#allocation174_spill] sm:$0xff] %v14362_v35  ;;  %v1019_v37 = vpop.permute.xlu0 %1018  ;;  %11298 = vmatprep.subr.mxu1 %v14373_v11  ;;  %v14414_v33 = vsub.f32 %v293_v39, %v14387_v4  ;;  %11310 = vmatprep.subr.mxu0 %v13806_v29  ;;  %v14418_v22 = vand.u32 4294901760, %v2363_v42  ;;  %v1691_v29 = vmul.f32 %v13563_v57, %v13783_v32 }
 0x162   : > { %21902 = vst [vmem:[#allocation175_spill] sm:$0xff] %v14373_v11  ;;  %21903 = vst [vmem:[#allocation176_spill] sm:$0xff] %v14382_v51  ;;  %11299 = vmatpush3.msra.mxu1 %v14393_v9  ;;  %v2482_v35 = vsub.f32 %v14385_v43, %v14405_v8  ;;  %v1021_v51 = vpop.permute.xlu1 %1020  ;;  %1550 = vrot.lane.b32.xlu0 %v1511_v41, %s13224_s29  ;;  %v1512_v42 = vmul.f32 %v14397_v13, %v13491_v5 }
 0x163   : > { %21904 = vst [vmem:[#allocation177_spill] sm:$0xff] %v14385_v43  ;;  %21905 = vst [vmem:[#allocation178_spill] sm:$0xff] %v14387_v4  ;;  %1363 = vrot.lane.b32.xlu1 %v1323_v1, %s13223_s23  ;;  %v14425_v40 = vand.u32 4294901760, %v14414_v33  ;;  %11300 = vmatprep.subr.mxu1 %v14400_v62  ;;  %v668_v43 = vsel %vm658_vm2, %v14231_v24, %v14086_v20  ;;  %v669_v5 = vsel %vm658_vm2, %v14086_v20, %v14284_v2 }
 0x164   : > { %21906 = vst [vmem:[#allocation179_spill] sm:$0xff] %v14389_v14  ;;  %21907 = vst [vmem:[#allocation180_spill] sm:$0xff] %v14393_v9  ;;  %v14428_v39 = vand.u32 4294901760, %v2482_v35  ;;  %v14436_v9 = vrot.slane %v13559_v54, %v13677_v58  ;;  %11301 = vmatpush3.msra.mxu1 %v14418_v22  ;;  %v1045_v10 = vsel %vm1036_vm8, %v1019_v37, %v1021_v51 }
 0x165   : > { %21908 = vst [vmem:[#allocation181_spill] sm:$0xff] %v14400_v62  ;;  %21909 = vst [vmem:[#allocation182_spill] sm:$0xff] %v14405_v8  ;;  %v2370_v41 = vsub.f32 %v14414_v33, %v14425_v40  ;;  %v1190_v1 = vpop.permute.xlu0 %1189 }
 0x166   : > { %21910 = vst [vmem:[#allocation183_spill] sm:$0xff] %v14414_v33  ;;  %21911 = vst [vmem:[#allocation184_spill] sm:$0xff] %v14418_v22  ;;  %11302 = vmatprep.subr.mxu1 %v14428_v39  ;;  %v14442_v35 = vpop.permute.xlu1 %1024  ;;  %1730 = vrot.lane.b32.xlu0 %v1691_v29, %s13225_s8  ;;  %v1881_v11 = vmul.f32 %v14436_v9, %v13579_v18  ;;  %v1692_v22 = vmul.f32 %v13563_v57, %v14248_v12 }
 0x167   : > { %21912 = vst [vmem:[#allocation185_spill] sm:$0xff] %v14425_v40  ;;  %21913 = vst [vmem:[#allocation186_spill] sm:$0xff] %v14428_v39  ;;  %1552 = vrot.lane.b32.xlu1 %v1512_v42, %s13224_s29  ;;  %v14446_v62 = vand.u32 4294901760, %v2370_v41  ;;  %v14454_v40 = vrot.slane %v13559_v54, %v13366_v26  ;;  %v667_v33 = vsel %vm658_vm2, %v14141_v15, %v14231_v24 }
 0x168   : > { %v505_v15 = vmul.f32 %v13755_v45, %v13717_v38  ;;  %v859_v24 = vsel %vm848_vm7, %v14181_v48, %v14389_v14  ;;  %v1046_v45 = vsel %vm1036_vm8, %v1021_v51, %v14326_v53 }
 0x169   : > { %21914 = vst [vmem:[#allocation187_spill] sm:$0xff] %v14446_v62  ;;  %11303 = vmatpush3.msra.mxu1 %v14446_v62  ;;  %v1374_v29 = vpop.permute.xlu0 %1373  ;;  %v1880_v42 = vmul.f32 %v14454_v40, %v13579_v18  ;;  %v857_v18 = vsel %vm848_vm7, %v14242_v7, %v14338_v34  ;;  %v858_v7 = vsel %vm848_vm7, %v14338_v34, %v14181_v48 }
 0x16a   : > { %11348 = vmatprep.subr.mxu1 %v13795_v3  ;;  %v1188_v39 = vpop.permute.xlu1 %1187  ;;  %1921 = vrot.lane.b32.xlu0 %v1881_v11, %s13226_s13  ;;  %v504_v11 = vmul.f32 %v13763_v47, %v13717_v38  ;;  %v506_v47 = vmul.f32 %v13759_v31, %v13717_v38  ;;  %v703_v20 = vadd.f32 %v668_v43, %v505_v15 }
 0x16b   : > { %1732 = vrot.lane.b32.xlu1 %v1692_v22, %s13225_s8  ;;  %v1210_v34 = vsel %vm432_vm6, %v1188_v39, %v1190_v1 }
 0x16c   : > { %v893_v31 = vadd.f32 %v858_v7, %v703_v20 }
 0x16d   : > { %v14465_v8 = vpop.permute.xlu0 %1377 }
 0x16e   : > { %v14463_v41 = vpop.permute.xlu1 %1191  ;;  %v1081_v43 = vadd.f32 %v1046_v45, %v893_v31 }
 0x16f   : > { %1919 = vrot.lane.b32.xlu1 %v1880_v42, %s13226_s13  ;;  %v702_v42 = vadd.f32 %v667_v33, %v504_v11  ;;  %v704_v33 = vadd.f32 %v669_v5, %v506_v47  ;;  %v1211_v48 = vsel %vm432_vm6, %v1190_v1, %v14463_v41 }
 0x170   : > { %v1245_v15 = vadd.f32 %v1210_v34, %v1081_v43 }
 0x171   : > { %v1565_v57 = vpop.permute.xlu0 %1564  ;;  %v892_v28 = vadd.f32 %v857_v18, %v702_v42  ;;  %v1047_v18 = vsel %vm1036_vm8, %v14326_v53, %v14442_v35  ;;  %v894_v42 = vadd.f32 %v859_v24, %v704_v33 }
 0x172   : > { %v1376_v54 = vpop.permute.xlu1 %1375 }
 0x173   : > { %v1080_v37 = vadd.f32 %v1045_v10, %v892_v28  ;;  %v1082_v5 = vadd.f32 %v1047_v18, %v894_v42  ;;  %v1400_v10 = vsel %vm1391_vm9, %v1374_v29, %v1376_v54  ;;  %v1401_v51 = vsel %vm1391_vm9, %v1376_v54, %v14465_v8 }
 0x174   : > { %v1436_v24 = vadd.f32 %v1400_v10, %v1245_v15 }
 0x175   : > { %v1743_v22 = vpop.permute.xlu0 %1742  ;;  %v1244_v38 = vadd.f32 %v1188_v39, %v1080_v37  ;;  %v1246_v47 = vadd.f32 %v1211_v48, %v1082_v5 }
 0x176   : > { %v1563_v62 = vpop.permute.xlu1 %1562 }
 0x177   : > { %v1435_v53 = vadd.f32 %v1374_v29, %v1244_v38  ;;  %v1589_v7 = vsel %vm1580_vm10, %v1563_v62, %v1565_v57  ;;  %v1437_v20 = vadd.f32 %v1401_v51, %v1246_v47 }
 0x178   : > { %v1625_v54 = vadd.f32 %v1589_v7, %v1436_v24  ;;  %v600_v7 = vmul.f32 %v13725_v55, %v13521_v17  ;;  %v978_v55 = vmul.f32 %v14266_v30, %v13615_v49  ;;  %v1332_v30 = vmul.f32 %v14371_v25, %v13635_v6 }
 0x179   : > { %v14494_v11 = vpop.permute.xlu0 %1746  ;;  %v1624_v1 = vadd.f32 %v1563_v62, %v1435_v53  ;;  %v599_v53 = vmul.f32 %v13688_v61, %v13521_v17  ;;  %v977_v61 = vmul.f32 %v13711_v16, %v13615_v49  ;;  %v1331_v16 = vmul.f32 %v14299_v19, %v13635_v6 }
 0x17a   : > { %v14486_v3 = vpop.permute.xlu1 %1566  ;;  %v1520_v24 = vmul.f32 %v14367_v0, %v13648_v36  ;;  %v1700_v19 = vmul.f32 %v13655_v46, %v13783_v32  ;;  %v1701_v25 = vmul.f32 %v13655_v46, %v14248_v12  ;;  %v21918_v0 = vld [vmem:[#allocation43_spill] sm:$0xff]  ;;  %v21960_v46 = vld [vmem:[#allocation77_spill] sm:$0xff] }
 0x17b   : > { %v1590_v39 = vsel %vm1580_vm10, %v1565_v57, %v14486_v3  ;;  %v1804_v31 = vadd.f32 %v1743_v22, %v1624_v1  ;;  %v14564_v1 = vsub.s32 6, %v13358_v23 }
 0x17c   : > { %v1626_v18 = vadd.f32 %v1590_v39, %v1437_v20  ;;  %v790_v39 = vmul.f32 %v13736_v59, %v13602_v27  ;;  %v1151_v59 = vmul.f32 %v14248_v12, %v13539_v44  ;;  %v1521_v20 = vmul.f32 %v14397_v13, %v13648_v36 }
 0x17d   : > { %v1932_v14 = vpop.permute.xlu0 %1931  ;;  %21917 = vst [vmem:[#allocation189_spill] sm:$0xff] %v14564_v1  ;;  %v14577_v13 = vsub.s32 7, %v13358_v23  ;;  %v21923_v23 = vld [vmem:[#allocation18_spill] sm:$0xff] }
 0x17e   : > { %v1745_v28 = vpop.permute.xlu1 %1744 }
 0x17f   : > { %v1769_v37 = vsel %vm1760_vm11, %v1743_v22, %v1745_v28  ;;  %v1770_v45 = vsel %vm1760_vm11, %v1745_v28, %v14494_v11  ;;  %v1993_v28 = vadd.f32 %v1932_v14, %v1804_v31  ;;  %v21921_v31 = vld [vmem:[#allocation19_spill] sm:$0xff] }
 0x180   : > { %v1805_v38 = vadd.f32 %v1769_v37, %v1625_v54  ;;  %v1806_v29 = vadd.f32 %v1770_v45, %v1626_v18  ;;  %v1889_v37 = vmul.f32 %v14454_v40, %v21918_v0  ;;  %v21919_v45 = vld [vmem:[#allocation7_spill] sm:$0xff]  ;;  %v1890_v18 = vmul.f32 %v14436_v9, %v21918_v0  ;;  %v21943_v0 = vld [vmem:[#allocation78_spill] sm:$0xff] }
 0x181   : > { %v14515_v42 = vpop.permute.xlu0 %1935  ;;  %v14574_v54 = vrot.slane %v21919_v45, %v14564_v1  ;;  %21920 = vst [vmem:[#allocation7_spill] sm:$0xff] %v14577_v13  ;;  %v14587_v40 = vrot.slane %v21919_v45, %v14577_v13 }
 0x183   : > { %v592_v12 = vmul.f32 %v14574_v54, %v21921_v31  ;;  %v593_v9 = vmul.f32 %v14587_v40, %v21921_v31 }
 0x187   : > { %v14510_v33 = vpop.permute.xlu1 %2009 }
 0x188   : > { %21915 = vst [vmem:[#allocation188_spill] sm:$0xff] %v14510_v33  ;;  %v2021_v22 = vadd.f32 %v14510_v33, %v1993_v28 }
 0x18a   : > { %v2039_v47 = vmax.f32 %v2021_v22, 0.0 }
 0x18b   : > { %v1934_v34 = vpop.permute.xlu1 %1933 }
 0x18c   : > { %v1958_v57 = vsel %vm1949_vm12, %v1932_v14, %v1934_v34  ;;  %v1959_v62 = vsel %vm1949_vm12, %v1934_v34, %v14515_v42  ;;  %v789_v14 = vmul.f32 %v13702_v50, %v13602_v27  ;;  %v1150_v50 = vmul.f32 %v13783_v32, %v13539_v44  ;;  %v631_v32 = vpop.permute.xlu0 %630  ;;  %v21925_v34 = vld [vmem:[#allocation9_spill] sm:$0xff]  ;;  %v21981_v44 = vld [vmem:[#allocation118_spill] sm:$0xff] }
 0x18d   : > { %v1994_v48 = vadd.f32 %v1958_v57, %v1805_v38  ;;  %v1995_v43 = vadd.f32 %v1959_v62, %v1806_v29  ;;  %v14595_v29 = vrot.slane %v21923_v23, %v14564_v1 }
 0x18f   : > { %v2023_v5 = vadd.f32 %v14510_v33, %v1995_v43  ;;  %v2022_v10 = vadd.f32 %v14510_v33, %v1994_v48  ;;  %v14589_v38 = vpop.permute.xlu1 %632  ;;  %21924 = vst [vmem:[#allocation18_spill] sm:$0xff] %v14595_v29  ;;  %v782_v57 = vmul.f32 %v14595_v29, %v21925_v34  ;;  %v14605_v48 = vrot.slane %v21923_v23, %v14577_v13  ;;  %v21936_v23 = vld [vmem:[#allocation49_spill] sm:$0xff] }
 0x190   : > { %21922 = vst [vmem:[#allocation190_spill] sm:$0xff] %v14589_v38  ;;  %v821_v62 = vpop.permute.xlu0 %820 }
 0x191   : > { %v2041_v51 = vmax.f32 %v2023_v5, 0.0  ;;  %v2040_v15 = vmax.f32 %v2022_v10, 0.0  ;;  %21926 = vst [vmem:[#allocation191_spill] sm:$0xff] %v14605_v48  ;;  %v783_v5 = vmul.f32 %v14605_v48, %v21925_v34  ;;  %v21941_v34 = vld [vmem:[#allocation70_spill] sm:$0xff] }
 0x193   : > { %2086 = vrot.lane.b32.xlu0 %v2040_v15, %s13216_s16  ;;  %2088 = vrot.lane.b32.xlu1 %v2041_v51, %s13216_s16  ;;  %v14607_v43 = vpop.permute.xlu1 %822 }
 0x194   : > { %21927 = vst [vmem:[#allocation192_spill] sm:$0xff] %v14607_v43  ;;  %v1009_v10 = vpop.permute.xlu0 %1008 }
 0x197   : > { %2084 = vrot.lane.b32.xlu0 %v2039_v47, %s13216_s16  ;;  %648 = vrot.lane.b32.xlu1 %v599_v53, %s13209_s21 }
 0x19b   : > { %650 = vrot.lane.b32.xlu0 %v600_v7, %s13209_s21  ;;  %838 = vrot.lane.b32.xlu1 %v789_v14, %s21916_s14 }
 0x19f   : > { %840 = vrot.lane.b32.xlu0 %v790_v39, %s21916_s14  ;;  %1026 = vrot.lane.b32.xlu1 %v977_v61, %s13222_s22 }
 0x1a3   : > { %1028 = vrot.lane.b32.xlu0 %v978_v55, %s13222_s22  ;;  %1193 = vrot.lane.b32.xlu1 %v1150_v50, %s13220_s19  ;;  %v21931_v50 = vld [vmem:[#allocation53_spill] sm:$0xff] }
 0x1a7   : > { %1195 = vrot.lane.b32.xlu0 %v1151_v59, %s13220_s19  ;;  %1379 = vrot.lane.b32.xlu1 %v1331_v16, %s13223_s23  ;;  %v14633_v59 = vrot.slane %v21931_v50, %v13366_v26  ;;  %v14637_v16 = vrot.slane %v21931_v50, %v13677_v58  ;;  %v21939_v58 = vld [vmem:[#allocation68_spill] sm:$0xff] }
 0x1ab   : > { %1381 = vrot.lane.b32.xlu0 %v1332_v30, %s13223_s23  ;;  %1568 = vrot.lane.b32.xlu1 %v1520_v24, %s13224_s29 }
 0x1af   : > { %1570 = vrot.lane.b32.xlu0 %v1521_v20, %s13224_s29  ;;  %1748 = vrot.lane.b32.xlu1 %v1700_v19, %s13225_s8  ;;  %v21932_v20 = vld [vmem:[#allocation56_spill] sm:$0xff]  ;;  %v21933_v19 = vld [vmem:[#allocation57_spill] sm:$0xff] }
 0x1b3   : > { %1750 = vrot.lane.b32.xlu0 %v1701_v25, %s13225_s8  ;;  %1937 = vrot.lane.b32.xlu1 %v1889_v37, %s13226_s13 }
 0x1b7   : > { %1939 = vrot.lane.b32.xlu0 %v1890_v18, %s13226_s13  ;;  %634 = vrot.lane.b32.xlu1 %v592_v12, %s13209_s21  ;;  %v21935_v12 = vld [vmem:[#allocation62_spill] sm:$0xff] }
 0x1bb   : > { %636 = vrot.lane.b32.xlu0 %v593_v9, %s13209_s21  ;;  %824 = vrot.lane.b32.xlu1 %v782_v57, %s21916_s14  ;;  %v662_v9 = vsel %vm658_vm2, %v21936_v23, %v631_v32  ;;  %v663_v57 = vsel %vm658_vm2, %v631_v32, %v14589_v38  ;;  %v853_v23 = vsel %vm848_vm7, %v821_v62, %v14607_v43 }
 0x1bf   : > { %826 = vrot.lane.b32.xlu0 %v783_v5, %s21916_s14  ;;  %v21937_v5 = vld [vmem:[#allocation65_spill] sm:$0xff] }
 0x1c3   : > { %v2069_v28 = vpop.permute.xlu1 %2068 }
 0x1c6   : > { %v14612_v51 = vpop.permute.xlu0 %2070 }
 0x1c7   : > { %21928 = vst [vmem:[#allocation193_spill] sm:$0xff] %v14612_v51  ;;  %v2067_v15 = vpop.permute.xlu1 %2066  ;;  %v2103_v22 = vsel %vm1816_vm5, %v2069_v28, %v14612_v51  ;;  %v21946_v51 = vld [vmem:[#allocation60_spill] sm:$0xff] }
 0x1c8   : > { %v2102_v47 = vsel %vm1816_vm5, %v2067_v15, %v2069_v28  ;;  %v14617_v53 = vand.u32 4294901760, %v2103_v22  ;;  %v21938_v28 = vld [vmem:[#allocation45_spill] sm:$0xff] }
 0x1c9   : > { %v14619_v7 = vand.u32 4294901760, %v2102_v47  ;;  %v498_v15 = vmul.f32 %v14633_v59, %v21938_v28 }
 0x1ca   : > { %v14622_v14 = vsub.f32 %v2103_v22, %v14617_v53  ;;  %2486 = vmatprep.mubr.f32.mxu1 %v14617_v53  ;;  %v499_v22 = vmul.f32 %v14637_v16, %v21938_v28 }
 0x1cb   : > { %21929 = vst [vmem:[#allocation194_spill] sm:$0xff] %v14619_v7  ;;  %v14625_v39 = vsub.f32 %v2102_v47, %v14619_v7  ;;  %v1178_v61 = vpop.permute.xlu0 %1177  ;;  %2488 = vmatmul.mubr.f32.vlgmr.msra.gmra.mxu1 %v14619_v7  ;;  %v696_v32 = vadd.f32 %v662_v9, %v498_v15  ;;  %v21947_v9 = vld [vmem:[#allocation80_spill] sm:$0xff]  ;;  %v21998_v7 = vld [vmem:[#allocation141_spill] sm:$0xff] }
 0x1cc   : > { %v14628_v55 = vpop.permute.xlu1 %1010  ;;  %v20728_v30 = vand.u32 4294901760, %v14622_v14  ;;  %11349 = vmatpush3.msra.mxu1 %v21932_v20  ;;  %v697_v31 = vadd.f32 %v663_v57, %v499_v22  ;;  %v21948_v57 = vld [vmem:[#allocation58_spill] sm:$0xff] }
 0x1cd   : > { %21930 = vst [vmem:[#allocation195_spill] sm:$0xff] %v14628_v55  ;;  %v20731_v24 = vand.u32 4294901760, %v14625_v39  ;;  %11350 = vmatprep.subr.mxu1 %v21933_v19  ;;  %v1041_v28 = vsel %vm1036_vm8, %v1009_v10, %v14628_v55  ;;  %v1205_v15 = vsel %vm432_vm6, %v21948_v57, %v1178_v61 }
 0x1ce   : > { %v2233_v45 = vsub.f32 %v14622_v14, %v20728_v30  ;;  %11351 = vmatpush3.msra.mxu1 %v21935_v12  ;;  %v887_v43 = vadd.f32 %v853_v23, %v697_v31  ;;  %v21953_v31 = vld [vmem:[#allocation94_spill] sm:$0xff]  ;;  %v21954_v23 = vld [vmem:[#allocation89_spill] sm:$0xff] }
 0x1cf   : > { %v1362_v25 = vpop.permute.xlu0 %1361  ;;  %v2239_v18 = vsub.f32 %v14625_v39, %v20731_v24  ;;  %11352 = vmatprep.subr.mxu1 %v21937_v5  ;;  %v21940_v24 = vld [vmem:[#allocation52_spill] sm:$0xff] }
 0x1d0   : > { %v14643_v37 = vpop.permute.xlu1 %1179  ;;  %v2234_v47 = vand.u32 4294901760, %v2233_v45  ;;  %11353 = vmatpush3.msra.mxu1 %v21939_v58  ;;  %v852_v26 = vsel %vm848_vm7, %v21940_v24, %v821_v62  ;;  %v21944_v45 = vld [vmem:[#allocation54_spill] sm:$0xff]  ;;  %v21945_v24 = vld [vmem:[#allocation79_spill] sm:$0xff] }
 0x1d1   : > { %21934 = vst [vmem:[#allocation196_spill] sm:$0xff] %v14643_v37  ;;  %v2240_v30 = vand.u32 4294901760, %v2239_v18  ;;  %11354 = vmatprep.subr.mxu1 %v21941_v34  ;;  %v1040_v18 = vsel %vm1036_vm8, %v21944_v45, %v1009_v10  ;;  %v886_v62 = vadd.f32 %v852_v26, %v696_v32  ;;  %v1206_v22 = vsel %vm432_vm6, %v1178_v61, %v14643_v37  ;;  %v21950_v45 = vld [vmem:[#allocation91_spill] sm:$0xff]  ;;  %v21956_v61 = vld [vmem:[#allocation100_spill] sm:$0xff] }
 0x1d2   : > { %2235 = vmatprep.mubr.f32.mxu0 %v2234_v47  ;;  %11355 = vmatpush3.msra.mxu1 %v21943_v0  ;;  %v21949_v47 = vld [vmem:[#allocation61_spill] sm:$0xff]  ;;  %v21952_v26 = vld [vmem:[#allocation67_spill] sm:$0xff]  ;;  %v1394_v32 = vsel %vm1391_vm9, %v21954_v23, %v1362_v25 }
 0x1d3   : > { %2241 = vmatmul.mubr.f32.vlgmr.msra.gmra.mxu0 %v2240_v30  ;;  %11356 = vmatprep.subr.mxu1 %v21945_v24  ;;  %v1074_v10 = vadd.f32 %v1040_v18, %v886_v62  ;;  %v1075_v30 = vadd.f32 %v1041_v28, %v887_v43  ;;  %v21957_v43 = vld [vmem:[#allocation76_spill] sm:$0xff]  ;;  %v21958_v28 = vld [vmem:[#allocation101_spill] sm:$0xff] }
 0x1d4   : > { %v1551_v38 = vpop.permute.xlu0 %1550  ;;  %11311 = vmatpush3.msra.mxu0 %v21946_v51  ;;  %11357 = vmatpush3.msra.mxu1 %v21947_v9  ;;  %v21955_v51 = vld [vmem:[#allocation69_spill] sm:$0xff]  ;;  %v21959_v62 = vld [vmem:[#allocation88_spill] sm:$0xff] }
 0x1d5   : > { %v14667_v50 = vpop.permute.xlu1 %1363  ;;  %11312 = vmatprep.subr.mxu0 %v21949_v47  ;;  %11358 = vmatprep.subr.mxu1 %v21950_v45  ;;  %v1238_v47 = vadd.f32 %v1205_v15, %v1074_v10  ;;  %v1239_v37 = vadd.f32 %v1206_v22, %v1075_v30  ;;  %v21963_v15 = vld [vmem:[#allocation84_spill] sm:$0xff] }
 0x1d6   : > { %21942 = vst [vmem:[#allocation49_spill] sm:$0xff] %v14667_v50  ;;  %11313 = vmatpush3.msra.mxu0 %v21952_v26  ;;  %11359 = vmatpush3.msra.mxu1 %v21953_v31  ;;  %v1395_v57 = vsel %vm1391_vm9, %v1362_v25, %v14667_v50  ;;  %v1583_v26 = vsel %vm1580_vm10, %v21959_v62, %v1551_v38  ;;  %v21961_v25 = vld [vmem:[#allocation102_spill] sm:$0xff]  ;;  %v21964_v22 = vld [vmem:[#allocation120_spill] sm:$0xff] }
 0x1d7   : > { %11314 = vmatprep.subr.mxu0 %v21955_v51  ;;  %11360 = vmatprep.subr.mxu1 %v21956_v61  ;;  %v1429_v51 = vadd.f32 %v1394_v32, %v1238_v47  ;;  %v1430_v50 = vadd.f32 %v1395_v57, %v1239_v37  ;;  %v21965_v62 = vld [vmem:[#allocation86_spill] sm:$0xff]  ;;  %v21967_v47 = vld [vmem:[#allocation87_spill] sm:$0xff]  ;;  %v21968_v37 = vld [vmem:[#allocation112_spill] sm:$0xff] }
 0x1d8   : > { %v1731_v18 = vpop.permute.xlu0 %1730  ;;  %11315 = vmatpush3.msra.mxu0 %v21957_v43  ;;  %11361 = vmatpush3.msra.mxu1 %v21958_v28  ;;  %v21969_v32 = vld [vmem:[#allocation97_spill] sm:$0xff]  ;;  %v21970_v57 = vld [vmem:[#allocation122_spill] sm:$0xff] }
 0x1d9   : > { %v14683_v55 = vpop.permute.xlu1 %1552  ;;  %11316 = vmatprep.subr.mxu0 %v21960_v46  ;;  %11362 = vmatprep.subr.mxu1 %v21961_v25  ;;  %v1763_v10 = vsel %vm1760_vm11, %v21964_v22, %v1731_v18  ;;  %v1618_v46 = vadd.f32 %v1583_v26, %v1429_v51  ;;  %v21974_v26 = vld [vmem:[#allocation107_spill] sm:$0xff] }
 0x1da   : > { %21951 = vst [vmem:[#allocation52_spill] sm:$0xff] %v14683_v55  ;;  %v1584_v23 = vsel %vm1580_vm10, %v1551_v38, %v14683_v55  ;;  %11317 = vmatpush3.msra.mxu0 %v21963_v15  ;;  %11363 = vmatpush3.msra.mxu1 %v14037_v60  ;;  %v21966_v38 = vld [vmem:[#allocation111_spill] sm:$0xff] }
 0x1db   : > { %11318 = vmatprep.subr.mxu0 %v21965_v62  ;;  %11364 = vmatprep.subr.mxu1 %v21966_v38  ;;  %v1619_v43 = vadd.f32 %v1584_v23, %v1430_v50  ;;  %v1798_v15 = vadd.f32 %v1763_v10, %v1618_v46  ;;  %v21973_v62 = vld [vmem:[#allocation123_spill] sm:$0xff]  ;;  %v21975_v23 = vld [vmem:[#allocation132_spill] sm:$0xff] }
 0x1dc   : > { %11319 = vmatpush3.msra.mxu0 %v21967_v47  ;;  %11365 = vmatpush3.msra.mxu1 %v21968_v37  ;;  %v14715_v55 = vpop.permute.xlu0 %1921  ;;  %v21976_v10 = vld [vmem:[#allocation108_spill] sm:$0xff]  ;;  %v21980_v47 = vld [vmem:[#allocation46_spill] sm:$0xff] }
 0x1dd   : > { %v14701_v36 = vpop.permute.xlu1 %1732  ;;  %11320 = vmatprep.subr.mxu0 %v21969_v32  ;;  %11366 = vmatprep.subr.mxu1 %v21970_v57  ;;  %21971 = vst [vmem:[#allocation58_spill] sm:$0xff] %v14715_v55 }
 0x1de   : > { %21962 = vst [vmem:[#allocation54_spill] sm:$0xff] %v14701_v36  ;;  %v1764_v30 = vsel %vm1760_vm11, %v1731_v18, %v14701_v36  ;;  %v21972_v18 = vld [vmem:[#allocation98_spill] sm:$0xff]  ;;  %11367 = vmatpush3.msra.mxu1 %v21973_v62 }
 0x1df   : > { %v1799_v22 = vadd.f32 %v1764_v30, %v1619_v43  ;;  %11321 = vmatpush3.msra.mxu0 %v21972_v18  ;;  %11368 = vmatprep.subr.mxu1 %v21975_v23  ;;  %v21977_v43 = vld [vmem:[#allocation133_spill] sm:$0xff]  ;;  %v21979_v18 = vld [vmem:[#allocation134_spill] sm:$0xff] }
 0x1e0   : > { %11322 = vmatprep.subr.mxu0 %v21974_v26  ;;  %11369 = vmatpush3.msra.mxu1 %v21977_v43  ;;  %v21978_v30 = vld [vmem:[#allocation109_spill] sm:$0xff]  ;;  %v21983_v26 = vld [vmem:[#allocation119_spill] sm:$0xff] }
 0x1e1   : > { %v1920_v6 = vpop.permute.xlu1 %1919  ;;  %11323 = vmatpush3.msra.mxu0 %v21976_v10  ;;  %11370 = vmatprep.subr.mxu1 %v21979_v18 }
 0x1e2   : > { %v1952_v51 = vsel %vm1949_vm12, %v14183_v52, %v1920_v6  ;;  %v1953_v50 = vsel %vm1949_vm12, %v1920_v6, %v14715_v55  ;;  %11324 = vmatprep.subr.mxu0 %v21978_v30  ;;  %v21982_v6 = vld [vmem:[#allocation143_spill] sm:$0xff] }
 0x1e3   : > { %v1987_v32 = vadd.f32 %v1952_v51, %v1798_v15  ;;  %v1988_v46 = vadd.f32 %v1953_v50, %v1799_v22  ;;  %11325 = vmatpush3.msra.mxu0 %v21981_v44  ;;  %11371 = vmatpush3.msra.mxu1 %v21982_v6  ;;  %v21984_v15 = vld [vmem:[#allocation150_spill] sm:$0xff]  ;;  %v21985_v50 = vld [vmem:[#allocation23_spill] sm:$0xff] }
 0x1e4   : > { %11326 = vmatprep.subr.mxu0 %v21983_v26  ;;  %11372 = vmatprep.subr.mxu1 %v21984_v15  ;;  %v14737_v10 = vrot.slane %v21985_v50, %v14577_v13  ;;  %v14741_v30 = vrot.slane %v21985_v50, %v14564_v1  ;;  %v21990_v44 = vld [vmem:[#allocation130_spill] sm:$0xff]  ;;  %v21993_v26 = vld [vmem:[#allocation131_spill] sm:$0xff] }
 0x1e5   : > { %v2015_v36 = vadd.f32 %v21980_v47, %v1987_v32  ;;  %v2016_v52 = vadd.f32 %v21980_v47, %v1988_v46  ;;  %v21988_v32 = vld [vmem:[#allocation121_spill] sm:$0xff]  ;;  %v21989_v46 = vld [vmem:[#allocation151_spill] sm:$0xff]  ;;  %v21991_v47 = vld [vmem:[#allocation152_spill] sm:$0xff] }
 0x1e6   : > { %21986 = vst [vmem:[#allocation89_spill] sm:$0xff] %v14737_v10  ;;  %21987 = vst [vmem:[#allocation88_spill] sm:$0xff] %v14741_v30  ;;  %11327 = vmatpush3.msra.mxu0 %v21988_v32  ;;  %11373 = vmatpush3.msra.mxu1 %v21989_v46  ;;  %v21994_v50 = vld [vmem:[#allocation10_spill] sm:$0xff]  ;;  %v21995_v13 = vld [vmem:[#allocation47_spill] sm:$0xff] }
 0x1e7   : > { %v2033_v22 = vmax.f32 %v2015_v36, 0.0  ;;  %v2034_v51 = vmax.f32 %v2016_v52, 0.0  ;;  %11328 = vmatprep.subr.mxu0 %v21990_v44  ;;  %11374 = vmatprep.subr.mxu1 %v21991_v47  ;;  %v21992_v36 = vld [vmem:[#allocation6_spill] sm:$0xff]  ;;  %v971_v32 = vmul.f32 %v14737_v10, %v21994_v50  ;;  %v970_v44 = vmul.f32 %v14741_v30, %v21994_v50 }
 0x1e8   : > { %v14751_v52 = vrot.slane %v21992_v36, %v14564_v1  ;;  %11329 = vmatpush3.msra.mxu0 %v21993_v26  ;;  %11375 = vmatpush3.msra.mxu1 %v14291_v63  ;;  %v14761_v55 = vrot.slane %v21992_v36, %v21995_v13  ;;  %v21999_v26 = vld [vmem:[#allocation22_spill] sm:$0xff]  ;;  %v22001_v36 = vld [vmem:[#allocation28_spill] sm:$0xff] }
 0x1e9   : > { %2074 = vrot.lane.b32.xlu0 %v2034_v51, %s13216_s16  ;;  %2072 = vrot.lane.b32.xlu1 %v2033_v22, %s13216_s16  ;;  %v21996_v51 = vld [vmem:[#allocation140_spill] sm:$0xff]  ;;  %v21997_v22 = vld [vmem:[#allocation161_spill] sm:$0xff]  ;;  %v22000_v50 = vld [vmem:[#allocation142_spill] sm:$0xff]  ;;  %v14777_v30 = vrot.slane %v22001_v36, %v14564_v1 }
 0x1ea   : > { %11330 = vmatprep.subr.mxu0 %v21996_v51  ;;  %11376 = vmatprep.subr.mxu1 %v21997_v22  ;;  %v1145_v10 = vmul.f32 %v14751_v52, %v21999_v26  ;;  %v1144_v51 = vmul.f32 %v14761_v55, %v21999_v26  ;;  %v22007_v26 = vld [vmem:[#allocation158_spill] sm:$0xff] }
 0x1eb   : > { %11331 = vmatpush3.msra.mxu0 %v21998_v7  ;;  %11377 = vmatpush3.msra.mxu1 %v14295_v56  ;;  %22002 = vst [vmem:[#allocation120_spill] sm:$0xff] %v14777_v30  ;;  %v14781_v7 = vrot.slane %v22001_v36, %v21995_v13  ;;  %v22023_v56 = vand.u32 4294901760, %v14622_v14 }
 0x1ec   : > { %11332 = vmatprep.subr.mxu0 %v22000_v50  ;;  %11378 = vmatprep.subr.mxu1 %v14350_v21  ;;  %v22006_v50 = vld [vmem:[#allocation55_spill] sm:$0xff]  ;;  %v22008_v21 = vld [vmem:[#allocation14_spill] sm:$0xff] }
 0x1ed   : > { %1014 = vrot.lane.b32.xlu0 %v971_v32, %s13222_s22  ;;  %1012 = vrot.lane.b32.xlu1 %v970_v44, %s13222_s22  ;;  %22003 = vst [vmem:[#allocation23_spill] sm:$0xff] %v14781_v7  ;;  %v22004_v32 = vld [vmem:[#allocation149_spill] sm:$0xff]  ;;  %v1325_v49 = vmul.f32 %v14777_v30, %v22008_v21  ;;  %v1324_v36 = vmul.f32 %v14781_v7, %v22008_v21 }
 0x1ee   : > { %11333 = vmatpush3.msra.mxu0 %v22004_v32  ;;  %11379 = vmatpush3.msra.mxu1 %v14387_v4  ;;  %v22005_v44 = vld [vmem:[#allocation157_spill] sm:$0xff]  ;;  %v22009_v32 = vld [vmem:[#allocation30_spill] sm:$0xff] }
 0x1ef   : > { %11334 = vmatprep.subr.mxu0 %v22005_v44  ;;  %11424 = vmatprep.subr.mxu1 %v22006_v50  ;;  %v14796_v48 = vrot.slane %v22009_v32, %v14564_v1  ;;  %v14800_v44 = vrot.slane %v22009_v32, %v21995_v13  ;;  %v22012_v50 = vld [vmem:[#allocation159_spill] sm:$0xff]  ;;  %v22016_v7 = vld [vmem:[#allocation169_spill] sm:$0xff] }
 0x1f0   : > { %11335 = vmatpush3.msra.mxu0 %v22007_v26  ;;  %v22015_v26 = vld [vmem:[#allocation29_spill] sm:$0xff] }
 0x1f1   : > { %1183 = vrot.lane.b32.xlu0 %v1145_v10, %s13220_s19  ;;  %1181 = vrot.lane.b32.xlu1 %v1144_v51, %s13220_s19  ;;  %22010 = vst [vmem:[#allocation197_spill] sm:$0xff] %v14796_v48  ;;  %22011 = vst [vmem:[#allocation198_spill] sm:$0xff] %v14800_v44  ;;  %v22013_v10 = vld [vmem:[#allocation166_spill] sm:$0xff]  ;;  %v22014_v51 = vld [vmem:[#allocation167_spill] sm:$0xff]  ;;  %v1514_v21 = vmul.f32 %v14796_v48, %v22015_v26  ;;  %v1513_v30 = vmul.f32 %v14800_v44, %v22015_v26 }
 0x1f2   : > { %11336 = vmatprep.subr.mxu0 %v22012_v50  ;;  %v22017_v32 = vld [vmem:[#allocation177_spill] sm:$0xff] }
 0x1f3   : > { %11337 = vmatpush3.msra.mxu0 %v22013_v10  ;;  %v22018_v10 = vld [vmem:[#allocation183_spill] sm:$0xff] }
 0x1f4   : > { %11338 = vmatprep.subr.mxu0 %v22014_v51 }
 0x1f5   : > { %1367 = vrot.lane.b32.xlu0 %v1325_v49, %s13223_s23  ;;  %1365 = vrot.lane.b32.xlu1 %v1324_v36, %s13223_s23  ;;  %v22019_v49 = vld [vmem:[#allocation63_spill] sm:$0xff] }
 0x1f6   : > { %11339 = vmatpush3.msra.mxu0 %v22016_v7 }
 0x1f7   : > { %11340 = vmatprep.subr.mxu0 %v22017_v32 }
 0x1f8   : > { %11341 = vmatpush3.msra.mxu0 %v22018_v10 }
 0x1f9   : > { %1556 = vrot.lane.b32.xlu0 %v1514_v21, %s13224_s29  ;;  %1554 = vrot.lane.b32.xlu1 %v1513_v30, %s13224_s29 }
 0x1fa   : > { %11386 = vmatprep.subr.mxu0 %v22019_v49 }
 0x205   : > { %v2087_v36 = vpop.permute.xlu0 %2086  ;;  %v14817_v51 = vpop.permute.xlu1 %2088 }
 0x206   : > { %22020 = vst [vmem:[#allocation199_spill] sm:$0xff] %v14817_v51  ;;  %v2111_v50 = vsel %vm1816_vm5, %v2087_v36, %v14817_v51 }
 0x207   : > { %v14821_v48 = vand.u32 4294901760, %v2111_v50 }
 0x209   : > { %22021 = vst [vmem:[#allocation200_spill] sm:$0xff] %v14821_v48  ;;  %v2246_v7 = vsub.f32 %v2111_v50, %v14821_v48  ;;  %v2085_v26 = vpop.permute.xlu0 %2084  ;;  %2493 = vmatprep.mubr.f32.mxu1 %v14821_v48  ;;  %v649_v21 = vpop.permute.xlu1 %648 }
 0x20a   : > { %v2110_v30 = vsel %vm1816_vm5, %v2085_v26, %v2087_v36  ;;  %v22025_v26 = vand.u32 4294901760, %v14625_v39 }
 0x20b   : > { %v14826_v32 = vand.u32 4294901760, %v2110_v30  ;;  %v2247_v10 = vand.u32 4294901760, %v2246_v7 }
 0x20d   : > { %v2252_v49 = vsub.f32 %v2110_v30, %v14826_v32  ;;  %v14829_v44 = vpop.permute.xlu0 %650  ;;  %2495 = vmatmul.mubr.f32.gmra.mxu1 %v14826_v32  ;;  %v839_v51 = vpop.permute.xlu1 %838  ;;  %v2248_v4 = vsub.f32 %v2246_v7, %v2247_v10 }
 0x20e   : > { %22022 = vst [vmem:[#allocation201_spill] sm:$0xff] %v14829_v44  ;;  %2746 = vmatprep.mubr.f32.mxu1 %v22023_v56 }
 0x20f   : > { %v2249_v50 = vand.u32 4294901760, %v2248_v4  ;;  %v2253_v22 = vand.u32 4294901760, %v2252_v49 }
 0x211   : > { %v14834_v48 = vpop.permute.xlu0 %840  ;;  %2250 = vmatprep.mubr.f32.mxu0 %v2249_v50  ;;  %2750 = vmatmul.mubr.f32.vlgmr.msra.gmra.mxu1 %v22025_v26  ;;  %v1027_v36 = vpop.permute.xlu1 %1026  ;;  %v2254_v29 = vsub.f32 %v2252_v49, %v2253_v22  ;;  %v670_v50 = vsel %vm658_vm2, %v14284_v2, %v649_v21  ;;  %v22027_v26 = vld [vmem:[#allocation48_spill] sm:$0xff] }
 0x212   : > { %22024 = vst [vmem:[#allocation202_spill] sm:$0xff] %v14834_v48  ;;  %11425 = vmatpush3.msra.mxu1 %v21932_v20  ;;  %2757 = vmatprep.mubr.f32.mxu1 %v2247_v10  ;;  %v507_v10 = vmul.f32 %v14633_v59, %v22027_v26  ;;  %v1048_v59 = vsel %vm1036_vm8, %v14442_v35, %v1027_v36 }
 0x213   : > { %11426 = vmatprep.subr.mxu1 %v21933_v19  ;;  %v2255_v30 = vand.u32 4294901760, %v2254_v29  ;;  %v22028_v29 = vld [vmem:[#allocation179_spill] sm:$0xff] }
 0x214   : > { %11427 = vmatpush3.msra.mxu1 %v21935_v12 }
 0x215   : > { %11428 = vmatprep.subr.mxu1 %v21937_v5  ;;  %v14842_v4 = vpop.permute.xlu0 %1028  ;;  %2256 = vmatmul.mubr.f32.gmra.mxu0 %v2255_v30  ;;  %v1194_v56 = vpop.permute.xlu1 %1193  ;;  %v860_v5 = vsel %vm848_vm7, %v22028_v29, %v839_v51  ;;  %v705_v30 = vadd.f32 %v670_v50, %v507_v10  ;;  %v508_v50 = vmul.f32 %v14637_v16, %v22027_v26  ;;  %v22031_v29 = vld [vmem:[#allocation66_spill] sm:$0xff] }
 0x216   : > { %22026 = vst [vmem:[#allocation203_spill] sm:$0xff] %v14842_v4  ;;  %2761 = vmatmul.mubr.f32.gmra.mxu1 %v2253_v22  ;;  %2630 = vmatprep.mubr.f32.mxu0 %v14622_v14  ;;  %v671_v14 = vsel %vm658_vm2, %v649_v21, %v14829_v44  ;;  %v22030_v22 = vld [vmem:[#allocation64_spill] sm:$0xff]  ;;  %v1212_v21 = vsel %vm432_vm6, %v14463_v41, %v1194_v56  ;;  %v22034_v41 = vld [vmem:[#allocation75_spill] sm:$0xff]  ;;  %v22106_v44 = vld [vmem:[#allocation165_spill] sm:$0xff] }
 0x217   : > { %11429 = vmatpush3.msra.mxu1 %v21939_v58  ;;  %3038 = vmatprep.mubr.f32.mxu1 %v14617_v53  ;;  %v895_v10 = vadd.f32 %v860_v5, %v705_v30  ;;  %v706_v35 = vadd.f32 %v671_v14, %v508_v50  ;;  %v22035_v50 = vld [vmem:[#allocation82_spill] sm:$0xff]  ;;  %v22080_v58 = vld [vmem:[#allocation39_spill] sm:$0xff] }
 0x218   : > { %11430 = vmatprep.subr.mxu1 %v21941_v34 }
 0x219   : > { %11431 = vmatpush3.msra.mxu1 %v21943_v0  ;;  %v14855_v12 = vpop.permute.xlu0 %1195  ;;  %2633 = vmatmul.mubr.f32.vlgmr.msra.gmra.mxu0 %v14625_v39  ;;  %v1380_v2 = vpop.permute.xlu1 %1379  ;;  %v861_v39 = vsel %vm848_vm7, %v839_v51, %v14834_v48  ;;  %v22079_v0 = vld [vmem:[#allocation191_spill] sm:$0xff]  ;;  %v22102_v48 = vld [vmem:[#allocation200_spill] sm:$0xff] }
 0x21a   : > { %22029 = vst [vmem:[#allocation179_spill] sm:$0xff] %v14855_v12  ;;  %11432 = vmatprep.subr.mxu1 %v21945_v24  ;;  %11387 = vmatpush3.msra.mxu0 %v22030_v22  ;;  %v1083_v24 = vadd.f32 %v1048_v59, %v895_v10  ;;  %v22032_v22 = vld [vmem:[#allocation71_spill] sm:$0xff]  ;;  %v1402_v51 = vsel %vm1391_vm9, %v14465_v8, %v1380_v2 }
 0x21b   : > { %11433 = vmatpush3.msra.mxu1 %v21947_v9  ;;  %2639 = vmatprep.mubr.f32.mxu0 %v2246_v7  ;;  %v1049_v7 = vsel %vm1036_vm8, %v1027_v36, %v14842_v4  ;;  %v896_v30 = vadd.f32 %v861_v39, %v706_v35  ;;  %v1213_v59 = vsel %vm432_vm6, %v1194_v56, %v14855_v12  ;;  %v356_v8 = vld [vmem:[%s20432_s4 + $0x1f8] sm:$0xff]  ;;  %v22038_v35 = vld [vmem:[#allocation90_spill] sm:$0xff]  ;;  %v22100_v4 = vld [vmem:[#allocation89_spill] sm:$0xff] }
 0x21c   : > { %11388 = vmatprep.subr.mxu0 %v22031_v29  ;;  %11434 = vmatprep.subr.mxu1 %v21950_v45  ;;  %v1247_v14 = vadd.f32 %v1212_v21, %v1083_v24  ;;  %v22036_v24 = vld [vmem:[#allocation83_spill] sm:$0xff]  ;;  %v22054_v29 = vld [vmem:[#allocation126_spill] sm:$0xff]  ;;  %v15059_v34 = vmul.f32 %v22079_v0, %v13602_v27 }
 0x21d   : > { %11389 = vmatpush3.msra.mxu0 %v22032_v22  ;;  %11435 = vmatpush3.msra.mxu1 %v21953_v31  ;;  %v14875_v16 = vpop.permute.xlu0 %1381  ;;  %v1569_v5 = vpop.permute.xlu1 %1568  ;;  %v1084_v10 = vadd.f32 %v1049_v7, %v896_v30  ;;  %v14905_v30 = vand.u32 4294901760, %v356_v8  ;;  %v338_v22 = vld [vmem:[%s20432_s4 + $0x168] sm:$0xff]  ;;  %v335_v45 = vld [vmem:[%s20432_s4 + $0x150] sm:$0xff] }
 0x21e   : > { %22033 = vst [vmem:[#allocation204_spill] sm:$0xff] %v14875_v16  ;;  %11390 = vmatprep.subr.mxu0 %v22034_v41  ;;  %11436 = vmatprep.subr.mxu1 %v21956_v61  ;;  %v1591_v36 = vsel %vm1580_vm10, %v14486_v3, %v1569_v5  ;;  %v1438_v39 = vadd.f32 %v1402_v51, %v1247_v14  ;;  %v22039_v51 = vld [vmem:[#allocation92_spill] sm:$0xff]  ;;  %v22076_v9 = vld [vmem:[#allocation147_spill] sm:$0xff]  ;;  %v350_v0 = vld [vmem:[%s20432_s4 + $0x1c8] sm:$0xff] }
 0x21f   : > { %2642 = vmatmul.mubr.f32.gmra.mxu0 %v2252_v49  ;;  %11437 = vmatpush3.msra.mxu1 %v21958_v28  ;;  %v1403_v21 = vsel %vm1391_vm9, %v1380_v2, %v14875_v16  ;;  %22040 = vst [vmem:[#allocation206_spill] sm:$0xff] %v14905_v30  ;;  %v340_v14 = vld [vmem:[%s20432_s4 + $0x178] sm:$0xff]  ;;  %v349_v16 = vld [vmem:[%s20432_s4 + $0x1c0] sm:$0xff]  ;;  %v22096_v12 = vld [vmem:[#allocation194_spill] sm:$0xff] }
 0x220   : > { %11391 = vmatpush3.msra.mxu0 %v22035_v50  ;;  %2927 = vmatprep.mubr.f32.mxu0 %v14617_v53  ;;  %v1248_v53 = vadd.f32 %v1213_v59, %v1084_v10  ;;  %v1627_v7 = vadd.f32 %v1591_v36, %v1438_v39  ;;  %v22042_v10 = vld [vmem:[#allocation105_spill] sm:$0xff]  ;;  %v14927_v50 = vand.u32 4294901760, %v340_v14 }
 0x221   : > { %11392 = vmatprep.subr.mxu0 %v22036_v24  ;;  %11438 = vmatprep.subr.mxu1 %v21961_v25  ;;  %v14895_v49 = vpop.permute.xlu0 %1570  ;;  %v1749_v56 = vpop.permute.xlu1 %1748  ;;  %v22044_v24 = vld [vmem:[#allocation106_spill] sm:$0xff] }
 0x222   : > { %22037 = vst [vmem:[#allocation205_spill] sm:$0xff] %v14895_v49  ;;  %11393 = vmatpush3.msra.mxu0 %v22038_v35  ;;  %11439 = vmatpush3.msra.mxu1 %v14037_v60  ;;  %v1771_v3 = vsel %vm1760_vm11, %v14494_v11, %v1749_v56  ;;  %v1592_v2 = vsel %vm1580_vm10, %v1569_v5, %v14895_v49  ;;  %v22041_v35 = vld [vmem:[#allocation93_spill] sm:$0xff]  ;;  %v355_v11 = vld [vmem:[%s20432_s4 + $0x1f0] sm:$0xff]  ;;  %22045 = vst [vmem:[#allocation208_spill] sm:$0xff] %v14927_v50 }
 0x223   : > { %11394 = vmatprep.subr.mxu0 %v22039_v51  ;;  %11440 = vmatprep.subr.mxu1 %v21966_v38  ;;  %v1439_v59 = vadd.f32 %v1403_v21, %v1248_v53  ;;  %v1807_v36 = vadd.f32 %v1771_v3, %v1627_v7  ;;  %v339_v21 = vld [vmem:[%s20432_s4 + $0x170] sm:$0xff]  ;;  %v22046_v53 = vld [vmem:[#allocation113_spill] sm:$0xff] }
 0x224   : > { %11395 = vmatpush3.msra.mxu0 %v22041_v35  ;;  %11441 = vmatpush3.msra.mxu1 %v21968_v37  ;;  %v22066_v38 = vld [vmem:[#allocation139_spill] sm:$0xff] }
 0x225   : > { %11396 = vmatprep.subr.mxu0 %v22042_v10  ;;  %11442 = vmatprep.subr.mxu1 %v21970_v57  ;;  %v14919_v39 = vpop.permute.xlu0 %1750  ;;  %v1938_v51 = vpop.permute.xlu1 %1937  ;;  %v1628_v3 = vadd.f32 %v1592_v2, %v1439_v59  ;;  %v14937_v10 = vand.u32 4294901760, %v355_v11  ;;  %v354_v2 = vld [vmem:[%s20432_s4 + $0x1e8] sm:$0xff]  ;;  %v22063_v57 = vld [vmem:[#allocation136_spill] sm:$0xff]  ;;  %v351_v25 = vld [vmem:[%s20432_s4 + $0x1d0] sm:$0xff] }
 0x226   : > { %22043 = vst [vmem:[#allocation207_spill] sm:$0xff] %v14919_v39  ;;  %11397 = vmatpush3.msra.mxu0 %v22044_v24  ;;  %11443 = vmatpush3.msra.mxu1 %v21973_v62  ;;  %v1772_v5 = vsel %vm1760_vm11, %v1749_v56, %v14919_v39  ;;  %v1960_v35 = vsel %vm1949_vm12, %v14515_v42, %v1938_v51  ;;  %v22049_v56 = vld [vmem:[#allocation114_spill] sm:$0xff]  ;;  %v22050_v42 = vld [vmem:[#allocation36_spill] sm:$0xff]  ;;  %v22061_v62 = vld [vmem:[#allocation129_spill] sm:$0xff] }
 0x227   : > { %11398 = vmatprep.subr.mxu0 %v22046_v53  ;;  %11444 = vmatprep.subr.mxu1 %v21975_v23  ;;  %v1996_v7 = vadd.f32 %v1960_v35, %v1807_v36  ;;  %v14935_v24 = vsub.f32 %v356_v8, %v14905_v30  ;;  %22048 = vst [vmem:[#allocation210_spill] sm:$0xff] %v14937_v10  ;;  %v22051_v36 = vld [vmem:[#allocation117_spill] sm:$0xff]  ;;  %v14957_v53 = vand.u32 4294901760, %v339_v21  ;;  %v14984_v23 = vand.u32 4294901760, %v354_v2 }
 0x228   : > { %11399 = vmatpush3.msra.mxu0 %v22049_v56  ;;  %11445 = vmatpush3.msra.mxu1 %v21977_v43  ;;  %v14943_v41 = vmul.f32 %v22050_v42, %v14761_v55  ;;  %v1808_v59 = vadd.f32 %v1772_v5, %v1628_v3  ;;  %v14955_v56 = vmul.f32 %v22050_v42, %v14751_v52  ;;  %v22055_v3 = vld [vmem:[#allocation35_spill] sm:$0xff]  ;;  %v22057_v43 = vld [vmem:[#allocation128_spill] sm:$0xff]  ;;  %v334_v39 = vld [vmem:[%s20432_s4 + $0x148] sm:$0xff] }
 0x229   : > { %22047 = vst [vmem:[#allocation209_spill] sm:$0xff] %v14935_v24  ;;  %v2024_v35 = vadd.f32 %v14510_v33, %v1996_v7  ;;  %11400 = vmatprep.subr.mxu0 %v22051_v36  ;;  %11446 = vmatprep.subr.mxu1 %v21979_v18  ;;  %v14951_v8 = vpop.permute.xlu0 %1939  ;;  %22053 = vst [vmem:[#allocation212_spill] sm:$0xff] %v14957_v53  ;;  %v14968_v7 = vrot.slane %v22055_v3, %v21995_v13  ;;  %v353_v18 = vld [vmem:[%s20432_s4 + $0x1e0] sm:$0xff]  ;;  %v22115_v13 = vld [vmem:[#allocation171_spill] sm:$0xff] }
 0x22a   : > { %22052 = vst [vmem:[#allocation211_spill] sm:$0xff] %v14951_v8  ;;  %11401 = vmatpush3.msra.mxu0 %v22054_v29  ;;  %11447 = vmatpush3.msra.mxu1 %v21982_v6  ;;  %v1961_v5 = vsel %vm1949_vm12, %v1938_v51, %v14951_v8  ;;  %v14971_v36 = vsub.f32 %v340_v14, %v14927_v50  ;;  %v14979_v6 = vand.u32 4294901760, %v14935_v24  ;;  %22060 = vst [vmem:[#allocation216_spill] sm:$0xff] %v14984_v23  ;;  %v337_v14 = vld [vmem:[%s20432_s4 + $0x160] sm:$0xff] }
 0x22b   : > { %11402 = vmatprep.subr.mxu0 %v22057_v43  ;;  %11448 = vmatprep.subr.mxu1 %v21984_v15  ;;  %v1997_v29 = vadd.f32 %v1961_v5, %v1808_v59  ;;  %v14982_v51 = vsub.f32 %v355_v11, %v14937_v10  ;;  %v14993_v43 = vrot.slane %v22055_v3, %v14564_v1  ;;  %v15003_v5 = vand.u32 4294901760, %v338_v22  ;;  %v22083_v8 = vld [vmem:[#allocation148_spill] sm:$0xff] }
 0x22c   : > { %22056 = vst [vmem:[#allocation213_spill] sm:$0xff] %v14971_v36  ;;  %22058 = vst [vmem:[#allocation214_spill] sm:$0xff] %v14979_v6  ;;  %11403 = vmatpush3.msra.mxu0 %v22061_v62  ;;  %11449 = vmatpush3.msra.mxu1 %v21989_v46  ;;  %v14997_v59 = vmul.f32 %v14574_v54, %v13521_v17  ;;  %v15001_v11 = vmul.f32 %v14587_v40, %v13521_v17  ;;  %v352_v62 = vld [vmem:[%s20432_s4 + $0x1d8] sm:$0xff]  ;;  %v2042_v15 = vmax.f32 %v2024_v35, 0.0  ;;  %v22067_v35 = vld [vmem:[#allocation37_spill] sm:$0xff] }
 0x22d   : > { %22059 = vst [vmem:[#allocation215_spill] sm:$0xff] %v14982_v51  ;;  %22062 = vst [vmem:[#allocation217_spill] sm:$0xff] %v15003_v5  ;;  %v2025_v46 = vadd.f32 %v14510_v33, %v1997_v29  ;;  %11404 = vmatprep.subr.mxu0 %v22063_v57  ;;  %11450 = vmatprep.subr.mxu1 %v21991_v47  ;;  %v15012_v54 = vsub.f32 %v339_v21, %v14957_v53  ;;  %v15014_v37 = vand.u32 4294901760, %v353_v18  ;;  %v336_v40 = vld [vmem:[%s20432_s4 + $0x158] sm:$0xff]  ;;  %v22069_v21 = vld [vmem:[#allocation18_spill] sm:$0xff] }
 0x22e   : > { %11405 = vmatpush3.msra.mxu0 %v22066_v38  ;;  %11451 = vmatpush3.msra.mxu1 %v14291_v63  ;;  %v15023_v29 = vmul.f32 %v14968_v7, %v22067_v35  ;;  %v15026_v57 = vand.u32 4294901760, %v14971_v36  ;;  %v15030_v47 = vmul.f32 %v22069_v21, %v13602_v27  ;;  %v15032_v60 = vand.u32 4294901760, %v337_v14  ;;  %v22071_v38 = vld [vmem:[#allocation145_spill] sm:$0xff]  ;;  %v22088_v27 = vld [vmem:[#allocation156_spill] sm:$0xff]  ;;  %v22091_v17 = vld [vmem:[#allocation178_spill] sm:$0xff] }
 0x22f   : > { %22064 = vst [vmem:[#allocation218_spill] sm:$0xff] %v15012_v54  ;;  %22065 = vst [vmem:[#allocation219_spill] sm:$0xff] %v15014_v37  ;;  %11406 = vmatprep.subr.mxu0 %v22071_v38  ;;  %v22072_v63 = vld [vmem:[#allocation161_spill] sm:$0xff]  ;;  %v3295_v28 = vsub.f32 %v14935_v24, %v14979_v6  ;;  %v15042_v61 = vand.u32 4294901760, %v14982_v51  ;;  %v15045_v31 = vsub.f32 %v354_v2, %v14984_v23  ;;  %v15047_v21 = vand.u32 4294901760, %v352_v62  ;;  %v22077_v38 = vld [vmem:[#allocation162_spill] sm:$0xff] }
 0x230   : > { %22068 = vst [vmem:[#allocation220_spill] sm:$0xff] %v15026_v57  ;;  %22070 = vst [vmem:[#allocation18_spill] sm:$0xff] %v15032_v60  ;;  %11452 = vmatprep.subr.mxu1 %v22072_v63  ;;  %11407 = vmatpush3.msra.mxu0 %v22076_v9  ;;  %v15055_v63 = vsub.f32 %v338_v22, %v15003_v5  ;;  %v22081_v2 = vld [vmem:[#allocation88_spill] sm:$0xff]  ;;  %v15065_v20 = vand.u32 4294901760, %v336_v40  ;;  %v2043_v33 = vmax.f32 %v2025_v46, 0.0  ;;  %v15070_v9 = vand.u32 4294901760, %v15012_v54 }
 0x231   : > { %22073 = vst [vmem:[#allocation221_spill] sm:$0xff] %v15042_v61  ;;  %22074 = vst [vmem:[#allocation222_spill] sm:$0xff] %v15045_v31  ;;  %11453 = vmatpush3.msra.mxu1 %v22077_v38  ;;  %v15063_v19 = vmul.f32 %v22081_v2, %v22080_v58  ;;  %2090 = vrot.lane.b32.xlu1 %v2042_v15, %s13216_s16  ;;  %v15073_v22 = vsub.f32 %v353_v18, %v15014_v37  ;;  %v15075_v38 = vand.u32 4294901760, %v351_v25  ;;  %v22087_v2 = vld [vmem:[#allocation172_spill] sm:$0xff]  ;;  %v347_v6 = vld [vmem:[%s20432_s4 + $0x1b0] sm:$0xff] }
 0x232   : > { %22075 = vst [vmem:[#allocation223_spill] sm:$0xff] %v15047_v21  ;;  %22078 = vst [vmem:[#allocation224_spill] sm:$0xff] %v15055_v63  ;;  %11408 = vmatprep.subr.mxu0 %v22083_v8  ;;  %11454 = vmatprep.subr.mxu1 %v22087_v2  ;;  %v15084_v15 = vmul.f32 %v14993_v43, %v22067_v35  ;;  %v3183_v46 = vsub.f32 %v14971_v36, %v15026_v57  ;;  %v15091_v8 = vand.u32 4294901760, %v335_v45  ;;  %v22092_v2 = vld [vmem:[#allocation163_spill] sm:$0xff]  ;;  %v333_v42 = vld [vmem:[%s20432_s4 + $0x140] sm:$0xff] }
 0x233   : > { %22082 = vst [vmem:[#allocation191_spill] sm:$0xff] %v15065_v20  ;;  %22084 = vst [vmem:[#allocation88_spill] sm:$0xff] %v15070_v9  ;;  %11409 = vmatpush3.msra.mxu0 %v22088_v27  ;;  %v15089_v18 = vsub.f32 %v337_v14, %v15032_v60  ;;  %11455 = vmatpush3.msra.mxu1 %v22091_v17  ;;  %v15098_v27 = vand.u32 4294901760, %v3295_v28  ;;  %v3302_v49 = vsub.f32 %v14982_v51, %v15042_v61  ;;  %v22097_v17 = vld [vmem:[#allocation164_spill] sm:$0xff]  ;;  %v22111_v57 = vld [vmem:[#allocation170_spill] sm:$0xff] }
 0x234   : > { %22085 = vst [vmem:[#allocation225_spill] sm:$0xff] %v15073_v22  ;;  %22086 = vst [vmem:[#allocation226_spill] sm:$0xff] %v15075_v38  ;;  %11410 = vmatprep.subr.mxu0 %v22092_v2  ;;  %v15103_v35 = vand.u32 4294901760, %v15045_v31  ;;  %v15106_v14 = vsub.f32 %v352_v62, %v15047_v21  ;;  %3040 = vmatmul.mubr.f32.vlgmr.msra.gmra.mxu1 %v22096_v12  ;;  %v15114_v28 = vand.u32 4294901760, %v15055_v63  ;;  %v15123_v62 = vand.u32 4294901760, %v350_v0 }
 0x235   : > { %22089 = vst [vmem:[#allocation227_spill] sm:$0xff] %v15089_v18  ;;  %22090 = vst [vmem:[#allocation228_spill] sm:$0xff] %v15091_v8  ;;  %11411 = vmatpush3.msra.mxu0 %v22097_v17  ;;  %v15117_v2 = vsub.f32 %v336_v40, %v15065_v20  ;;  %v15121_v3 = vmul.f32 %v22100_v4, %v22080_v58  ;;  %3045 = vmatprep.mubr.f32.mxu1 %v22102_v48  ;;  %v15133_v40 = vand.u32 4294901760, %v15073_v22  ;;  %v348_v58 = vld [vmem:[%s20432_s4 + $0x1b8] sm:$0xff] }
 0x236   : > { %22093 = vst [vmem:[#allocation229_spill] sm:$0xff] %v15098_v27  ;;  %22094 = vst [vmem:[#allocation230_spill] sm:$0xff] %v15103_v35  ;;  %2092 = vrot.lane.b32.xlu0 %v2043_v33, %s13216_s16  ;;  %v3190_v17 = vsub.f32 %v15012_v54, %v15070_v9  ;;  %v15136_v26 = vsub.f32 %v351_v25, %v15075_v38  ;;  %v15138_v4 = vand.u32 4294901760, %v334_v39  ;;  %1734 = vrot.lane.b32.xlu1 %v14943_v41, %s13225_s8  ;;  %v22123_v54 = vld [vmem:[#allocation182_spill] sm:$0xff] }
 0x237   : > { %22095 = vst [vmem:[#allocation231_spill] sm:$0xff] %v15106_v14  ;;  %22098 = vst [vmem:[#allocation194_spill] sm:$0xff] %v15114_v28  ;;  %11412 = vmatprep.subr.mxu0 %v22106_v44  ;;  %v15146_v33 = vand.u32 4294901760, %v3183_v46  ;;  %v15149_v9 = vand.u32 4294901760, %v15089_v18  ;;  %v15152_v61 = vsub.f32 %v335_v45, %v15091_v8  ;;  %v15154_v25 = vand.u32 4294901760, %v349_v16  ;;  %11500 = vmatprep.subr.mxu1 %v15098_v27  ;;  %v332_v45 = vld [vmem:[%s20432_s4 + $0x138] sm:$0xff] }
 0x238   : > { %22099 = vst [vmem:[#allocation232_spill] sm:$0xff] %v15117_v2  ;;  %22101 = vst [vmem:[#allocation89_spill] sm:$0xff] %v15123_v62  ;;  %11413 = vmatpush3.msra.mxu0 %v22111_v57  ;;  %v15158_v1 = vand.u32 4294901760, %v3302_v49  ;;  %v3309_v41 = vsub.f32 %v15045_v31, %v15103_v35  ;;  %v15163_v46 = vand.u32 4294901760, %v15106_v14  ;;  %v15165_v44 = vand.u32 4294901760, %v333_v42  ;;  %3047 = vmatmul.mubr.f32.gmra.mxu1 %v14826_v32  ;;  %v22119_v31 = vld [vmem:[#allocation176_spill] sm:$0xff] }
 0x239   : > { %22103 = vst [vmem:[#allocation200_spill] sm:$0xff] %v15133_v40  ;;  %22104 = vst [vmem:[#allocation233_spill] sm:$0xff] %v15136_v26  ;;  %11414 = vmatprep.subr.mxu0 %v22115_v13  ;;  %v3197_v49 = vsub.f32 %v15055_v63, %v15114_v28  ;;  %v15175_v27 = vand.u32 4294901760, %v15117_v2  ;;  %v15178_v57 = vsub.f32 %v350_v0, %v15123_v62  ;;  %v15180_v35 = vand.u32 4294901760, %v348_v58 }
 0x23a   : > { %22105 = vst [vmem:[#allocation234_spill] sm:$0xff] %v15138_v4  ;;  %22107 = vst [vmem:[#allocation235_spill] sm:$0xff] %v15146_v33  ;;  %11415 = vmatpush3.msra.mxu0 %v22119_v31  ;;  %1736 = vrot.lane.b32.xlu0 %v14955_v56, %s13225_s8  ;;  %v15188_v13 = vand.u32 4294901760, %v3190_v17  ;;  %v3316_v28 = vsub.f32 %v15073_v22, %v15133_v40  ;;  %v15193_v63 = vand.u32 4294901760, %v15136_v26  ;;  %v15204_v17 = vand.u32 4294901760, %v15152_v61  ;;  %v22127_v22 = vld [vmem:[#allocation185_spill] sm:$0xff] }
 0x23b   : > { %22108 = vst [vmem:[#allocation236_spill] sm:$0xff] %v15149_v9  ;;  %22109 = vst [vmem:[#allocation237_spill] sm:$0xff] %v15152_v61  ;;  %v15196_v0 = vsub.f32 %v334_v39, %v15138_v4  ;;  %1923 = vrot.lane.b32.xlu1 %v15023_v29, %s13226_s13  ;;  %11416 = vmatprep.subr.mxu0 %v22123_v54  ;;  %v3204_v31 = vsub.f32 %v15089_v18, %v15149_v9  ;;  %v15209_v40 = vand.u32 4294901760, %v332_v45  ;;  %v331_v39 = vld [vmem:[%s20432_s4 + $0x130] sm:$0xff] }
 0x23c   : > { %22110 = vst [vmem:[#allocation238_spill] sm:$0xff] %v15154_v25  ;;  %22112 = vst [vmem:[#allocation239_spill] sm:$0xff] %v15158_v1  ;;  %v15207_v56 = vsub.f32 %v349_v16, %v15154_v25  ;;  %11417 = vmatpush3.msra.mxu0 %v22127_v22  ;;  %11501 = vmatpush3.msra.mxu1 %v15146_v33  ;;  %v15216_v29 = vand.u32 4294901760, %v3309_v41  ;;  %v3323_v54 = vsub.f32 %v15106_v14, %v15163_v46  ;;  %v325_v14 = vld [vmem:[%s20432_s4 + $0x100] sm:$0xff] }
 0x23d   : > { %22113 = vst [vmem:[#allocation240_spill] sm:$0xff] %v15163_v46  ;;  %22114 = vst [vmem:[#allocation241_spill] sm:$0xff] %v15165_v44  ;;  %v15221_v9 = vsub.f32 %v333_v42, %v15165_v44  ;;  %v15223_v16 = vand.u32 4294901760, %v347_v6  ;;  %2929 = vmatmul.mubr.f32.vlgmr.msra.gmra.mxu0 %v22096_v12  ;;  %11502 = vmatprep.subr.mxu1 %v15158_v1  ;;  %v15227_v18 = vand.u32 4294901760, %v3197_v49  ;;  %v15232_v41 = vand.u32 4294901760, %v15178_v57  ;;  %v346_v42 = vld [vmem:[%s20432_s4 + $0x1a8] sm:$0xff] }
 0x23e   : > { %22116 = vst [vmem:[#allocation242_spill] sm:$0xff] %v15175_v27  ;;  %22117 = vst [vmem:[#allocation243_spill] sm:$0xff] %v15178_v57  ;;  %v3211_v22 = vsub.f32 %v15117_v2, %v15175_v27  ;;  %v15235_v33 = vsub.f32 %v348_v58, %v15180_v35  ;;  %2934 = vmatprep.mubr.f32.mxu0 %v22102_v48  ;;  %1925 = vrot.lane.b32.xlu0 %v15084_v15, %s13226_s13  ;;  %v15243_v12 = vand.u32 4294901760, %v3316_v28  ;;  %v330_v58 = vld [vmem:[%s20432_s4 + $0x128] sm:$0xff]  ;;  %v345_v46 = vld [vmem:[%s20432_s4 + $0x1a0] sm:$0xff] }
 0x23f   : > { %22118 = vst [vmem:[#allocation244_spill] sm:$0xff] %v15180_v35  ;;  %22120 = vst [vmem:[#allocation245_spill] sm:$0xff] %v15188_v13  ;;  %v3330_v49 = vsub.f32 %v15136_v26, %v15193_v63  ;;  %v15248_v1 = vand.u32 4294901760, %v15196_v0  ;;  %v15250_v27 = vand.u32 4294901760, %v331_v39  ;;  %652 = vrot.lane.b32.xlu1 %v14997_v59, %s13209_s21  ;;  %11503 = vmatpush3.msra.mxu1 %v15188_v13  ;;  %v15258_v48 = vand.u32 4294901760, %v3204_v31 }
 0x240   : > { %22121 = vst [vmem:[#allocation246_spill] sm:$0xff] %v15193_v63  ;;  %22122 = vst [vmem:[#allocation247_spill] sm:$0xff] %v15196_v0  ;;  %v3218_v15 = vsub.f32 %v15152_v61, %v15204_v17  ;;  %v15263_v28 = vand.u32 4294901760, %v15207_v56  ;;  %v15266_v63 = vsub.f32 %v332_v45, %v15209_v40  ;;  %11504 = vmatprep.subr.mxu1 %v15216_v29  ;;  %11462 = vmatprep.subr.mxu0 %v14905_v30 }
 0x241   : > { %22124 = vst [vmem:[#allocation248_spill] sm:$0xff] %v15204_v17  ;;  %22125 = vst [vmem:[#allocation249_spill] sm:$0xff] %v15207_v56  ;;  %v15273_v59 = vand.u32 4294901760, %v3323_v54  ;;  %v15276_v31 = vand.u32 4294901760, %v15221_v9  ;;  %v15279_v13 = vsub.f32 %v347_v6, %v15223_v16  ;;  %v15281_v17 = vand.u32 4294901760, %v346_v42  ;;  %2936 = vmatmul.mubr.f32.gmra.mxu0 %v14826_v32  ;;  %11505 = vmatpush3.msra.mxu1 %v15227_v18  ;;  %v329_v6 = vld [vmem:[%s20432_s4 + $0x120] sm:$0xff] }
 0x242   : > { %22126 = vst [vmem:[#allocation250_spill] sm:$0xff] %v15209_v40  ;;  %22128 = vst [vmem:[#allocation251_spill] sm:$0xff] %v15216_v29  ;;  %v15285_v45 = vand.u32 4294901760, %v3211_v22  ;;  %v3337_v29 = vsub.f32 %v15178_v57, %v15232_v41  ;;  %v15290_v54 = vand.u32 4294901760, %v15235_v33  ;;  %v15292_v61 = vand.u32 4294901760, %v330_v58  ;;  %654 = vrot.lane.b32.xlu0 %v15001_v11, %s13209_s21  ;;  %11506 = vmatprep.subr.mxu1 %v15243_v12  ;;  %v344_v57 = vld [vmem:[%s20432_s4 + $0x198] sm:$0xff] }
 0x243   : > { %22129 = vst [vmem:[#allocation252_spill] sm:$0xff] %v15221_v9  ;;  %22130 = vst [vmem:[#allocation253_spill] sm:$0xff] %v15223_v16  ;;  %v15300_v32 = vand.u32 4294901760, %v3330_v49  ;;  %v3225_v22 = vsub.f32 %v15196_v0, %v15248_v1  ;;  %842 = vrot.lane.b32.xlu1 %v15030_v47, %s21916_s14  ;;  %11507 = vmatpush3.msra.mxu1 %v15258_v48  ;;  %v22150_v11 = vld [vmem:[#allocation33_spill] sm:$0xff]  ;;  %v328_v0 = vld [vmem:[%s20432_s4 + $0x118] sm:$0xff]  ;;  %v3232_v47 = vsub.f32 %v15221_v9, %v15276_v31 }
 0x244   : > { %22131 = vst [vmem:[#allocation254_spill] sm:$0xff] %v15227_v18  ;;  %22132 = vst [vmem:[#allocation255_spill] sm:$0xff] %v15232_v41  ;;  %v15305_v18 = vsub.f32 %v331_v39, %v15250_v27  ;;  %v15307_v41 = vand.u32 4294901760, %v345_v46  ;;  %v1152_v49 = vmul.f32 %v14761_v55, %v22150_v11  ;;  %v3344_v39 = vsub.f32 %v15207_v56, %v15263_v28  ;;  %v343_v56 = vld [vmem:[%s20432_s4 + $0x190] sm:$0xff] }
 0x245   : > { %22133 = vst [vmem:[#allocation256_spill] sm:$0xff] %v15235_v33  ;;  %22134 = vst [vmem:[#allocation257_spill] sm:$0xff] %v15243_v12  ;;  %v15317_v12 = vand.u32 4294901760, %v3218_v15  ;;  %11508 = vmatprep.subr.mxu1 %v15273_v59  ;;  %11463 = vmatpush3.msra.mxu0 %v14927_v50  ;;  %v15332_v15 = vand.u32 4294901760, %v15279_v13  ;;  %v15349_v9 = vsub.f32 %v330_v58, %v15292_v61  ;;  %v15356_v26 = vand.u32 4294901760, %v3225_v22  ;;  %v327_v58 = vld [vmem:[%s20432_s4 + $0x110] sm:$0xff] }
 0x246   : > { %22135 = vst [vmem:[#allocation258_spill] sm:$0xff] %v15248_v1  ;;  %22136 = vst [vmem:[#allocation259_spill] sm:$0xff] %v15250_v27  ;;  %v15322_v1 = vand.u32 4294901760, %v15266_v63  ;;  %11509 = vmatpush3.msra.mxu1 %v15285_v45  ;;  %11464 = vmatprep.subr.mxu0 %v14937_v10  ;;  %v15364_v2 = vand.u32 4294901760, %v328_v0  ;;  %v1153_v22 = vmul.f32 %v14751_v52, %v22150_v11 }
 0x247   : > { %22137 = vst [vmem:[#allocation260_spill] sm:$0xff] %v15258_v48  ;;  %22138 = vst [vmem:[#allocation261_spill] sm:$0xff] %v15263_v28  ;;  %v15335_v48 = vsub.f32 %v346_v42, %v15281_v17  ;;  %v15337_v28 = vand.u32 4294901760, %v329_v6  ;;  %v15351_v42 = vand.u32 4294901760, %v344_v57  ;;  %844 = vrot.lane.b32.xlu0 %v15059_v34, %s21916_s14  ;;  %11510 = vmatprep.subr.mxu1 %v15300_v32  ;;  %v15372_v34 = vand.u32 4294901760, %v3344_v39 }
 0x248   : > { %22139 = vst [vmem:[#allocation262_spill] sm:$0xff] %v15266_v63  ;;  %22140 = vst [vmem:[#allocation263_spill] sm:$0xff] %v15273_v59  ;;  %v15344_v59 = vand.u32 4294901760, %v3337_v29  ;;  %v15362_v29 = vsub.f32 %v345_v46, %v15307_v41  ;;  %1030 = vrot.lane.b32.xlu1 %v15063_v19, %s13222_s22  ;;  %11465 = vmatpush3.msra.mxu0 %v14957_v53  ;;  %v3239_v46 = vsub.f32 %v15266_v63, %v15322_v1  ;;  %v326_v63 = vld [vmem:[%s20432_s4 + $0x108] sm:$0xff] }
 0x249   : > { %22141 = vst [vmem:[#allocation264_spill] sm:$0xff] %v15276_v31  ;;  %22142 = vst [vmem:[#allocation265_spill] sm:$0xff] %v15279_v13  ;;  %v3351_v31 = vsub.f32 %v15235_v33, %v15290_v54  ;;  %11511 = vmatpush3.msra.mxu1 %v15317_v12  ;;  %11466 = vmatprep.subr.mxu0 %v14984_v23  ;;  %v15385_v19 = vand.u32 4294901760, %v3232_v47  ;;  %v3358_v39 = vsub.f32 %v15279_v13, %v15332_v15 }
 0x24a   : > { %22143 = vst [vmem:[#allocation266_spill] sm:$0xff] %v15281_v17  ;;  %22144 = vst [vmem:[#allocation267_spill] sm:$0xff] %v15285_v45  ;;  %v15359_v45 = vand.u32 4294901760, %v15305_v18  ;;  %v15390_v11 = vand.u32 4294901760, %v15335_v48  ;;  %11512 = vmatprep.subr.mxu1 %v15344_v59  ;;  %11467 = vmatpush3.msra.mxu0 %v15003_v5  ;;  %v15403_v47 = vand.u32 4294901760, %v15349_v9  ;;  %v15408_v13 = vand.u32 4294901760, %v327_v58 }
 0x24b   : > { %22145 = vst [vmem:[#allocation268_spill] sm:$0xff] %v15290_v54  ;;  %22146 = vst [vmem:[#allocation269_spill] sm:$0xff] %v15292_v61  ;;  %v342_v54 = vld [vmem:[%s20432_s4 + $0x188] sm:$0xff]  ;;  %1032 = vrot.lane.b32.xlu0 %v15121_v3, %s13222_s22  ;;  %11513 = vmatpush3.msra.mxu1 %v15356_v26  ;;  %v22175_v3 = vld [vmem:[#allocation40_spill] sm:$0xff]  ;;  %v15442_v36 = vand.u32 4294901760, %v3358_v39 }
 0x24c   : > { %22147 = vst [vmem:[#allocation270_spill] sm:$0xff] %v15300_v32  ;;  %22148 = vst [vmem:[#allocation271_spill] sm:$0xff] %v15305_v18  ;;  %v15378_v32 = vand.u32 4294901760, %v343_v56  ;;  %v15424_v33 = vand.u32 4294901760, %v342_v54  ;;  %1197 = vrot.lane.b32.xlu1 %v1152_v49, %s13220_s19  ;;  %11468 = vmatprep.subr.mxu0 %v15014_v37  ;;  %v3365_v49 = vsub.f32 %v15335_v48, %v15390_v11 }
 0x24d   : > { %22149 = vst [vmem:[#allocation272_spill] sm:$0xff] %v15307_v41  ;;  %22151 = vst [vmem:[#allocation273_spill] sm:$0xff] %v15317_v12  ;;  %v15400_v12 = vand.u32 4294901760, %v3351_v31  ;;  %v3246_v31 = vsub.f32 %v15305_v18, %v15359_v45  ;;  %11514 = vmatprep.subr.mxu1 %v15372_v34  ;;  %11469 = vmatpush3.msra.mxu0 %v15032_v60  ;;  %v3253_v39 = vsub.f32 %v15349_v9, %v15403_v47 }
 0x24e   : > { %22152 = vst [vmem:[#allocation274_spill] sm:$0xff] %v15322_v1  ;;  %22153 = vst [vmem:[#allocation275_spill] sm:$0xff] %v15332_v15  ;;  %v15393_v1 = vsub.f32 %v329_v6, %v15337_v28  ;;  %v15406_v15 = vsub.f32 %v344_v57, %v15351_v42  ;;  %v341_v6 = vld [vmem:[%s20432_s4 + $0x180] sm:$0xff]  ;;  %v15422_v57 = vsub.f32 %v328_v0, %v15364_v2  ;;  %v15438_v0 = vand.u32 4294901760, %v326_v63 }
 0x24f   : > { %22154 = vst [vmem:[#allocation276_spill] sm:$0xff] %v15335_v48  ;;  %22155 = vst [vmem:[#allocation277_spill] sm:$0xff] %v15337_v28  ;;  %v15436_v18 = vsub.f32 %v343_v56, %v15378_v32  ;;  %v15453_v56 = vpop.permute.xlu0 %636  ;;  %11515 = vmatpush3.msra.mxu1 %v15385_v19  ;;  %11470 = vmatprep.subr.mxu0 %v15047_v21  ;;  %v15465_v48 = vand.u32 4294901760, %v325_v14 }
 0x250   : > { %22156 = vst [vmem:[#allocation278_spill] sm:$0xff] %v15344_v59  ;;  %22157 = vst [vmem:[#allocation279_spill] sm:$0xff] %v15349_v9  ;;  %v15419_v59 = vand.u32 4294901760, %v15362_v29  ;;  %v15447_v24 = vand.u32 4294901760, %v15393_v1  ;;  %1199 = vrot.lane.b32.xlu0 %v1153_v22, %s13220_s19  ;;  %11516 = vmatprep.subr.mxu1 %v15400_v12  ;;  %v15493_v9 = vand.u32 4294901760, %v3365_v49 }
 0x251   : > { %22158 = vst [vmem:[#allocation280_spill] sm:$0xff] %v15351_v42  ;;  %22159 = vst [vmem:[#allocation281_spill] sm:$0xff] %v15356_v26  ;;  %v22176_v26 = vld [vmem:[#allocation23_spill] sm:$0xff]  ;;  %11471 = vmatpush3.msra.mxu0 %v15065_v20  ;;  %v15510_v49 = vsub.f32 %v325_v14, %v15465_v48 }
 0x252   : > { %22160 = vst [vmem:[#allocation282_spill] sm:$0xff] %v15359_v45  ;;  %22161 = vst [vmem:[#allocation283_spill] sm:$0xff] %v15362_v29  ;;  %v1333_v51 = vmul.f32 %v22176_v26, %v22175_v3  ;;  %v15433_v45 = vand.u32 4294901760, %v3239_v46  ;;  %v15449_v26 = vand.u32 4294901760, %v341_v6  ;;  %v15451_v46 = vpop.permute.xlu1 %634  ;;  %11472 = vmatprep.subr.mxu0 %v15075_v38 }
 0x253   : > { %22162 = vst [vmem:[#allocation284_spill] sm:$0xff] %v15364_v2  ;;  %22163 = vst [vmem:[#allocation285_spill] sm:$0xff] %v15372_v34  ;;  %v15460_v34 = vand.u32 4294901760, %v15406_v15  ;;  %11473 = vmatpush3.msra.mxu0 %v15091_v8 }
 0x254   : > { %22164 = vst [vmem:[#allocation286_spill] sm:$0xff] %v15378_v32  ;;  %22165 = vst [vmem:[#allocation287_spill] sm:$0xff] %v15385_v19  ;;  %v3372_v19 = vsub.f32 %v15362_v29, %v15419_v59  ;;  %1383 = vrot.lane.b32.xlu1 %v1333_v51, %s13223_s23  ;;  %11517 = vmatpush3.msra.mxu1 %v15433_v45  ;;  %v3260_v51 = vsub.f32 %v15393_v1, %v15447_v24 }
 0x255   : > { %22166 = vst [vmem:[#allocation288_spill] sm:$0xff] %v15390_v11  ;;  %22167 = vst [vmem:[#allocation289_spill] sm:$0xff] %v15393_v1  ;;  %v15463_v11 = vsub.f32 %v327_v58, %v15408_v13  ;;  %v22191_v58 = vld [vmem:[#allocation120_spill] sm:$0xff]  ;;  %11518 = vmatprep.subr.mxu1 %v15442_v36  ;;  %11474 = vmatprep.subr.mxu0 %v15123_v62 }
 0x256   : > { %22168 = vst [vmem:[#allocation290_spill] sm:$0xff] %v15400_v12  ;;  %22169 = vst [vmem:[#allocation291_spill] sm:$0xff] %v15403_v47  ;;  %v15477_v47 = vsub.f32 %v342_v54, %v15424_v33  ;;  %v1334_v22 = vmul.f32 %v22191_v58, %v22175_v3  ;;  %v15484_v12 = vand.u32 4294901760, %v15436_v18  ;;  %v22195_v54 = vld [vmem:[#allocation198_spill] sm:$0xff]  ;;  %v15498_v58 = vsub.f32 %v341_v6, %v15449_v26 }
 0x257   : > { %22170 = vst [vmem:[#allocation292_spill] sm:$0xff] %v15406_v15  ;;  %22171 = vst [vmem:[#allocation293_spill] sm:$0xff] %v15408_v13  ;;  %v15507_v3 = vand.u32 4294901760, %v15463_v11  ;;  %v15514_v6 = vand.u32 4294901760, %v3372_v19  ;;  %11475 = vmatpush3.msra.mxu0 %v15138_v4 }
 0x258   : > { %22172 = vst [vmem:[#allocation294_spill] sm:$0xff] %v15419_v59  ;;  %22173 = vst [vmem:[#allocation295_spill] sm:$0xff] %v15422_v57  ;;  %v22194_v59 = vld [vmem:[#allocation41_spill] sm:$0xff]  ;;  %1385 = vrot.lane.b32.xlu0 %v1334_v22, %s13223_s23  ;;  %v3386_v14 = vsub.f32 %v15436_v18, %v15484_v12  ;;  %11476 = vmatprep.subr.mxu0 %v15154_v25 }
 0x259   : > { %22174 = vst [vmem:[#allocation296_spill] sm:$0xff] %v15424_v33  ;;  %22177 = vst [vmem:[#allocation23_spill] sm:$0xff] %v15433_v45  ;;  %v1522_v29 = vmul.f32 %v22195_v54, %v22194_v59  ;;  %v3379_v45 = vsub.f32 %v15406_v15, %v15460_v34  ;;  %v22206_v22 = vld [vmem:[#allocation197_spill] sm:$0xff]  ;;  %11477 = vmatpush3.msra.mxu0 %v15165_v44 }
 0x25a   : > { %22178 = vst [vmem:[#allocation297_spill] sm:$0xff] %v15436_v18  ;;  %22179 = vst [vmem:[#allocation298_spill] sm:$0xff] %v15438_v0  ;;  %11478 = vmatprep.subr.mxu0 %v15180_v35 }
 0x25b   : > { %22180 = vst [vmem:[#allocation299_spill] sm:$0xff] %v15442_v36  ;;  %22181 = vst [vmem:[#allocation300_spill] sm:$0xff] %v15447_v24  ;;  %v15521_v36 = vpop.permute.xlu1 %824  ;;  %1572 = vrot.lane.b32.xlu1 %v1522_v29, %s13224_s29  ;;  %v15539_v24 = vand.u32 4294901760, %v15498_v58  ;;  %v22209_v29 = vld [vmem:[#allocation42_spill] sm:$0xff]  ;;  %11479 = vmatpush3.msra.mxu0 %v15209_v40 }
 0x25c   : > { %22182 = vst [vmem:[#allocation301_spill] sm:$0xff] %v15449_v26  ;;  %22183 = vst [vmem:[#allocation302_spill] sm:$0xff] %v15451_v46  ;;  %v15474_v46 = vand.u32 4294901760, %v15422_v57  ;;  %11480 = vmatprep.subr.mxu0 %v15223_v16 }
 0x25d   : > { %22184 = vst [vmem:[#allocation303_spill] sm:$0xff] %v15453_v56  ;;  %22185 = vst [vmem:[#allocation304_spill] sm:$0xff] %v15460_v34  ;;  %v15469_v56 = vand.u32 4294901760, %v3246_v31  ;;  %v15487_v31 = vsub.f32 %v326_v63, %v15438_v0  ;;  %v15502_v63 = vand.u32 4294901760, %v3253_v39  ;;  %v15519_v39 = vand.u32 4294901760, %v15477_v47  ;;  %v15523_v34 = vpop.permute.xlu0 %826  ;;  %11481 = vmatpush3.msra.mxu0 %v15250_v27 }
 0x25e   : > { %22186 = vst [vmem:[#allocation305_spill] sm:$0xff] %v15463_v11  ;;  %22187 = vst [vmem:[#allocation306_spill] sm:$0xff] %v15465_v48  ;;  %v3267_v54 = vsub.f32 %v15422_v57, %v15474_v46  ;;  %11482 = vmatprep.subr.mxu0 %v15281_v17 }
 0x25f   : > { %22188 = vst [vmem:[#allocation307_spill] sm:$0xff] %v15469_v56  ;;  %22189 = vst [vmem:[#allocation308_spill] sm:$0xff] %v15474_v46  ;;  %11519 = vmatpush3.msra.mxu1 %v15469_v56  ;;  %v15530_v19 = vand.u32 4294901760, %v15487_v31  ;;  %v1523_v56 = vmul.f32 %v22206_v22, %v22194_v59  ;;  %v15536_v46 = vand.u32 4294901760, %v3260_v51  ;;  %v3393_v22 = vsub.f32 %v15477_v47, %v15519_v39  ;;  %v2073_v59 = vpop.permute.xlu1 %2072 }
 0x260   : > { %22190 = vst [vmem:[#allocation309_spill] sm:$0xff] %v15477_v47  ;;  %22192 = vst [vmem:[#allocation120_spill] sm:$0xff] %v15484_v12  ;;  %11520 = vmatprep.subr.mxu1 %v15493_v9  ;;  %v1702_v12 = vmul.f32 %v22209_v29, %v14761_v55  ;;  %v15554_v51 = vand.u32 4294901760, %v3267_v54  ;;  %v15560_v55 = vand.u32 4294901760, %v3386_v14  ;;  %v22215_v54 = vld [vmem:[#allocation193_spill] sm:$0xff]  ;;  %11483 = vmatpush3.msra.mxu0 %v15292_v61 }
 0x261   : > { %22193 = vst [vmem:[#allocation310_spill] sm:$0xff] %v15487_v31  ;;  %22196 = vst [vmem:[#allocation198_spill] sm:$0xff] %v15493_v9  ;;  %11521 = vmatpush3.msra.mxu1 %v15502_v63  ;;  %v3274_v9 = vsub.f32 %v15463_v11, %v15507_v3  ;;  %1574 = vrot.lane.b32.xlu0 %v1523_v56, %s13224_s29  ;;  %v3281_v56 = vsub.f32 %v15487_v31, %v15530_v19 }
 0x262   : > { %22197 = vst [vmem:[#allocation311_spill] sm:$0xff] %v15498_v58  ;;  %22198 = vst [vmem:[#allocation312_spill] sm:$0xff] %v15502_v63  ;;  %11522 = vmatprep.subr.mxu1 %v15514_v6  ;;  %1752 = vrot.lane.b32.xlu1 %v1702_v12, %s13225_s8  ;;  %v15564_v63 = vpop.permute.xlu0 %2074  ;;  %v2104_v12 = vsel %vm1816_vm5, %v22215_v54, %v2073_v59 }
 0x263   : > { %22199 = vst [vmem:[#allocation313_spill] sm:$0xff] %v15507_v3  ;;  %22200 = vst [vmem:[#allocation314_spill] sm:$0xff] %v15510_v49  ;;  %11523 = vmatpush3.msra.mxu1 %v15536_v46  ;;  %v2105_v14 = vsel %vm1816_vm5, %v2073_v59, %v15564_v63  ;;  %v22217_v59 = vld [vmem:[#allocation43_spill] sm:$0xff]  ;;  %11484 = vmatprep.subr.mxu0 %v15307_v41 }
 0x264   : > { %22201 = vst [vmem:[#allocation315_spill] sm:$0xff] %v15514_v6  ;;  %22202 = vst [vmem:[#allocation316_spill] sm:$0xff] %v15519_v39  ;;  %v3400_v6 = vsub.f32 %v15498_v58, %v15539_v24  ;;  %v1891_v54 = vmul.f32 %v14968_v7, %v22217_v59  ;;  %11485 = vmatpush3.msra.mxu0 %v15337_v28 }
 0x265   : > { %22203 = vst [vmem:[#allocation317_spill] sm:$0xff] %v15521_v36  ;;  %22204 = vst [vmem:[#allocation318_spill] sm:$0xff] %v15523_v34  ;;  %v15545_v34 = vand.u32 4294901760, %v3379_v45  ;;  %v15550_v36 = vand.u32 4294901760, %v15510_v49  ;;  %v1703_v45 = vmul.f32 %v22209_v29, %v14751_v52  ;;  %v15578_v52 = vand.u32 4294901760, %v3274_v9  ;;  %11486 = vmatprep.subr.mxu0 %v15351_v42 }
 0x266   : > { %22205 = vst [vmem:[#allocation319_spill] sm:$0xff] %v15530_v19  ;;  %22207 = vst [vmem:[#allocation197_spill] sm:$0xff] %v15536_v46  ;;  %v15580_v29 = vand.u32 4294901760, %v2105_v14  ;;  %v15582_v46 = vand.u32 4294901760, %v2104_v12  ;;  %1941 = vrot.lane.b32.xlu1 %v1891_v54, %s13226_s13  ;;  %11487 = vmatpush3.msra.mxu0 %v15364_v2  ;;  %v22223_v54 = vld [vmem:[#allocation213_spill] sm:$0xff] }
 0x267   : > { %22208 = vst [vmem:[#allocation320_spill] sm:$0xff] %v15539_v24  ;;  %22210 = vst [vmem:[#allocation321_spill] sm:$0xff] %v15545_v34  ;;  %11524 = vmatprep.subr.mxu1 %v15545_v34  ;;  %v3288_v19 = vsub.f32 %v15510_v49, %v15550_v36  ;;  %1754 = vrot.lane.b32.xlu0 %v1703_v45, %s13225_s8  ;;  %v22260_v24 = vld [vmem:[#allocation196_spill] sm:$0xff] }
 0x268   : > { %22211 = vst [vmem:[#allocation322_spill] sm:$0xff] %v15550_v36  ;;  %22212 = vst [vmem:[#allocation323_spill] sm:$0xff] %v15554_v51  ;;  %11525 = vmatpush3.msra.mxu1 %v15554_v51  ;;  %v15595_v9 = vsub.f32 %v2105_v14, %v15580_v29  ;;  %v15598_v34 = vsub.f32 %v2104_v12, %v15582_v46  ;;  %v15600_v36 = vand.u32 4294901760, %v3281_v56  ;;  %v15604_v51 = vand.u32 4294901760, %v3400_v6  ;;  %v22222_v14 = vld [vmem:[#allocation209_spill] sm:$0xff] }
 0x269   : > { %22213 = vst [vmem:[#allocation324_spill] sm:$0xff] %v15560_v55  ;;  %22214 = vst [vmem:[#allocation325_spill] sm:$0xff] %v15564_v63  ;;  %v15590_v63 = vand.u32 4294901760, %v3393_v22  ;;  %11526 = vmatprep.subr.mxu1 %v15560_v55  ;;  %v15608_v7 = vand.u32 4294901760, %v3288_v19  ;;  %v1892_v56 = vmul.f32 %v14993_v43, %v22217_v59  ;;  %3404 = vmatprep.mubr.f32.mxu1 %v15580_v29  ;;  %v22258_v55 = vld [vmem:[#allocation195_spill] sm:$0xff] }
 0x26a   : > { %22216 = vst [vmem:[#allocation193_spill] sm:$0xff] %v15578_v52  ;;  %22219 = vst [vmem:[#allocation327_spill] sm:$0xff] %v15600_v36  ;;  %11527 = vmatpush3.msra.mxu1 %v15578_v52  ;;  %v20978_v22 = vand.u32 4294901760, %v15595_v9  ;;  %v20977_v45 = vand.u32 4294901760, %v15598_v34  ;;  %11488 = vmatprep.subr.mxu0 %v15378_v32 }
 0x26b   : > { %22218 = vst [vmem:[#allocation326_spill] sm:$0xff] %v15590_v63  ;;  %22220 = vst [vmem:[#allocation328_spill] sm:$0xff] %v15604_v51  ;;  %11528 = vmatprep.subr.mxu1 %v15590_v63  ;;  %1943 = vrot.lane.b32.xlu0 %v1892_v56, %s13226_s13  ;;  %v22224_v56 = vld [vmem:[#allocation215_spill] sm:$0xff] }
 0x26c   : > { %22221 = vst [vmem:[#allocation329_spill] sm:$0xff] %v15608_v7  ;;  %11529 = vmatpush3.msra.mxu1 %v15600_v36  ;;  %v3151_v6 = vsub.f32 %v15595_v9, %v20978_v22  ;;  %v3157_v43 = vsub.f32 %v15598_v34, %v20977_v45  ;;  %11489 = vmatpush3.msra.mxu0 %v15408_v13  ;;  %v22229_v45 = vld [vmem:[#allocation227_spill] sm:$0xff] }
 0x26d   : > { %11530 = vmatprep.subr.mxu1 %v15604_v51  ;;  %11490 = vmatprep.subr.mxu0 %v15424_v33  ;;  %v22230_v22 = vld [vmem:[#allocation231_spill] sm:$0xff] }
 0x26e   : > { %11531 = vmatpush3.msra.mxu1 %v15608_v7  ;;  %v3152_v19 = vand.u32 4294901760, %v3151_v6  ;;  %v3158_v12 = vand.u32 4294901760, %v3157_v43  ;;  %11491 = vmatpush3.msra.mxu0 %v15438_v0  ;;  %v22225_v6 = vld [vmem:[#allocation218_spill] sm:$0xff]  ;;  %v22227_v43 = vld [vmem:[#allocation224_spill] sm:$0xff]  ;;  %v22257_v63 = vld [vmem:[#allocation303_spill] sm:$0xff] }
 0x26f   : > { %3406 = vmatmul.mubr.f32.vlgmr.msra.gmra.mxu1 %v15582_v46  ;;  %11576 = vmatprep.subr.mxu1 %v14905_v30 }
 0x270   : > { %3153 = vmatprep.mubr.f32.mxu0 %v3152_v19  ;;  %11577 = vmatpush3.msra.mxu1 %v14927_v50  ;;  %v22226_v19 = vld [vmem:[#allocation222_spill] sm:$0xff] }
 0x271   : > { %11578 = vmatprep.subr.mxu1 %v14937_v10  ;;  %11492 = vmatprep.subr.mxu0 %v15449_v26 }
 0x272   : > { %11579 = vmatpush3.msra.mxu1 %v14957_v53  ;;  %11493 = vmatpush3.msra.mxu0 %v15465_v48 }
 0x273   : > { %11580 = vmatprep.subr.mxu1 %v14984_v23  ;;  %3159 = vmatmul.mubr.f32.vlgmr.msra.gmra.mxu0 %v3158_v12  ;;  %v22228_v12 = vld [vmem:[#allocation225_spill] sm:$0xff] }
 0x274   : > { %11581 = vmatpush3.msra.mxu1 %v15003_v5  ;;  %11538 = vmatprep.subr.mxu0 %v22222_v14  ;;  %v22256_v14 = vld [vmem:[#allocation192_spill] sm:$0xff] }
 0x275   : > { %11582 = vmatprep.subr.mxu1 %v15014_v37  ;;  %11539 = vmatpush3.msra.mxu0 %v22223_v54  ;;  %v22255_v54 = vld [vmem:[#allocation317_spill] sm:$0xff] }
 0x276   : > { %11583 = vmatpush3.msra.mxu1 %v15032_v60  ;;  %11540 = vmatprep.subr.mxu0 %v22224_v56  ;;  %v854_v7 = vsel %vm848_vm7, %v22256_v14, %v22255_v54 }
 0x277   : > { %11584 = vmatprep.subr.mxu1 %v15047_v21  ;;  %11541 = vmatpush3.msra.mxu0 %v22225_v6  ;;  %v22231_v6 = vld [vmem:[#allocation232_spill] sm:$0xff] }
 0x278   : > { %11585 = vmatpush3.msra.mxu1 %v15065_v20  ;;  %11542 = vmatprep.subr.mxu0 %v22226_v19  ;;  %v22232_v19 = vld [vmem:[#allocation233_spill] sm:$0xff] }
 0x279   : > { %11586 = vmatprep.subr.mxu1 %v15075_v38  ;;  %11543 = vmatpush3.msra.mxu0 %v22227_v43  ;;  %v22233_v43 = vld [vmem:[#allocation237_spill] sm:$0xff] }
 0x27a   : > { %11587 = vmatpush3.msra.mxu1 %v15091_v8  ;;  %11544 = vmatprep.subr.mxu0 %v22228_v12  ;;  %v22234_v12 = vld [vmem:[#allocation243_spill] sm:$0xff] }
 0x27b   : > { %11588 = vmatprep.subr.mxu1 %v15123_v62  ;;  %11545 = vmatpush3.msra.mxu0 %v22229_v45  ;;  %v22235_v45 = vld [vmem:[#allocation247_spill] sm:$0xff] }
 0x27c   : > { %11589 = vmatpush3.msra.mxu1 %v15138_v4  ;;  %11546 = vmatprep.subr.mxu0 %v22230_v22  ;;  %v22236_v22 = vld [vmem:[#allocation249_spill] sm:$0xff] }
 0x27d   : > { %11590 = vmatprep.subr.mxu1 %v15154_v25  ;;  %11547 = vmatpush3.msra.mxu0 %v22231_v6  ;;  %v22237_v6 = vld [vmem:[#allocation252_spill] sm:$0xff] }
 0x27e   : > { %11591 = vmatpush3.msra.mxu1 %v15165_v44  ;;  %11548 = vmatprep.subr.mxu0 %v22232_v19  ;;  %v22238_v19 = vld [vmem:[#allocation256_spill] sm:$0xff] }
 0x27f   : > { %11592 = vmatprep.subr.mxu1 %v15180_v35  ;;  %11549 = vmatpush3.msra.mxu0 %v22233_v43  ;;  %v22239_v43 = vld [vmem:[#allocation262_spill] sm:$0xff] }
 0x280   : > { %11593 = vmatpush3.msra.mxu1 %v15209_v40  ;;  %11550 = vmatprep.subr.mxu0 %v22234_v12  ;;  %v22240_v12 = vld [vmem:[#allocation265_spill] sm:$0xff] }
 0x281   : > { %11594 = vmatprep.subr.mxu1 %v15223_v16  ;;  %11551 = vmatpush3.msra.mxu0 %v22235_v45  ;;  %v22241_v45 = vld [vmem:[#allocation271_spill] sm:$0xff] }
 0x282   : > { %11595 = vmatpush3.msra.mxu1 %v15250_v27  ;;  %11552 = vmatprep.subr.mxu0 %v22236_v22  ;;  %v22242_v22 = vld [vmem:[#allocation276_spill] sm:$0xff] }
 0x283   : > { %11596 = vmatprep.subr.mxu1 %v15281_v17  ;;  %11553 = vmatpush3.msra.mxu0 %v22237_v6  ;;  %v22243_v6 = vld [vmem:[#allocation279_spill] sm:$0xff] }
 0x284   : > { %11597 = vmatpush3.msra.mxu1 %v15292_v61  ;;  %11554 = vmatprep.subr.mxu0 %v22238_v19  ;;  %v22244_v19 = vld [vmem:[#allocation283_spill] sm:$0xff] }
 0x285   : > { %11598 = vmatprep.subr.mxu1 %v15307_v41  ;;  %11555 = vmatpush3.msra.mxu0 %v22239_v43  ;;  %v22254_v43 = vld [vmem:[#allocation45_spill] sm:$0xff] }
 0x286   : > { %11599 = vmatpush3.msra.mxu1 %v15337_v28  ;;  %11556 = vmatprep.subr.mxu0 %v22240_v12  ;;  %v22251_v12 = vld [vmem:[#allocation190_spill] sm:$0xff] }
 0x287   : > { %11600 = vmatprep.subr.mxu1 %v15351_v42  ;;  %11557 = vmatpush3.msra.mxu0 %v22241_v45  ;;  %v22249_v45 = vld [vmem:[#allocation53_spill] sm:$0xff] }
 0x288   : > { %11601 = vmatpush3.msra.mxu1 %v15364_v2  ;;  %11558 = vmatprep.subr.mxu0 %v22242_v22 }
 0x289   : > { %11602 = vmatprep.subr.mxu1 %v15378_v32  ;;  %11559 = vmatpush3.msra.mxu0 %v22243_v6 }
 0x28a   : > { %11603 = vmatpush3.msra.mxu1 %v15408_v13  ;;  %11560 = vmatprep.subr.mxu0 %v22244_v19  ;;  %v15704_v19 = vpop.permute.xlu0 %1014 }
 0x28b   : > { %11604 = vmatprep.subr.mxu1 %v15424_v33  ;;  %11561 = vmatpush3.msra.mxu0 %v15393_v1  ;;  %v22245_v1 = vld [vmem:[#allocation214_spill] sm:$0xff]  ;;  %22246 = vst [vmem:[#allocation330_spill] sm:$0xff] %v15704_v19 }
 0x28c   : > { %11605 = vmatpush3.msra.mxu1 %v15438_v0  ;;  %11562 = vmatprep.subr.mxu0 %v15406_v15  ;;  %v1013_v15 = vpop.permute.xlu1 %1012 }
 0x28d   : > { %11606 = vmatprep.subr.mxu1 %v15449_v26  ;;  %11563 = vmatpush3.msra.mxu0 %v15422_v57 }
 0x28e   : > { %11607 = vmatpush3.msra.mxu1 %v15465_v48  ;;  %11564 = vmatprep.subr.mxu0 %v15436_v18  ;;  %v15706_v6 = vpop.permute.xlu0 %1183  ;;  %v22248_v18 = vld [vmem:[#allocation47_spill] sm:$0xff] }
 0x28f   : > { %11652 = vmatprep.subr.mxu1 %v14905_v30  ;;  %11565 = vmatpush3.msra.mxu0 %v15463_v11  ;;  %22247 = vst [vmem:[#allocation331_spill] sm:$0xff] %v15706_v6  ;;  %v15710_v11 = vrot.slane %v22249_v45, %v22248_v18  ;;  %v1042_v30 = vsel %vm1036_vm8, %v22258_v55, %v1013_v15  ;;  %v22259_v18 = vld [vmem:[#allocation318_spill] sm:$0xff] }
 0x290   : > { %11566 = vmatprep.subr.mxu0 %v15477_v47  ;;  %v1182_v57 = vpop.permute.xlu1 %1181  ;;  %v22250_v47 = vld [vmem:[#allocation302_spill] sm:$0xff] }
 0x291   : > { %11567 = vmatpush3.msra.mxu0 %v15487_v31  ;;  %v664_v31 = vsel %vm658_vm2, %v22251_v12, %v22250_v47  ;;  %v500_v56 = vmul.f32 %v15710_v11, %v22254_v43  ;;  %v665_v52 = vsel %vm658_vm2, %v22250_v47, %v22257_v63  ;;  %v1207_v14 = vsel %vm432_vm6, %v22260_v24, %v1182_v57 }
 0x292   : > { %11568 = vmatprep.subr.mxu0 %v15498_v58  ;;  %v22252_v58 = vld [vmem:[#allocation189_spill] sm:$0xff]  ;;  %v1043_v47 = vsel %vm1036_vm8, %v1013_v15, %v15704_v19  ;;  %v22371_v19 = vld [vmem:[#allocation120_spill] sm:$0xff] }
 0x293   : > { %11569 = vmatpush3.msra.mxu0 %v15510_v49  ;;  %v15717_v49 = vrot.slane %v22249_v45, %v22252_v58  ;;  %v698_v36 = vadd.f32 %v664_v31, %v500_v56  ;;  %v855_v45 = vsel %vm848_vm7, %v22255_v54, %v22259_v18 }
 0x294   : > { %11614 = vmatprep.subr.mxu0 %v22245_v1  ;;  %v1366_v22 = vpop.permute.xlu1 %1365  ;;  %v15719_v1 = vpop.permute.xlu0 %1367 }
 0x295   : > { %22253 = vst [vmem:[#allocation302_spill] sm:$0xff] %v15719_v1  ;;  %v501_v12 = vmul.f32 %v15717_v49, %v22254_v43  ;;  %v888_v58 = vadd.f32 %v854_v7, %v698_v36  ;;  %v22262_v43 = vld [vmem:[#allocation199_spill] sm:$0xff]  ;;  %v22263_v36 = vld [vmem:[#allocation49_spill] sm:$0xff] }
 0x296   : > { %v1396_v7 = vsel %vm1391_vm9, %v22263_v36, %v1366_v22 }
 0x297   : > { %v699_v59 = vadd.f32 %v665_v52, %v501_v12  ;;  %v1076_v63 = vadd.f32 %v1042_v30, %v888_v58  ;;  %v1208_v52 = vsel %vm432_vm6, %v1182_v57, %v15706_v6  ;;  %v22264_v12 = vld [vmem:[#allocation52_spill] sm:$0xff]  ;;  %v1397_v58 = vsel %vm1391_vm9, %v1366_v22, %v15719_v1 }
 0x298   : > { %v1555_v51 = vpop.permute.xlu1 %1554  ;;  %v15738_v31 = vpop.permute.xlu0 %1556  ;;  %v22366_v1 = vld [vmem:[#allocation304_spill] sm:$0xff] }
 0x299   : > { %22261 = vst [vmem:[#allocation190_spill] sm:$0xff] %v15738_v31  ;;  %v889_v55 = vadd.f32 %v855_v45, %v699_v59  ;;  %v1240_v24 = vadd.f32 %v1207_v14, %v1076_v63  ;;  %v1585_v18 = vsel %vm1580_vm10, %v22264_v12, %v1555_v51  ;;  %v22266_v63 = vld [vmem:[#allocation54_spill] sm:$0xff] }
 0x29b   : > { %v1077_v54 = vadd.f32 %v1043_v47, %v889_v55  ;;  %v1431_v59 = vadd.f32 %v1396_v7, %v1240_v24 }
 0x29d   : > { %v1241_v36 = vadd.f32 %v1208_v52, %v1077_v54  ;;  %v1620_v47 = vadd.f32 %v1585_v18, %v1431_v59  ;;  %v22268_v54 = vld [vmem:[#allocation58_spill] sm:$0xff] }
 0x29f   : > { %v1432_v55 = vadd.f32 %v1397_v58, %v1241_v36 }
 0x2a3   : > { %v2091_v56 = vpop.permute.xlu1 %2090 }
 0x2a4   : > { %v2112_v39 = vsel %vm1816_vm5, %v22262_v43, %v2091_v56 }
 0x2a5   : > { %v15746_v3 = vand.u32 4294901760, %v2112_v39 }
 0x2a7   : > { %v15753_v15 = vsub.f32 %v2112_v39, %v15746_v3  ;;  %v1586_v39 = vsel %vm1580_vm10, %v1555_v51, %v15738_v31  ;;  %v22269_v51 = vand.u32 4294901760, %v15595_v9  ;;  %v22301_v31 = vld [vmem:[#allocation194_spill] sm:$0xff] }
 0x2a8   : > { %v15755_v30 = vpop.permute.xlu0 %2092  ;;  %v1735_v43 = vpop.permute.xlu1 %1734  ;;  %v1621_v24 = vadd.f32 %v1586_v39, %v1432_v55  ;;  %v22272_v55 = vand.u32 4294901760, %v15598_v34 }
 0x2a9   : > { %22265 = vst [vmem:[#allocation317_spill] sm:$0xff] %v15755_v30  ;;  %v2113_v45 = vsel %vm1816_vm5, %v2091_v56, %v15755_v30  ;;  %v1765_v14 = vsel %vm1760_vm11, %v22266_v63, %v1735_v43  ;;  %v3171_v22 = vand.u32 4294901760, %v15753_v15  ;;  %v22321_v30 = vld [vmem:[#allocation255_spill] sm:$0xff] }
 0x2aa   : > { %v15761_v57 = vand.u32 4294901760, %v2113_v45  ;;  %v1800_v56 = vadd.f32 %v1765_v14, %v1620_v47  ;;  %v22271_v47 = vld [vmem:[#allocation46_spill] sm:$0xff] }
 0x2ab   : > { %v3172_v14 = vsub.f32 %v15753_v15, %v3171_v22 }
 0x2ac   : > { %v3164_v12 = vsub.f32 %v2113_v45, %v15761_v57  ;;  %v15768_v6 = vpop.permute.xlu0 %1736  ;;  %3411 = vmatprep.mubr.f32.mxu1 %v15761_v57 }
 0x2ad   : > { %22267 = vst [vmem:[#allocation192_spill] sm:$0xff] %v15768_v6  ;;  %v1766_v7 = vsel %vm1760_vm11, %v1735_v43, %v15768_v6  ;;  %v1924_v52 = vpop.permute.xlu1 %1923  ;;  %3413 = vmatmul.mubr.f32.gmra.mxu1 %v15746_v3 }
 0x2ae   : > { %v1954_v18 = vsel %vm1949_vm12, %v22268_v54, %v1924_v52  ;;  %3664 = vmatprep.mubr.f32.mxu1 %v22269_v51  ;;  %v3165_v58 = vand.u32 4294901760, %v3164_v12  ;;  %v1801_v45 = vadd.f32 %v1766_v7, %v1621_v24  ;;  %v22274_v51 = vld [vmem:[#allocation21_spill] sm:$0xff] }
 0x2af   : > { %v1989_v59 = vadd.f32 %v1954_v18, %v1800_v56 }
 0x2b0   : > { %v15779_v36 = vpop.permute.xlu0 %1925  ;;  %v3166_v63 = vsub.f32 %v3164_v12, %v3165_v58 }
 0x2b1   : > { %22270 = vst [vmem:[#allocation195_spill] sm:$0xff] %v15779_v36  ;;  %v2017_v43 = vadd.f32 %v22271_v47, %v1989_v59  ;;  %v1955_v6 = vsel %vm1949_vm12, %v1924_v52, %v15779_v36  ;;  %v15785_v39 = vpop.permute.xlu1 %652  ;;  %3668 = vmatmul.mubr.f32.vlgmr.msra.gmra.mxu1 %v22272_v55  ;;  %v3173_v52 = vand.u32 4294901760, %v3172_v14  ;;  %v22275_v59 = vld [vmem:[#allocation8_spill] sm:$0xff]  ;;  %v22277_v14 = vld [vmem:[#allocation11_spill] sm:$0xff]  ;;  %v1254_v55 = vld [vmem:[#allocation2 + $0x9] sm:$0x1] }
 0x2b2   : > { %v1990_v54 = vadd.f32 %v1955_v6, %v1801_v45  ;;  %11653 = vmatpush3.msra.mxu1 %v14927_v50  ;;  %3675 = vmatprep.mubr.f32.mxu1 %v3165_v58  ;;  %v3167_v56 = vand.u32 4294901760, %v3166_v63  ;;  %v15797_v36 = vrot.slane %v22275_v59, %v22274_v51  ;;  %v22276_v58 = vld [vmem:[#allocation16_spill] sm:$0xff]  ;;  %v22294_v50 = vld [vmem:[#allocation22_spill] sm:$0xff] }
 0x2b3   : > { %v2035_v7 = vmax.f32 %v2017_v43, 0.0  ;;  %11654 = vmatprep.subr.mxu1 %v14937_v10  ;;  %v908_v45 = vmul.f32 %v22276_v58, %v22275_v59  ;;  %v720_v43 = vmul.f32 %v22277_v14, %v22275_v59  ;;  %v22281_v58 = vld [vmem:[#allocation7_spill] sm:$0xff]  ;;  %v22282_v14 = vld [vmem:[#allocation6_spill] sm:$0xff] }
 0x2b4   : > { %v2018_v24 = vadd.f32 %v22271_v47, %v1990_v54  ;;  %11655 = vmatpush3.msra.mxu1 %v14957_v53  ;;  %v15793_v18 = vpop.permute.xlu0 %654  ;;  %3168 = vmatprep.mubr.f32.mxu0 %v3167_v56  ;;  %v22279_v56 = vld [vmem:[#allocation19_spill] sm:$0xff]  ;;  %v22291_v53 = vld [vmem:[#allocation10_spill] sm:$0xff] }
 0x2b5   : > { %22273 = vst [vmem:[#allocation196_spill] sm:$0xff] %v15793_v18  ;;  %11656 = vmatprep.subr.mxu1 %v14984_v23  ;;  %2076 = vrot.lane.b32.xlu1 %v2035_v7, %s13216_s16  ;;  %v15801_v6 = vpop.permute.xlu1 %842  ;;  %v594_v7 = vmul.f32 %v15797_v36, %v22279_v56  ;;  %v22289_v23 = vld [vmem:[#allocation88_spill] sm:$0xff]  ;;  %v22293_v10 = vld [vmem:[#allocation230_spill] sm:$0xff] }
 0x2b6   : > { %v2036_v63 = vmax.f32 %v2018_v24, 0.0  ;;  %3174 = vmatmul.mubr.f32.gmra.mxu0 %v3173_v52  ;;  %3679 = vmatmul.mubr.f32.gmra.mxu1 %v3171_v22  ;;  %v22280_v24 = vld [vmem:[#allocation24_spill] sm:$0xff] }
 0x2b7   : > { %11657 = vmatpush3.msra.mxu1 %v15003_v5  ;;  %3548 = vmatprep.mubr.f32.mxu0 %v15595_v9  ;;  %v15822_v9 = vrot.slane %v908_v45, %v22274_v51  ;;  %v1263_v52 = vmul.f32 %v22280_v24, %v1254_v55  ;;  %v22285_v45 = vld [vmem:[#allocation28_spill] sm:$0xff]  ;;  %v22286_v24 = vld [vmem:[#allocation25_spill] sm:$0xff] }
 0x2b8   : > { %11658 = vmatprep.subr.mxu1 %v15014_v37  ;;  %3956 = vmatprep.mubr.f32.mxu1 %v15580_v29  ;;  %v22287_v5 = vld [vmem:[#allocation221_spill] sm:$0xff] }
 0x2b9   : > { %v15811_v54 = vpop.permute.xlu0 %844  ;;  %11659 = vmatpush3.msra.mxu1 %v15032_v60  ;;  %2078 = vrot.lane.b32.xlu0 %v2036_v63, %s13216_s16  ;;  %v15829_v60 = vrot.slane %v22282_v14, %v22281_v58  ;;  %v22283_v63 = vld [vmem:[#allocation220_spill] sm:$0xff] }
 0x2ba   : > { %22278 = vst [vmem:[#allocation199_spill] sm:$0xff] %v15811_v54  ;;  %v15817_v22 = vpop.permute.xlu1 %1030  ;;  %11660 = vmatprep.subr.mxu1 %v15047_v21  ;;  %638 = vrot.lane.b32.xlu1 %v594_v7, %s13209_s21  ;;  %v15835_v7 = vrot.slane %v720_v43, %v22274_v51  ;;  %v15839_v21 = vrot.slane %v22285_v45, %v22281_v58  ;;  %v22290_v43 = vld [vmem:[#allocation9_spill] sm:$0xff] }
 0x2bb   : > { %3551 = vmatmul.mubr.f32.vlgmr.msra.gmra.mxu0 %v15598_v34  ;;  %11661 = vmatpush3.msra.mxu1 %v15065_v20  ;;  %v1452_v34 = vmul.f32 %v22286_v24, %v1254_v55  ;;  %v972_v24 = vmul.f32 %v15822_v9, %v22291_v53 }
 0x2bc   : > { %11615 = vmatpush3.msra.mxu0 %v22283_v63  ;;  %3557 = vmatprep.mubr.f32.mxu0 %v3164_v12  ;;  %v15847_v63 = vrot.slane %v1254_v55, %v22274_v51  ;;  %v22288_v12 = vld [vmem:[#allocation32_spill] sm:$0xff]  ;;  %v784_v45 = vmul.f32 %v15835_v7, %v22290_v43 }
 0x2bd   : > { %v15832_v37 = vpop.permute.xlu0 %1032  ;;  %11616 = vmatprep.subr.mxu0 %v22287_v5  ;;  %11662 = vmatprep.subr.mxu1 %v15075_v38  ;;  %v1821_v20 = vmul.f32 %v22288_v12, %v1254_v55  ;;  %v22292_v5 = vld [vmem:[#allocation201_spill] sm:$0xff]  ;;  %v1146_v55 = vmul.f32 %v15829_v60, %v22294_v50  ;;  %v15864_v12 = vrot.slane %v1263_v52, %v22274_v51  ;;  %v22299_v50 = vld [vmem:[#allocation202_spill] sm:$0xff] }
 0x2be   : > { %22284 = vst [vmem:[#allocation49_spill] sm:$0xff] %v15832_v37  ;;  %v15844_v14 = vpop.permute.xlu1 %1197  ;;  %11617 = vmatpush3.msra.mxu0 %v22289_v23  ;;  %11663 = vmatpush3.msra.mxu1 %v15091_v8  ;;  %v672_v38 = vsel %vm658_vm2, %v22292_v5, %v15785_v39  ;;  %v22295_v23 = vld [vmem:[#allocation48_spill] sm:$0xff]  ;;  %v22297_v5 = vld [vmem:[#allocation14_spill] sm:$0xff]  ;;  %v862_v52 = vsel %vm848_vm7, %v22299_v50, %v15801_v6 }
 0x2bf   : > { %11618 = vmatprep.subr.mxu0 %v22293_v10  ;;  %11664 = vmatprep.subr.mxu1 %v15123_v62  ;;  %v509_v8 = vmul.f32 %v15710_v11, %v22295_v23  ;;  %v1326_v10 = vmul.f32 %v15839_v21, %v22297_v5  ;;  %v22298_v62 = vld [vmem:[#allocation30_spill] sm:$0xff] }
 0x2c0   : > { %828 = vrot.lane.b32.xlu0 %v784_v45, %s21916_s14  ;;  %1016 = vrot.lane.b32.xlu1 %v972_v24, %s13222_s22  ;;  %v15876_v43 = vrot.slane %v22298_v62, %v22281_v58  ;;  %v15884_v24 = vrot.slane %v1452_v34, %v22274_v51  ;;  %v22300_v45 = vld [vmem:[#allocation36_spill] sm:$0xff]  ;;  %v22302_v62 = vld [vmem:[#allocation35_spill] sm:$0xff]  ;;  %v673_v34 = vsel %vm658_vm2, %v15785_v39, %v15793_v18 }
 0x2c1   : > { %3560 = vmatmul.mubr.f32.gmra.mxu0 %v15753_v15  ;;  %11665 = vmatpush3.msra.mxu1 %v15138_v4  ;;  %v15888_v56 = vmul.f32 %v22300_v45, %v15829_v60  ;;  %v707_v47 = vadd.f32 %v672_v38, %v509_v8  ;;  %v15894_v50 = vmul.f32 %v15847_v63, %v22300_v45  ;;  %v22304_v4 = vld [vmem:[#allocation203_spill] sm:$0xff]  ;;  %v22305_v8 = vld [vmem:[#allocation200_spill] sm:$0xff] }
 0x2c2   : > { %v15870_v53 = vpop.permute.xlu0 %1199  ;;  %11619 = vmatpush3.msra.mxu0 %v22301_v31  ;;  %3845 = vmatprep.mubr.f32.mxu0 %v15580_v29  ;;  %v15898_v15 = vrot.slane %v22302_v62, %v22281_v58  ;;  %v1050_v38 = vsel %vm1036_vm8, %v22304_v4, %v15817_v22  ;;  %v1327_v29 = vmul.f32 %v15864_v12, %v22297_v5  ;;  %v22306_v45 = vld [vmem:[#allocation236_spill] sm:$0xff] }
 0x2c3   : > { %22296 = vst [vmem:[#allocation52_spill] sm:$0xff] %v15870_v53  ;;  %11620 = vmatprep.subr.mxu0 %v22305_v8  ;;  %11666 = vmatprep.subr.mxu1 %v15154_v25  ;;  %v510_v31 = vmul.f32 %v15717_v49, %v22295_v23  ;;  %v897_v62 = vadd.f32 %v862_v52, %v707_v47  ;;  %v22309_v8 = vld [vmem:[#allocation179_spill] sm:$0xff]  ;;  %v22310_v5 = vld [vmem:[#allocation240_spill] sm:$0xff]  ;;  %v22311_v49 = vld [vmem:[#allocation29_spill] sm:$0xff] }
 0x2c4   : > { %22303 = vst [vmem:[#allocation54_spill] sm:$0xff] %v15898_v15  ;;  %11621 = vmatpush3.msra.mxu0 %v22306_v45  ;;  %11667 = vmatpush3.msra.mxu1 %v15165_v44  ;;  %v15917_v18 = vrot.slane %v1821_v20, %v22274_v51  ;;  %v863_v4 = vsel %vm848_vm7, %v15801_v6, %v15811_v54  ;;  %v388_v6 = vld [vmem:[%s20432_s4 + $0x2f8] sm:$0xff]  ;;  %v22315_v54 = vld [vmem:[#allocation246_spill] sm:$0xff] }
 0x2c5   : > { %v1214_v25 = vsel %vm432_vm6, %v22309_v8, %v15844_v14  ;;  %11622 = vmatprep.subr.mxu0 %v22310_v5  ;;  %11668 = vmatprep.subr.mxu1 %v15180_v35  ;;  %v1515_v47 = vmul.f32 %v15876_v43, %v22311_v49  ;;  %v708_v45 = vadd.f32 %v673_v34, %v510_v31  ;;  %v372_v8 = vld [vmem:[%s20432_s4 + $0x278] sm:$0xff]  ;;  %v387_v5 = vld [vmem:[%s20432_s4 + $0x2f0] sm:$0xff] }
 0x2c6   : > { %v1384_v11 = vpop.permute.xlu1 %1383  ;;  %22308 = vst [vmem:[#allocation6_spill] sm:$0xff] %v15917_v18  ;;  %v1085_v44 = vadd.f32 %v1050_v38, %v897_v62  ;;  %1185 = vrot.lane.b32.xlu0 %v1146_v55, %s13220_s19  ;;  %1369 = vrot.lane.b32.xlu1 %v1326_v10, %s13223_s23  ;;  %v15933_v20 = vmul.f32 %v15884_v24, %v22311_v49  ;;  %v22312_v34 = vld [vmem:[#allocation204_spill] sm:$0xff]  ;;  %v22313_v10 = vld [vmem:[#allocation242_spill] sm:$0xff]  ;;  %v22314_v38 = vld [vmem:[#allocation37_spill] sm:$0xff] }
 0x2c7   : > { %v1051_v31 = vsel %vm1036_vm8, %v15817_v22, %v15832_v37  ;;  %v1404_v55 = vsel %vm1391_vm9, %v22312_v34, %v1384_v11  ;;  %11623 = vmatpush3.msra.mxu0 %v22313_v10  ;;  %11669 = vmatpush3.msra.mxu1 %v15209_v40  ;;  %v15950_v62 = vmul.f32 %v15898_v15, %v22314_v38  ;;  %v371_v10 = vld [vmem:[%s20432_s4 + $0x270] sm:$0xff] }
 0x2c8   : > { %v898_v35 = vadd.f32 %v863_v4, %v708_v45  ;;  %v1249_v49 = vadd.f32 %v1214_v25, %v1085_v44  ;;  %11624 = vmatprep.subr.mxu0 %v22315_v54  ;;  %11670 = vmatprep.subr.mxu1 %v15223_v16  ;;  %v15961_v34 = vmul.f32 %v15917_v18, %v22314_v38  ;;  %v22317_v45 = vld [vmem:[#allocation248_spill] sm:$0xff]  ;;  %v22318_v44 = vld [vmem:[#allocation205_spill] sm:$0xff]  ;;  %v15973_v54 = vand.u32 4294901760, %v388_v6  ;;  %v22394_v18 = vld [vmem:[#allocation322_spill] sm:$0xff] }
 0x2c9   : > { %v1215_v40 = vsel %vm432_vm6, %v15844_v14, %v15870_v53  ;;  %11625 = vmatpush3.msra.mxu0 %v22317_v45  ;;  %11671 = vmatpush3.msra.mxu1 %v15250_v27  ;;  %v15975_v16 = vand.u32 4294901760, %v372_v8  ;;  %v386_v38 = vld [vmem:[%s20432_s4 + $0x2e8] sm:$0xff]  ;;  %v22322_v14 = vld [vmem:[#allocation31_spill] sm:$0xff] }
 0x2ca   : > { %v15914_v39 = vpop.permute.xlu0 %1385  ;;  %22319 = vst [vmem:[#allocation201_spill] sm:$0xff] %v15973_v54  ;;  %v1086_v37 = vadd.f32 %v1051_v31, %v898_v35  ;;  %v1440_v23 = vadd.f32 %v1404_v55, %v1249_v49  ;;  %11626 = vmatprep.subr.mxu0 %v22321_v30  ;;  %11672 = vmatprep.subr.mxu1 %v15281_v17  ;;  %v370_v27 = vld [vmem:[%s20432_s4 + $0x268] sm:$0xff]  ;;  %v22324_v35 = vld [vmem:[#allocation207_spill] sm:$0xff]  ;;  %v16001_v55 = vand.u32 4294901760, %v371_v10 }
 0x2cb   : > { %22307 = vst [vmem:[#allocation58_spill] sm:$0xff] %v15914_v39  ;;  %22320 = vst [vmem:[#allocation30_spill] sm:$0xff] %v15975_v16  ;;  %v15984_v45 = vmul.f32 %v15797_v36, %v22322_v14  ;;  %v1405_v53 = vsel %vm1391_vm9, %v1384_v11, %v15914_v39  ;;  %1371 = vrot.lane.b32.xlu0 %v1327_v29, %s13223_s23  ;;  %1558 = vrot.lane.b32.xlu1 %v1515_v47, %s13224_s29  ;;  %v22325_v31 = vld [vmem:[#allocation38_spill] sm:$0xff]  ;;  %v22328_v11 = vld [vmem:[#allocation39_spill] sm:$0xff]  ;;  %v16009_v47 = vand.u32 4294901760, %v386_v38 }
 0x2cc   : > { %v15999_v36 = vmul.f32 %v15835_v7, %v22325_v31  ;;  %22326 = vst [vmem:[#allocation35_spill] sm:$0xff] %v16001_v55  ;;  %v1250_v30 = vadd.f32 %v1215_v40, %v1086_v37  ;;  %v22327_v14 = vld [vmem:[#allocation258_spill] sm:$0xff]  ;;  %11673 = vmatpush3.msra.mxu1 %v15292_v61  ;;  %v16007_v29 = vmul.f32 %v15822_v9, %v22328_v11  ;;  %v22330_v39 = vld [vmem:[#allocation261_spill] sm:$0xff]  ;;  %v16023_v40 = vand.u32 4294901760, %v370_v27 }
 0x2cd   : > { %v1573_v52 = vpop.permute.xlu1 %1572  ;;  %11627 = vmatpush3.msra.mxu0 %v22327_v14  ;;  %22329 = vst [vmem:[#allocation203_spill] sm:$0xff] %v16009_v47  ;;  %11674 = vmatprep.subr.mxu1 %v15307_v41  ;;  %v16018_v37 = vsub.f32 %v388_v6, %v15973_v54  ;;  %v22337_v6 = vld [vmem:[#allocation268_spill] sm:$0xff] }
 0x2ce   : > { %v1593_v25 = vsel %vm1580_vm10, %v22318_v44, %v1573_v52  ;;  %v15986_v44 = vand.u32 4294901760, %v387_v5  ;;  %11628 = vmatprep.subr.mxu0 %v22330_v39  ;;  %22334 = vst [vmem:[#allocation207_spill] sm:$0xff] %v16023_v40  ;;  %v1441_v9 = vadd.f32 %v1405_v53, %v1250_v30  ;;  %11675 = vmatpush3.msra.mxu1 %v15337_v28  ;;  %v22338_v30 = vld [vmem:[#allocation211_spill] sm:$0xff] }
 0x2cf   : > { %v1629_v17 = vadd.f32 %v1593_v25, %v1440_v23  ;;  %22332 = vst [vmem:[#allocation204_spill] sm:$0xff] %v16018_v37  ;;  %v16021_v23 = vsub.f32 %v372_v8, %v15975_v16  ;;  %v22335_v25 = vld [vmem:[#allocation264_spill] sm:$0xff]  ;;  %11676 = vmatprep.subr.mxu1 %v15351_v42  ;;  %1560 = vrot.lane.b32.xlu0 %v15933_v20, %s13224_s29  ;;  %v16058_v28 = vand.u32 4294901760, %v16018_v37 }
 0x2d0   : > { %22323 = vst [vmem:[#allocation202_spill] sm:$0xff] %v15986_v44  ;;  %11629 = vmatpush3.msra.mxu0 %v22335_v25  ;;  %v16028_v41 = vsub.f32 %v387_v5, %v15986_v44  ;;  %v369_v5 = vld [vmem:[%s20432_s4 + $0x260] sm:$0xff]  ;;  %v16049_v42 = vsub.f32 %v386_v38, %v16009_v47  ;;  %11677 = vmatpush3.msra.mxu1 %v15364_v2  ;;  %v22347_v38 = vld [vmem:[#allocation282_spill] sm:$0xff] }
 0x2d1   : > { %22333 = vst [vmem:[#allocation205_spill] sm:$0xff] %v16021_v23  ;;  %11630 = vmatprep.subr.mxu0 %v22337_v6  ;;  %v22340_v6 = vld [vmem:[#allocation274_spill] sm:$0xff]  ;;  %22344 = vst [vmem:[#allocation334_spill] sm:$0xff] %v16058_v28  ;;  %11678 = vmatprep.subr.mxu1 %v15378_v32  ;;  %v22350_v2 = vld [vmem:[#allocation40_spill] sm:$0xff] }
 0x2d2   : > { %22336 = vst [vmem:[#allocation332_spill] sm:$0xff] %v16028_v41  ;;  %11631 = vmatpush3.msra.mxu0 %v22340_v6  ;;  %22341 = vst [vmem:[#allocation333_spill] sm:$0xff] %v16049_v42  ;;  %v16075_v61 = vmul.f32 %v15839_v21, %v22350_v2  ;;  %11679 = vmatpush3.msra.mxu1 %v15408_v13  ;;  %v22352_v32 = vld [vmem:[#allocation288_spill] sm:$0xff]  ;;  %v22356_v13 = vld [vmem:[#allocation291_spill] sm:$0xff]  ;;  %v16105_v11 = vand.u32 4294901760, %v16049_v42 }
 0x2d3   : > { %v15957_v22 = vpop.permute.xlu0 %1574  ;;  %11680 = vmatprep.subr.mxu1 %v15424_v33  ;;  %v382_v33 = vld [vmem:[%s20432_s4 + $0x2c8] sm:$0xff] }
 0x2d4   : > { %22316 = vst [vmem:[#allocation28_spill] sm:$0xff] %v15957_v22  ;;  %v1753_v4 = vpop.permute.xlu1 %1752  ;;  %v1594_v7 = vsel %vm1580_vm10, %v1573_v52, %v15957_v22  ;;  %v385_v52 = vld [vmem:[%s20432_s4 + $0x2e0] sm:$0xff]  ;;  %22357 = vst [vmem:[#allocation342_spill] sm:$0xff] %v16105_v11  ;;  %11681 = vmatpush3.msra.mxu1 %v15438_v0 }
 0x2d5   : > { %v1773_v49 = vsel %vm1760_vm11, %v22324_v35, %v1753_v4  ;;  %v16063_v20 = vand.u32 4294901760, %v385_v52  ;;  %11682 = vmatprep.subr.mxu1 %v15449_v26  ;;  %v22363_v0 = vld [vmem:[#allocation300_spill] sm:$0xff] }
 0x2d6   : > { %v1809_v39 = vadd.f32 %v1773_v49, %v1629_v17  ;;  %v16040_v17 = vsub.f32 %v371_v10, %v16001_v55  ;;  %v1630_v49 = vadd.f32 %v1594_v7, %v1441_v9  ;;  %v22343_v10 = vld [vmem:[#allocation33_spill] sm:$0xff]  ;;  %v16061_v7 = vsub.f32 %v370_v27, %v16023_v40  ;;  %11683 = vmatpush3.msra.mxu1 %v15465_v48  ;;  %v22368_v48 = vld [vmem:[#allocation308_spill] sm:$0xff] }
 0x2d7   : > { %22346 = vst [vmem:[#allocation336_spill] sm:$0xff] %v16063_v20  ;;  %v16077_v27 = vand.u32 4294901760, %v369_v5  ;;  %v381_v26 = vld [vmem:[%s20432_s4 + $0x2c0] sm:$0xff]  ;;  %3958 = vmatmul.mubr.f32.vlgmr.msra.gmra.mxu1 %v15582_v46 }
 0x2d8   : > { %v1942_v14 = vpop.permute.xlu1 %1941  ;;  %22339 = vst [vmem:[#allocation211_spill] sm:$0xff] %v16040_v17  ;;  %22345 = vst [vmem:[#allocation335_spill] sm:$0xff] %v16061_v7  ;;  %v16093_v21 = vand.u32 4294901760, %v16040_v17  ;;  %3963 = vmatprep.mubr.f32.mxu1 %v15761_v57 }
 0x2d9   : > { %v16015_v35 = vpop.permute.xlu0 %1754  ;;  %v1962_v8 = vsel %vm1949_vm12, %v22338_v30, %v1942_v14  ;;  %v16055_v30 = vmul.f32 %v15829_v60, %v22343_v10  ;;  %22351 = vst [vmem:[#allocation338_spill] sm:$0xff] %v16077_v27  ;;  %v368_v10 = vld [vmem:[%s20432_s4 + $0x258] sm:$0xff]  ;;  %v16131_v22 = vsub.f32 %v369_v5, %v16077_v27 }
 0x2da   : > { %22331 = vst [vmem:[#allocation179_spill] sm:$0xff] %v16015_v35  ;;  %v1774_v53 = vsel %vm1760_vm11, %v1753_v4, %v16015_v35  ;;  %v1998_v25 = vadd.f32 %v1962_v8, %v1809_v39  ;;  %v22342_v4 = vld [vmem:[#allocation275_spill] sm:$0xff]  ;;  %v22348_v8 = vld [vmem:[#allocation188_spill] sm:$0xff]  ;;  %22355 = vst [vmem:[#allocation341_spill] sm:$0xff] %v16093_v21 }
 0x2db   : > { %11632 = vmatprep.subr.mxu0 %v22342_v4  ;;  %v384_v39 = vld [vmem:[%s20432_s4 + $0x2d8] sm:$0xff]  ;;  %v1810_v9 = vadd.f32 %v1774_v53, %v1630_v49  ;;  %v16090_v49 = vand.u32 4294901760, %v16028_v41  ;;  %v22359_v35 = vld [vmem:[#allocation294_spill] sm:$0xff]  ;;  %22364 = vst [vmem:[#allocation347_spill] sm:$0xff] %v16131_v22  ;;  %3965 = vmatmul.mubr.f32.gmra.mxu1 %v15746_v3 }
 0x2dc   : > { %11633 = vmatpush3.msra.mxu0 %v22347_v38  ;;  %v2026_v4 = vadd.f32 %v22348_v8, %v1998_v25  ;;  %v16087_v25 = vand.u32 4294901760, %v16021_v23  ;;  %v383_v38 = vld [vmem:[%s20432_s4 + $0x2d0] sm:$0xff]  ;;  %v16107_v31 = vand.u32 4294901760, %v384_v39 }
 0x2dd   : > { %v16071_v6 = vpop.permute.xlu0 %1943  ;;  %11634 = vmatprep.subr.mxu0 %v22352_v32  ;;  %22354 = vst [vmem:[#allocation340_spill] sm:$0xff] %v16090_v49 }
 0x2de   : > { %22349 = vst [vmem:[#allocation337_spill] sm:$0xff] %v16071_v6  ;;  %v1963_v53 = vsel %vm1949_vm12, %v1942_v14, %v16071_v6  ;;  %22353 = vst [vmem:[#allocation339_spill] sm:$0xff] %v16087_v25  ;;  %11635 = vmatpush3.msra.mxu0 %v22356_v13  ;;  %v16102_v14 = vmul.f32 %v15864_v12, %v22350_v2  ;;  %v367_v6 = vld [vmem:[%s20432_s4 + $0x250] sm:$0xff]  ;;  %v16120_v12 = vsub.f32 %v385_v52, %v16063_v20  ;;  %v366_v52 = vld [vmem:[%s20432_s4 + $0x248] sm:$0xff] }
 0x2df   : > { %v1999_v32 = vadd.f32 %v1963_v53, %v1810_v9  ;;  %22358 = vst [vmem:[#allocation343_spill] sm:$0xff] %v16107_v31  ;;  %11636 = vmatprep.subr.mxu0 %v22359_v35  ;;  %v4213_v9 = vsub.f32 %v16018_v37, %v16058_v28  ;;  %v16117_v53 = vand.u32 4294901760, %v16061_v7  ;;  %v16122_v13 = vand.u32 4294901760, %v368_v10 }
 0x2e0   : > { %22361 = vst [vmem:[#allocation345_spill] sm:$0xff] %v16120_v12  ;;  %v2044_v2 = vmax.f32 %v2026_v4, 0.0  ;;  %11637 = vmatpush3.msra.mxu0 %v22363_v0  ;;  %v16133_v28 = vand.u32 4294901760, %v383_v38  ;;  %v4101_v4 = vsub.f32 %v16021_v23, %v16087_v25  ;;  %v4220_v0 = vsub.f32 %v16028_v41, %v16090_v49  ;;  %v22380_v41 = vld [vmem:[#allocation316_spill] sm:$0xff] }
 0x2e1   : > { %22360 = vst [vmem:[#allocation344_spill] sm:$0xff] %v16117_v53  ;;  %22362 = vst [vmem:[#allocation346_spill] sm:$0xff] %v16122_v13  ;;  %v2027_v35 = vadd.f32 %v22348_v8, %v1999_v32  ;;  %11638 = vmatprep.subr.mxu0 %v22366_v1  ;;  %v4108_v32 = vsub.f32 %v16040_v17, %v16093_v21  ;;  %v16146_v5 = vand.u32 4294901760, %v367_v6  ;;  %v16158_v49 = vand.u32 4294901760, %v382_v33  ;;  %v365_v21 = vld [vmem:[%s20432_s4 + $0x240] sm:$0xff] }
 0x2e2   : > { %22365 = vst [vmem:[#allocation348_spill] sm:$0xff] %v16133_v28  ;;  %11639 = vmatpush3.msra.mxu0 %v22368_v48  ;;  %v4227_v1 = vsub.f32 %v16049_v42, %v16105_v11  ;;  %v16156_v25 = vsub.f32 %v384_v39, %v16107_v31  ;;  %v16168_v48 = vand.u32 4294901760, %v4213_v9  ;;  %v16171_v11 = vand.u32 4294901760, %v16120_v12  ;;  %v364_v42 = vld [vmem:[%s20432_s4 + $0x238] sm:$0xff]  ;;  %v22376_v17 = vld [vmem:[#allocation313_spill] sm:$0xff]  ;;  %2094 = vrot.lane.b32.xlu1 %v2044_v2, %s13216_s16 }
 0x2e3   : > { %22367 = vst [vmem:[#allocation349_spill] sm:$0xff] %v16146_v5  ;;  %v2045_v8 = vmax.f32 %v2027_v35, 0.0  ;;  %22370 = vst [vmem:[#allocation351_spill] sm:$0xff] %v16158_v49  ;;  %v380_v35 = vld [vmem:[%s20432_s4 + $0x2b8] sm:$0xff]  ;;  %11640 = vmatprep.subr.mxu0 %v22371_v19  ;;  %v16174_v39 = vsub.f32 %v368_v10, %v16122_v13  ;;  %v16176_v51 = vand.u32 4294901760, %v366_v52  ;;  %v4115_v9 = vsub.f32 %v16061_v7, %v16117_v53 }
 0x2e4   : > { %22369 = vst [vmem:[#allocation350_spill] sm:$0xff] %v16156_v25  ;;  %22372 = vst [vmem:[#allocation352_spill] sm:$0xff] %v16168_v48  ;;  %11641 = vmatpush3.msra.mxu0 %v22376_v17  ;;  %v16186_v19 = vand.u32 4294901760, %v16131_v22  ;;  %v16189_v59 = vsub.f32 %v383_v38, %v16133_v28  ;;  %v16191_v10 = vand.u32 4294901760, %v381_v26  ;;  %v16195_v58 = vand.u32 4294901760, %v4101_v4  ;;  %v22385_v7 = vld [vmem:[#allocation319_spill] sm:$0xff]  ;;  %11728 = vmatprep.subr.mxu1 %v16168_v48 }
 0x2e5   : > { %22373 = vst [vmem:[#allocation353_spill] sm:$0xff] %v16171_v11  ;;  %22374 = vst [vmem:[#allocation354_spill] sm:$0xff] %v16174_v39  ;;  %11642 = vmatprep.subr.mxu0 %v22380_v41  ;;  %2096 = vrot.lane.b32.xlu0 %v2045_v8, %s13216_s16  ;;  %v16198_v17 = vsub.f32 %v367_v6, %v16146_v5  ;;  %v16200_v2 = vand.u32 4294901760, %v365_v21  ;;  %v16202_v53 = vand.u32 4294901760, %v380_v35  ;;  %v16206_v38 = vand.u32 4294901760, %v4220_v0  ;;  %v379_v6 = vld [vmem:[%s20432_s4 + $0x2b0] sm:$0xff] }
 0x2e6   : > { %22375 = vst [vmem:[#allocation355_spill] sm:$0xff] %v16176_v51  ;;  %22377 = vst [vmem:[#allocation356_spill] sm:$0xff] %v16186_v19  ;;  %11643 = vmatpush3.msra.mxu0 %v22385_v7  ;;  %v16209_v23 = vand.u32 4294901760, %v16156_v25  ;;  %v16212_v8 = vsub.f32 %v382_v33, %v16158_v49  ;;  %v16214_v4 = vand.u32 4294901760, %v364_v42  ;;  %v22390_v41 = vld [vmem:[#allocation320_spill] sm:$0xff]  ;;  %v16221_v37 = vand.u32 4294901760, %v4108_v32  ;;  %1738 = vrot.lane.b32.xlu1 %v15888_v56, %s13225_s8 }
 0x2e7   : > { %22378 = vst [vmem:[#allocation357_spill] sm:$0xff] %v16189_v59  ;;  %22379 = vst [vmem:[#allocation358_spill] sm:$0xff] %v16191_v10  ;;  %11644 = vmatprep.subr.mxu0 %v22390_v41  ;;  %v4234_v0 = vsub.f32 %v16120_v12, %v16171_v11  ;;  %v16226_v7 = vand.u32 4294901760, %v16174_v39  ;;  %v16229_v33 = vsub.f32 %v366_v52, %v16176_v51  ;;  %v16234_v15 = vand.u32 4294901760, %v4227_v1  ;;  %v363_v52 = vld [vmem:[%s20432_s4 + $0x230] sm:$0xff] }
 0x2e8   : > { %22381 = vst [vmem:[#allocation359_spill] sm:$0xff] %v16195_v58  ;;  %22382 = vst [vmem:[#allocation360_spill] sm:$0xff] %v16198_v17  ;;  %11645 = vmatpush3.msra.mxu0 %v22394_v18  ;;  %v4122_v32 = vsub.f32 %v16131_v22, %v16186_v19  ;;  %v16239_v48 = vand.u32 4294901760, %v16189_v59  ;;  %v16242_v41 = vsub.f32 %v381_v26, %v16191_v10  ;;  %v16251_v1 = vand.u32 4294901760, %v16198_v17  ;;  %v378_v19 = vld [vmem:[%s20432_s4 + $0x2a8] sm:$0xff] }
 0x2e9   : > { %22383 = vst [vmem:[#allocation361_spill] sm:$0xff] %v16200_v2  ;;  %22384 = vst [vmem:[#allocation362_spill] sm:$0xff] %v16202_v53  ;;  %3847 = vmatmul.mubr.f32.vlgmr.msra.gmra.mxu0 %v15582_v46  ;;  %1740 = vrot.lane.b32.xlu0 %v15894_v50, %s13225_s8  ;;  %v16254_v56 = vsub.f32 %v365_v21, %v16200_v2  ;;  %v16257_v18 = vsub.f32 %v380_v35, %v16202_v53  ;;  %v16259_v26 = vand.u32 4294901760, %v379_v6 }
 0x2ea   : > { %22386 = vst [vmem:[#allocation363_spill] sm:$0xff] %v16206_v38  ;;  %22387 = vst [vmem:[#allocation364_spill] sm:$0xff] %v16209_v23  ;;  %3852 = vmatprep.mubr.f32.mxu0 %v15761_v57  ;;  %11729 = vmatpush3.msra.mxu1 %v16195_v58  ;;  %v16266_v46 = vand.u32 4294901760, %v4115_v9  ;;  %v4241_v50 = vsub.f32 %v16156_v25, %v16209_v23  ;;  %v16271_v21 = vand.u32 4294901760, %v16212_v8  ;;  %v16277_v11 = vand.u32 4294901760, %v4234_v0  ;;  %v362_v23 = vld [vmem:[%s20432_s4 + $0x228] sm:$0xff] }
 0x2eb   : > { %22388 = vst [vmem:[#allocation365_spill] sm:$0xff] %v16212_v8  ;;  %22389 = vst [vmem:[#allocation366_spill] sm:$0xff] %v16214_v4  ;;  %v16274_v35 = vsub.f32 %v364_v42, %v16214_v4  ;;  %11730 = vmatprep.subr.mxu1 %v16206_v38  ;;  %11690 = vmatprep.subr.mxu0 %v15973_v54  ;;  %v4129_v57 = vsub.f32 %v16174_v39, %v16226_v7  ;;  %v16283_v9 = vand.u32 4294901760, %v16229_v33  ;;  %v377_v39 = vld [vmem:[%s20432_s4 + $0x2a0] sm:$0xff] }
 0x2ec   : > { %22391 = vst [vmem:[#allocation367_spill] sm:$0xff] %v16221_v37  ;;  %22392 = vst [vmem:[#allocation368_spill] sm:$0xff] %v16226_v7  ;;  %v16285_v58 = vand.u32 4294901760, %v363_v52  ;;  %1927 = vrot.lane.b32.xlu1 %v15950_v62, %s13226_s13  ;;  %11731 = vmatpush3.msra.mxu1 %v16221_v37  ;;  %v16293_v42 = vand.u32 4294901760, %v4122_v32  ;;  %v4248_v0 = vsub.f32 %v16189_v59, %v16239_v48  ;;  %v16298_v38 = vand.u32 4294901760, %v16242_v41  ;;  %v361_v59 = vld [vmem:[%s20432_s4 + $0x220] sm:$0xff] }
 0x2ed   : > { %22393 = vst [vmem:[#allocation369_spill] sm:$0xff] %v16229_v33  ;;  %22395 = vst [vmem:[#allocation370_spill] sm:$0xff] %v16234_v15  ;;  %v16300_v7 = vand.u32 4294901760, %v378_v19  ;;  %3854 = vmatmul.mubr.f32.gmra.mxu0 %v15746_v3  ;;  %1929 = vrot.lane.b32.xlu0 %v15961_v34, %s13226_s13  ;;  %v4136_v62 = vsub.f32 %v16198_v17, %v16251_v1  ;;  %v16311_v32 = vand.u32 4294901760, %v16254_v56  ;;  %v16314_v37 = vand.u32 4294901760, %v16257_v18 }
 0x2ee   : > { %22396 = vst [vmem:[#allocation371_spill] sm:$0xff] %v16239_v48  ;;  %22397 = vst [vmem:[#allocation372_spill] sm:$0xff] %v16242_v41  ;;  %v16317_v48 = vsub.f32 %v379_v6, %v16259_v26  ;;  %11732 = vmatprep.subr.mxu1 %v16234_v15  ;;  %v16323_v3 = vand.u32 4294901760, %v4241_v50  ;;  %11691 = vmatpush3.msra.mxu0 %v15975_v16  ;;  %v4255_v34 = vsub.f32 %v16212_v8, %v16271_v21 }
 0x2ef   : > { %22398 = vst [vmem:[#allocation373_spill] sm:$0xff] %v16251_v1  ;;  %22399 = vst [vmem:[#allocation374_spill] sm:$0xff] %v16254_v56  ;;  %v16329_v1 = vand.u32 4294901760, %v16274_v35  ;;  %v16331_v17 = vand.u32 4294901760, %v362_v23  ;;  %11733 = vmatpush3.msra.mxu1 %v16266_v46  ;;  %v16334_v6 = vand.u32 4294901760, %v4129_v57  ;;  %11692 = vmatprep.subr.mxu0 %v15986_v44  ;;  %v4143_v50 = vsub.f32 %v16229_v33, %v16283_v9  ;;  %v360_v33 = vld [vmem:[%s20432_s4 + $0x218] sm:$0xff] }
 0x2f0   : > { %22400 = vst [vmem:[#allocation375_spill] sm:$0xff] %v16257_v18  ;;  %22401 = vst [vmem:[#allocation376_spill] sm:$0xff] %v16259_v26  ;;  %v16340_v15 = vsub.f32 %v363_v52, %v16285_v58  ;;  %v16342_v25 = vand.u32 4294901760, %v377_v39  ;;  %656 = vrot.lane.b32.xlu1 %v15984_v45, %s13209_s21  ;;  %11734 = vmatprep.subr.mxu1 %v16277_v11  ;;  %v16350_v57 = vand.u32 4294901760, %v4248_v0  ;;  %v16357_v52 = vand.u32 4294901760, %v361_v59 }
 0x2f1   : > { %22402 = vst [vmem:[#allocation377_spill] sm:$0xff] %v16266_v46  ;;  %22403 = vst [vmem:[#allocation378_spill] sm:$0xff] %v16271_v21  ;;  %v376_v21 = vld [vmem:[%s20432_s4 + $0x298] sm:$0xff]  ;;  %v4262_v46 = vsub.f32 %v16242_v41, %v16298_v38  ;;  %846 = vrot.lane.b32.xlu0 %v15999_v36, %s21916_s14  ;;  %11735 = vmatpush3.msra.mxu1 %v16293_v42  ;;  %v16365_v45 = vand.u32 4294901760, %v4136_v62  ;;  %v4150_v0 = vsub.f32 %v16254_v56, %v16311_v32  ;;  %v358_v56 = vld [vmem:[%s20432_s4 + $0x208] sm:$0xff] }
 0x2f2   : > { %22404 = vst [vmem:[#allocation379_spill] sm:$0xff] %v16274_v35  ;;  %22405 = vst [vmem:[#allocation380_spill] sm:$0xff] %v16277_v11  ;;  %v16372_v11 = vand.u32 4294901760, %v16317_v48  ;;  %11736 = vmatprep.subr.mxu1 %v16323_v3  ;;  %11693 = vmatpush3.msra.mxu0 %v16001_v55  ;;  %v16379_v36 = vand.u32 4294901760, %v4255_v34  ;;  %v4157_v62 = vsub.f32 %v16274_v35, %v16329_v1  ;;  %v16396_v34 = vand.u32 4294901760, %v16340_v15  ;;  %v374_v35 = vld [vmem:[%s20432_s4 + $0x288] sm:$0xff] }
 0x2f3   : > { %22406 = vst [vmem:[#allocation381_spill] sm:$0xff] %v16283_v9  ;;  %22407 = vst [vmem:[#allocation382_spill] sm:$0xff] %v16285_v58  ;;  %v16355_v9 = vsub.f32 %v378_v19, %v16300_v7  ;;  %v4269_v19 = vsub.f32 %v16257_v18, %v16314_v37  ;;  %11737 = vmatpush3.msra.mxu1 %v16334_v6  ;;  %11694 = vmatprep.subr.mxu0 %v16009_v47  ;;  %v373_v41 = vld [vmem:[%s20432_s4 + $0x280] sm:$0xff] }
 0x2f4   : > { %22408 = vst [vmem:[#allocation383_spill] sm:$0xff] %v16293_v42  ;;  %22409 = vst [vmem:[#allocation384_spill] sm:$0xff] %v16298_v38  ;;  %v375_v38 = vld [vmem:[%s20432_s4 + $0x290] sm:$0xff]  ;;  %v16384_v42 = vsub.f32 %v362_v23, %v16331_v17  ;;  %v16401_v23 = vand.u32 4294901760, %v360_v33  ;;  %1034 = vrot.lane.b32.xlu1 %v16007_v29, %s13222_s22  ;;  %11738 = vmatprep.subr.mxu1 %v16350_v57  ;;  %v16415_v18 = vsub.f32 %v361_v59, %v16357_v52 }
 0x2f5   : > { %22410 = vst [vmem:[#allocation385_spill] sm:$0xff] %v16300_v7  ;;  %22411 = vst [vmem:[#allocation386_spill] sm:$0xff] %v16311_v32  ;;  %v359_v32 = vld [vmem:[%s20432_s4 + $0x210] sm:$0xff]  ;;  %1201 = vrot.lane.b32.xlu0 %v16055_v30, %s13220_s19  ;;  %11739 = vmatpush3.msra.mxu1 %v16365_v45  ;;  %v16425_v29 = vand.u32 4294901760, %v4150_v0  ;;  %v16438_v30 = vand.u32 4294901760, %v4157_v62  ;;  %v4164_v62 = vsub.f32 %v16340_v15, %v16396_v34 }
 0x2f6   : > { %22412 = vst [vmem:[#allocation387_spill] sm:$0xff] %v16314_v37  ;;  %22413 = vst [vmem:[#allocation388_spill] sm:$0xff] %v16317_v48  ;;  %v16386_v37 = vand.u32 4294901760, %v376_v21  ;;  %v16431_v59 = vand.u32 4294901760, %v359_v32  ;;  %11740 = vmatprep.subr.mxu1 %v16379_v36  ;;  %11695 = vmatpush3.msra.mxu0 %v16023_v40  ;;  %v16441_v0 = vand.u32 4294901760, %v16384_v42  ;;  %v16469_v8 = vand.u32 4294901760, %v16415_v18 }
 0x2f7   : > { %22414 = vst [vmem:[#allocation389_spill] sm:$0xff] %v16323_v3  ;;  %22415 = vst [vmem:[#allocation390_spill] sm:$0xff] %v16329_v1  ;;  %v16393_v3 = vand.u32 4294901760, %v4143_v50  ;;  %v16399_v1 = vsub.f32 %v377_v39, %v16342_v25  ;;  %v16412_v50 = vand.u32 4294901760, %v16355_v9  ;;  %v16417_v39 = vand.u32 4294901760, %v375_v38  ;;  %11696 = vmatprep.subr.mxu0 %v16063_v20 }
 0x2f8   : > { %22416 = vst [vmem:[#allocation391_spill] sm:$0xff] %v16331_v17  ;;  %22417 = vst [vmem:[#allocation392_spill] sm:$0xff] %v16334_v6  ;;  %v16409_v6 = vand.u32 4294901760, %v4262_v46  ;;  %v16427_v46 = vand.u32 4294901760, %v4269_v19  ;;  %v16444_v19 = vsub.f32 %v376_v21, %v16386_v37  ;;  %v16461_v21 = vand.u32 4294901760, %v358_v56  ;;  %1387 = vrot.lane.b32.xlu1 %v16075_v61, %s13223_s23  ;;  %11697 = vmatpush3.msra.mxu0 %v16077_v27 }
 0x2f9   : > { %22418 = vst [vmem:[#allocation393_spill] sm:$0xff] %v16340_v15  ;;  %22419 = vst [vmem:[#allocation394_spill] sm:$0xff] %v16342_v25  ;;  %11741 = vmatpush3.msra.mxu1 %v16393_v3  ;;  %v16474_v15 = vand.u32 4294901760, %v373_v41  ;;  %1389 = vrot.lane.b32.xlu0 %v16102_v14, %s13223_s23  ;;  %v4171_v14 = vsub.f32 %v16384_v42, %v16441_v0 }
 0x2fa   : > { %22420 = vst [vmem:[#allocation395_spill] sm:$0xff] %v16350_v57  ;;  %22421 = vst [vmem:[#allocation396_spill] sm:$0xff] %v16355_v9  ;;  %v4276_v57 = vsub.f32 %v16317_v48, %v16372_v11  ;;  %v16459_v48 = vsub.f32 %v360_v33, %v16401_v23  ;;  %11742 = vmatprep.subr.mxu1 %v16409_v6  ;;  %v22449_v33 = vld [vmem:[#allocation41_spill] sm:$0xff]  ;;  %11698 = vmatprep.subr.mxu0 %v16107_v31 }
 0x2fb   : > { %22422 = vst [vmem:[#allocation397_spill] sm:$0xff] %v16357_v52  ;;  %22423 = vst [vmem:[#allocation398_spill] sm:$0xff] %v16365_v45  ;;  %v16446_v45 = vand.u32 4294901760, %v374_v35  ;;  %v1524_v22 = vmul.f32 %v15876_v43, %v22449_v33  ;;  %v1525_v61 = vmul.f32 %v15884_v24, %v22449_v33  ;;  %11743 = vmatpush3.msra.mxu1 %v16425_v29  ;;  %v16495_v43 = vand.u32 4294901760, %v16444_v19 }
 0x2fc   : > { %22424 = vst [vmem:[#allocation399_spill] sm:$0xff] %v16372_v11  ;;  %22425 = vst [vmem:[#allocation400_spill] sm:$0xff] %v16379_v36  ;;  %v357_v11 = vld [vmem:[%s20432_s4 + $0x200] sm:$0xff]  ;;  %v16456_v36 = vand.u32 4294901760, %v16399_v1  ;;  %11744 = vmatprep.subr.mxu1 %v16427_v46  ;;  %11699 = vmatpush3.msra.mxu0 %v16122_v13  ;;  %v16510_v33 = vsub.f32 %v358_v56, %v16461_v21 }
 0x2fd   : > { %22426 = vst [vmem:[#allocation401_spill] sm:$0xff] %v16384_v42  ;;  %22427 = vst [vmem:[#allocation402_spill] sm:$0xff] %v16386_v37  ;;  %v16498_v24 = vsub.f32 %v374_v35, %v16446_v45  ;;  %1576 = vrot.lane.b32.xlu1 %v1524_v22, %s13224_s29  ;;  %11745 = vmatpush3.msra.mxu1 %v16438_v30 }
 0x2fe   : > { %22428 = vst [vmem:[#allocation403_spill] sm:$0xff] %v16393_v3  ;;  %22429 = vst [vmem:[#allocation404_spill] sm:$0xff] %v16396_v34  ;;  %v4283_v3 = vsub.f32 %v16355_v9, %v16412_v50  ;;  %v16472_v34 = vsub.f32 %v375_v38, %v16417_v39  ;;  %v16490_v38 = vand.u32 4294901760, %v4276_v57  ;;  %v16507_v57 = vand.u32 4294901760, %v16459_v48  ;;  %1578 = vrot.lane.b32.xlu0 %v1525_v61, %s13224_s29 }
 0x2ff   : > { %22430 = vst [vmem:[#allocation405_spill] sm:$0xff] %v16399_v1  ;;  %22431 = vst [vmem:[#allocation406_spill] sm:$0xff] %v16401_v23  ;;  %11700 = vmatprep.subr.mxu0 %v16133_v28  ;;  %v16541_v61 = vand.u32 4294901760, %v16498_v24 }
 0x300   : > { %22432 = vst [vmem:[#allocation407_spill] sm:$0xff] %v16409_v6  ;;  %22433 = vst [vmem:[#allocation408_spill] sm:$0xff] %v16412_v50  ;;  %v16484_v6 = vsub.f32 %v359_v32, %v16431_v59  ;;  %v16486_v50 = vand.u32 4294901760, %v357_v11  ;;  %v16502_v32 = vand.u32 4294901760, %v4164_v62  ;;  %v16514_v35 = vand.u32 4294901760, %v4283_v3  ;;  %v22463_v3 = vld [vmem:[#allocation42_spill] sm:$0xff]  ;;  %11746 = vmatprep.subr.mxu1 %v16490_v38  ;;  %11701 = vmatpush3.msra.mxu0 %v16146_v5 }
 0x301   : > { %22434 = vst [vmem:[#allocation409_spill] sm:$0xff] %v16415_v18  ;;  %22435 = vst [vmem:[#allocation410_spill] sm:$0xff] %v16417_v39  ;;  %v16519_v62 = vand.u32 4294901760, %v16472_v34  ;;  %11702 = vmatprep.subr.mxu0 %v16158_v49 }
 0x302   : > { %22436 = vst [vmem:[#allocation411_spill] sm:$0xff] %v16425_v29  ;;  %22437 = vst [vmem:[#allocation412_spill] sm:$0xff] %v16427_v46  ;;  %v4290_v29 = vsub.f32 %v16399_v1, %v16456_v36  ;;  %v4178_v46 = vsub.f32 %v16415_v18, %v16469_v8  ;;  %v16527_v56 = vand.u32 4294901760, %v16484_v6  ;;  %v16530_v22 = vsub.f32 %v357_v11, %v16486_v50 }
 0x303   : > { %22438 = vst [vmem:[#allocation413_spill] sm:$0xff] %v16431_v59  ;;  %22439 = vst [vmem:[#allocation414_spill] sm:$0xff] %v16438_v30  ;;  %v1704_v30 = vmul.f32 %v22463_v3, %v15829_v60  ;;  %11747 = vmatpush3.msra.mxu1 %v16502_v32  ;;  %v4185_v11 = vsub.f32 %v16459_v48, %v16507_v57  ;;  %11703 = vmatpush3.msra.mxu0 %v16176_v51 }
 0x304   : > { %22440 = vst [vmem:[#allocation415_spill] sm:$0xff] %v16441_v0  ;;  %22441 = vst [vmem:[#allocation416_spill] sm:$0xff] %v16444_v19  ;;  %v1705_v0 = vmul.f32 %v15847_v63, %v22463_v3  ;;  %v16547_v60 = vand.u32 4294901760, %v4290_v29  ;;  %11748 = vmatprep.subr.mxu1 %v16514_v35  ;;  %v4304_v63 = vsub.f32 %v16472_v34, %v16519_v62  ;;  %v16568_v3 = vand.u32 4294901760, %v16530_v22 }
 0x305   : > { %22442 = vst [vmem:[#allocation417_spill] sm:$0xff] %v16446_v45  ;;  %22443 = vst [vmem:[#allocation418_spill] sm:$0xff] %v16456_v36  ;;  %v16522_v36 = vsub.f32 %v373_v41, %v16474_v15  ;;  %v4297_v41 = vsub.f32 %v16444_v19, %v16495_v43  ;;  %1756 = vrot.lane.b32.xlu1 %v1704_v30, %s13225_s8  ;;  %v4192_v29 = vsub.f32 %v16484_v6, %v16527_v56  ;;  %v22471_v30 = vld [vmem:[#allocation43_spill] sm:$0xff] }
 0x306   : > { %22444 = vst [vmem:[#allocation419_spill] sm:$0xff] %v16459_v48  ;;  %22445 = vst [vmem:[#allocation420_spill] sm:$0xff] %v16461_v21  ;;  %1758 = vrot.lane.b32.xlu0 %v1705_v0, %s13225_s8  ;;  %11704 = vmatprep.subr.mxu0 %v16191_v10  ;;  %v4311_v0 = vsub.f32 %v16498_v24, %v16541_v61 }
 0x307   : > { %22446 = vst [vmem:[#allocation421_spill] sm:$0xff] %v16469_v8  ;;  %22447 = vst [vmem:[#allocation422_spill] sm:$0xff] %v16472_v34  ;;  %v16536_v8 = vand.u32 4294901760, %v4171_v14  ;;  %v16552_v14 = vand.u32 4294901760, %v16510_v33  ;;  %11705 = vmatpush3.msra.mxu0 %v16200_v2 }
 0x308   : > { %22448 = vst [vmem:[#allocation423_spill] sm:$0xff] %v16474_v15  ;;  %22450 = vst [vmem:[#allocation424_spill] sm:$0xff] %v16484_v6  ;;  %11706 = vmatprep.subr.mxu0 %v16202_v53 }
 0x309   : > { %22451 = vst [vmem:[#allocation425_spill] sm:$0xff] %v16486_v50  ;;  %22452 = vst [vmem:[#allocation426_spill] sm:$0xff] %v16490_v38  ;;  %v16556_v38 = vand.u32 4294901760, %v4178_v46  ;;  %11749 = vmatpush3.msra.mxu1 %v16536_v8  ;;  %11707 = vmatpush3.msra.mxu0 %v16214_v4 }
 0x30a   : > { %22453 = vst [vmem:[#allocation427_spill] sm:$0xff] %v16495_v43  ;;  %22454 = vst [vmem:[#allocation428_spill] sm:$0xff] %v16498_v24  ;;  %11750 = vmatprep.subr.mxu1 %v16547_v60  ;;  %11708 = vmatprep.subr.mxu0 %v16259_v26 }
 0x30b   : > { %22455 = vst [vmem:[#allocation429_spill] sm:$0xff] %v16502_v32  ;;  %22456 = vst [vmem:[#allocation430_spill] sm:$0xff] %v16507_v57  ;;  %v16561_v32 = vand.u32 4294901760, %v16522_v36  ;;  %v22474_v57 = vld [vmem:[#allocation6_spill] sm:$0xff]  ;;  %11751 = vmatpush3.msra.mxu1 %v16556_v38  ;;  %11709 = vmatpush3.msra.mxu0 %v16285_v58 }
 0x30c   : > { %22457 = vst [vmem:[#allocation431_spill] sm:$0xff] %v16510_v33  ;;  %22458 = vst [vmem:[#allocation432_spill] sm:$0xff] %v16514_v35  ;;  %v22472_v35 = vld [vmem:[#allocation54_spill] sm:$0xff]  ;;  %v1894_v43 = vmul.f32 %v22474_v57, %v22471_v30  ;;  %v16594_v57 = vand.u32 4294901760, %v4192_v29  ;;  %11710 = vmatprep.subr.mxu0 %v16300_v7 }
 0x30d   : > { %22459 = vst [vmem:[#allocation433_spill] sm:$0xff] %v16519_v62  ;;  %22460 = vst [vmem:[#allocation434_spill] sm:$0xff] %v16522_v36  ;;  %v1893_v46 = vmul.f32 %v22472_v35, %v22471_v30  ;;  %v16574_v62 = vand.u32 4294901760, %v4297_v41  ;;  %v4199_v35 = vsub.f32 %v16510_v33, %v16552_v14  ;;  %v16588_v41 = vand.u32 4294901760, %v4304_v63  ;;  %11711 = vmatpush3.msra.mxu0 %v16331_v17  ;;  %v22490_v30 = vld [vmem:[#allocation332_spill] sm:$0xff] }
 0x30e   : > { %22461 = vst [vmem:[#allocation435_spill] sm:$0xff] %v16527_v56  ;;  %22462 = vst [vmem:[#allocation436_spill] sm:$0xff] %v16530_v22  ;;  %v16582_v56 = vand.u32 4294901760, %v4185_v11  ;;  %1947 = vrot.lane.b32.xlu0 %v1894_v43, %s13226_s13  ;;  %v4206_v11 = vsub.f32 %v16530_v22, %v16568_v3  ;;  %11712 = vmatprep.subr.mxu0 %v16342_v25 }
 0x30f   : > { %22464 = vst [vmem:[#allocation437_spill] sm:$0xff] %v16536_v8  ;;  %22465 = vst [vmem:[#allocation438_spill] sm:$0xff] %v16541_v61  ;;  %1945 = vrot.lane.b32.xlu1 %v1893_v46, %s13226_s13  ;;  %v4318_v8 = vsub.f32 %v16522_v36, %v16561_v32  ;;  %11752 = vmatprep.subr.mxu1 %v16574_v62  ;;  %v16600_v46 = vand.u32 4294901760, %v4311_v0  ;;  %v16604_v63 = vand.u32 4294901760, %v4199_v35  ;;  %v22483_v35 = vld [vmem:[#allocation325_spill] sm:$0xff] }
 0x310   : > { %22466 = vst [vmem:[#allocation439_spill] sm:$0xff] %v16547_v60  ;;  %22467 = vst [vmem:[#allocation440_spill] sm:$0xff] %v16552_v14  ;;  %11753 = vmatpush3.msra.mxu1 %v16582_v56  ;;  %v16612_v29 = vand.u32 4294901760, %v4206_v11  ;;  %11713 = vmatpush3.msra.mxu0 %v16357_v52  ;;  %v22488_v60 = vld [vmem:[#allocation53_spill] sm:$0xff]  ;;  %v22496_v14 = vld [vmem:[#allocation335_spill] sm:$0xff] }
 0x311   : > { %22468 = vst [vmem:[#allocation441_spill] sm:$0xff] %v16556_v38  ;;  %22469 = vst [vmem:[#allocation442_spill] sm:$0xff] %v16561_v32  ;;  %11754 = vmatprep.subr.mxu1 %v16588_v41  ;;  %v16608_v43 = vand.u32 4294901760, %v4318_v8  ;;  %11714 = vmatprep.subr.mxu0 %v16386_v37  ;;  %v22482_v8 = vld [vmem:[#allocation204_spill] sm:$0xff]  ;;  %v22494_v32 = vld [vmem:[#allocation333_spill] sm:$0xff] }
 0x312   : > { %22470 = vst [vmem:[#allocation443_spill] sm:$0xff] %v16568_v3  ;;  %22473 = vst [vmem:[#allocation54_spill] sm:$0xff] %v16574_v62  ;;  %11755 = vmatpush3.msra.mxu1 %v16594_v57  ;;  %11715 = vmatpush3.msra.mxu0 %v16401_v23  ;;  %v22493_v3 = vld [vmem:[#allocation211_spill] sm:$0xff] }
 0x313   : > { %22475 = vst [vmem:[#allocation6_spill] sm:$0xff] %v16582_v56  ;;  %22476 = vst [vmem:[#allocation444_spill] sm:$0xff] %v16588_v41  ;;  %11756 = vmatprep.subr.mxu1 %v16600_v46  ;;  %11716 = vmatprep.subr.mxu0 %v16417_v39 }
 0x314   : > { %22477 = vst [vmem:[#allocation445_spill] sm:$0xff] %v16594_v57  ;;  %22478 = vst [vmem:[#allocation446_spill] sm:$0xff] %v16600_v46  ;;  %11757 = vmatpush3.msra.mxu1 %v16604_v63  ;;  %11717 = vmatpush3.msra.mxu0 %v16431_v59 }
 0x315   : > { %22479 = vst [vmem:[#allocation447_spill] sm:$0xff] %v16604_v63  ;;  %22480 = vst [vmem:[#allocation448_spill] sm:$0xff] %v16608_v43  ;;  %11758 = vmatprep.subr.mxu1 %v16608_v43  ;;  %11718 = vmatprep.subr.mxu0 %v16446_v45 }
 0x316   : > { %22481 = vst [vmem:[#allocation449_spill] sm:$0xff] %v16612_v29  ;;  %11759 = vmatpush3.msra.mxu1 %v16612_v29  ;;  %11719 = vmatpush3.msra.mxu0 %v16461_v21 }
 0x317   : > { %11804 = vmatprep.subr.mxu1 %v15973_v54  ;;  %11720 = vmatprep.subr.mxu0 %v16474_v15 }
 0x318   : > { %11721 = vmatpush3.msra.mxu0 %v16486_v50 }
 0x319   : > { %11766 = vmatprep.subr.mxu0 %v22482_v8 }
 0x327   : > { %v2077_v0 = vpop.permute.xlu1 %2076 }
 0x328   : > { %v2106_v11 = vsel %vm1816_vm5, %v22483_v35, %v2077_v0 }
 0x329   : > { %v16633_v29 = vand.u32 4294901760, %v2106_v11 }
 0x32b   : > { %22484 = vst [vmem:[#allocation325_spill] sm:$0xff] %v16633_v29  ;;  %v16636_v43 = vsub.f32 %v2106_v11, %v16633_v29  ;;  %v16638_v63 = vpop.permute.xlu0 %2078 }
 0x32c   : > { %22485 = vst [vmem:[#allocation450_spill] sm:$0xff] %v16638_v63  ;;  %v2107_v46 = vsel %vm1816_vm5, %v2077_v0, %v16638_v63  ;;  %v639_v62 = vpop.permute.xlu1 %638  ;;  %v22492_v63 = vld [vmem:[#allocation50_spill] sm:$0xff] }
 0x32d   : > { %v16642_v57 = vand.u32 4294901760, %v2107_v46  ;;  %v21222_v41 = vand.u32 4294901760, %v16636_v43 }
 0x32f   : > { %v16646_v8 = vsub.f32 %v2107_v46, %v16642_v57  ;;  %4322 = vmatprep.mubr.f32.mxu1 %v16642_v57  ;;  %v4075_v11 = vsub.f32 %v16636_v43, %v21222_v41  ;;  %v22486_v41 = vld [vmem:[#allocation205_spill] sm:$0xff] }
 0x330   : > { %4324 = vmatmul.mubr.f32.vlgmr.msra.gmra.mxu1 %v16633_v29  ;;  %v22500_v29 = vld [vmem:[#allocation347_spill] sm:$0xff] }
 0x331   : > { %11805 = vmatpush3.msra.mxu1 %v15975_v16  ;;  %v21223_v35 = vand.u32 4294901760, %v16646_v8  ;;  %v4076_v56 = vand.u32 4294901760, %v4075_v11  ;;  %v22491_v11 = vld [vmem:[#allocation8_spill] sm:$0xff] }
 0x332   : > { %11806 = vmatprep.subr.mxu1 %v15986_v44  ;;  %v829_v38 = vpop.permute.xlu0 %828 }
 0x333   : > { %11807 = vmatpush3.msra.mxu1 %v16001_v55  ;;  %v4069_v46 = vsub.f32 %v16646_v8, %v21223_v35  ;;  %v22487_v35 = vld [vmem:[#allocation7_spill] sm:$0xff] }
 0x334   : > { %11808 = vmatprep.subr.mxu1 %v16009_v47 }
 0x335   : > { %v4070_v0 = vand.u32 4294901760, %v4069_v46  ;;  %11809 = vmatpush3.msra.mxu1 %v16023_v40  ;;  %v16669_v46 = vrot.slane %v22488_v60, %v22487_v35 }
 0x336   : > { %11810 = vmatprep.subr.mxu1 %v16063_v20 }
 0x337   : > { %4071 = vmatprep.mubr.f32.mxu0 %v4070_v0  ;;  %11811 = vmatpush3.msra.mxu1 %v16077_v27  ;;  %22489 = vst [vmem:[#allocation53_spill] sm:$0xff] %v16669_v46  ;;  %v437_v0 = vmul.f32 %v22492_v63, %v22491_v11 }
 0x338   : > { %4077 = vmatmul.mubr.f32.vlgmr.msra.gmra.mxu0 %v4076_v56  ;;  %11812 = vmatprep.subr.mxu1 %v16107_v31  ;;  %v1017_v56 = vpop.permute.xlu1 %1016  ;;  %v1186_v35 = vpop.permute.xlu0 %1185 }
 0x339   : > { %11767 = vmatpush3.msra.mxu0 %v22486_v41  ;;  %11813 = vmatpush3.msra.mxu1 %v16122_v13  ;;  %v22495_v41 = vld [vmem:[#allocation303_spill] sm:$0xff] }
 0x33a   : > { %11768 = vmatprep.subr.mxu0 %v22490_v30  ;;  %11814 = vmatprep.subr.mxu1 %v16133_v28  ;;  %v666_v60 = vsel %vm658_vm2, %v22495_v41, %v639_v62  ;;  %v22497_v30 = vld [vmem:[#allocation45_spill] sm:$0xff] }
 0x33b   : > { %11769 = vmatpush3.msra.mxu0 %v22493_v3  ;;  %11815 = vmatpush3.msra.mxu1 %v16146_v5  ;;  %v502_v11 = vmul.f32 %v16669_v46, %v22497_v30  ;;  %v22498_v3 = vld [vmem:[#allocation21_spill] sm:$0xff]  ;;  %v22502_v46 = vld [vmem:[#allocation354_spill] sm:$0xff] }
 0x33c   : > { %11770 = vmatprep.subr.mxu0 %v22494_v32  ;;  %11816 = vmatprep.subr.mxu1 %v16158_v49  ;;  %v16688_v63 = vrot.slane %v437_v0, %v22498_v3  ;;  %v22499_v32 = vld [vmem:[#allocation318_spill] sm:$0xff]  ;;  %v22503_v0 = vld [vmem:[#allocation357_spill] sm:$0xff] }
 0x33d   : > { %11771 = vmatpush3.msra.mxu0 %v22496_v14  ;;  %11817 = vmatpush3.msra.mxu1 %v16176_v51  ;;  %v856_v61 = vsel %vm848_vm7, %v22499_v32, %v829_v38  ;;  %v700_v41 = vadd.f32 %v666_v60, %v502_v11  ;;  %v22501_v14 = vld [vmem:[#allocation350_spill] sm:$0xff]  ;;  %v22505_v60 = vld [vmem:[#allocation365_spill] sm:$0xff] }
 0x33e   : > { %11772 = vmatprep.subr.mxu0 %v16120_v12  ;;  %11818 = vmatprep.subr.mxu1 %v16191_v10  ;;  %v1370_v10 = vpop.permute.xlu1 %1369  ;;  %v503_v32 = vmul.f32 %v16688_v63, %v22497_v30  ;;  %v22509_v30 = vld [vmem:[#allocation331_spill] sm:$0xff] }
 0x33f   : > { %11773 = vmatpush3.msra.mxu0 %v22500_v29  ;;  %11819 = vmatpush3.msra.mxu1 %v16200_v2  ;;  %v890_v12 = vadd.f32 %v856_v61, %v700_v41  ;;  %v1372_v29 = vpop.permute.xlu0 %1371  ;;  %v22504_v2 = vld [vmem:[#allocation360_spill] sm:$0xff]  ;;  %v22507_v41 = vld [vmem:[#allocation369_spill] sm:$0xff] }
 0x340   : > { %11774 = vmatprep.subr.mxu0 %v22501_v14  ;;  %11820 = vmatprep.subr.mxu1 %v16202_v53  ;;  %v701_v11 = vadd.f32 %v639_v62, %v503_v32  ;;  %v22508_v14 = vld [vmem:[#allocation372_spill] sm:$0xff]  ;;  %v22511_v32 = vld [vmem:[#allocation375_spill] sm:$0xff] }
 0x341   : > { %11775 = vmatpush3.msra.mxu0 %v22502_v46  ;;  %11821 = vmatpush3.msra.mxu1 %v16214_v4  ;;  %v22506_v46 = vld [vmem:[#allocation330_spill] sm:$0xff] }
 0x342   : > { %11776 = vmatprep.subr.mxu0 %v22503_v0  ;;  %11822 = vmatprep.subr.mxu1 %v16259_v26  ;;  %v1044_v61 = vsel %vm1036_vm8, %v22506_v46, %v1017_v56  ;;  %v1559_v62 = vpop.permute.xlu1 %1558 }
 0x343   : > { %11777 = vmatpush3.msra.mxu0 %v22504_v2  ;;  %11823 = vmatpush3.msra.mxu1 %v16285_v58  ;;  %v1078_v0 = vadd.f32 %v1044_v61, %v890_v12  ;;  %v891_v2 = vadd.f32 %v829_v38, %v701_v11  ;;  %v1209_v58 = vsel %vm432_vm6, %v22509_v30, %v1186_v35  ;;  %v1561_v46 = vpop.permute.xlu0 %1560  ;;  %v22513_v61 = vld [vmem:[#allocation388_spill] sm:$0xff]  ;;  %v22514_v30 = vld [vmem:[#allocation393_spill] sm:$0xff] }
 0x344   : > { %11778 = vmatprep.subr.mxu0 %v22505_v60  ;;  %11824 = vmatprep.subr.mxu1 %v16300_v7  ;;  %v22510_v60 = vld [vmem:[#allocation374_spill] sm:$0xff] }
 0x345   : > { %11779 = vmatpush3.msra.mxu0 %v22507_v41  ;;  %11825 = vmatpush3.msra.mxu1 %v16331_v17  ;;  %v22512_v41 = vld [vmem:[#allocation379_spill] sm:$0xff]  ;;  %v1242_v12 = vadd.f32 %v1209_v58, %v1078_v0  ;;  %v1079_v38 = vadd.f32 %v1017_v56, %v891_v2  ;;  %v1399_v56 = vsel %vm1391_vm9, %v1370_v10, %v1372_v29 }
 0x346   : > { %11780 = vmatprep.subr.mxu0 %v22508_v14  ;;  %11826 = vmatprep.subr.mxu1 %v16342_v25 }
 0x347   : > { %11781 = vmatpush3.msra.mxu0 %v22510_v60  ;;  %11827 = vmatpush3.msra.mxu1 %v16357_v52  ;;  %v22516_v60 = vld [vmem:[#allocation317_spill] sm:$0xff] }
 0x348   : > { %11782 = vmatprep.subr.mxu0 %v22511_v32  ;;  %11828 = vmatprep.subr.mxu1 %v16386_v37  ;;  %v22515_v32 = vld [vmem:[#allocation302_spill] sm:$0xff] }
 0x349   : > { %11783 = vmatpush3.msra.mxu0 %v22512_v41  ;;  %11829 = vmatpush3.msra.mxu1 %v16401_v23  ;;  %v1398_v41 = vsel %vm1391_vm9, %v22515_v32, %v1370_v10  ;;  %v1243_v32 = vadd.f32 %v1186_v35, %v1079_v38  ;;  %v1588_v10 = vsel %vm1580_vm10, %v1559_v62, %v1561_v46  ;;  %v22519_v38 = vld [vmem:[#allocation192_spill] sm:$0xff] }
 0x34a   : > { %11784 = vmatprep.subr.mxu0 %v22513_v61  ;;  %11830 = vmatprep.subr.mxu1 %v16417_v39  ;;  %v1433_v2 = vadd.f32 %v1398_v41, %v1242_v12 }
 0x34b   : > { %11785 = vmatpush3.msra.mxu0 %v22514_v30  ;;  %11831 = vmatpush3.msra.mxu1 %v16431_v59  ;;  %v1434_v35 = vadd.f32 %v1399_v56, %v1243_v32 }
 0x34c   : > { %11786 = vmatprep.subr.mxu0 %v16355_v9  ;;  %11832 = vmatprep.subr.mxu1 %v16446_v45 }
 0x34d   : > { %11787 = vmatpush3.msra.mxu0 %v16384_v42  ;;  %11833 = vmatpush3.msra.mxu1 %v16461_v21  ;;  %v1623_v56 = vadd.f32 %v1588_v10, %v1434_v35 }
 0x34e   : > { %11788 = vmatprep.subr.mxu0 %v16399_v1  ;;  %11834 = vmatprep.subr.mxu1 %v16474_v15 }
 0x34f   : > { %11789 = vmatpush3.msra.mxu0 %v16415_v18  ;;  %11835 = vmatpush3.msra.mxu1 %v16486_v50  ;;  %v22551_v18 = vld [vmem:[#allocation26_spill] sm:$0xff] }
 0x350   : > { %11790 = vmatprep.subr.mxu0 %v16444_v19  ;;  %11880 = vmatprep.subr.mxu1 %v15973_v54 }
 0x351   : > { %11791 = vmatpush3.msra.mxu0 %v16459_v48 }
 0x352   : > { %11792 = vmatprep.subr.mxu0 %v16472_v34 }
 0x353   : > { %11793 = vmatpush3.msra.mxu0 %v16484_v6  ;;  %v22522_v6 = vand.u32 4294901760, %v16636_v43 }
 0x354   : > { %v2095_v11 = vpop.permute.xlu1 %2094  ;;  %11794 = vmatprep.subr.mxu0 %v16498_v24 }
 0x355   : > { %v2114_v58 = vsel %vm1816_vm5, %v22516_v60, %v2095_v11  ;;  %v22518_v60 = vld [vmem:[#allocation190_spill] sm:$0xff]  ;;  %11795 = vmatpush3.msra.mxu0 %v16510_v33  ;;  %v420_v33 = vld [vmem:[%s20432_s4 + $0x3f8] sm:$0xff] }
 0x356   : > { %v16735_v30 = vand.u32 4294901760, %v2114_v58  ;;  %v1587_v61 = vsel %vm1580_vm10, %v22518_v60, %v1559_v62  ;;  %11796 = vmatprep.subr.mxu0 %v16522_v36  ;;  %v13136_v36 = vld [vmem:[#allocation2 + $0x1] sm:$0xff] }
 0x357   : > { %v16730_v0 = vpop.permute.xlu0 %2096  ;;  %v1622_v62 = vadd.f32 %v1587_v61, %v1433_v2  ;;  %11797 = vmatpush3.msra.mxu0 %v16530_v22  ;;  %v16868_v1 = vmul.f32 %v13136_v36, %v22551_v18 }
 0x358   : > { %22517 = vst [vmem:[#allocation8_spill] sm:$0xff] %v16730_v0  ;;  %v2115_v9 = vsel %vm1816_vm5, %v2095_v11, %v16730_v0  ;;  %v16749_v29 = vsub.f32 %v2114_v58, %v16735_v30  ;;  %v1739_v41 = vpop.permute.xlu1 %1738 }
 0x359   : > { %v16743_v14 = vand.u32 4294901760, %v2115_v9  ;;  %v1767_v11 = vsel %vm1760_vm11, %v22519_v38, %v1739_v41  ;;  %22552 = vst [vmem:[#allocation26_spill] sm:$0xff] %v16868_v1 }
 0x35a   : > { %v4089_v58 = vand.u32 4294901760, %v16749_v29  ;;  %v1802_v38 = vadd.f32 %v1767_v11, %v1622_v62 }
 0x35b   : > { %v16754_v12 = vsub.f32 %v2115_v9, %v16743_v14  ;;  %v1741_v60 = vpop.permute.xlu0 %1740  ;;  %4329 = vmatprep.mubr.f32.mxu1 %v16743_v14  ;;  %v22520_v9 = vand.u32 4294901760, %v16646_v8 }
 0x35c   : > { %v1768_v46 = vsel %vm1760_vm11, %v1739_v41, %v1741_v60  ;;  %4331 = vmatmul.mubr.f32.gmra.mxu1 %v16735_v30  ;;  %v4090_v61 = vsub.f32 %v16749_v29, %v4089_v58  ;;  %v22521_v41 = vld [vmem:[#allocation195_spill] sm:$0xff] }
 0x35d   : > { %4582 = vmatprep.mubr.f32.mxu1 %v22520_v9  ;;  %v4083_v32 = vand.u32 4294901760, %v16754_v12  ;;  %v1803_v2 = vadd.f32 %v1768_v46, %v1623_v56  ;;  %v22523_v46 = vld [vmem:[#allocation46_spill] sm:$0xff] }
 0x35e   : > { %v1928_v19 = vpop.permute.xlu1 %1927 }
 0x35f   : > { %v1956_v60 = vsel %vm1949_vm12, %v22521_v41, %v1928_v19  ;;  %v1930_v34 = vpop.permute.xlu0 %1929  ;;  %v4084_v10 = vsub.f32 %v16754_v12, %v4083_v32  ;;  %v4091_v41 = vand.u32 4294901760, %v4090_v61  ;;  %v22526_v61 = vld [vmem:[#allocation334_spill] sm:$0xff] }
 0x360   : > { %v1991_v35 = vadd.f32 %v1956_v60, %v1802_v38  ;;  %v1957_v9 = vsel %vm1949_vm12, %v1928_v19, %v1930_v34  ;;  %4586 = vmatmul.mubr.f32.vlgmr.msra.gmra.mxu1 %v22522_v6  ;;  %v5852_v38 = vld [vmem:[#allocation2] sm:$0xff]  ;;  %11842 = vmatprep.subr.mxu0 %v22526_v61  ;;  %v22527_v60 = vld [vmem:[#allocation19_spill] sm:$0xff] }
 0x361   : > { %v1992_v11 = vadd.f32 %v1957_v9, %v1803_v2  ;;  %11881 = vmatpush3.msra.mxu1 %v15975_v16  ;;  %4593 = vmatprep.mubr.f32.mxu1 %v4083_v32  ;;  %v4085_v62 = vand.u32 4294901760, %v4084_v10  ;;  %v22524_v19 = vld [vmem:[#allocation12_spill] sm:$0xff]  ;;  %v22530_v9 = vld [vmem:[#allocation15_spill] sm:$0xff]  ;;  %v22542_v61 = vld [vmem:[#allocation341_spill] sm:$0xff] }
 0x362   : > { %v2019_v56 = vadd.f32 %v22523_v46, %v1991_v35  ;;  %11882 = vmatprep.subr.mxu1 %v15986_v44  ;;  %v16786_v32 = vrot.slane %v5852_v38, %v22524_v19  ;;  %v6456_v35 = vld [vmem:[#allocation2 + $0x1] sm:$0xff]  ;;  %v16870_v42 = vpop.permute.xlu1 %656  ;;  %v22563_v44 = vld [vmem:[#allocation358_spill] sm:$0xff] }
 0x363   : > { %v2020_v34 = vadd.f32 %v22523_v46, %v1992_v11  ;;  %11883 = vmatpush3.msra.mxu1 %v16001_v55  ;;  %4086 = vmatprep.mubr.f32.mxu0 %v4085_v62  ;;  %v16803_v11 = vmul.f32 %v5852_v38, %v22530_v9  ;;  %v22532_v62 = vld [vmem:[#allocation13_spill] sm:$0xff]  ;;  %v22564_v16 = vld [vmem:[#allocation356_spill] sm:$0xff]  ;;  %v403_v46 = vld [vmem:[%s20432_s4 + $0x370] sm:$0xff] }
 0x364   : > { %v2037_v6 = vmax.f32 %v2019_v56, 0.0  ;;  %11884 = vmatprep.subr.mxu1 %v16009_v47  ;;  %4092 = vmatmul.mubr.f32.gmra.mxu0 %v4091_v41  ;;  %22525 = vst [vmem:[#allocation303_spill] sm:$0xff] %v16786_v32  ;;  %v5987_v10 = vmul.f32 %v16786_v32, %v22527_v60  ;;  %v16808_v56 = vrot.slane %v5852_v38, %v22532_v62  ;;  %v22534_v41 = vld [vmem:[#allocation339_spill] sm:$0xff]  ;;  %v22562_v47 = vld [vmem:[#allocation353_spill] sm:$0xff] }
 0x365   : > { %v2038_v2 = vmax.f32 %v2020_v34, 0.0  ;;  %4597 = vmatmul.mubr.f32.gmra.mxu1 %v4089_v58  ;;  %4466 = vmatprep.mubr.f32.mxu0 %v16646_v8  ;;  %v22528_v8 = vld [vmem:[#allocation17_spill] sm:$0xff]  ;;  %22531 = vst [vmem:[#allocation330_spill] sm:$0xff] %v16803_v11  ;;  %v16813_v34 = vrot.slane %v5852_v38, %v22498_v3  ;;  %v16861_v24 = vrot.slane %v16803_v11, %v22532_v62 }
 0x366   : > { %2080 = vrot.lane.b32.xlu1 %v2037_v6, %s13216_s16  ;;  %11885 = vmatpush3.msra.mxu1 %v16023_v40  ;;  %v16800_v58 = vrot.slane %v5852_v38, %v22528_v8  ;;  %22533 = vst [vmem:[#allocation331_spill] sm:$0xff] %v16808_v56  ;;  %v16816_v6 = vrot.slane %v6456_v35, %v22498_v3  ;;  %v16958_v0 = vpop.permute.xlu1 %1034 }
 0x367   : > { %11886 = vmatprep.subr.mxu1 %v16063_v20  ;;  %4874 = vmatprep.mubr.f32.mxu1 %v16642_v57  ;;  %22535 = vst [vmem:[#allocation302_spill] sm:$0xff] %v16813_v34  ;;  %22549 = vst [vmem:[#allocation454_spill] sm:$0xff] %v16861_v24  ;;  %v16865_v48 = vrot.slane %v16803_v11, %v22498_v3  ;;  %v5986_v54 = vmul.f32 %v16813_v34, %v22527_v60  ;;  %v22592_v34 = vld [vmem:[#allocation36_spill] sm:$0xff] }
 0x368   : > { %11887 = vmatpush3.msra.mxu1 %v16077_v27  ;;  %2082 = vrot.lane.b32.xlu0 %v2038_v2, %s13216_s16  ;;  %22529 = vst [vmem:[#allocation318_spill] sm:$0xff] %v16800_v58  ;;  %22536 = vst [vmem:[#allocation317_spill] sm:$0xff] %v16816_v6  ;;  %v22537_v2 = vld [vmem:[#allocation20_spill] sm:$0xff]  ;;  %v5988_v22 = vmul.f32 %v16800_v58, %v22527_v60 }
 0x369   : > { %11888 = vmatprep.subr.mxu1 %v16107_v31  ;;  %4469 = vmatmul.mubr.f32.vlgmr.msra.gmra.mxu0 %v16636_v43  ;;  %v16819_v9 = vmul.f32 %v5852_v38, %v22537_v2  ;;  %v16824_v43 = vrot.slane %v6456_v35, %v22524_v19  ;;  %v16834_v38 = vrot.slane %v13136_v36, %v22524_v19  ;;  %v22545_v2 = vld [vmem:[#allocation342_spill] sm:$0xff]  ;;  %v16894_v31 = vand.u32 4294901760, %v420_v33  ;;  %v404_v27 = vld [vmem:[%s20432_s4 + $0x378] sm:$0xff] }
 0x36a   : > { %6024 = vrot.lane.b32.xlu1 %v5987_v10, %s13209_s21  ;;  %11843 = vmatpush3.msra.mxu0 %v22534_v41  ;;  %v22539_v10 = vld [vmem:[#allocation340_spill] sm:$0xff]  ;;  %v16827_v41 = vrot.slane %v6456_v35, %v22528_v8  ;;  %v5989_v35 = vmul.f32 %v16808_v56, %v22527_v60  ;;  %22550 = vst [vmem:[#allocation455_spill] sm:$0xff] %v16865_v48 }
 0x36b   : > { %11889 = vmatpush3.msra.mxu1 %v16122_v13  ;;  %22538 = vst [vmem:[#allocation190_spill] sm:$0xff] %v16819_v9  ;;  %4475 = vmatprep.mubr.f32.mxu0 %v16754_v12  ;;  %22540 = vst [vmem:[#allocation192_spill] sm:$0xff] %v16824_v43  ;;  %v16837_v12 = vrot.slane %v13136_v36, %v22498_v3  ;;  %v22555_v13 = vld [vmem:[#allocation344_spill] sm:$0xff]  ;;  %v17046_v56 = vmul.f32 %v16834_v38, %v22592_v34 }
 0x36c   : > { %11844 = vmatprep.subr.mxu0 %v22539_v10  ;;  %22541 = vst [vmem:[#allocation195_spill] sm:$0xff] %v16827_v41  ;;  %11890 = vmatprep.subr.mxu1 %v16133_v28  ;;  %22543 = vst [vmem:[#allocation15_spill] sm:$0xff] %v16834_v38  ;;  %v16848_v10 = vrot.slane %v13136_v36, %v22528_v8  ;;  %v16880_v28 = vpop.permute.xlu0 %846 }
 0x36d   : > { %11845 = vmatpush3.msra.mxu0 %v22542_v61  ;;  %22544 = vst [vmem:[#allocation20_spill] sm:$0xff] %v16837_v12  ;;  %11891 = vmatpush3.msra.mxu1 %v16146_v5  ;;  %v16845_v61 = vrot.slane %v16803_v11, %v22524_v19  ;;  %v16878_v5 = vrot.slane %v16819_v9, %v22524_v19  ;;  %22557 = vst [vmem:[#allocation458_spill] sm:$0xff] %v16894_v31 }
 0x36e   : > { %11846 = vmatprep.subr.mxu0 %v22545_v2  ;;  %22547 = vst [vmem:[#allocation452_spill] sm:$0xff] %v16848_v10  ;;  %11892 = vmatprep.subr.mxu1 %v16158_v49  ;;  %v16857_v2 = vrot.slane %v16803_v11, %v22528_v8  ;;  %v16937_v11 = vand.u32 4294901760, %v404_v27  ;;  %22593 = vst [vmem:[#allocation473_spill] sm:$0xff] %v17046_v56  ;;  %v17071_v56 = vpop.permute.xlu1 %1387 }
 0x36f   : > { %22546 = vst [vmem:[#allocation451_spill] sm:$0xff] %v16845_v61  ;;  %6026 = vrot.lane.b32.xlu0 %v5988_v22, %s13209_s21  ;;  %6028 = vrot.lane.b32.xlu1 %v5989_v35, %s13209_s21  ;;  %v22553_v22 = vld [vmem:[#allocation9_spill] sm:$0xff]  ;;  %22554 = vst [vmem:[#allocation456_spill] sm:$0xff] %v16878_v5 }
 0x370   : > { %22548 = vst [vmem:[#allocation453_spill] sm:$0xff] %v16857_v2  ;;  %4478 = vmatmul.mubr.f32.gmra.mxu0 %v16749_v29  ;;  %v6160_v49 = vmul.f32 %v16845_v61, %v22553_v22  ;;  %11893 = vmatpush3.msra.mxu1 %v16176_v51  ;;  %v6161_v18 = vmul.f32 %v16857_v2, %v22553_v22  ;;  %v22560_v51 = vld [vmem:[#allocation34_spill] sm:$0xff]  ;;  %22572 = vst [vmem:[#allocation462_spill] sm:$0xff] %v16937_v11  ;;  %v401_v61 = vld [vmem:[%s20432_s4 + $0x360] sm:$0xff] }
 0x371   : > { %11847 = vmatpush3.msra.mxu0 %v22555_v13  ;;  %v16888_v35 = vmul.f32 %v16861_v24, %v22553_v22  ;;  %v16892_v29 = vrot.slane %v16819_v9, %v22528_v8  ;;  %v22558_v13 = vld [vmem:[#allocation27_spill] sm:$0xff]  ;;  %v16903_v40 = vmul.f32 %v13136_v36, %v22560_v51  ;;  %4763 = vmatprep.mubr.f32.mxu0 %v16642_v57 }
 0x372   : > { %v16900_v20 = vmul.f32 %v13136_v36, %v22558_v13  ;;  %11848 = vmatprep.subr.mxu0 %v22562_v47  ;;  %v16909_v55 = vmul.f32 %v16865_v48, %v22553_v22  ;;  %11894 = vmatprep.subr.mxu1 %v22563_v44  ;;  %v16917_v13 = vrot.slane %v16819_v9, %v22532_v62  ;;  %v22567_v36 = vld [vmem:[#allocation48_spill] sm:$0xff]  ;;  %v22568_v47 = vld [vmem:[#allocation361_spill] sm:$0xff] }
 0x373   : > { %22556 = vst [vmem:[#allocation457_spill] sm:$0xff] %v16892_v29  ;;  %22561 = vst [vmem:[#allocation34_spill] sm:$0xff] %v16903_v40  ;;  %11849 = vmatpush3.msra.mxu0 %v22564_v16  ;;  %v16921_v51 = vrot.slane %v16819_v9, %v22498_v3  ;;  %v16925_v57 = vmul.f32 %v16688_v63, %v22567_v36  ;;  %11895 = vmatpush3.msra.mxu1 %v22568_v47  ;;  %v22569_v44 = vld [vmem:[#allocation364_spill] sm:$0xff]  ;;  %v22570_v16 = vld [vmem:[#allocation10_spill] sm:$0xff] }
 0x374   : > { %22559 = vst [vmem:[#allocation27_spill] sm:$0xff] %v16900_v20  ;;  %22565 = vst [vmem:[#allocation459_spill] sm:$0xff] %v16917_v13  ;;  %11850 = vmatprep.subr.mxu0 %v22569_v44  ;;  %v16931_v22 = vmul.f32 %v16878_v5, %v22570_v16  ;;  %v16935_v62 = vrot.slane %v16868_v1, %v22498_v3  ;;  %v419_v9 = vld [vmem:[%s20432_s4 + $0x3f0] sm:$0xff]  ;;  %v22573_v63 = vld [vmem:[#allocation53_spill] sm:$0xff]  ;;  %11896 = vmatprep.subr.mxu1 %v16202_v53  ;;  %v16977_v5 = vpop.permute.xlu0 %1201 }
 0x375   : > { %22566 = vst [vmem:[#allocation460_spill] sm:$0xff] %v16921_v51  ;;  %v16944_v60 = vmul.f32 %v22573_v63, %v22567_v36  ;;  %6022 = vrot.lane.b32.xlu0 %v5986_v54, %s13209_s21  ;;  %v16950_v44 = vmul.f32 %v16892_v29, %v22570_v16  ;;  %v16953_v47 = vsub.f32 %v420_v33, %v16894_v31  ;;  %v22575_v63 = vld [vmem:[#allocation368_spill] sm:$0xff]  ;;  %v22576_v53 = vld [vmem:[#allocation22_spill] sm:$0xff]  ;;  %v16993_v48 = vand.u32 4294901760, %v419_v9 }
 0x376   : > { %22571 = vst [vmem:[#allocation461_spill] sm:$0xff] %v16935_v62  ;;  %6197 = vrot.lane.b32.xlu1 %v6160_v49, %s21916_s14  ;;  %11851 = vmatpush3.msra.mxu0 %v22575_v63  ;;  %v16964_v54 = vmul.f32 %v16816_v6, %v22576_v53  ;;  %v16968_v36 = vmul.f32 %v16824_v43, %v22576_v53  ;;  %v418_v29 = vld [vmem:[%s20432_s4 + $0x3e8] sm:$0xff]  ;;  %v22578_v49 = vld [vmem:[#allocation371_spill] sm:$0xff] }
 0x377   : > { %22574 = vst [vmem:[#allocation53_spill] sm:$0xff] %v16953_v47  ;;  %v16972_v33 = vrot.slane %v16868_v1, %v22524_v19  ;;  %11897 = vmatpush3.msra.mxu1 %v16214_v4  ;;  %11852 = vmatprep.subr.mxu0 %v22578_v49  ;;  %v16983_v63 = vmul.f32 %v16917_v13, %v22570_v16  ;;  %22579 = vst [vmem:[#allocation464_spill] sm:$0xff] %v16993_v48  ;;  %v402_v4 = vld [vmem:[%s20432_s4 + $0x368] sm:$0xff]  ;;  %v17029_v2 = vand.u32 4294901760, %v418_v29 }
 0x378   : > { %v16987_v43 = vmul.f32 %v16921_v51, %v22570_v16  ;;  %v16991_v6 = vmul.f32 %v16827_v41, %v22576_v53  ;;  %11898 = vmatprep.subr.mxu1 %v16259_v26  ;;  %v22580_v49 = vld [vmem:[#allocation373_spill] sm:$0xff]  ;;  %v22581_v13 = vld [vmem:[#allocation14_spill] sm:$0xff]  ;;  %v17006_v16 = vrot.slane %v16868_v1, %v22528_v8  ;;  %v17009_v53 = vsub.f32 %v404_v27, %v16937_v11 }
 0x379   : > { %22577 = vst [vmem:[#allocation463_spill] sm:$0xff] %v16972_v33  ;;  %11853 = vmatpush3.msra.mxu0 %v22580_v49  ;;  %v17002_v24 = vmul.f32 %v16935_v62, %v22581_v13  ;;  %v17011_v41 = vand.u32 4294901760, %v403_v46  ;;  %v417_v51 = vld [vmem:[%s20432_s4 + $0x3e0] sm:$0xff]  ;;  %v22585_v26 = vld [vmem:[#allocation382_spill] sm:$0xff]  ;;  %v17020_v62 = vrot.slane %v16900_v20, %v22498_v3  ;;  %v17024_v1 = vrot.slane %v16900_v20, %v22524_v19 }
 0x37a   : > { %22582 = vst [vmem:[#allocation465_spill] sm:$0xff] %v17006_v16  ;;  %22583 = vst [vmem:[#allocation466_spill] sm:$0xff] %v17009_v53  ;;  %11899 = vmatpush3.msra.mxu1 %v22585_v26  ;;  %v22586_v49 = vld [vmem:[#allocation378_spill] sm:$0xff]  ;;  %v17027_v27 = vand.u32 4294901760, %v16953_v47  ;;  %6199 = vrot.lane.b32.xlu0 %v6161_v18, %s21916_s14  ;;  %v17042_v26 = vrot.slane %v16900_v20, %v22528_v8  ;;  %v17048_v58 = vand.u32 4294901760, %v402_v4  ;;  %v22595_v18 = vld [vmem:[#allocation196_spill] sm:$0xff] }
 0x37b   : > { %22584 = vst [vmem:[#allocation467_spill] sm:$0xff] %v17011_v41  ;;  %11854 = vmatprep.subr.mxu0 %v22586_v49  ;;  %22587 = vst [vmem:[#allocation468_spill] sm:$0xff] %v17020_v62  ;;  %11900 = vmatprep.subr.mxu1 %v16300_v7  ;;  %v17038_v49 = vmul.f32 %v16972_v33, %v22581_v13  ;;  %v416_v7 = vld [vmem:[%s20432_s4 + $0x3d8] sm:$0xff]  ;;  %v674_v32 = vsel %vm658_vm2, %v22595_v18, %v16870_v42  ;;  %v22596_v33 = vld [vmem:[#allocation381_spill] sm:$0xff]  ;;  %v17066_v19 = vand.u32 4294901760, %v417_v51 }
 0x37c   : > { %22588 = vst [vmem:[#allocation469_spill] sm:$0xff] %v17024_v1  ;;  %22589 = vst [vmem:[#allocation470_spill] sm:$0xff] %v17027_v27  ;;  %6201 = vrot.lane.b32.xlu1 %v16888_v35, %s21916_s14  ;;  %11855 = vmatpush3.msra.mxu0 %v22596_v33  ;;  %v17061_v20 = vmul.f32 %v16837_v12, %v22592_v34  ;;  %v17064_v38 = vsub.f32 %v419_v9, %v16993_v48  ;;  %v400_v8 = vld [vmem:[%s20432_s4 + $0x358] sm:$0xff]  ;;  %v17080_v33 = vand.u32 4294901760, %v17009_v53  ;;  %v17090_v34 = vpop.permute.xlu0 %1389 }
 0x37d   : > { %22590 = vst [vmem:[#allocation471_spill] sm:$0xff] %v17029_v2  ;;  %22591 = vst [vmem:[#allocation472_spill] sm:$0xff] %v17042_v26  ;;  %11901 = vmatpush3.msra.mxu1 %v16331_v17  ;;  %v22600_v35 = vld [vmem:[#allocation384_spill] sm:$0xff]  ;;  %v17077_v18 = vmul.f32 %v17006_v16, %v22581_v13  ;;  %v17083_v9 = vsub.f32 %v403_v46, %v17011_v41  ;;  %v17085_v12 = vand.u32 4294901760, %v401_v61  ;;  %v17099_v46 = vand.u32 4294901760, %v416_v7  ;;  %v22608_v41 = vld [vmem:[#allocation387_spill] sm:$0xff] }
 0x37e   : > { %22594 = vst [vmem:[#allocation474_spill] sm:$0xff] %v17048_v58  ;;  %22597 = vst [vmem:[#allocation196_spill] sm:$0xff] %v17061_v20  ;;  %11856 = vmatprep.subr.mxu0 %v22600_v35  ;;  %v22604_v20 = vld [vmem:[#allocation199_spill] sm:$0xff]  ;;  %11902 = vmatprep.subr.mxu1 %v16342_v25  ;;  %v22605_v35 = vld [vmem:[#allocation386_spill] sm:$0xff]  ;;  %v5131_v17 = vsub.f32 %v16953_v47, %v17027_v27  ;;  %v17097_v13 = vsub.f32 %v418_v29, %v17029_v2  ;;  %v17111_v25 = vand.u32 4294901760, %v400_v8 }
 0x37f   : > { %22598 = vst [vmem:[#allocation475_spill] sm:$0xff] %v17064_v38  ;;  %22599 = vst [vmem:[#allocation476_spill] sm:$0xff] %v17066_v19  ;;  %v864_v10 = vsel %vm848_vm7, %v22604_v20, %v16880_v28  ;;  %11857 = vmatpush3.msra.mxu0 %v22605_v35  ;;  %v709_v16 = vadd.f32 %v674_v32, %v16944_v60  ;;  %11903 = vmatpush3.msra.mxu1 %v16357_v52  ;;  %v22609_v20 = vld [vmem:[#allocation29_spill] sm:$0xff]  ;;  %v17125_v29 = vand.u32 4294901760, %v17064_v38  ;;  %v22614_v52 = vld [vmem:[#allocation390_spill] sm:$0xff] }
 0x380   : > { %22601 = vst [vmem:[#allocation477_spill] sm:$0xff] %v17080_v33  ;;  %22602 = vst [vmem:[#allocation478_spill] sm:$0xff] %v17083_v9  ;;  %11858 = vmatprep.subr.mxu0 %v22608_v41  ;;  %v17106_v48 = vmul.f32 %v17020_v62, %v22609_v20  ;;  %v17109_v35 = vsub.f32 %v402_v4, %v17048_v58  ;;  %11904 = vmatprep.subr.mxu1 %v16386_v37  ;;  %v415_v41 = vld [vmem:[%s20432_s4 + $0x3d0] sm:$0xff] }
 0x381   : > { %22603 = vst [vmem:[#allocation479_spill] sm:$0xff] %v17085_v12  ;;  %22606 = vst [vmem:[#allocation199_spill] sm:$0xff] %v17097_v13  ;;  %6195 = vrot.lane.b32.xlu0 %v16909_v55, %s21916_s14  ;;  %v17118_v32 = vmul.f32 %v17024_v1, %v22609_v20  ;;  %v17122_v60 = vrot.slane %v16903_v40, %v22498_v3  ;;  %v17128_v4 = vsub.f32 %v417_v51, %v17066_v19  ;;  %v399_v55 = vld [vmem:[%s20432_s4 + $0x350] sm:$0xff] }
 0x382   : > { %22607 = vst [vmem:[#allocation480_spill] sm:$0xff] %v17099_v46  ;;  %22610 = vst [vmem:[#allocation481_spill] sm:$0xff] %v17109_v35  ;;  %v899_v37 = vadd.f32 %v864_v10, %v709_v16  ;;  %6370 = vrot.lane.b32.xlu1 %v16931_v22, %s13222_s22  ;;  %11859 = vmatpush3.msra.mxu0 %v22614_v52  ;;  %v5019_v3 = vsub.f32 %v17009_v53, %v17080_v33  ;;  %v17142_v51 = vand.u32 4294901760, %v17083_v9  ;;  %v22617_v1 = vld [vmem:[#allocation399_spill] sm:$0xff]  ;;  %v17161_v33 = vpop.permute.xlu1 %1576  ;;  %v22626_v53 = vld [vmem:[#allocation49_spill] sm:$0xff] }
 0x383   : > { %22611 = vst [vmem:[#allocation482_spill] sm:$0xff] %v17111_v25  ;;  %22612 = vst [vmem:[#allocation483_spill] sm:$0xff] %v17125_v29  ;;  %v17145_v27 = vsub.f32 %v401_v61, %v17085_v12  ;;  %11905 = vmatpush3.msra.mxu1 %v16401_v23  ;;  %11860 = vmatprep.subr.mxu0 %v22617_v1  ;;  %v17151_v16 = vmul.f32 %v17042_v26, %v22609_v20  ;;  %v17153_v10 = vand.u32 4294901760, %v5131_v17  ;;  %v22621_v61 = vld [vmem:[#allocation404_spill] sm:$0xff] }
 0x384   : > { %22613 = vst [vmem:[#allocation484_spill] sm:$0xff] %v17128_v4  ;;  %22615 = vst [vmem:[#allocation485_spill] sm:$0xff] %v17142_v51  ;;  %v17156_v22 = vand.u32 4294901760, %v17097_v13  ;;  %v17159_v52 = vsub.f32 %v416_v7, %v17099_v46  ;;  %11906 = vmatprep.subr.mxu1 %v16417_v39  ;;  %11861 = vmatpush3.msra.mxu0 %v22621_v61  ;;  %v17166_v1 = vand.u32 4294901760, %v17109_v35  ;;  %v17171_v17 = vand.u32 4294901760, %v415_v41  ;;  %v17180_v39 = vpop.permute.xlu0 %1578  ;;  %v22627_v61 = vld [vmem:[#allocation408_spill] sm:$0xff] }
 0x385   : > { %22616 = vst [vmem:[#allocation486_spill] sm:$0xff] %v17145_v27  ;;  %22618 = vst [vmem:[#allocation487_spill] sm:$0xff] %v17153_v10  ;;  %v17169_v23 = vsub.f32 %v400_v8, %v17111_v25  ;;  %v17173_v20 = vand.u32 4294901760, %v399_v55  ;;  %v710_v7 = vadd.f32 %v16870_v42, %v16925_v57  ;;  %v1052_v26 = vsel %vm1036_vm8, %v22626_v53, %v16958_v0 }
 0x386   : > { %22619 = vst [vmem:[#allocation488_spill] sm:$0xff] %v17156_v22  ;;  %22620 = vst [vmem:[#allocation489_spill] sm:$0xff] %v17159_v52  ;;  %11907 = vmatpush3.msra.mxu1 %v16431_v59  ;;  %11862 = vmatprep.subr.mxu0 %v22627_v61  ;;  %v5138_v8 = vsub.f32 %v17064_v38, %v17125_v29  ;;  %v17187_v62 = vand.u32 4294901760, %v17128_v4  ;;  %v1087_v47 = vadd.f32 %v1052_v26, %v899_v37  ;;  %v414_v61 = vld [vmem:[%s20432_s4 + $0x3c8] sm:$0xff]  ;;  %v413_v29 = vld [vmem:[%s20432_s4 + $0x3c0] sm:$0xff] }
 0x387   : > { %22622 = vst [vmem:[#allocation490_spill] sm:$0xff] %v17166_v1  ;;  %22623 = vst [vmem:[#allocation491_spill] sm:$0xff] %v17169_v23  ;;  %11908 = vmatprep.subr.mxu1 %v16446_v45  ;;  %6372 = vrot.lane.b32.xlu0 %v16950_v44, %s13222_s22  ;;  %v17192_v42 = vand.u32 4294901760, %v5019_v3  ;;  %v5026_v53 = vsub.f32 %v17083_v9, %v17142_v51  ;;  %v17197_v57 = vand.u32 4294901760, %v17145_v27  ;;  %v398_v37 = vld [vmem:[%s20432_s4 + $0x348] sm:$0xff]  ;;  %v22631_v44 = vld [vmem:[#allocation52_spill] sm:$0xff] }
 0x388   : > { %22624 = vst [vmem:[#allocation492_spill] sm:$0xff] %v17171_v17  ;;  %22625 = vst [vmem:[#allocation493_spill] sm:$0xff] %v17173_v20  ;;  %v900_v26 = vadd.f32 %v16880_v28, %v710_v7  ;;  %v1216_v3 = vsel %vm432_vm6, %v22631_v44, %v16977_v5  ;;  %6374 = vrot.lane.b32.xlu1 %v16983_v63, %s13222_s22  ;;  %v22632_v45 = vld [vmem:[#allocation415_spill] sm:$0xff]  ;;  %v5145_v59 = vsub.f32 %v17097_v13, %v17156_v22  ;;  %v22634_v28 = vld [vmem:[#allocation418_spill] sm:$0xff] }
 0x389   : > { %22628 = vst [vmem:[#allocation49_spill] sm:$0xff] %v17187_v62  ;;  %22629 = vst [vmem:[#allocation494_spill] sm:$0xff] %v17192_v42  ;;  %11863 = vmatpush3.msra.mxu0 %v22632_v45  ;;  %v17215_v51 = vand.u32 4294901760, %v17159_v52  ;;  %11909 = vmatpush3.msra.mxu1 %v16461_v21  ;;  %v5033_v7 = vsub.f32 %v17109_v35, %v17166_v1  ;;  %v17225_v63 = vand.u32 4294901760, %v17169_v23  ;;  %v397_v22 = vld [vmem:[%s20432_s4 + $0x340] sm:$0xff]  ;;  %v17242_v35 = vand.u32 4294901760, %v414_v61 }
 0x38a   : > { %22630 = vst [vmem:[#allocation495_spill] sm:$0xff] %v17197_v57  ;;  %11864 = vmatprep.subr.mxu0 %v22634_v28  ;;  %v17228_v44 = vsub.f32 %v415_v41, %v17171_v17  ;;  %v17231_v45 = vsub.f32 %v399_v55, %v17173_v20  ;;  %11910 = vmatprep.subr.mxu1 %v16474_v15  ;;  %v22638_v21 = vld [vmem:[#allocation421_spill] sm:$0xff]  ;;  %v17238_v28 = vand.u32 4294901760, %v5138_v8  ;;  %v17244_v41 = vand.u32 4294901760, %v398_v37  ;;  %v1757_v55 = vpop.permute.xlu1 %1756  ;;  %v22642_v9 = vld [vmem:[#allocation427_spill] sm:$0xff] }
 0x38b   : > { %22633 = vst [vmem:[#allocation52_spill] sm:$0xff] %v17215_v51  ;;  %22635 = vst [vmem:[#allocation496_spill] sm:$0xff] %v17225_v63  ;;  %11865 = vmatpush3.msra.mxu0 %v22638_v21  ;;  %v5152_v1 = vsub.f32 %v17128_v4, %v17187_v62  ;;  %v1251_v13 = vadd.f32 %v1216_v3, %v1087_v47  ;;  %11911 = vmatpush3.msra.mxu1 %v16486_v50  ;;  %v17248_v38 = vand.u32 4294901760, %v5026_v53  ;;  %v1759_v62 = vpop.permute.xlu0 %1758  ;;  %v22645_v4 = vld [vmem:[#allocation325_spill] sm:$0xff] }
 0x38c   : > { %22636 = vst [vmem:[#allocation497_spill] sm:$0xff] %v17228_v44  ;;  %22637 = vst [vmem:[#allocation498_spill] sm:$0xff] %v17231_v45  ;;  %11866 = vmatprep.subr.mxu0 %v22642_v9  ;;  %v5040_v21 = vsub.f32 %v17145_v27, %v17197_v57  ;;  %v17252_v8 = vand.u32 4294901760, %v413_v29  ;;  %v1088_v15 = vadd.f32 %v16958_v0, %v900_v26  ;;  %4876 = vmatmul.mubr.f32.vlgmr.msra.gmra.mxu1 %v22645_v4  ;;  %v22648_v9 = vld [vmem:[#allocation430_spill] sm:$0xff]  ;;  %v412_v57 = vld [vmem:[%s20432_s4 + $0x3b8] sm:$0xff] }
 0x38d   : > { %22639 = vst [vmem:[#allocation499_spill] sm:$0xff] %v17238_v28  ;;  %22640 = vst [vmem:[#allocation500_spill] sm:$0xff] %v17242_v35  ;;  %6368 = vrot.lane.b32.xlu0 %v16987_v43, %s13222_s22  ;;  %v17258_v47 = vand.u32 4294901760, %v5145_v59  ;;  %v5159_v3 = vsub.f32 %v17159_v52, %v17215_v51  ;;  %v17262_v53 = vand.u32 4294901760, %v397_v22  ;;  %6530 = vrot.lane.b32.xlu1 %v16964_v54, %s13220_s19  ;;  %v17267_v50 = vand.u32 4294901760, %v5033_v7  ;;  %v22652_v43 = vld [vmem:[#allocation58_spill] sm:$0xff] }
 0x38e   : > { %22641 = vst [vmem:[#allocation501_spill] sm:$0xff] %v17244_v41  ;;  %22643 = vst [vmem:[#allocation502_spill] sm:$0xff] %v17248_v38  ;;  %11867 = vmatpush3.msra.mxu0 %v22648_v9  ;;  %v17272_v26 = vand.u32 4294901760, %v17228_v44  ;;  %v17275_v59 = vand.u32 4294901760, %v17231_v45  ;;  %v1406_v51 = vsel %vm1391_vm9, %v22652_v43, %v17071_v56  ;;  %4881 = vmatprep.mubr.f32.mxu1 %v16743_v14  ;;  %v22653_v54 = vld [vmem:[#allocation433_spill] sm:$0xff]  ;;  %v17282_v9 = vand.u32 4294901760, %v5152_v1 }
 0x38f   : > { %22644 = vst [vmem:[#allocation503_spill] sm:$0xff] %v17252_v8  ;;  %22646 = vst [vmem:[#allocation325_spill] sm:$0xff] %v17258_v47  ;;  %11868 = vmatprep.subr.mxu0 %v22653_v54  ;;  %v17285_v7 = vsub.f32 %v414_v61, %v17242_v35  ;;  %v17288_v0 = vsub.f32 %v398_v37, %v17244_v41  ;;  %v1442_v52 = vadd.f32 %v1406_v51, %v1251_v13  ;;  %v22657_v27 = vld [vmem:[#allocation435_spill] sm:$0xff]  ;;  %v1946_v54 = vpop.permute.xlu1 %1945 }
 0x390   : > { %22647 = vst [vmem:[#allocation504_spill] sm:$0xff] %v17262_v53  ;;  %22649 = vst [vmem:[#allocation505_spill] sm:$0xff] %v17267_v50  ;;  %v1407_v43 = vsel %vm1391_vm9, %v17071_v56, %v17090_v34  ;;  %11869 = vmatpush3.msra.mxu0 %v22657_v27  ;;  %11956 = vmatprep.subr.mxu1 %v17153_v10  ;;  %v17298_v1 = vand.u32 4294901760, %v5040_v21  ;;  %v17301_v61 = vsub.f32 %v413_v29, %v17252_v8  ;;  %v396_v37 = vld [vmem:[%s20432_s4 + $0x338] sm:$0xff]  ;;  %v411_v13 = vld [vmem:[%s20432_s4 + $0x3b0] sm:$0xff] }
 0x391   : > { %22650 = vst [vmem:[#allocation506_spill] sm:$0xff] %v17272_v26  ;;  %22651 = vst [vmem:[#allocation507_spill] sm:$0xff] %v17275_v59  ;;  %v1252_v51 = vadd.f32 %v16977_v5, %v1088_v15  ;;  %v22660_v56 = vld [vmem:[#allocation28_spill] sm:$0xff]  ;;  %v22661_v27 = vld [vmem:[#allocation438_spill] sm:$0xff]  ;;  %4883 = vmatmul.mubr.f32.gmra.mxu1 %v16735_v30  ;;  %v17315_v21 = vand.u32 4294901760, %v5159_v3  ;;  %v17318_v29 = vsub.f32 %v397_v22, %v17262_v53  ;;  %6532 = vrot.lane.b32.xlu0 %v16968_v36, %s13220_s19 }
 0x392   : > { %22654 = vst [vmem:[#allocation58_spill] sm:$0xff] %v17282_v9  ;;  %22655 = vst [vmem:[#allocation508_spill] sm:$0xff] %v17285_v7  ;;  %v1595_v34 = vsel %vm1580_vm10, %v22660_v56, %v17161_v33  ;;  %11870 = vmatprep.subr.mxu0 %v22661_v27  ;;  %v1596_v10 = vsel %vm1580_vm10, %v17161_v33, %v17180_v39  ;;  %6534 = vrot.lane.b32.xlu1 %v16991_v6, %s13220_s19  ;;  %v17331_v3 = vand.u32 4294901760, %v412_v57  ;;  %v22665_v56 = vld [vmem:[#allocation179_spill] sm:$0xff]  ;;  %v1948_v39 = vpop.permute.xlu0 %1947  ;;  %v22666_v33 = vld [vmem:[#allocation440_spill] sm:$0xff] }
 0x393   : > { %22656 = vst [vmem:[#allocation509_spill] sm:$0xff] %v17288_v0  ;;  %22658 = vst [vmem:[#allocation510_spill] sm:$0xff] %v17298_v1  ;;  %v5166_v15 = vsub.f32 %v17228_v44, %v17272_v26  ;;  %v5054_v5 = vsub.f32 %v17231_v45, %v17275_v59  ;;  %v1443_v22 = vadd.f32 %v1407_v43, %v1252_v51  ;;  %11871 = vmatpush3.msra.mxu0 %v22666_v33  ;;  %v395_v26 = vld [vmem:[%s20432_s4 + $0x330] sm:$0xff]  ;;  %v410_v33 = vld [vmem:[%s20432_s4 + $0x3a8] sm:$0xff] }
 0x394   : > { %22659 = vst [vmem:[#allocation511_spill] sm:$0xff] %v17301_v61  ;;  %22662 = vst [vmem:[#allocation28_spill] sm:$0xff] %v17315_v21  ;;  %v1775_v27 = vsel %vm1760_vm11, %v22665_v56, %v1757_v55  ;;  %11957 = vmatpush3.msra.mxu1 %v17192_v42  ;;  %v17337_v36 = vand.u32 4294901760, %v396_v37  ;;  %v17339_v6 = vand.u32 4294901760, %v411_v13  ;;  %v1631_v59 = vadd.f32 %v1595_v34, %v1442_v52  ;;  %v22669_v43 = vld [vmem:[#allocation442_spill] sm:$0xff]  ;;  %v22672_v44 = vld [vmem:[#allocation337_spill] sm:$0xff] }
 0x395   : > { %22663 = vst [vmem:[#allocation512_spill] sm:$0xff] %v17318_v29  ;;  %22664 = vst [vmem:[#allocation513_spill] sm:$0xff] %v17331_v3  ;;  %v1776_v45 = vsel %vm1760_vm11, %v1757_v55, %v1759_v62  ;;  %11872 = vmatprep.subr.mxu0 %v22669_v43  ;;  %11958 = vmatprep.subr.mxu1 %v17238_v28  ;;  %v17348_v51 = vand.u32 4294901760, %v17285_v7  ;;  %v17351_v56 = vand.u32 4294901760, %v17288_v0  ;;  %v22673_v34 = vld [vmem:[#allocation443_spill] sm:$0xff]  ;;  %v17361_v62 = vand.u32 4294901760, %v17301_v61 }
 0x396   : > { %22667 = vst [vmem:[#allocation179_spill] sm:$0xff] %v17337_v36  ;;  %22668 = vst [vmem:[#allocation514_spill] sm:$0xff] %v17339_v6  ;;  %v1632_v42 = vadd.f32 %v1596_v10, %v1443_v22  ;;  %v1964_v52 = vsel %vm1949_vm12, %v22672_v44, %v1946_v54  ;;  %11873 = vmatpush3.msra.mxu0 %v22673_v34  ;;  %11959 = vmatpush3.msra.mxu1 %v17248_v38  ;;  %v17364_v55 = vand.u32 4294901760, %v17318_v29  ;;  %v394_v43 = vld [vmem:[%s20432_s4 + $0x328] sm:$0xff]  ;;  %v409_v34 = vld [vmem:[%s20432_s4 + $0x3a0] sm:$0xff] }
 0x397   : > { %22670 = vst [vmem:[#allocation515_spill] sm:$0xff] %v17348_v51  ;;  %22671 = vst [vmem:[#allocation516_spill] sm:$0xff] %v17351_v56  ;;  %v1811_v28 = vadd.f32 %v1775_v27, %v1631_v59  ;;  %v1965_v10 = vsel %vm1949_vm12, %v1946_v54, %v1948_v39  ;;  %4765 = vmatmul.mubr.f32.vlgmr.msra.gmra.mxu0 %v22645_v4  ;;  %6699 = vrot.lane.b32.xlu0 %v17002_v24, %s13223_s23  ;;  %v17376_v22 = vand.u32 4294901760, %v395_v26 }
 0x398   : > { %22674 = vst [vmem:[#allocation337_spill] sm:$0xff] %v17361_v62  ;;  %22675 = vst [vmem:[#allocation517_spill] sm:$0xff] %v17364_v55  ;;  %v17374_v44 = vsub.f32 %v412_v57, %v17331_v3  ;;  %v1812_v38 = vadd.f32 %v1776_v45, %v1632_v42  ;;  %6701 = vrot.lane.b32.xlu1 %v17038_v49, %s13223_s23  ;;  %4770 = vmatprep.mubr.f32.mxu0 %v16743_v14  ;;  %v17390_v4 = vand.u32 4294901760, %v410_v33 }
 0x399   : > { %22677 = vst [vmem:[#allocation519_spill] sm:$0xff] %v17376_v22  ;;  %v17385_v27 = vsub.f32 %v396_v37, %v17337_v36  ;;  %v17388_v24 = vsub.f32 %v411_v13, %v17339_v6  ;;  %v2000_v57 = vadd.f32 %v1964_v52, %v1811_v28  ;;  %11960 = vmatprep.subr.mxu1 %v17258_v47  ;;  %v17401_v49 = vand.u32 4294901760, %v394_v43  ;;  %v393_v13 = vld [vmem:[%s20432_s4 + $0x320] sm:$0xff] }
 0x39a   : > { %22676 = vst [vmem:[#allocation518_spill] sm:$0xff] %v17374_v44  ;;  %22680 = vst [vmem:[#allocation522_spill] sm:$0xff] %v17390_v4  ;;  %11918 = vmatprep.subr.mxu0 %v16894_v31  ;;  %v22681_v45 = vsub.f32 %v17169_v23, %v17225_v63  ;;  %v5173_v14 = vsub.f32 %v17285_v7, %v17348_v51  ;;  %v2001_v59 = vadd.f32 %v1965_v10, %v1812_v38  ;;  %v408_v10 = vld [vmem:[%s20432_s4 + $0x398] sm:$0xff] }
 0x39b   : > { %22678 = vst [vmem:[#allocation520_spill] sm:$0xff] %v17385_v27  ;;  %22679 = vst [vmem:[#allocation521_spill] sm:$0xff] %v17388_v24  ;;  %11961 = vmatpush3.msra.mxu1 %v17267_v50  ;;  %11919 = vmatpush3.msra.mxu0 %v16937_v11  ;;  %v17405_v28 = vand.u32 4294901760, %v5166_v15  ;;  %v5061_v54 = vsub.f32 %v17288_v0, %v17351_v56  ;;  %v17409_v37 = vand.u32 4294901760, %v409_v34  ;;  %v17417_v38 = vand.u32 4294901760, %v5054_v5  ;;  %v22692_v50 = vld [vmem:[#allocation188_spill] sm:$0xff] }
 0x39c   : > { %v17397_v42 = vand.u32 4294901760, %v22681_v45  ;;  %22683 = vst [vmem:[#allocation524_spill] sm:$0xff] %v17401_v49  ;;  %4772 = vmatmul.mubr.f32.gmra.mxu0 %v16735_v30  ;;  %6703 = vrot.lane.b32.xlu0 %v17077_v18, %s13223_s23  ;;  %v5180_v15 = vsub.f32 %v17301_v61, %v17361_v62  ;;  %v17422_v39 = vand.u32 4294901760, %v17374_v44  ;;  %v17425_v52 = vsub.f32 %v395_v26, %v17376_v22  ;;  %v392_v45 = vld [vmem:[%s20432_s4 + $0x318] sm:$0xff]  ;;  %v22732_v0 = vld [vmem:[#allocation17_spill] sm:$0xff] }
 0x39d   : > { %22684 = vst [vmem:[#allocation525_spill] sm:$0xff] %v17405_v28  ;;  %22685 = vst [vmem:[#allocation526_spill] sm:$0xff] %v17409_v37  ;;  %6872 = vrot.lane.b32.xlu1 %v17106_v48, %s13224_s29  ;;  %11962 = vmatprep.subr.mxu1 %v17282_v9  ;;  %v5068_v30 = vsub.f32 %v17318_v29, %v17364_v55  ;;  %v17436_v18 = vand.u32 4294901760, %v17385_v27  ;;  %v17439_v5 = vand.u32 4294901760, %v17388_v24  ;;  %v22693_v9 = vld [vmem:[#allocation464_spill] sm:$0xff]  ;;  %v17450_v47 = vand.u32 4294901760, %v5173_v14 }
 0x39e   : > { %22682 = vst [vmem:[#allocation523_spill] sm:$0xff] %v17397_v42  ;;  %22686 = vst [vmem:[#allocation527_spill] sm:$0xff] %v17417_v38  ;;  %v17442_v26 = vsub.f32 %v410_v33, %v17390_v4  ;;  %v2028_v48 = vadd.f32 %v22692_v50, %v2000_v57  ;;  %11963 = vmatpush3.msra.mxu1 %v17298_v1  ;;  %11920 = vmatprep.subr.mxu0 %v22693_v9  ;;  %v17455_v62 = vand.u32 4294901760, %v393_v13  ;;  %v22697_v56 = vld [vmem:[#allocation467_spill] sm:$0xff] }
 0x39f   : > { %22687 = vst [vmem:[#allocation528_spill] sm:$0xff] %v17422_v39  ;;  %22688 = vst [vmem:[#allocation529_spill] sm:$0xff] %v17425_v52  ;;  %v17453_v55 = vsub.f32 %v394_v43, %v17401_v49  ;;  %v2029_v33 = vadd.f32 %v22692_v50, %v2001_v59  ;;  %11964 = vmatprep.subr.mxu1 %v17315_v21  ;;  %11921 = vmatpush3.msra.mxu0 %v22697_v56  ;;  %v17460_v51 = vand.u32 4294901760, %v5061_v54  ;;  %v407_v43 = vld [vmem:[%s20432_s4 + $0x390] sm:$0xff] }
 0x3a0   : > { %22689 = vst [vmem:[#allocation530_spill] sm:$0xff] %v17436_v18  ;;  %22690 = vst [vmem:[#allocation531_spill] sm:$0xff] %v17439_v5  ;;  %v17463_v57 = vsub.f32 %v409_v34, %v17409_v37  ;;  %v17465_v1 = vand.u32 4294901760, %v408_v10  ;;  %6874 = vrot.lane.b32.xlu0 %v17118_v32, %s13224_s29  ;;  %11965 = vmatpush3.msra.mxu1 %v17397_v42  ;;  %v17473_v14 = vand.u32 4294901760, %v5180_v15  ;;  %v17478_v54 = vand.u32 4294901760, %v17425_v52  ;;  %v391_v21 = vld [vmem:[%s20432_s4 + $0x310] sm:$0xff] }
 0x3a1   : > { %22691 = vst [vmem:[#allocation532_spill] sm:$0xff] %v17442_v26  ;;  %22694 = vst [vmem:[#allocation533_spill] sm:$0xff] %v17450_v47  ;;  %v5187_v59 = vsub.f32 %v17374_v44, %v17422_v39  ;;  %v17480_v34 = vand.u32 4294901760, %v392_v45  ;;  %6876 = vrot.lane.b32.xlu1 %v17151_v16, %s13224_s29  ;;  %11966 = vmatprep.subr.mxu1 %v17405_v28  ;;  %v17488_v32 = vand.u32 4294901760, %v5068_v30  ;;  %v17495_v50 = vand.u32 4294901760, %v17442_v26  ;;  %v406_v39 = vld [vmem:[%s20432_s4 + $0x388] sm:$0xff] }
 0x3a2   : > { %22695 = vst [vmem:[#allocation534_spill] sm:$0xff] %v17453_v55  ;;  %22696 = vst [vmem:[#allocation535_spill] sm:$0xff] %v17455_v62  ;;  %v5075_v15 = vsub.f32 %v17385_v27, %v17436_v18  ;;  %v5194_v42 = vsub.f32 %v17388_v24, %v17439_v5  ;;  %v2046_v63 = vmax.f32 %v2028_v48, 0.0  ;;  %11967 = vmatpush3.msra.mxu1 %v17417_v38  ;;  %11922 = vmatprep.subr.mxu0 %v17029_v2  ;;  %v405_v27 = vld [vmem:[%s20432_s4 + $0x380] sm:$0xff] }
 0x3a3   : > { %22698 = vst [vmem:[#allocation536_spill] sm:$0xff] %v17460_v51  ;;  %22699 = vst [vmem:[#allocation537_spill] sm:$0xff] %v17463_v57  ;;  %v17503_v16 = vand.u32 4294901760, %v17453_v55  ;;  %v17506_v30 = vsub.f32 %v393_v13, %v17455_v62  ;;  %v17508_v28 = vand.u32 4294901760, %v407_v43  ;;  %v2047_v5 = vmax.f32 %v2029_v33, 0.0  ;;  %11968 = vmatprep.subr.mxu1 %v17450_v47  ;;  %11923 = vmatpush3.msra.mxu0 %v17048_v58  ;;  %v390_v13 = vld [vmem:[%s20432_s4 + $0x308] sm:$0xff] }
 0x3a4   : > { %22700 = vst [vmem:[#allocation538_spill] sm:$0xff] %v17465_v1  ;;  %22701 = vst [vmem:[#allocation539_spill] sm:$0xff] %v17473_v14  ;;  %v17513_v18 = vand.u32 4294901760, %v17463_v57  ;;  %v17516_v48 = vsub.f32 %v408_v10, %v17465_v1  ;;  %v17518_v38 = vand.u32 4294901760, %v391_v21  ;;  %2098 = vrot.lane.b32.xlu0 %v2046_v63, %s13216_s16  ;;  %11969 = vmatpush3.msra.mxu1 %v17460_v51  ;;  %v17525_v33 = vand.u32 4294901760, %v5187_v59  ;;  %v22715_v44 = vld [vmem:[#allocation36_spill] sm:$0xff] }
 0x3a5   : > { %22702 = vst [vmem:[#allocation540_spill] sm:$0xff] %v17478_v54  ;;  %22703 = vst [vmem:[#allocation541_spill] sm:$0xff] %v17480_v34  ;;  %v5082_v47 = vsub.f32 %v17425_v52, %v17478_v54  ;;  %v17530_v24 = vsub.f32 %v392_v45, %v17480_v34  ;;  %v17532_v10 = vand.u32 4294901760, %v406_v39  ;;  %2100 = vrot.lane.b32.xlu1 %v2047_v5, %s13216_s16  ;;  %v22716_v63 = vld [vmem:[#allocation452_spill] sm:$0xff]  ;;  %11924 = vmatprep.subr.mxu0 %v17066_v19  ;;  %v22731_v52 = vld [vmem:[#allocation37_spill] sm:$0xff] }
 0x3a6   : > { %22704 = vst [vmem:[#allocation542_spill] sm:$0xff] %v17488_v32  ;;  %22705 = vst [vmem:[#allocation543_spill] sm:$0xff] %v17495_v50  ;;  %v7009_v29 = vmul.f32 %v22716_v63, %v22715_v44  ;;  %v17541_v59 = vand.u32 4294901760, %v5075_v15  ;;  %v17543_v51 = vand.u32 4294901760, %v5194_v42  ;;  %v5201_v45 = vsub.f32 %v17442_v26, %v17495_v50  ;;  %v389_v54 = vld [vmem:[%s20432_s4 + $0x300] sm:$0xff]  ;;  %11970 = vmatprep.subr.mxu1 %v17473_v14 }
 0x3a7   : > { %22706 = vst [vmem:[#allocation544_spill] sm:$0xff] %v17503_v16  ;;  %22707 = vst [vmem:[#allocation545_spill] sm:$0xff] %v17506_v30  ;;  %11925 = vmatpush3.msra.mxu0 %v17085_v12  ;;  %v5089_v5 = vsub.f32 %v17453_v55, %v17503_v16  ;;  %v17555_v44 = vand.u32 4294901760, %v17506_v30  ;;  %v17558_v42 = vsub.f32 %v407_v43, %v17508_v28  ;;  %v17560_v15 = vand.u32 4294901760, %v390_v13  ;;  %v22725_v43 = vld [vmem:[#allocation196_spill] sm:$0xff] }
 0x3a8   : > { %22708 = vst [vmem:[#allocation546_spill] sm:$0xff] %v17508_v28  ;;  %22709 = vst [vmem:[#allocation547_spill] sm:$0xff] %v17513_v18  ;;  %11971 = vmatpush3.msra.mxu1 %v17488_v32  ;;  %11926 = vmatprep.subr.mxu0 %v17099_v46  ;;  %v5208_v14 = vsub.f32 %v17463_v57, %v17513_v18  ;;  %v17567_v50 = vand.u32 4294901760, %v17516_v48  ;;  %v17570_v16 = vsub.f32 %v391_v21, %v17518_v38  ;;  %v22730_v21 = vld [vmem:[#allocation473_spill] sm:$0xff] }
 0x3a9   : > { %22710 = vst [vmem:[#allocation548_spill] sm:$0xff] %v17516_v48  ;;  %22711 = vst [vmem:[#allocation549_spill] sm:$0xff] %v17518_v38  ;;  %v17572_v55 = vand.u32 4294901760, %v405_v27  ;;  %7043 = vrot.lane.b32.xlu0 %v22725_v43, %s13225_s8  ;;  %11972 = vmatprep.subr.mxu1 %v17525_v33  ;;  %v17577_v26 = vand.u32 4294901760, %v5082_v47  ;;  %v17580_v32 = vand.u32 4294901760, %v17530_v24  ;;  %v17583_v18 = vsub.f32 %v406_v39, %v17532_v10  ;;  %v22733_v47 = vld [vmem:[#allocation12_spill] sm:$0xff] }
 0x3aa   : > { %22712 = vst [vmem:[#allocation550_spill] sm:$0xff] %v17525_v33  ;;  %22713 = vst [vmem:[#allocation551_spill] sm:$0xff] %v17530_v24  ;;  %v17585_v57 = vand.u32 4294901760, %v389_v54  ;;  %7045 = vrot.lane.b32.xlu1 %v22730_v21, %s13225_s8  ;;  %v7180_v61 = vmul.f32 %v17122_v60, %v22731_v52  ;;  %v17593_v43 = vrot.slane %v16903_v40, %v22732_v0  ;;  %11927 = vmatpush3.msra.mxu0 %v17111_v25 }
 0x3ab   : > { %22714 = vst [vmem:[#allocation552_spill] sm:$0xff] %v17532_v10  ;;  %22717 = vst [vmem:[#allocation452_spill] sm:$0xff] %v17541_v59  ;;  %v17597_v33 = vrot.slane %v16903_v40, %v22733_v47  ;;  %11973 = vmatpush3.msra.mxu1 %v17541_v59  ;;  %11928 = vmatprep.subr.mxu0 %v17171_v17  ;;  %v17602_v39 = vand.u32 4294901760, %v5201_v45  ;;  %v5096_v21 = vsub.f32 %v17506_v30, %v17555_v44 }
 0x3ac   : > { %22718 = vst [vmem:[#allocation553_spill] sm:$0xff] %v17543_v51  ;;  %22719 = vst [vmem:[#allocation554_spill] sm:$0xff] %v17555_v44  ;;  %v17607_v7 = vand.u32 4294901760, %v17558_v42  ;;  %v17610_v0 = vsub.f32 %v390_v13, %v17560_v15  ;;  %11974 = vmatprep.subr.mxu1 %v17543_v51  ;;  %11929 = vmatpush3.msra.mxu0 %v17173_v20  ;;  %v17614_v40 = vand.u32 4294901760, %v5089_v5  ;;  %v17619_v45 = vand.u32 4294901760, %v17570_v16 }
 0x3ad   : > { %22720 = vst [vmem:[#allocation555_spill] sm:$0xff] %v17558_v42  ;;  %22721 = vst [vmem:[#allocation556_spill] sm:$0xff] %v17560_v15  ;;  %v5215_v59 = vsub.f32 %v17516_v48, %v17567_v50  ;;  %v17622_v44 = vsub.f32 %v405_v27, %v17572_v55  ;;  %7047 = vrot.lane.b32.xlu0 %v7009_v29, %s13225_s8  ;;  %11975 = vmatpush3.msra.mxu1 %v17577_v26  ;;  %v17626_v13 = vand.u32 4294901760, %v5208_v14 }
 0x3ae   : > { %22722 = vst [vmem:[#allocation557_spill] sm:$0xff] %v17567_v50  ;;  %22723 = vst [vmem:[#allocation558_spill] sm:$0xff] %v17570_v16  ;;  %v5103_v51 = vsub.f32 %v17530_v24, %v17580_v32  ;;  %v17631_v5 = vand.u32 4294901760, %v17583_v18  ;;  %v17634_v50 = vsub.f32 %v389_v54, %v17585_v57  ;;  %7216 = vrot.lane.b32.xlu1 %v7180_v61, %s13226_s13  ;;  %11930 = vmatprep.subr.mxu0 %v17242_v35 }
 0x3af   : > { %22724 = vst [vmem:[#allocation559_spill] sm:$0xff] %v17572_v55  ;;  %22726 = vst [vmem:[#allocation196_spill] sm:$0xff] %v17577_v26  ;;  %v7181_v29 = vmul.f32 %v17597_v33, %v22731_v52  ;;  %11976 = vmatprep.subr.mxu1 %v17602_v39  ;;  %11931 = vmatpush3.msra.mxu0 %v17244_v41  ;;  %v17642_v27 = vand.u32 4294901760, %v5096_v21  ;;  %v5222_v14 = vsub.f32 %v17558_v42, %v17607_v7 }
 0x3b0   : > { %22727 = vst [vmem:[#allocation560_spill] sm:$0xff] %v17580_v32  ;;  %22728 = vst [vmem:[#allocation561_spill] sm:$0xff] %v17583_v18  ;;  %v17647_v26 = vand.u32 4294901760, %v17610_v0  ;;  %v7182_v61 = vmul.f32 %v17593_v43, %v22731_v52  ;;  %11977 = vmatpush3.msra.mxu1 %v17614_v40  ;;  %11932 = vmatprep.subr.mxu0 %v17252_v8  ;;  %v17653_v54 = vand.u32 4294901760, %v5215_v59  ;;  %v17658_v21 = vand.u32 4294901760, %v17622_v44  ;;  %v22749_v59 = vld [vmem:[#allocation31_spill] sm:$0xff] }
 0x3b1   : > { %22729 = vst [vmem:[#allocation562_spill] sm:$0xff] %v17585_v57  ;;  %22734 = vst [vmem:[#allocation473_spill] sm:$0xff] %v17602_v39  ;;  %v5110_v39 = vsub.f32 %v17570_v16, %v17619_v45  ;;  %7218 = vrot.lane.b32.xlu0 %v7181_v29, %s13226_s13  ;;  %11978 = vmatprep.subr.mxu1 %v17626_v13  ;;  %v5229_v52 = vsub.f32 %v17583_v18, %v17631_v5  ;;  %v17675_v29 = vand.u32 4294901760, %v5222_v14 }
 0x3b2   : > { %22735 = vst [vmem:[#allocation12_spill] sm:$0xff] %v17607_v7  ;;  %22736 = vst [vmem:[#allocation563_spill] sm:$0xff] %v17610_v0  ;;  %v17662_v7 = vand.u32 4294901760, %v5103_v51  ;;  %7220 = vrot.lane.b32.xlu1 %v7182_v61, %s13226_s13  ;;  %11933 = vmatpush3.msra.mxu0 %v17262_v53  ;;  %v5117_v51 = vsub.f32 %v17610_v0, %v17647_v26 }
 0x3b3   : > { %22737 = vst [vmem:[#allocation564_spill] sm:$0xff] %v17614_v40  ;;  %22738 = vst [vmem:[#allocation565_spill] sm:$0xff] %v17619_v45  ;;  %v17667_v40 = vand.u32 4294901760, %v17634_v50  ;;  %v22750_v45 = vld [vmem:[#allocation303_spill] sm:$0xff]  ;;  %11979 = vmatpush3.msra.mxu1 %v17642_v27  ;;  %11934 = vmatprep.subr.mxu0 %v17331_v3  ;;  %v17683_v61 = vand.u32 4294901760, %v5110_v39  ;;  %v17689_v14 = vand.u32 4294901760, %v5229_v52 }
 0x3b4   : > { %22739 = vst [vmem:[#allocation566_spill] sm:$0xff] %v17622_v44  ;;  %22740 = vst [vmem:[#allocation567_spill] sm:$0xff] %v17626_v13  ;;  %v5996_v32 = vmul.f32 %v22750_v45, %v22749_v59  ;;  %v22752_v13 = vld [vmem:[#allocation318_spill] sm:$0xff]  ;;  %11980 = vmatprep.subr.mxu1 %v17653_v54  ;;  %11935 = vmatpush3.msra.mxu0 %v17337_v36  ;;  %v5236_v45 = vsub.f32 %v17622_v44, %v17658_v21 }
 0x3b5   : > { %22741 = vst [vmem:[#allocation568_spill] sm:$0xff] %v17631_v5  ;;  %22742 = vst [vmem:[#allocation569_spill] sm:$0xff] %v17634_v50  ;;  %v5997_v5 = vmul.f32 %v22752_v13, %v22749_v59  ;;  %11981 = vmatpush3.msra.mxu1 %v17662_v7  ;;  %11936 = vmatprep.subr.mxu0 %v17339_v6  ;;  %v22755_v13 = vld [vmem:[#allocation331_spill] sm:$0xff] }
 0x3b6   : > { %22743 = vst [vmem:[#allocation570_spill] sm:$0xff] %v17642_v27  ;;  %22744 = vst [vmem:[#allocation571_spill] sm:$0xff] %v17647_v26  ;;  %6042 = vrot.lane.b32.xlu0 %v5996_v32, %s13209_s21  ;;  %v5124_v27 = vsub.f32 %v17634_v50, %v17667_v40  ;;  %v5998_v39 = vmul.f32 %v22755_v13, %v22749_v59  ;;  %11982 = vmatprep.subr.mxu1 %v17675_v29  ;;  %v22757_v32 = vld [vmem:[#allocation302_spill] sm:$0xff]  ;;  %v22761_v13 = vld [vmem:[#allocation451_spill] sm:$0xff] }
 0x3b7   : > { %22745 = vst [vmem:[#allocation572_spill] sm:$0xff] %v17653_v54  ;;  %22746 = vst [vmem:[#allocation573_spill] sm:$0xff] %v17658_v21  ;;  %6044 = vrot.lane.b32.xlu1 %v5997_v5, %s13209_s21  ;;  %11937 = vmatpush3.msra.mxu0 %v17376_v22  ;;  %v17699_v54 = vand.u32 4294901760, %v5117_v51  ;;  %v5995_v52 = vmul.f32 %v22757_v32, %v22749_v59  ;;  %v22760_v51 = vld [vmem:[#allocation38_spill] sm:$0xff]  ;;  %v22803_v59 = vld [vmem:[#allocation511_spill] sm:$0xff] }
 0x3b8   : > { %22747 = vst [vmem:[#allocation574_spill] sm:$0xff] %v17662_v7  ;;  %22748 = vst [vmem:[#allocation575_spill] sm:$0xff] %v17667_v40  ;;  %11983 = vmatpush3.msra.mxu1 %v17683_v61  ;;  %11938 = vmatprep.subr.mxu0 %v17390_v4  ;;  %v17705_v7 = vand.u32 4294901760, %v5236_v45  ;;  %v17709_v5 = vand.u32 4294901760, %v5124_v27  ;;  %v22762_v45 = vld [vmem:[#allocation453_spill] sm:$0xff]  ;;  %v22763_v27 = vld [vmem:[#allocation454_spill] sm:$0xff] }
 0x3b9   : > { %22751 = vst [vmem:[#allocation303_spill] sm:$0xff] %v17675_v29  ;;  %22753 = vst [vmem:[#allocation318_spill] sm:$0xff] %v17683_v61  ;;  %11984 = vmatprep.subr.mxu1 %v17689_v14  ;;  %11939 = vmatpush3.msra.mxu0 %v17401_v49  ;;  %v6169_v29 = vmul.f32 %v22761_v13, %v22760_v51  ;;  %v6170_v32 = vmul.f32 %v22762_v45, %v22760_v51  ;;  %v22766_v45 = vld [vmem:[#allocation456_spill] sm:$0xff]  ;;  %v22809_v21 = vld [vmem:[#allocation529_spill] sm:$0xff] }
 0x3ba   : > { %22754 = vst [vmem:[#allocation576_spill] sm:$0xff] %v17689_v14  ;;  %22756 = vst [vmem:[#allocation331_spill] sm:$0xff] %v17699_v54  ;;  %6046 = vrot.lane.b32.xlu0 %v5998_v39, %s13209_s21  ;;  %11985 = vmatpush3.msra.mxu1 %v17699_v54  ;;  %v6171_v39 = vmul.f32 %v22763_v27, %v22760_v51  ;;  %v22767_v27 = vld [vmem:[#allocation457_spill] sm:$0xff]  ;;  %v22805_v40 = vld [vmem:[#allocation512_spill] sm:$0xff] }
 0x3bb   : > { %22758 = vst [vmem:[#allocation302_spill] sm:$0xff] %v17705_v7  ;;  %22759 = vst [vmem:[#allocation577_spill] sm:$0xff] %v17709_v5  ;;  %6040 = vrot.lane.b32.xlu1 %v5995_v52, %s13209_s21  ;;  %11940 = vmatprep.subr.mxu0 %v17409_v37  ;;  %v22764_v52 = vld [vmem:[#allocation455_spill] sm:$0xff]  ;;  %v22772_v54 = vld [vmem:[#allocation317_spill] sm:$0xff] }
 0x3bc   : > { %11986 = vmatprep.subr.mxu1 %v17705_v7  ;;  %11941 = vmatpush3.msra.mxu0 %v17455_v62  ;;  %v6168_v13 = vmul.f32 %v22764_v52, %v22760_v51  ;;  %v22769_v52 = vld [vmem:[#allocation459_spill] sm:$0xff]  ;;  %v22776_v51 = vld [vmem:[#allocation461_spill] sm:$0xff]  ;;  %v22810_v26 = vld [vmem:[#allocation532_spill] sm:$0xff] }
 0x3bd   : > { %11987 = vmatpush3.msra.mxu1 %v17709_v5  ;;  %11942 = vmatprep.subr.mxu0 %v17465_v1 }
 0x3be   : > { %6215 = vrot.lane.b32.xlu0 %v6169_v29, %s21916_s14  ;;  %11943 = vmatpush3.msra.mxu0 %v17480_v34  ;;  %v22765_v29 = vld [vmem:[#allocation39_spill] sm:$0xff] }
 0x3bf   : > { %6217 = vrot.lane.b32.xlu1 %v6170_v32, %s21916_s14  ;;  %12032 = vmatprep.subr.mxu1 %v16894_v31  ;;  %v6342_v32 = vmul.f32 %v22766_v45, %v22765_v29  ;;  %v6343_v5 = vmul.f32 %v22767_v27, %v22765_v29  ;;  %v22770_v45 = vld [vmem:[#allocation460_spill] sm:$0xff]  ;;  %v22771_v27 = vld [vmem:[#allocation33_spill] sm:$0xff] }
 0x3c0   : > { %11944 = vmatprep.subr.mxu0 %v17508_v28  ;;  %v6341_v7 = vmul.f32 %v22770_v45, %v22765_v29  ;;  %v6506_v14 = vmul.f32 %v22772_v54, %v22771_v27 }
 0x3c1   : > { %11945 = vmatpush3.msra.mxu0 %v17518_v38 }
 0x3c2   : > { %6219 = vrot.lane.b32.xlu0 %v6171_v39, %s21916_s14  ;;  %11946 = vmatprep.subr.mxu0 %v17532_v10  ;;  %v22768_v39 = vld [vmem:[#allocation53_spill] sm:$0xff] }
 0x3c3   : > { %6213 = vrot.lane.b32.xlu1 %v6168_v13, %s21916_s14  ;;  %11947 = vmatpush3.msra.mxu0 %v17560_v15  ;;  %v6344_v13 = vmul.f32 %v22769_v52, %v22765_v29  ;;  %v22784_v29 = vld [vmem:[#allocation20_spill] sm:$0xff] }
 0x3c4   : > { %11948 = vmatprep.subr.mxu0 %v17572_v55 }
 0x3c5   : > { %11949 = vmatpush3.msra.mxu0 %v17585_v57 }
 0x3c6   : > { %6388 = vrot.lane.b32.xlu0 %v6342_v32, %s13222_s22  ;;  %11994 = vmatprep.subr.mxu0 %v22768_v39  ;;  %v22773_v32 = vld [vmem:[#allocation192_spill] sm:$0xff] }
 0x3c7   : > { %6390 = vrot.lane.b32.xlu1 %v6343_v5, %s13222_s22  ;;  %v6507_v61 = vmul.f32 %v22773_v32, %v22771_v27  ;;  %v22774_v5 = vld [vmem:[#allocation195_spill] sm:$0xff]  ;;  %v22775_v39 = vld [vmem:[#allocation40_spill] sm:$0xff] }
 0x3c8   : > { %v6508_v52 = vmul.f32 %v22774_v5, %v22771_v27  ;;  %v6672_v45 = vmul.f32 %v22776_v51, %v22775_v39  ;;  %v22781_v27 = vld [vmem:[#allocation469_spill] sm:$0xff] }
 0x3ca   : > { %6392 = vrot.lane.b32.xlu0 %v6344_v13, %s13222_s22  ;;  %v22778_v13 = vld [vmem:[#allocation465_spill] sm:$0xff] }
 0x3cb   : > { %6386 = vrot.lane.b32.xlu1 %v6341_v7, %s13222_s22  ;;  %v22777_v7 = vld [vmem:[#allocation463_spill] sm:$0xff]  ;;  %v6674_v32 = vmul.f32 %v22778_v13, %v22775_v39 }
 0x3cc   : > { %v6673_v54 = vmul.f32 %v22777_v7, %v22775_v39  ;;  %v22783_v7 = vld [vmem:[#allocation42_spill] sm:$0xff] }
 0x3cd   : > { %v7016_v13 = vmul.f32 %v22784_v29, %v22783_v7 }
 0x3ce   : > { %6546 = vrot.lane.b32.xlu0 %v6506_v14, %s13220_s19  ;;  %v22780_v14 = vld [vmem:[#allocation468_spill] sm:$0xff] }
 0x3cf   : > { %6548 = vrot.lane.b32.xlu1 %v6507_v61, %s13220_s19  ;;  %v22779_v61 = vld [vmem:[#allocation41_spill] sm:$0xff] }
 0x3d0   : > { %v6845_v5 = vmul.f32 %v22780_v14, %v22779_v61  ;;  %v6846_v51 = vmul.f32 %v22781_v27, %v22779_v61  ;;  %v7018_v27 = vmul.f32 %v22716_v63, %v22783_v7 }
 0x3d2   : > { %6550 = vrot.lane.b32.xlu0 %v6508_v52, %s13220_s19  ;;  %v22782_v52 = vld [vmem:[#allocation472_spill] sm:$0xff] }
 0x3d3   : > { %6717 = vrot.lane.b32.xlu1 %v6672_v45, %s13223_s23  ;;  %v6847_v45 = vmul.f32 %v22782_v52, %v22779_v61 }
 0x3d6   : > { %6719 = vrot.lane.b32.xlu0 %v6673_v54, %s13223_s23  ;;  %v22785_v54 = vld [vmem:[#allocation15_spill] sm:$0xff] }
 0x3d7   : > { %6721 = vrot.lane.b32.xlu1 %v6674_v32, %s13223_s23  ;;  %v7017_v32 = vmul.f32 %v22785_v54, %v22783_v7  ;;  %v22799_v7 = vld [vmem:[#allocation497_spill] sm:$0xff] }
 0x3d8   : > { %v2081_v14 = vpop.permute.xlu1 %2080 }
 0x3da   : > { %6890 = vrot.lane.b32.xlu0 %v6845_v5, %s13224_s29  ;;  %v22786_v5 = vld [vmem:[#allocation450_spill] sm:$0xff]  ;;  %v2083_v29 = vpop.permute.xlu0 %2082 }
 0x3db   : > { %6892 = vrot.lane.b32.xlu1 %v6846_v51, %s13224_s29  ;;  %v2108_v51 = vsel %vm1816_vm5, %v22786_v5, %v2081_v14  ;;  %v2109_v54 = vsel %vm1816_vm5, %v2081_v14, %v2083_v29 }
 0x3dc   : > { %v17789_v52 = vand.u32 4294901760, %v2108_v51  ;;  %v17798_v39 = vpop.permute.xlu1 %6024  ;;  %v17802_v5 = vand.u32 4294901760, %v2109_v54 }
 0x3de   : > { %6894 = vrot.lane.b32.xlu0 %v6847_v45, %s13224_s29  ;;  %22787 = vst [vmem:[#allocation451_spill] sm:$0xff] %v17789_v52  ;;  %v22788_v45 = vld [vmem:[#allocation43_spill] sm:$0xff]  ;;  %v17795_v61 = vsub.f32 %v2108_v51, %v17789_v52  ;;  %5240 = vmatprep.mubr.f32.mxu1 %v17802_v5 }
 0x3df   : > { %7061 = vrot.lane.b32.xlu1 %v7016_v13, %s13225_s8  ;;  %v7189_v13 = vmul.f32 %v17122_v60, %v22788_v45  ;;  %v7190_v63 = vmul.f32 %v17597_v33, %v22788_v45  ;;  %v17808_v60 = vsub.f32 %v2109_v54, %v17802_v5  ;;  %v7191_v14 = vmul.f32 %v17593_v43, %v22788_v45  ;;  %v22795_v45 = vld [vmem:[#allocation481_spill] sm:$0xff] }
 0x3e0   : > { %5242 = vmatmul.mubr.f32.vlgmr.msra.gmra.mxu1 %v17789_v52 }
 0x3e1   : > { %v21510_v33 = vand.u32 4294901760, %v17808_v60  ;;  %12033 = vmatpush3.msra.mxu1 %v16937_v11  ;;  %v17822_v29 = vpop.permute.xlu1 %6028 }
 0x3e2   : > { %7063 = vrot.lane.b32.xlu0 %v7017_v32, %s13225_s8  ;;  %v21509_v32 = vand.u32 4294901760, %v17795_v61  ;;  %22789 = vst [vmem:[#allocation453_spill] sm:$0xff] %v17822_v29  ;;  %12034 = vmatprep.subr.mxu1 %v22693_v9 }
 0x3e3   : > { %7065 = vrot.lane.b32.xlu1 %v7018_v27, %s13225_s8  ;;  %v17814_v27 = vpop.permute.xlu0 %6026  ;;  %v4987_v43 = vsub.f32 %v17808_v60, %v21510_v33  ;;  %12035 = vmatpush3.msra.mxu1 %v22697_v56  ;;  %v22793_v33 = vld [vmem:[#allocation199_spill] sm:$0xff] }
 0x3e4   : > { %v4993_v51 = vsub.f32 %v17795_v61, %v21509_v32  ;;  %12036 = vmatprep.subr.mxu1 %v17029_v2  ;;  %v22790_v32 = vld [vmem:[#allocation466_spill] sm:$0xff] }
 0x3e5   : > { %12037 = vmatpush3.msra.mxu1 %v17048_v58 }
 0x3e6   : > { %7234 = vrot.lane.b32.xlu0 %v7189_v13, %s13226_s13  ;;  %v4988_v13 = vand.u32 4294901760, %v4987_v43  ;;  %v4994_v54 = vand.u32 4294901760, %v4993_v51  ;;  %12038 = vmatprep.subr.mxu1 %v17066_v19  ;;  %v22791_v43 = vld [vmem:[#allocation475_spill] sm:$0xff]  ;;  %v22792_v51 = vld [vmem:[#allocation478_spill] sm:$0xff] }
 0x3e7   : > { %7236 = vrot.lane.b32.xlu1 %v7190_v63, %s13226_s13  ;;  %v17832_v63 = vpop.permute.xlu0 %6022  ;;  %12039 = vmatpush3.msra.mxu1 %v17085_v12 }
 0x3e8   : > { %4989 = vmatprep.mubr.f32.mxu0 %v4988_v13  ;;  %12040 = vmatprep.subr.mxu1 %v17099_v46 }
 0x3e9   : > { %4995 = vmatmul.mubr.f32.vlgmr.msra.gmra.mxu0 %v4994_v54  ;;  %12041 = vmatpush3.msra.mxu1 %v17111_v25 }
 0x3ea   : > { %7238 = vrot.lane.b32.xlu0 %v7191_v14, %s13226_s13  ;;  %v17835_v14 = vpop.permute.xlu1 %6197  ;;  %11995 = vmatpush3.msra.mxu0 %v22790_v32  ;;  %v22796_v32 = vld [vmem:[#allocation484_spill] sm:$0xff] }
 0x3eb   : > { %11996 = vmatprep.subr.mxu0 %v22791_v43  ;;  %12042 = vmatprep.subr.mxu1 %v17171_v17  ;;  %v22797_v43 = vld [vmem:[#allocation486_spill] sm:$0xff] }
 0x3ec   : > { %11997 = vmatpush3.msra.mxu0 %v22792_v51  ;;  %12043 = vmatpush3.msra.mxu1 %v17173_v20  ;;  %v17844_v13 = vpop.permute.xlu0 %6199  ;;  %v22798_v51 = vld [vmem:[#allocation489_spill] sm:$0xff] }
 0x3ed   : > { %11998 = vmatprep.subr.mxu0 %v22793_v33  ;;  %12044 = vmatprep.subr.mxu1 %v17242_v35 }
 0x3ee   : > { %v17848_v54 = vpop.permute.xlu1 %6201  ;;  %11999 = vmatpush3.msra.mxu0 %v22795_v45  ;;  %12045 = vmatpush3.msra.mxu1 %v17244_v41 }
 0x3ef   : > { %22794 = vst [vmem:[#allocation454_spill] sm:$0xff] %v17848_v54  ;;  %12000 = vmatprep.subr.mxu0 %v22796_v32  ;;  %12046 = vmatprep.subr.mxu1 %v17252_v8  ;;  %v22800_v32 = vld [vmem:[#allocation498_spill] sm:$0xff] }
 0x3f0   : > { %12001 = vmatpush3.msra.mxu0 %v22797_v43  ;;  %12047 = vmatpush3.msra.mxu1 %v17262_v53  ;;  %v22801_v43 = vld [vmem:[#allocation508_spill] sm:$0xff] }
 0x3f1   : > { %12002 = vmatprep.subr.mxu0 %v22798_v51  ;;  %12048 = vmatprep.subr.mxu1 %v17331_v3  ;;  %v22802_v51 = vld [vmem:[#allocation509_spill] sm:$0xff] }
 0x3f2   : > { %12003 = vmatpush3.msra.mxu0 %v17169_v23  ;;  %12049 = vmatpush3.msra.mxu1 %v17337_v36 }
 0x3f3   : > { %v17858_v33 = vpop.permute.xlu0 %6195  ;;  %12004 = vmatprep.subr.mxu0 %v22799_v7  ;;  %12050 = vmatprep.subr.mxu1 %v17339_v6 }
 0x3f4   : > { %v17862_v45 = vpop.permute.xlu1 %6370  ;;  %12005 = vmatpush3.msra.mxu0 %v22800_v32  ;;  %12051 = vmatpush3.msra.mxu1 %v17376_v22  ;;  %v22806_v32 = vld [vmem:[#allocation518_spill] sm:$0xff] }
 0x3f5   : > { %12006 = vmatprep.subr.mxu0 %v22801_v43  ;;  %12052 = vmatprep.subr.mxu1 %v17390_v4  ;;  %v22807_v43 = vld [vmem:[#allocation520_spill] sm:$0xff] }
 0x3f6   : > { %12007 = vmatpush3.msra.mxu0 %v22802_v51  ;;  %12053 = vmatpush3.msra.mxu1 %v17401_v49  ;;  %v22808_v51 = vld [vmem:[#allocation521_spill] sm:$0xff] }
 0x3f7   : > { %12008 = vmatprep.subr.mxu0 %v22803_v59  ;;  %12054 = vmatprep.subr.mxu1 %v17409_v37 }
 0x3f8   : > { %12009 = vmatpush3.msra.mxu0 %v22805_v40  ;;  %12055 = vmatpush3.msra.mxu1 %v17455_v62 }
 0x3f9   : > { %v17872_v23 = vpop.permute.xlu0 %6372  ;;  %12010 = vmatprep.subr.mxu0 %v22806_v32  ;;  %12056 = vmatprep.subr.mxu1 %v17465_v1  ;;  %v22811_v32 = vld [vmem:[#allocation534_spill] sm:$0xff] }
 0x3fa   : > { %v17876_v7 = vpop.permute.xlu1 %6374  ;;  %12011 = vmatpush3.msra.mxu0 %v22807_v43  ;;  %12057 = vmatpush3.msra.mxu1 %v17480_v34  ;;  %v22812_v43 = vld [vmem:[#allocation537_spill] sm:$0xff] }
 0x3fb   : > { %22804 = vst [vmem:[#allocation455_spill] sm:$0xff] %v17876_v7  ;;  %12012 = vmatprep.subr.mxu0 %v22808_v51  ;;  %12058 = vmatprep.subr.mxu1 %v17508_v28 }
 0x3fc   : > { %12013 = vmatpush3.msra.mxu0 %v22809_v21  ;;  %12059 = vmatpush3.msra.mxu1 %v17518_v38 }
 0x3fd   : > { %12014 = vmatprep.subr.mxu0 %v22810_v26  ;;  %12060 = vmatprep.subr.mxu1 %v17532_v10  ;;  %v22813_v26 = vld [vmem:[#allocation51_spill] sm:$0xff]  ;;  %v6233_v10 = vsel %vm848_vm7, %v17844_v13, %v17848_v54 }
 0x3fe   : > { %12015 = vmatpush3.msra.mxu0 %v22811_v32  ;;  %12061 = vmatpush3.msra.mxu1 %v17560_v15  ;;  %v17911_v32 = vld [vmem:[#allocation2] sm:$0xff] }
 0x3ff   : > { %v17886_v59 = vpop.permute.xlu0 %6368  ;;  %v17890_v40 = vpop.permute.xlu1 %6530  ;;  %12016 = vmatprep.subr.mxu0 %v22812_v43  ;;  %12062 = vmatprep.subr.mxu1 %v17572_v55 }
 0x400   : > { %12017 = vmatpush3.msra.mxu0 %v17506_v30  ;;  %12063 = vmatpush3.msra.mxu1 %v17585_v57  ;;  %v22820_v57 = vld [vmem:[#allocation45_spill] sm:$0xff] }
 0x401   : > { %12018 = vmatprep.subr.mxu0 %v17516_v48  ;;  %12108 = vmatprep.subr.mxu1 %v16894_v31  ;;  %v17915_v48 = vmul.f32 %v17911_v32, %v22813_v26  ;;  %v22819_v26 = vld [vmem:[#allocation21_spill] sm:$0xff] }
 0x402   : > { %12019 = vmatpush3.msra.mxu0 %v17530_v24 }
 0x403   : > { %v6533_v21 = vpop.permute.xlu0 %6532  ;;  %12020 = vmatprep.subr.mxu0 %v17558_v42  ;;  %22814 = vst [vmem:[#allocation456_spill] sm:$0xff] %v17915_v48  ;;  %v17934_v52 = vrot.slane %v17915_v48, %v22819_v26  ;;  %v6232_v26 = vsel %vm848_vm7, %v17835_v14, %v17844_v13 }
 0x404   : > { %v17900_v51 = vpop.permute.xlu1 %6534  ;;  %12021 = vmatpush3.msra.mxu0 %v17570_v16  ;;  %v22815_v16 = vld [vmem:[#allocation470_spill] sm:$0xff] }
 0x405   : > { %12022 = vmatprep.subr.mxu0 %v17583_v18  ;;  %v17926_v18 = vrot.slane %v17915_v48, %v22733_v47  ;;  %v6060_v47 = vsel %vm658_vm2, %v17814_v27, %v17822_v29  ;;  %v5903_v15 = vmul.f32 %v17934_v52, %v22820_v57  ;;  %v6405_v29 = vsel %vm1036_vm8, %v17862_v45, %v17872_v23 }
 0x406   : > { %12023 = vmatpush3.msra.mxu0 %v17610_v0  ;;  %v22817_v0 = vld [vmem:[#allocation17_spill] sm:$0xff] }
 0x407   : > { %12024 = vmatprep.subr.mxu0 %v17622_v44  ;;  %22816 = vst [vmem:[#allocation457_spill] sm:$0xff] %v17926_v18  ;;  %v17930_v31 = vrot.slane %v17915_v48, %v22817_v0  ;;  %v5904_v55 = vmul.f32 %v17926_v18, %v22820_v57 }
 0x408   : > { %12025 = vmatpush3.msra.mxu0 %v17634_v50  ;;  %v6059_v50 = vsel %vm658_vm2, %v17798_v39, %v17814_v27  ;;  %v6058_v27 = vsel %vm658_vm2, %v17832_v63, %v17798_v39  ;;  %v6231_v39 = vsel %vm848_vm7, %v17858_v33, %v17835_v14  ;;  %v6562_v63 = vsel %vm432_vm6, %v17890_v40, %v6533_v21 }
 0x409   : > { %v17907_v43 = vpop.permute.xlu0 %6699  ;;  %12070 = vmatprep.subr.mxu0 %v22815_v16  ;;  %22818 = vst [vmem:[#allocation459_spill] sm:$0xff] %v17930_v31  ;;  %v5905_v0 = vmul.f32 %v17930_v31, %v22820_v57  ;;  %v6093_v48 = vadd.f32 %v6059_v50, %v5904_v55  ;;  %v22821_v31 = vld [vmem:[#allocation8_spill] sm:$0xff]  ;;  %v6406_v57 = vsel %vm1036_vm8, %v17872_v23, %v17876_v7 }
 0x40a   : > { %v6702_v30 = vpop.permute.xlu1 %6701 }
 0x40b   : > { %v6094_v38 = vadd.f32 %v6060_v47, %v5905_v0  ;;  %v6266_v28 = vadd.f32 %v6232_v26, %v6093_v48  ;;  %v6563_v26 = vsel %vm432_vm6, %v6533_v21, %v17900_v51 }
 0x40d   : > { %v6267_v0 = vadd.f32 %v6233_v10, %v6094_v38  ;;  %v6439_v48 = vadd.f32 %v6405_v29, %v6266_v28  ;;  %v6404_v38 = vsel %vm1036_vm8, %v17886_v59, %v17862_v45  ;;  %v6735_v10 = vsel %vm1391_vm9, %v17907_v43, %v6702_v30 }
 0x40e   : > { %v17919_v42 = vpop.permute.xlu0 %6703  ;;  %v22822_v45 = vand.u32 4294901760, %v17808_v60 }
 0x40f   : > { %v17922_v24 = vpop.permute.xlu1 %6872  ;;  %v6595_v29 = vadd.f32 %v6562_v63, %v6439_v48  ;;  %v6736_v21 = vsel %vm1391_vm9, %v6702_v30, %v17919_v42 }
 0x412   : > { %v6875_v44 = vpop.permute.xlu0 %6874 }
 0x413   : > { %v17939_v16 = vpop.permute.xlu1 %6876  ;;  %v6908_v59 = vsel %vm1580_vm10, %v17922_v24, %v6875_v44 }
 0x416   : > { %v2099_v18 = vpop.permute.xlu0 %2098 }
 0x417   : > { %v2116_v50 = vsel %vm1816_vm5, %v22821_v31, %v2099_v18  ;;  %v2101_v55 = vpop.permute.xlu1 %2100  ;;  %v6092_v31 = vadd.f32 %v6058_v27, %v5903_v15 }
 0x418   : > { %v17967_v13 = vand.u32 4294901760, %v2116_v50  ;;  %v2117_v47 = vsel %vm1816_vm5, %v2099_v18, %v2101_v55  ;;  %v6440_v18 = vadd.f32 %v6406_v57, %v6267_v0  ;;  %v6770_v55 = vadd.f32 %v6735_v10, %v6595_v29 }
 0x419   : > { %v17975_v54 = vand.u32 4294901760, %v2117_v47  ;;  %v6265_v15 = vadd.f32 %v6231_v39, %v6092_v31 }
 0x41a   : > { %v17980_v23 = vsub.f32 %v2116_v50, %v17967_v13  ;;  %v6596_v14 = vadd.f32 %v6563_v26, %v6440_v18  ;;  %v6943_v26 = vadd.f32 %v6908_v59, %v6770_v55 }
 0x41b   : > { %v7044_v7 = vpop.permute.xlu0 %7043  ;;  %v5000_v33 = vsub.f32 %v2117_v47, %v17975_v54  ;;  %5247 = vmatprep.mubr.f32.mxu1 %v17975_v54  ;;  %v6438_v50 = vadd.f32 %v6404_v38, %v6265_v15  ;;  %v6909_v47 = vsel %vm1580_vm10, %v6875_v44, %v17939_v16 }
 0x41c   : > { %v7046_v28 = vpop.permute.xlu1 %7045  ;;  %5249 = vmatmul.mubr.f32.gmra.mxu1 %v17967_v13  ;;  %v5007_v57 = vand.u32 4294901760, %v17980_v23  ;;  %v6771_v39 = vadd.f32 %v6736_v21, %v6596_v14 }
 0x41d   : > { %5500 = vmatprep.mubr.f32.mxu1 %v22822_v45  ;;  %v5001_v27 = vand.u32 4294901760, %v5000_v33  ;;  %v7079_v63 = vsel %vm1760_vm11, %v7044_v7, %v7046_v28  ;;  %v22823_v45 = vand.u32 4294901760, %v17795_v61  ;;  %v6594_v15 = vadd.f32 %v17890_v40, %v6438_v50 }
 0x41e   : > { %v5008_v30 = vsub.f32 %v17980_v23, %v5007_v57  ;;  %v6944_v10 = vadd.f32 %v6909_v47, %v6771_v39  ;;  %v7114_v29 = vadd.f32 %v7079_v63, %v6943_v26 }
 0x41f   : > { %v17999_v0 = vpop.permute.xlu0 %7047  ;;  %v5002_v48 = vsub.f32 %v5000_v33, %v5001_v27  ;;  %v6769_v55 = vadd.f32 %v17907_v43, %v6594_v15 }
 0x420   : > { %v7217_v31 = vpop.permute.xlu1 %7216  ;;  %v7080_v18 = vsel %vm1760_vm11, %v7046_v28, %v17999_v0  ;;  %5504 = vmatmul.mubr.f32.vlgmr.msra.gmra.mxu1 %v22823_v45  ;;  %v5009_v38 = vand.u32 4294901760, %v5008_v30  ;;  %v22824_v30 = vld [vmem:[#allocation46_spill] sm:$0xff] }
 0x421   : > { %12109 = vmatpush3.msra.mxu1 %v16937_v11  ;;  %5511 = vmatprep.mubr.f32.mxu1 %v5001_v27  ;;  %v5003_v44 = vand.u32 4294901760, %v5002_v48  ;;  %v7115_v14 = vadd.f32 %v7080_v18, %v6944_v10  ;;  %v6942_v50 = vadd.f32 %v17922_v24, %v6769_v55  ;;  %v22825_v24 = vld [vmem:[#allocation477_spill] sm:$0xff]  ;;  %v22832_v55 = vld [vmem:[#allocation495_spill] sm:$0xff]  ;;  %v22877_v11 = vld [vmem:[#allocation12_spill] sm:$0xff] }
 0x422   : > { %12110 = vmatprep.subr.mxu1 %v22693_v9  ;;  %v22827_v10 = vld [vmem:[#allocation485_spill] sm:$0xff]  ;;  %v22876_v9 = vld [vmem:[#allocation560_spill] sm:$0xff] }
 0x423   : > { %v7219_v21 = vpop.permute.xlu0 %7218  ;;  %12111 = vmatpush3.msra.mxu1 %v22697_v56  ;;  %5004 = vmatprep.mubr.f32.mxu0 %v5003_v44  ;;  %v7113_v26 = vadd.f32 %v7044_v7, %v6942_v50  ;;  %v22829_v44 = vld [vmem:[#allocation44_spill] sm:$0xff]  ;;  %v22836_v50 = vld [vmem:[#allocation47_spill] sm:$0xff] }
 0x424   : > { %v7252_v28 = vsel %vm1949_vm12, %v7217_v31, %v7219_v21  ;;  %v18012_v59 = vpop.permute.xlu1 %7220  ;;  %12112 = vmatprep.subr.mxu1 %v17029_v2  ;;  %5010 = vmatmul.mubr.f32.gmra.mxu0 %v5009_v38  ;;  %v22826_v38 = vld [vmem:[#allocation483_spill] sm:$0xff]  ;;  %v18051_v15 = vrot.slane %v17911_v32, %v22829_v44 }
 0x425   : > { %v7287_v47 = vadd.f32 %v7252_v28, %v7114_v29  ;;  %v7253_v40 = vsel %vm1949_vm12, %v7219_v21, %v18012_v59  ;;  %5515 = vmatmul.mubr.f32.gmra.mxu1 %v5007_v57  ;;  %5384 = vmatprep.mubr.f32.mxu0 %v17808_v60  ;;  %v7286_v60 = vadd.f32 %v7217_v31, %v7113_v26  ;;  %v22830_v21 = vld [vmem:[#allocation490_spill] sm:$0xff] }
 0x426   : > { %v7288_v27 = vadd.f32 %v7253_v40, %v7115_v14  ;;  %12113 = vmatpush3.msra.mxu1 %v17048_v58  ;;  %5792 = vmatprep.mubr.f32.mxu1 %v17802_v5  ;;  %v22831_v14 = vld [vmem:[#allocation49_spill] sm:$0xff]  ;;  %v22838_v26 = vld [vmem:[#allocation330_spill] sm:$0xff]  ;;  %v22875_v58 = vld [vmem:[#allocation459_spill] sm:$0xff] }
 0x427   : > { %v7305_v39 = vadd.f32 %v7287_v47, %v22824_v30  ;;  %12114 = vmatprep.subr.mxu1 %v17066_v19  ;;  %v7304_v31 = vadd.f32 %v7286_v60, %v22824_v30  ;;  %v22833_v47 = vld [vmem:[#allocation19_spill] sm:$0xff]  ;;  %v18081_v60 = vrot.slane %v22838_v26, %v22829_v44 }
 0x428   : > { %v18023_v43 = vpop.permute.xlu0 %6042  ;;  %v7306_v63 = vadd.f32 %v7288_v27, %v22824_v30  ;;  %12115 = vmatpush3.msra.mxu1 %v17085_v12  ;;  %5387 = vmatmul.mubr.f32.vlgmr.msra.gmra.mxu0 %v17795_v61  ;;  %v22828_v61 = vld [vmem:[#allocation488_spill] sm:$0xff]  ;;  %v22874_v12 = vld [vmem:[#allocation457_spill] sm:$0xff] }
 0x429   : > { %v18027_v48 = vpop.permute.xlu1 %6044  ;;  %12116 = vmatprep.subr.mxu1 %v17099_v46  ;;  %12071 = vmatpush3.msra.mxu0 %v22825_v24  ;;  %v7323_v57 = vmax.f32 %v7305_v39, 0.0  ;;  %v7322_v28 = vmax.f32 %v7304_v31, 0.0  ;;  %v22835_v27 = vld [vmem:[#allocation52_spill] sm:$0xff] }
 0x42a   : > { %v7324_v18 = vmax.f32 %v7306_v63, 0.0  ;;  %12117 = vmatpush3.msra.mxu1 %v17111_v25  ;;  %5393 = vmatprep.mubr.f32.mxu0 %v5000_v33  ;;  %v22837_v63 = vld [vmem:[#allocation496_spill] sm:$0xff]  ;;  %v6067_v25 = vsel %vm658_vm2, %v18023_v43, %v18027_v48 }
 0x42b   : > { %12072 = vmatprep.subr.mxu0 %v22826_v38  ;;  %12118 = vmatprep.subr.mxu1 %v17171_v17  ;;  %v22849_v38 = vld [vmem:[#allocation528_spill] sm:$0xff] }
 0x42c   : > { %v18034_v45 = vpop.permute.xlu0 %6046  ;;  %12073 = vmatpush3.msra.mxu0 %v22827_v10  ;;  %12119 = vmatpush3.msra.mxu1 %v17173_v20  ;;  %v22847_v10 = vld [vmem:[#allocation517_spill] sm:$0xff] }
 0x42d   : > { %v18038_v7 = vpop.permute.xlu1 %6040  ;;  %12074 = vmatprep.subr.mxu0 %v22828_v61  ;;  %12120 = vmatprep.subr.mxu1 %v17242_v35  ;;  %v18127_v24 = vld [vmem:[#allocation2 + $0x1] sm:$0xff]  ;;  %v22867_v35 = vld [vmem:[#allocation562_spill] sm:$0xff] }
 0x42e   : > { %7360 = vrot.lane.b32.xlu1 %v7323_v57, %s13216_s16  ;;  %7362 = vrot.lane.b32.xlu0 %v7324_v18, %s13216_s16  ;;  %v22839_v57 = vld [vmem:[#allocation506_spill] sm:$0xff]  ;;  %v22840_v18 = vld [vmem:[#allocation507_spill] sm:$0xff]  ;;  %22850 = vst [vmem:[#allocation192_spill] sm:$0xff] %v18127_v24 }
 0x42f   : > { %5396 = vmatmul.mubr.f32.gmra.mxu0 %v17980_v23  ;;  %12121 = vmatpush3.msra.mxu1 %v17244_v41  ;;  %v5990_v23 = vmul.f32 %v18051_v15, %v22833_v47  ;;  %v22866_v41 = vld [vmem:[#allocation554_spill] sm:$0xff] }
 0x430   : > { %v18047_v33 = vpop.permute.xlu0 %6215  ;;  %12075 = vmatpush3.msra.mxu0 %v22830_v21  ;;  %5681 = vmatprep.mubr.f32.mxu0 %v17802_v5  ;;  %v18071_v5 = vrot.slane %v17911_v32, %v22836_v50 }
 0x431   : > { %v18055_v29 = vpop.permute.xlu1 %6217  ;;  %12076 = vmatprep.subr.mxu0 %v22831_v14  ;;  %12122 = vmatprep.subr.mxu1 %v17252_v8  ;;  %v18107_v14 = vrot.slane %v22838_v26, %v22836_v50  ;;  %v22865_v8 = vld [vmem:[#allocation559_spill] sm:$0xff] }
 0x432   : > { %12077 = vmatpush3.msra.mxu0 %v22832_v55  ;;  %12123 = vmatpush3.msra.mxu1 %v17262_v53  ;;  %v5991_v31 = vmul.f32 %v18071_v5, %v22833_v47  ;;  %v22862_v53 = vld [vmem:[#allocation544_spill] sm:$0xff] }
 0x433   : > { %12078 = vmatprep.subr.mxu0 %v22835_v27  ;;  %12124 = vmatprep.subr.mxu1 %v17331_v3  ;;  %v22842_v27 = vld [vmem:[#allocation515_spill] sm:$0xff] }
 0x434   : > { %v18065_v40 = vpop.permute.xlu0 %6219  ;;  %7358 = vrot.lane.b32.xlu1 %v7322_v28, %s13216_s16  ;;  %6030 = vrot.lane.b32.xlu0 %v5990_v23, %s13209_s21  ;;  %v22841_v28 = vld [vmem:[#allocation9_spill] sm:$0xff]  ;;  %v22858_v3 = vld [vmem:[#allocation543_spill] sm:$0xff] }
 0x435   : > { %22834 = vst [vmem:[#allocation460_spill] sm:$0xff] %v18065_v40  ;;  %v18073_v39 = vpop.permute.xlu1 %6213  ;;  %12079 = vmatpush3.msra.mxu0 %v22837_v63  ;;  %12125 = vmatpush3.msra.mxu1 %v17337_v36  ;;  %v6163_v23 = vmul.f32 %v18081_v60, %v22841_v28 }
 0x436   : > { %12080 = vmatprep.subr.mxu0 %v22839_v57  ;;  %12126 = vmatprep.subr.mxu1 %v17339_v6  ;;  %v22843_v57 = vld [vmem:[#allocation190_spill] sm:$0xff]  ;;  %v22856_v6 = vld [vmem:[#allocation549_spill] sm:$0xff] }
 0x437   : > { %12081 = vmatpush3.msra.mxu0 %v22840_v18  ;;  %12127 = vmatpush3.msra.mxu1 %v17376_v22  ;;  %v18099_v55 = vrot.slane %v22843_v57, %v22829_v44  ;;  %v22844_v18 = vld [vmem:[#allocation516_spill] sm:$0xff] }
 0x438   : > { %v18085_v32 = vpop.permute.xlu0 %6388  ;;  %12082 = vmatprep.subr.mxu0 %v22842_v27  ;;  %12128 = vmatprep.subr.mxu1 %v17390_v4  ;;  %v22846_v27 = vld [vmem:[#allocation337_spill] sm:$0xff]  ;;  %v22854_v4 = vld [vmem:[#allocation546_spill] sm:$0xff]  ;;  %v22855_v22 = vld [vmem:[#allocation540_spill] sm:$0xff] }
 0x439   : > { %v18093_v63 = vpop.permute.xlu1 %6390  ;;  %6032 = vrot.lane.b32.xlu1 %v5991_v31, %s13209_s21  ;;  %6203 = vrot.lane.b32.xlu0 %v6163_v23, %s21916_s14  ;;  %v6164_v31 = vmul.f32 %v18107_v14, %v22841_v28  ;;  %v22848_v23 = vld [vmem:[#allocation10_spill] sm:$0xff] }
 0x43a   : > { %12083 = vmatpush3.msra.mxu0 %v22844_v18  ;;  %12129 = vmatpush3.msra.mxu1 %v17401_v49  ;;  %v6336_v18 = vmul.f32 %v18099_v55, %v22848_v23  ;;  %v22852_v49 = vld [vmem:[#allocation530_spill] sm:$0xff] }
 0x43b   : > { %12084 = vmatprep.subr.mxu0 %v22846_v27  ;;  %12130 = vmatprep.subr.mxu1 %v17409_v37  ;;  %v18125_v27 = vrot.slane %v22843_v57, %v22836_v50  ;;  %v22851_v37 = vld [vmem:[#allocation13_spill] sm:$0xff]  ;;  %v22948_v50 = vld [vmem:[#allocation143_spill] sm:$0xff] }
 0x43c   : > { %v18109_v21 = vpop.permute.xlu0 %6392  ;;  %12085 = vmatpush3.msra.mxu0 %v22847_v10  ;;  %12131 = vmatpush3.msra.mxu1 %v17455_v62  ;;  %v18131_v10 = vrot.slane %v18127_v24, %v22851_v37 }
 0x43d   : > { %22845 = vst [vmem:[#allocation317_spill] sm:$0xff] %v18109_v21  ;;  %v18113_v61 = vpop.permute.xlu1 %6386  ;;  %12086 = vmatprep.subr.mxu0 %v22849_v38  ;;  %12132 = vmatprep.subr.mxu1 %v17465_v1  ;;  %v22853_v1 = vld [vmem:[#allocation531_spill] sm:$0xff] }
 0x43e   : > { %6205 = vrot.lane.b32.xlu1 %v6164_v31, %s21916_s14  ;;  %6376 = vrot.lane.b32.xlu0 %v6336_v18, %s13222_s22  ;;  %v6337_v31 = vmul.f32 %v18125_v27, %v22848_v23  ;;  %v22857_v18 = vld [vmem:[#allocation22_spill] sm:$0xff]  ;;  %v22943_v23 = vld [vmem:[#allocation133_spill] sm:$0xff] }
 0x43f   : > { %12087 = vmatpush3.msra.mxu0 %v22852_v49  ;;  %12133 = vmatpush3.msra.mxu1 %v17480_v34  ;;  %v6501_v36 = vmul.f32 %v18131_v10, %v22857_v18  ;;  %v22859_v49 = vld [vmem:[#allocation552_spill] sm:$0xff]  ;;  %v18153_v34 = vrot.slane %v18127_v24, %v22829_v44  ;;  %v22959_v24 = vld [vmem:[#allocation178_spill] sm:$0xff] }
 0x440   : > { %v18135_v62 = vpop.permute.xlu0 %6546  ;;  %12088 = vmatprep.subr.mxu0 %v22853_v1  ;;  %12134 = vmatprep.subr.mxu1 %v22854_v4  ;;  %v22860_v1 = vld [vmem:[#allocation26_spill] sm:$0xff] }
 0x441   : > { %v18139_v38 = vpop.permute.xlu1 %6548  ;;  %12089 = vmatpush3.msra.mxu0 %v22855_v22  ;;  %12135 = vmatpush3.msra.mxu1 %v22856_v6  ;;  %v18157_v4 = vrot.slane %v22860_v1, %v22851_v37  ;;  %v6502_v20 = vmul.f32 %v18153_v34, %v22857_v18  ;;  %v18177_v17 = vrot.slane %v22860_v1, %v22829_v44  ;;  %v22879_v1 = vld [vmem:[#allocation565_spill] sm:$0xff] }
 0x442   : > { %12090 = vmatprep.subr.mxu0 %v22858_v3  ;;  %12136 = vmatprep.subr.mxu1 %v22859_v49  ;;  %v22863_v3 = vld [vmem:[#allocation556_spill] sm:$0xff]  ;;  %v22864_v49 = vld [vmem:[#allocation547_spill] sm:$0xff]  ;;  %v6241_v18 = vsel %vm848_vm7, %v18055_v29, %v18065_v40 }
 0x443   : > { %6378 = vrot.lane.b32.xlu1 %v6337_v31, %s13222_s22  ;;  %6536 = vrot.lane.b32.xlu0 %v6501_v36, %s13220_s19  ;;  %v22868_v31 = vld [vmem:[#allocation14_spill] sm:$0xff]  ;;  %v22960_v40 = vld [vmem:[#allocation59_spill] sm:$0xff] }
 0x444   : > { %v18159_v22 = vpop.permute.xlu0 %6550  ;;  %12091 = vmatpush3.msra.mxu0 %v22862_v53  ;;  %12137 = vmatpush3.msra.mxu1 %v22863_v3  ;;  %v6666_v36 = vmul.f32 %v18157_v4, %v22868_v31  ;;  %v22869_v3 = vld [vmem:[#allocation557_spill] sm:$0xff] }
 0x445   : > { %22861 = vst [vmem:[#allocation195_spill] sm:$0xff] %v18159_v22  ;;  %v18163_v6 = vpop.permute.xlu1 %6717  ;;  %12092 = vmatprep.subr.mxu0 %v22864_v49  ;;  %12138 = vmatprep.subr.mxu1 %v22865_v8  ;;  %v22870_v49 = vld [vmem:[#allocation451_spill] sm:$0xff] }
 0x446   : > { %12093 = vmatpush3.msra.mxu0 %v22866_v41  ;;  %12139 = vmatpush3.msra.mxu1 %v22867_v35  ;;  %v22871_v41 = vld [vmem:[#allocation27_spill] sm:$0xff] }
 0x447   : > { %12094 = vmatprep.subr.mxu0 %v22869_v3  ;;  %5794 = vmatmul.mubr.f32.vlgmr.msra.gmra.mxu1 %v22870_v49  ;;  %v18185_v8 = vrot.slane %v22871_v41, %v22851_v37  ;;  %v18196_v46 = vrot.slane %v22871_v41, %v22829_v44  ;;  %v22873_v3 = vld [vmem:[#allocation48_spill] sm:$0xff]  ;;  %v6068_v41 = vsel %vm658_vm2, %v18027_v48, %v18034_v45 }
 0x448   : > { %v18179_v53 = vpop.permute.xlu0 %6719  ;;  %6538 = vrot.lane.b32.xlu1 %v6502_v20, %s13220_s19  ;;  %6705 = vrot.lane.b32.xlu0 %v6666_v36, %s13223_s23  ;;  %v5913_v19 = vmul.f32 %v22874_v12, %v22873_v3  ;;  %v5914_v2 = vmul.f32 %v22875_v58, %v22873_v3  ;;  %v5912_v56 = vmul.f32 %v17934_v52, %v22873_v3  ;;  %v22878_v52 = vld [vmem:[#allocation72_spill] sm:$0xff] }
 0x449   : > { %v18187_v35 = vpop.permute.xlu1 %6721  ;;  %12095 = vmatpush3.msra.mxu0 %v22876_v9  ;;  %5799 = vmatprep.mubr.f32.mxu1 %v17975_v54  ;;  %v6066_v20 = vsel %vm658_vm2, %v18038_v7, %v18023_v43  ;;  %v6240_v36 = vsel %vm848_vm7, %v18047_v33, %v18055_v29  ;;  %v6667_v58 = vmul.f32 %v18177_v17, %v22868_v31  ;;  %v22880_v43 = vld [vmem:[#allocation29_spill] sm:$0xff] }
 0x44a   : > { %22872 = vst [vmem:[#allocation461_spill] sm:$0xff] %v18187_v35  ;;  %12096 = vmatprep.subr.mxu0 %v22877_v11  ;;  %12184 = vmatprep.subr.mxu1 %v22878_v52  ;;  %v6102_v9 = vadd.f32 %v6067_v25, %v5913_v19  ;;  %v6839_v7 = vmul.f32 %v18185_v8, %v22880_v43  ;;  %v22881_v19 = vld [vmem:[#allocation568_spill] sm:$0xff] }
 0x44b   : > { %12097 = vmatpush3.msra.mxu0 %v22879_v1  ;;  %5801 = vmatmul.mubr.f32.gmra.mxu1 %v17967_v13  ;;  %v6239_v31 = vsel %vm848_vm7, %v18073_v39, %v18047_v33  ;;  %v6413_v25 = vsel %vm1036_vm8, %v18085_v32, %v18093_v63  ;;  %v6840_v48 = vmul.f32 %v18196_v46, %v22880_v43  ;;  %v22882_v33 = vld [vmem:[#allocation571_spill] sm:$0xff]  ;;  %v22883_v43 = vld [vmem:[#allocation573_spill] sm:$0xff] }
 0x44c   : > { %v18215_v12 = vpop.permute.xlu0 %6890  ;;  %12098 = vmatprep.subr.mxu0 %v22881_v19  ;;  %6707 = vrot.lane.b32.xlu1 %v6667_v58, %s13223_s23  ;;  %v6101_v52 = vadd.f32 %v6066_v20, %v5912_v56  ;;  %v6275_v1 = vadd.f32 %v6240_v36, %v6102_v9  ;;  %v6103_v39 = vadd.f32 %v6068_v41, %v5914_v2  ;;  %v22885_v56 = vld [vmem:[#allocation73_spill] sm:$0xff]  ;;  %v22886_v41 = vld [vmem:[#allocation575_spill] sm:$0xff] }
 0x44d   : > { %v6893_v11 = vpop.permute.xlu1 %6892  ;;  %6878 = vrot.lane.b32.xlu0 %v6839_v7, %s13224_s29  ;;  %12099 = vmatpush3.msra.mxu0 %v22882_v33  ;;  %v6412_v19 = vsel %vm1036_vm8, %v18113_v61, %v18085_v32  ;;  %v6569_v58 = vsel %vm432_vm6, %v18135_v62, %v18139_v38  ;;  %v6414_v2 = vsel %vm1036_vm8, %v18093_v63, %v18109_v21  ;;  %v22887_v61 = vld [vmem:[#allocation74_spill] sm:$0xff]  ;;  %v22923_v33 = vld [vmem:[#allocation101_spill] sm:$0xff] }
 0x44e   : > { %12100 = vmatprep.subr.mxu0 %v22883_v43  ;;  %12185 = vmatpush3.msra.mxu1 %v22885_v56  ;;  %v6274_v29 = vadd.f32 %v6239_v31, %v6101_v52  ;;  %v6448_v20 = vadd.f32 %v6413_v25, %v6275_v1  ;;  %v6276_v32 = vadd.f32 %v6241_v18, %v6103_v39  ;;  %v22888_v25 = vld [vmem:[#allocation81_spill] sm:$0xff] }
 0x44f   : > { %12101 = vmatpush3.msra.mxu0 %v22886_v41  ;;  %12186 = vmatprep.subr.mxu1 %v22887_v61  ;;  %v6743_v7 = vsel %vm1391_vm9, %v18163_v6, %v18179_v53  ;;  %v6570_v63 = vsel %vm432_vm6, %v18139_v38, %v18159_v22  ;;  %v6916_v18 = vsel %vm1580_vm10, %v18215_v12, %v6893_v11  ;;  %v22889_v56 = vld [vmem:[#allocation85_spill] sm:$0xff]  ;;  %v22892_v38 = vld [vmem:[#allocation95_spill] sm:$0xff]  ;;  %v22941_v22 = vld [vmem:[#allocation132_spill] sm:$0xff] }
 0x450   : > { %v18247_v9 = vpop.permute.xlu0 %6894  ;;  %5683 = vmatmul.mubr.f32.vlgmr.msra.gmra.mxu0 %v22870_v49  ;;  %6880 = vrot.lane.b32.xlu1 %v6840_v48, %s13224_s29  ;;  %v6447_v31 = vadd.f32 %v6412_v19, %v6274_v29  ;;  %v6604_v1 = vadd.f32 %v6569_v58, %v6448_v20  ;;  %v6449_v52 = vadd.f32 %v6414_v2, %v6276_v32  ;;  %v22890_v49 = vld [vmem:[#allocation55_spill] sm:$0xff]  ;;  %v22894_v2 = vld [vmem:[#allocation96_spill] sm:$0xff]  ;;  %v22909_v43 = vld [vmem:[#allocation125_spill] sm:$0xff] }
 0x451   : > { %22884 = vst [vmem:[#allocation463_spill] sm:$0xff] %v18247_v9  ;;  %v7062_v36 = vpop.permute.xlu1 %7061  ;;  %5688 = vmatprep.mubr.f32.mxu0 %v17975_v54  ;;  %12187 = vmatpush3.msra.mxu1 %v22888_v25  ;;  %v6744_v19 = vsel %vm1391_vm9, %v18179_v53, %v18187_v35  ;;  %v22893_v54 = vld [vmem:[#allocation56_spill] sm:$0xff]  ;;  %v22895_v53 = vld [vmem:[#allocation99_spill] sm:$0xff] }
 0x452   : > { %12188 = vmatprep.subr.mxu1 %v22889_v56  ;;  %12146 = vmatprep.subr.mxu0 %v22890_v49  ;;  %v6779_v48 = vadd.f32 %v6743_v7, %v6604_v1  ;;  %v6605_v29 = vadd.f32 %v6570_v63, %v6449_v52  ;;  %v6603_v61 = vadd.f32 %v18135_v62, %v6447_v31  ;;  %v22896_v1 = vld [vmem:[#allocation57_spill] sm:$0xff]  ;;  %v22898_v63 = vld [vmem:[#allocation62_spill] sm:$0xff] }
 0x453   : > { %12189 = vmatpush3.msra.mxu1 %v22892_v38  ;;  %12147 = vmatpush3.msra.mxu0 %v22893_v54  ;;  %v6917_v7 = vsel %vm1580_vm10, %v6893_v11, %v18247_v9  ;;  %v22897_v38 = vld [vmem:[#allocation103_spill] sm:$0xff]  ;;  %v22900_v11 = vld [vmem:[#allocation65_spill] sm:$0xff]  ;;  %v22936_v9 = vld [vmem:[#allocation122_spill] sm:$0xff] }
 0x454   : > { %v7064_v39 = vpop.permute.xlu0 %7063  ;;  %5690 = vmatmul.mubr.f32.gmra.mxu0 %v17967_v13  ;;  %12190 = vmatprep.subr.mxu1 %v22894_v2  ;;  %v6952_v32 = vadd.f32 %v6916_v18, %v6779_v48  ;;  %v6780_v25 = vadd.f32 %v6744_v19, %v6605_v29  ;;  %v6778_v13 = vadd.f32 %v18163_v6, %v6603_v61  ;;  %v22899_v18 = vld [vmem:[#allocation104_spill] sm:$0xff]  ;;  %v22901_v19 = vld [vmem:[#allocation115_spill] sm:$0xff] }
 0x455   : > { %v18272_v58 = vpop.permute.xlu1 %7065  ;;  %v7087_v20 = vsel %vm1760_vm11, %v7062_v36, %v7064_v39  ;;  %12191 = vmatpush3.msra.mxu1 %v22895_v53  ;;  %12148 = vmatprep.subr.mxu0 %v22896_v1  ;;  %v22902_v29 = vld [vmem:[#allocation68_spill] sm:$0xff] }
 0x456   : > { %22891 = vst [vmem:[#allocation465_spill] sm:$0xff] %v18272_v58  ;;  %12192 = vmatprep.subr.mxu1 %v22897_v38  ;;  %12149 = vmatpush3.msra.mxu0 %v22898_v63  ;;  %v7123_v52 = vadd.f32 %v7087_v20, %v6952_v32  ;;  %v7088_v62 = vsel %vm1760_vm11, %v7064_v39, %v18272_v58  ;;  %v22903_v6 = vld [vmem:[#allocation116_spill] sm:$0xff]  ;;  %v22904_v20 = vld [vmem:[#allocation70_spill] sm:$0xff] }
 0x457   : > { %12193 = vmatpush3.msra.mxu1 %v22899_v18  ;;  %12150 = vmatprep.subr.mxu0 %v22900_v11  ;;  %v6953_v48 = vadd.f32 %v6917_v7, %v6780_v25  ;;  %v6951_v53 = vadd.f32 %v18215_v12, %v6778_v13  ;;  %v22906_v32 = vld [vmem:[#allocation124_spill] sm:$0xff]  ;;  %v22907_v18 = vld [vmem:[#allocation78_spill] sm:$0xff]  ;;  %v22910_v12 = vld [vmem:[#allocation79_spill] sm:$0xff] }
 0x458   : > { %v7235_v56 = vpop.permute.xlu0 %7234  ;;  %12194 = vmatprep.subr.mxu1 %v22901_v19  ;;  %12151 = vmatpush3.msra.mxu0 %v22902_v29  ;;  %v22908_v25 = vld [vmem:[#allocation188_spill] sm:$0xff]  ;;  %v22935_v58 = vld [vmem:[#allocation174_spill] sm:$0xff] }
 0x459   : > { %v7237_v31 = vpop.permute.xlu1 %7236  ;;  %12195 = vmatpush3.msra.mxu1 %v22903_v6  ;;  %12152 = vmatprep.subr.mxu0 %v22904_v20  ;;  %v7124_v39 = vadd.f32 %v7088_v62, %v6953_v48  ;;  %v7122_v7 = vadd.f32 %v7062_v36, %v6951_v53  ;;  %v22912_v62 = vld [vmem:[#allocation80_spill] sm:$0xff]  ;;  %v22914_v53 = vld [vmem:[#allocation135_spill] sm:$0xff] }
 0x45a   : > { %v7260_v2 = vsel %vm1949_vm12, %v7235_v56, %v7237_v31  ;;  %12196 = vmatprep.subr.mxu1 %v22906_v32  ;;  %12153 = vmatpush3.msra.mxu0 %v22907_v18  ;;  %v18308_v6 = vld [vmem:[#allocation2 + $0x1] sm:$0xff] }
 0x45b   : > { %v7296_v38 = vadd.f32 %v7260_v2, %v7123_v52  ;;  %12197 = vmatpush3.msra.mxu1 %v22909_v43  ;;  %12154 = vmatprep.subr.mxu0 %v22910_v12  ;;  %v22911_v52 = vld [vmem:[#allocation127_spill] sm:$0xff]  ;;  %v7295_v48 = vadd.f32 %v7235_v56, %v7122_v7  ;;  %22913 = vst [vmem:[#allocation469_spill] sm:$0xff] %v18308_v6  ;;  %v22918_v56 = vld [vmem:[#allocation138_spill] sm:$0xff]  ;;  %v22919_v7 = vld [vmem:[#allocation144_spill] sm:$0xff] }
 0x45c   : > { %v18297_v61 = vpop.permute.xlu0 %7238  ;;  %12198 = vmatprep.subr.mxu1 %v22911_v52  ;;  %12155 = vmatpush3.msra.mxu0 %v22912_v62  ;;  %v18312_v36 = vrot.slane %v18308_v6, %v22851_v37  ;;  %v18323_v32 = vrot.slane %v18308_v6, %v22829_v44  ;;  %v22927_v6 = vld [vmem:[#allocation102_spill] sm:$0xff] }
 0x45d   : > { %22905 = vst [vmem:[#allocation468_spill] sm:$0xff] %v18297_v61  ;;  %v7314_v41 = vadd.f32 %v7296_v38, %v22908_v25  ;;  %v7261_v19 = vsel %vm1949_vm12, %v7237_v31, %v18297_v61  ;;  %12199 = vmatpush3.msra.mxu1 %v22914_v53  ;;  %v22915_v31 = vld [vmem:[#allocation91_spill] sm:$0xff]  ;;  %v22916_v38 = vld [vmem:[#allocation137_spill] sm:$0xff]  ;;  %v7313_v52 = vadd.f32 %v7295_v48, %v22908_v25  ;;  %v22926_v48 = vld [vmem:[#allocation34_spill] sm:$0xff] }
 0x45e   : > { %v7297_v13 = vadd.f32 %v7261_v19, %v7124_v39  ;;  %12156 = vmatprep.subr.mxu0 %v22915_v31  ;;  %12200 = vmatprep.subr.mxu1 %v22916_v38  ;;  %v22917_v39 = vld [vmem:[#allocation94_spill] sm:$0xff]  ;;  %v22920_v19 = vld [vmem:[#allocation100_spill] sm:$0xff]  ;;  %v22933_v61 = vld [vmem:[#allocation37_spill] sm:$0xff] }
 0x45f   : > { %v7332_v2 = vmax.f32 %v7314_v41, 0.0  ;;  %12157 = vmatpush3.msra.mxu0 %v22917_v39  ;;  %12201 = vmatpush3.msra.mxu1 %v22918_v56  ;;  %v22922_v38 = vld [vmem:[#allocation146_spill] sm:$0xff] }
 0x460   : > { %v7315_v43 = vadd.f32 %v7297_v13, %v22908_v25  ;;  %12202 = vmatprep.subr.mxu1 %v22919_v7  ;;  %12158 = vmatprep.subr.mxu0 %v22920_v19  ;;  %v22921_v13 = vld [vmem:[#allocation36_spill] sm:$0xff]  ;;  %v18340_v7 = vrot.slane %v22926_v48, %v22851_v37  ;;  %v7331_v25 = vmax.f32 %v7313_v52, 0.0 }
 0x461   : > { %7378 = vrot.lane.b32.xlu0 %v7332_v2, %s13216_s16  ;;  %v7010_v53 = vmul.f32 %v18312_v36, %v22921_v13  ;;  %12203 = vmatpush3.msra.mxu1 %v22922_v38  ;;  %v22924_v2 = vld [vmem:[#allocation153_spill] sm:$0xff]  ;;  %v7011_v56 = vmul.f32 %v18323_v32, %v22921_v13  ;;  %v22928_v38 = vld [vmem:[#allocation155_spill] sm:$0xff]  ;;  %v22934_v52 = vld [vmem:[#allocation112_spill] sm:$0xff] }
 0x462   : > { %v7333_v41 = vmax.f32 %v7315_v43, 0.0  ;;  %12159 = vmatpush3.msra.mxu0 %v22923_v33  ;;  %12204 = vmatprep.subr.mxu1 %v22924_v2  ;;  %v22925_v43 = vld [vmem:[#allocation154_spill] sm:$0xff]  ;;  %v22932_v13 = vld [vmem:[#allocation173_spill] sm:$0xff] }
 0x463   : > { %12205 = vmatpush3.msra.mxu1 %v22925_v43  ;;  %12160 = vmatprep.subr.mxu0 %v22927_v6  ;;  %v22929_v2 = vld [vmem:[#allocation110_spill] sm:$0xff]  ;;  %v22931_v43 = vld [vmem:[#allocation111_spill] sm:$0xff] }
 0x464   : > { %7380 = vrot.lane.b32.xlu1 %v7333_v41, %s13216_s16  ;;  %12206 = vmatprep.subr.mxu1 %v22928_v38  ;;  %v18346_v41 = vrot.slane %v22926_v48, %v22829_v44  ;;  %v7183_v38 = vmul.f32 %v18340_v7, %v22933_v61 }
 0x465   : > { %7049 = vrot.lane.b32.xlu0 %v7010_v53, %s13225_s8  ;;  %12161 = vmatpush3.msra.mxu0 %v22929_v2  ;;  %v22930_v53 = vld [vmem:[#allocation168_spill] sm:$0xff] }
 0x466   : > { %12207 = vmatpush3.msra.mxu1 %v22930_v53  ;;  %12162 = vmatprep.subr.mxu0 %v22931_v43  ;;  %v7184_v48 = vmul.f32 %v18346_v41, %v22933_v61  ;;  %v22937_v53 = vld [vmem:[#allocation175_spill] sm:$0xff] }
 0x467   : > { %12208 = vmatprep.subr.mxu1 %v22932_v13  ;;  %12163 = vmatpush3.msra.mxu0 %v22934_v52  ;;  %v22940_v13 = vld [vmem:[#allocation31_spill] sm:$0xff] }
 0x468   : > { %7051 = vrot.lane.b32.xlu1 %v7011_v56, %s13225_s8  ;;  %12209 = vmatpush3.msra.mxu1 %v22935_v58  ;;  %v22938_v56 = vld [vmem:[#allocation123_spill] sm:$0xff]  ;;  %v5999_v35 = vmul.f32 %v18051_v15, %v22940_v13  ;;  %v22942_v58 = vld [vmem:[#allocation181_spill] sm:$0xff]  ;;  %v6000_v61 = vmul.f32 %v18071_v5, %v22940_v13  ;;  %v22947_v15 = vld [vmem:[#allocation38_spill] sm:$0xff] }
 0x469   : > { %7376 = vrot.lane.b32.xlu0 %v7331_v25, %s13216_s16  ;;  %12164 = vmatprep.subr.mxu0 %v22936_v9  ;;  %v22939_v25 = vld [vmem:[#allocation180_spill] sm:$0xff]  ;;  %v6173_v5 = vmul.f32 %v18107_v14, %v22947_v15  ;;  %v22950_v13 = vld [vmem:[#allocation150_spill] sm:$0xff] }
 0x46a   : > { %12210 = vmatprep.subr.mxu1 %v22937_v53  ;;  %12165 = vmatpush3.msra.mxu0 %v22938_v56  ;;  %v22944_v53 = vld [vmem:[#allocation184_spill] sm:$0xff] }
 0x46b   : > { %12211 = vmatpush3.msra.mxu1 %v22939_v25  ;;  %12166 = vmatprep.subr.mxu0 %v22941_v22  ;;  %v6172_v25 = vmul.f32 %v18081_v60, %v22947_v15  ;;  %v22953_v60 = vld [vmem:[#allocation39_spill] sm:$0xff]  ;;  %v22956_v15 = vld [vmem:[#allocation162_spill] sm:$0xff] }
 0x46c   : > { %7222 = vrot.lane.b32.xlu1 %v7183_v38, %s13226_s13  ;;  %12212 = vmatprep.subr.mxu1 %v22942_v58  ;;  %v22945_v38 = vld [vmem:[#allocation134_spill] sm:$0xff]  ;;  %v22949_v58 = vld [vmem:[#allocation187_spill] sm:$0xff]  ;;  %v6346_v14 = vmul.f32 %v18125_v27, %v22953_v60  ;;  %v22961_v27 = vld [vmem:[#allocation40_spill] sm:$0xff] }
 0x46d   : > { %7224 = vrot.lane.b32.xlu0 %v7184_v48, %s13226_s13  ;;  %12167 = vmatpush3.msra.mxu0 %v22943_v23  ;;  %v22946_v48 = vld [vmem:[#allocation186_spill] sm:$0xff] }
 0x46e   : > { %12213 = vmatpush3.msra.mxu1 %v22944_v53  ;;  %12168 = vmatprep.subr.mxu0 %v22945_v38  ;;  %v6345_v53 = vmul.f32 %v18099_v55, %v22953_v60 }
 0x46f   : > { %12214 = vmatprep.subr.mxu1 %v22946_v48  ;;  %12169 = vmatpush3.msra.mxu0 %v22948_v50  ;;  %v22954_v48 = vld [vmem:[#allocation160_spill] sm:$0xff] }
 0x470   : > { %6048 = vrot.lane.b32.xlu1 %v5999_v35, %s13209_s21  ;;  %12215 = vmatpush3.msra.mxu1 %v22949_v58  ;;  %v22951_v35 = vld [vmem:[#allocation151_spill] sm:$0xff]  ;;  %v22955_v58 = vld [vmem:[#allocation161_spill] sm:$0xff] }
 0x471   : > { %6050 = vrot.lane.b32.xlu0 %v6000_v61, %s13209_s21  ;;  %12170 = vmatprep.subr.mxu0 %v22950_v13  ;;  %v22952_v61 = vld [vmem:[#allocation152_spill] sm:$0xff] }
 0x472   : > { %12260 = vmatprep.subr.mxu1 %v22890_v49  ;;  %12171 = vmatpush3.msra.mxu0 %v22951_v35 }
 0x473   : > { %12172 = vmatprep.subr.mxu0 %v22952_v61 }
 0x474   : > { %6221 = vrot.lane.b32.xlu1 %v6172_v25, %s21916_s14  ;;  %12173 = vmatpush3.msra.mxu0 %v22954_v48  ;;  %v22957_v25 = vld [vmem:[#allocation172_spill] sm:$0xff] }
 0x475   : > { %6223 = vrot.lane.b32.xlu0 %v6173_v5, %s21916_s14  ;;  %12174 = vmatprep.subr.mxu0 %v22955_v58  ;;  %v22958_v5 = vld [vmem:[#allocation33_spill] sm:$0xff] }
 0x476   : > { %12175 = vmatpush3.msra.mxu0 %v22956_v15  ;;  %v6509_v21 = vmul.f32 %v18131_v10, %v22958_v5  ;;  %v6510_v55 = vmul.f32 %v18153_v34, %v22958_v5  ;;  %v22962_v10 = vld [vmem:[#allocation41_spill] sm:$0xff] }
 0x477   : > { %12176 = vmatprep.subr.mxu0 %v22957_v25  ;;  %v6848_v60 = vmul.f32 %v18185_v8, %v22962_v10  ;;  %v6849_v34 = vmul.f32 %v18196_v46, %v22962_v10  ;;  %v22983_v10 = vld [vmem:[#allocation118_spill] sm:$0xff]  ;;  %v22989_v5 = vld [vmem:[#allocation141_spill] sm:$0xff] }
 0x478   : > { %6394 = vrot.lane.b32.xlu1 %v6345_v53, %s13222_s22  ;;  %12177 = vmatpush3.msra.mxu0 %v22959_v24  ;;  %v6675_v53 = vmul.f32 %v18157_v4, %v22961_v27 }
 0x479   : > { %6396 = vrot.lane.b32.xlu0 %v6346_v14, %s13222_s22  ;;  %12222 = vmatprep.subr.mxu0 %v22960_v40  ;;  %v6676_v14 = vmul.f32 %v18177_v17, %v22961_v27  ;;  %v22964_v40 = vld [vmem:[#allocation43_spill] sm:$0xff]  ;;  %v22986_v27 = vld [vmem:[#allocation130_spill] sm:$0xff] }
 0x47a   : > { %v7192_v8 = vmul.f32 %v18340_v7, %v22964_v40  ;;  %v7193_v46 = vmul.f32 %v18346_v41, %v22964_v40  ;;  %v22977_v40 = vld [vmem:[#allocation87_spill] sm:$0xff] }
 0x47c   : > { %6552 = vrot.lane.b32.xlu1 %v6509_v21, %s13220_s19  ;;  %v22963_v21 = vld [vmem:[#allocation42_spill] sm:$0xff] }
 0x47d   : > { %6554 = vrot.lane.b32.xlu0 %v6510_v55, %s13220_s19  ;;  %v7019_v4 = vmul.f32 %v18312_v36, %v22963_v21  ;;  %v7020_v17 = vmul.f32 %v18323_v32, %v22963_v21  ;;  %v22980_v21 = vld [vmem:[#allocation107_spill] sm:$0xff] }
 0x480   : > { %6723 = vrot.lane.b32.xlu1 %v6675_v53, %s13223_s23 }
 0x481   : > { %6725 = vrot.lane.b32.xlu0 %v6676_v14, %s13223_s23 }
 0x484   : > { %6896 = vrot.lane.b32.xlu1 %v6848_v60, %s13224_s29 }
 0x485   : > { %6898 = vrot.lane.b32.xlu0 %v6849_v34, %s13224_s29 }
 0x488   : > { %7067 = vrot.lane.b32.xlu1 %v7019_v4, %s13225_s8 }
 0x489   : > { %7069 = vrot.lane.b32.xlu0 %v7020_v17, %s13225_s8 }
 0x48c   : > { %7240 = vrot.lane.b32.xlu1 %v7192_v8, %s13226_s13 }
 0x48d   : > { %7242 = vrot.lane.b32.xlu0 %v7193_v46, %s13226_s13 }
 0x4a0   : > { %v18432_v60 = vpop.permute.xlu0 %7362  ;;  %v7361_v36 = vpop.permute.xlu1 %7360 }
 0x4a1   : > { %22965 = vst [vmem:[#allocation472_spill] sm:$0xff] %v18432_v60  ;;  %v7395_v32 = vsel %vm1816_vm5, %v7361_v36, %v18432_v60  ;;  %v22974_v60 = vld [vmem:[#allocation77_spill] sm:$0xff] }
 0x4a2   : > { %v18436_v55 = vand.u32 4294901760, %v7395_v32 }
 0x4a4   : > { %v18439_v53 = vsub.f32 %v7395_v32, %v18436_v55  ;;  %7778 = vmatprep.mubr.f32.mxu1 %v18436_v55 }
 0x4a6   : > { %v7359_v7 = vpop.permute.xlu1 %7358  ;;  %v21628_v41 = vand.u32 4294901760, %v18439_v53  ;;  %v18461_v32 = vpop.permute.xlu0 %6030 }
 0x4a7   : > { %v7394_v14 = vsel %vm1816_vm5, %v7359_v7, %v7361_v36 }
 0x4a8   : > { %v18444_v34 = vand.u32 4294901760, %v7394_v14  ;;  %v7525_v4 = vsub.f32 %v18439_v53, %v21628_v41  ;;  %v22971_v41 = vld [vmem:[#allocation69_spill] sm:$0xff] }
 0x4aa   : > { %22966 = vst [vmem:[#allocation20_spill] sm:$0xff] %v18444_v34  ;;  %v18450_v17 = vsub.f32 %v7394_v14, %v18444_v34  ;;  %7780 = vmatmul.mubr.f32.vlgmr.msra.gmra.mxu1 %v18444_v34  ;;  %v7526_v8 = vand.u32 4294901760, %v7525_v4  ;;  %v22968_v4 = vld [vmem:[#allocation60_spill] sm:$0xff] }
 0x4ab   : > { %12261 = vmatpush3.msra.mxu1 %v22893_v54  ;;  %v18466_v14 = vpop.permute.xlu1 %6032 }
 0x4ac   : > { %v21627_v46 = vand.u32 4294901760, %v18450_v17  ;;  %7527 = vmatprep.mubr.f32.mxu0 %v7526_v8  ;;  %12262 = vmatprep.subr.mxu1 %v22896_v1  ;;  %22967 = vst [vmem:[#allocation15_spill] sm:$0xff] %v18466_v14  ;;  %v22969_v8 = vld [vmem:[#allocation61_spill] sm:$0xff] }
 0x4ad   : > { %12263 = vmatpush3.msra.mxu1 %v22898_v63 }
 0x4ae   : > { %v7531_v36 = vsub.f32 %v18450_v17, %v21627_v46  ;;  %12264 = vmatprep.subr.mxu1 %v22900_v11  ;;  %v18473_v46 = vpop.permute.xlu0 %6203 }
 0x4af   : > { %12265 = vmatpush3.msra.mxu1 %v22902_v29 }
 0x4b0   : > { %v7532_v7 = vand.u32 4294901760, %v7531_v36  ;;  %12266 = vmatprep.subr.mxu1 %v22904_v20  ;;  %v22970_v36 = vld [vmem:[#allocation67_spill] sm:$0xff] }
 0x4b1   : > { %12267 = vmatpush3.msra.mxu1 %v22907_v18 }
 0x4b2   : > { %7533 = vmatmul.mubr.f32.vlgmr.msra.gmra.mxu0 %v7532_v7  ;;  %12268 = vmatprep.subr.mxu1 %v22910_v12  ;;  %v22972_v7 = vld [vmem:[#allocation76_spill] sm:$0xff] }
 0x4b3   : > { %12223 = vmatpush3.msra.mxu0 %v22968_v4  ;;  %12269 = vmatpush3.msra.mxu1 %v22912_v62  ;;  %v18481_v4 = vpop.permute.xlu1 %6205 }
 0x4b4   : > { %12224 = vmatprep.subr.mxu0 %v22969_v8  ;;  %12270 = vmatprep.subr.mxu1 %v22915_v31  ;;  %22973 = vst [vmem:[#allocation450_spill] sm:$0xff] %v18481_v4  ;;  %v22975_v8 = vld [vmem:[#allocation84_spill] sm:$0xff] }
 0x4b5   : > { %12225 = vmatpush3.msra.mxu0 %v22970_v36  ;;  %12271 = vmatpush3.msra.mxu1 %v22917_v39  ;;  %v22976_v36 = vld [vmem:[#allocation86_spill] sm:$0xff] }
 0x4b6   : > { %12226 = vmatprep.subr.mxu0 %v22971_v41  ;;  %12272 = vmatprep.subr.mxu1 %v22920_v19  ;;  %v6377_v41 = vpop.permute.xlu0 %6376 }
 0x4b7   : > { %12227 = vmatpush3.msra.mxu0 %v22972_v7  ;;  %12273 = vmatpush3.msra.mxu1 %v22923_v33  ;;  %v22978_v7 = vld [vmem:[#allocation97_spill] sm:$0xff] }
 0x4b8   : > { %12228 = vmatprep.subr.mxu0 %v22974_v60  ;;  %12274 = vmatprep.subr.mxu1 %v22927_v6  ;;  %v22979_v60 = vld [vmem:[#allocation98_spill] sm:$0xff] }
 0x4b9   : > { %12229 = vmatpush3.msra.mxu0 %v22975_v8  ;;  %12275 = vmatpush3.msra.mxu1 %v22929_v2  ;;  %v18495_v8 = vpop.permute.xlu1 %6378 }
 0x4ba   : > { %12230 = vmatprep.subr.mxu0 %v22976_v36  ;;  %12276 = vmatprep.subr.mxu1 %v22931_v43  ;;  %v22981_v36 = vld [vmem:[#allocation108_spill] sm:$0xff] }
 0x4bb   : > { %12231 = vmatpush3.msra.mxu0 %v22977_v40  ;;  %12277 = vmatpush3.msra.mxu1 %v22934_v52  ;;  %v22982_v40 = vld [vmem:[#allocation109_spill] sm:$0xff] }
 0x4bc   : > { %12232 = vmatprep.subr.mxu0 %v22978_v7  ;;  %12278 = vmatprep.subr.mxu1 %v22936_v9  ;;  %v6537_v7 = vpop.permute.xlu0 %6536 }
 0x4bd   : > { %12233 = vmatpush3.msra.mxu0 %v22979_v60  ;;  %12279 = vmatpush3.msra.mxu1 %v22938_v56  ;;  %v22984_v60 = vld [vmem:[#allocation119_spill] sm:$0xff] }
 0x4be   : > { %12234 = vmatprep.subr.mxu0 %v22980_v21  ;;  %12280 = vmatprep.subr.mxu1 %v22941_v22  ;;  %v22985_v21 = vld [vmem:[#allocation121_spill] sm:$0xff] }
 0x4bf   : > { %12235 = vmatpush3.msra.mxu0 %v22981_v36  ;;  %12281 = vmatpush3.msra.mxu1 %v22943_v23  ;;  %v18509_v36 = vpop.permute.xlu1 %6538 }
 0x4c0   : > { %12236 = vmatprep.subr.mxu0 %v22982_v40  ;;  %12282 = vmatprep.subr.mxu1 %v22945_v38  ;;  %v22987_v40 = vld [vmem:[#allocation131_spill] sm:$0xff] }
 0x4c1   : > { %12237 = vmatpush3.msra.mxu0 %v22983_v10  ;;  %12283 = vmatpush3.msra.mxu1 %v22948_v50  ;;  %v22988_v10 = vld [vmem:[#allocation140_spill] sm:$0xff] }
 0x4c2   : > { %12238 = vmatprep.subr.mxu0 %v22984_v60  ;;  %12284 = vmatprep.subr.mxu1 %v22950_v13  ;;  %v6706_v60 = vpop.permute.xlu0 %6705  ;;  %v23002_v13 = vld [vmem:[#allocation177_spill] sm:$0xff] }
 0x4c3   : > { %12239 = vmatpush3.msra.mxu0 %v22985_v21  ;;  %12285 = vmatpush3.msra.mxu1 %v22951_v35  ;;  %v22990_v21 = vld [vmem:[#allocation142_spill] sm:$0xff] }
 0x4c4   : > { %12240 = vmatprep.subr.mxu0 %v22986_v27  ;;  %12286 = vmatprep.subr.mxu1 %v22952_v61  ;;  %v22991_v27 = vld [vmem:[#allocation149_spill] sm:$0xff] }
 0x4c5   : > { %12241 = vmatpush3.msra.mxu0 %v22987_v40  ;;  %12287 = vmatpush3.msra.mxu1 %v22954_v48  ;;  %v22992_v40 = vld [vmem:[#allocation456_spill] sm:$0xff]  ;;  %v22998_v48 = vld [vmem:[#allocation45_spill] sm:$0xff] }
 0x4c6   : > { %12242 = vmatprep.subr.mxu0 %v22988_v10  ;;  %12288 = vmatprep.subr.mxu1 %v22955_v58  ;;  %v18525_v34 = vrot.slane %v22992_v40, %v22851_v37  ;;  %v18527_v10 = vpop.permute.xlu1 %6707  ;;  %v22993_v58 = vld [vmem:[#allocation157_spill] sm:$0xff]  ;;  %v6879_v37 = vpop.permute.xlu0 %6878 }
 0x4c7   : > { %12243 = vmatpush3.msra.mxu0 %v22989_v5  ;;  %12289 = vmatpush3.msra.mxu1 %v22956_v15  ;;  %v18533_v5 = vrot.slane %v22992_v40, %v22829_v44  ;;  %v22997_v15 = vld [vmem:[#allocation166_spill] sm:$0xff]  ;;  %v22999_v44 = vld [vmem:[#allocation167_spill] sm:$0xff] }
 0x4c8   : > { %12244 = vmatprep.subr.mxu0 %v22990_v21  ;;  %12290 = vmatprep.subr.mxu1 %v22957_v25  ;;  %v22994_v21 = vld [vmem:[#allocation158_spill] sm:$0xff]  ;;  %v22995_v25 = vld [vmem:[#allocation159_spill] sm:$0xff] }
 0x4c9   : > { %12245 = vmatpush3.msra.mxu0 %v22991_v27  ;;  %12291 = vmatpush3.msra.mxu1 %v22959_v24  ;;  %v22996_v27 = vld [vmem:[#allocation453_spill] sm:$0xff]  ;;  %v5907_v40 = vmul.f32 %v18533_v5, %v22998_v48 }
 0x4ca   : > { %12246 = vmatprep.subr.mxu0 %v22993_v58  ;;  %12336 = vmatprep.subr.mxu1 %v22890_v49  ;;  %v6061_v24 = vsel %vm658_vm2, %v22996_v27, %v18461_v32  ;;  %v5906_v58 = vmul.f32 %v18525_v34, %v22998_v48  ;;  %v6062_v49 = vsel %vm658_vm2, %v18461_v32, %v18466_v14  ;;  %v23001_v27 = vld [vmem:[#allocation169_spill] sm:$0xff]  ;;  %v18556_v35 = vpop.permute.xlu1 %6880 }
 0x4cb   : > { %12247 = vmatpush3.msra.mxu0 %v22994_v21  ;;  %v23000_v21 = vld [vmem:[#allocation454_spill] sm:$0xff]  ;;  %v6096_v32 = vadd.f32 %v6062_v49, %v5907_v40 }
 0x4cc   : > { %12248 = vmatprep.subr.mxu0 %v22995_v25  ;;  %v6234_v25 = vsel %vm848_vm7, %v23000_v21, %v18473_v46  ;;  %v6095_v61 = vadd.f32 %v6061_v24, %v5906_v58  ;;  %v23004_v21 = vld [vmem:[#allocation183_spill] sm:$0xff] }
 0x4cd   : > { %12249 = vmatpush3.msra.mxu0 %v22997_v15  ;;  %v6235_v15 = vsel %vm848_vm7, %v18473_v46, %v18481_v4  ;;  %v23005_v24 = vld [vmem:[#allocation63_spill] sm:$0xff]  ;;  %v6564_v46 = vsel %vm432_vm6, %v17900_v51, %v6537_v7 }
 0x4ce   : > { %12250 = vmatprep.subr.mxu0 %v22999_v44  ;;  %v23003_v44 = vld [vmem:[#allocation455_spill] sm:$0xff]  ;;  %v6268_v38 = vadd.f32 %v6234_v25, %v6095_v61  ;;  %v6269_v58 = vadd.f32 %v6235_v15, %v6096_v32  ;;  %v6738_v15 = vsel %vm1391_vm9, %v6706_v60, %v18527_v10 }
 0x4cf   : > { %12251 = vmatpush3.msra.mxu0 %v23001_v27  ;;  %v6407_v14 = vsel %vm1036_vm8, %v23003_v44, %v6377_v41  ;;  %v6408_v27 = vsel %vm1036_vm8, %v6377_v41, %v18495_v8  ;;  %v6737_v44 = vsel %vm1391_vm9, %v17919_v42, %v6706_v60 }
 0x4d0   : > { %12252 = vmatprep.subr.mxu0 %v23002_v13  ;;  %v6441_v4 = vadd.f32 %v6407_v14, %v6268_v38  ;;  %v6565_v13 = vsel %vm432_vm6, %v6537_v7, %v18509_v36  ;;  %v6442_v49 = vadd.f32 %v6408_v27, %v6269_v58  ;;  %v6910_v38 = vsel %vm1580_vm10, %v17939_v16, %v6879_v37 }
 0x4d1   : > { %12253 = vmatpush3.msra.mxu0 %v23004_v21  ;;  %v6911_v7 = vsel %vm1580_vm10, %v6879_v37, %v18556_v35 }
 0x4d2   : > { %12298 = vmatprep.subr.mxu0 %v23005_v24  ;;  %v6597_v25 = vadd.f32 %v6564_v46, %v6441_v4  ;;  %v6598_v51 = vadd.f32 %v6565_v13, %v6442_v49 }
 0x4d3   : > { %v7379_v50 = vpop.permute.xlu0 %7378 }
 0x4d4   : > { %v6772_v14 = vadd.f32 %v6737_v44, %v6597_v25  ;;  %v6773_v4 = vadd.f32 %v6738_v15, %v6598_v51 }
 0x4d6   : > { %v18569_v40 = vpop.permute.xlu1 %7380  ;;  %v6945_v24 = vadd.f32 %v6910_v38, %v6772_v14  ;;  %v6946_v46 = vadd.f32 %v6911_v7, %v6773_v4  ;;  %v23006_v38 = vand.u32 4294901760, %v18439_v53 }
 0x4d7   : > { %v7050_v61 = vpop.permute.xlu0 %7049  ;;  %v7403_v41 = vsel %vm1816_vm5, %v7379_v50, %v18569_v40 }
 0x4d8   : > { %v18577_v32 = vand.u32 4294901760, %v7403_v41  ;;  %v7081_v60 = vsel %vm1760_vm11, %v17999_v0, %v7050_v61 }
 0x4d9   : > { %v7116_v49 = vadd.f32 %v7081_v60, %v6945_v24 }
 0x4da   : > { %v18584_v42 = vsub.f32 %v7403_v41, %v18577_v32  ;;  %7785 = vmatprep.mubr.f32.mxu1 %v18577_v32  ;;  %v18587_v21 = vpop.permute.xlu1 %7051 }
 0x4db   : > { %v7377_v27 = vpop.permute.xlu0 %7376  ;;  %v7082_v16 = vsel %vm1760_vm11, %v7050_v61, %v18587_v21 }
 0x4dc   : > { %v7402_v58 = vsel %vm1816_vm5, %v7377_v27, %v7379_v50  ;;  %v7539_v37 = vand.u32 4294901760, %v18584_v42  ;;  %v7117_v0 = vadd.f32 %v7082_v16, %v6946_v46 }
 0x4dd   : > { %v18595_v13 = vand.u32 4294901760, %v7402_v58 }
 0x4de   : > { %v7223_v44 = vpop.permute.xlu1 %7222  ;;  %v7540_v41 = vsub.f32 %v18584_v42, %v7539_v37 }
 0x4df   : > { %v18599_v25 = vsub.f32 %v7402_v58, %v18595_v13  ;;  %v18601_v15 = vpop.permute.xlu0 %7224  ;;  %7787 = vmatmul.mubr.f32.gmra.mxu1 %v18595_v13  ;;  %v7254_v50 = vsel %vm1949_vm12, %v18012_v59, %v7223_v44  ;;  %v23007_v59 = vand.u32 4294901760, %v18450_v17 }
 0x4e0   : > { %v7255_v61 = vsel %vm1949_vm12, %v7223_v44, %v18601_v15  ;;  %v7289_v51 = vadd.f32 %v7254_v50, %v7116_v49  ;;  %8038 = vmatprep.mubr.f32.mxu1 %v23006_v38  ;;  %v7541_v14 = vand.u32 4294901760, %v7540_v41  ;;  %v13140_v50 = vld [vmem:[#allocation2] sm:$0xff] }
 0x4e1   : > { %v7290_v7 = vadd.f32 %v7255_v61, %v7117_v0  ;;  %v7545_v4 = vand.u32 4294901760, %v18599_v25  ;;  %v23009_v61 = vld [vmem:[#allocation7_spill] sm:$0xff]  ;;  %v23012_v38 = vld [vmem:[#allocation64_spill] sm:$0xff] }
 0x4e2   : > { %v7307_v60 = vadd.f32 %v7289_v51, %v22824_v30  ;;  %7542 = vmatprep.mubr.f32.mxu0 %v7541_v14  ;;  %v6049_v27 = vpop.permute.xlu1 %6048  ;;  %v18626_v51 = vrot.slane %v13140_v50, %v23009_v61  ;;  %v23015_v14 = vld [vmem:[#allocation71_spill] sm:$0xff] }
 0x4e3   : > { %v7308_v24 = vadd.f32 %v7290_v7, %v22824_v30  ;;  %v18613_v58 = vpop.permute.xlu0 %6050  ;;  %8042 = vmatmul.mubr.f32.vlgmr.msra.gmra.mxu1 %v23007_v59  ;;  %v7546_v16 = vsub.f32 %v18599_v25, %v7545_v4  ;;  %v5916_v7 = vmul.f32 %v18533_v5, %v22873_v3  ;;  %v23018_v59 = vld [vmem:[#allocation82_spill] sm:$0xff] }
 0x4e4   : > { %v7325_v46 = vmax.f32 %v7307_v60, 0.0  ;;  %12337 = vmatpush3.msra.mxu1 %v22893_v54  ;;  %8049 = vmatprep.mubr.f32.mxu1 %v7539_v37  ;;  %v23010_v54 = vld [vmem:[#allocation189_spill] sm:$0xff]  ;;  %v5993_v37 = vmul.f32 %v18626_v51, %v22833_v47  ;;  %v5915_v60 = vmul.f32 %v18525_v34, %v22873_v3 }
 0x4e5   : > { %v7326_v49 = vmax.f32 %v7308_v24, 0.0  ;;  %12338 = vmatprep.subr.mxu1 %v22896_v1  ;;  %v7547_v44 = vand.u32 4294901760, %v7546_v16  ;;  %v18630_v1 = vrot.slane %v13140_v50, %v23010_v54  ;;  %v23022_v50 = vld [vmem:[#allocation317_spill] sm:$0xff] }
 0x4e6   : > { %12339 = vmatpush3.msra.mxu1 %v22898_v63  ;;  %7364 = vrot.lane.b32.xlu1 %v7325_v46, %s13216_s16  ;;  %v6222_v41 = vpop.permute.xlu1 %6221  ;;  %v23020_v46 = vld [vmem:[#allocation83_spill] sm:$0xff] }
 0x4e7   : > { %12340 = vmatprep.subr.mxu1 %v22900_v11  ;;  %v18623_v0 = vpop.permute.xlu0 %6223  ;;  %7548 = vmatmul.mubr.f32.gmra.mxu0 %v7547_v44 }
 0x4e8   : > { %23008 = vst [vmem:[#allocation51_spill] sm:$0xff] %v18623_v0  ;;  %8053 = vmatmul.mubr.f32.gmra.mxu1 %v7545_v4  ;;  %7366 = vrot.lane.b32.xlu0 %v7326_v49, %s13216_s16  ;;  %v23016_v4 = vld [vmem:[#allocation75_spill] sm:$0xff]  ;;  %v23021_v49 = vld [vmem:[#allocation192_spill] sm:$0xff] }
 0x4e9   : > { %12341 = vmatpush3.msra.mxu1 %v22902_v29  ;;  %7922 = vmatprep.mubr.f32.mxu0 %v18439_v53  ;;  %v5992_v29 = vmul.f32 %v18630_v1, %v22833_v47  ;;  %v23013_v53 = vld [vmem:[#allocation66_spill] sm:$0xff]  ;;  %v18702_v44 = vrot.slane %v23021_v49, %v23010_v54 }
 0x4ea   : > { %12342 = vmatprep.subr.mxu1 %v22904_v20  ;;  %8330 = vmatprep.mubr.f32.mxu1 %v18436_v55  ;;  %v6395_v63 = vpop.permute.xlu1 %6394  ;;  %v18652_v20 = vrot.slane %v22838_v26, %v23009_v61 }
 0x4eb   : > { %12343 = vmatpush3.msra.mxu1 %v22907_v18  ;;  %v18637_v11 = vpop.permute.xlu0 %6396  ;;  %7925 = vmatmul.mubr.f32.vlgmr.msra.gmra.mxu0 %v18450_v17  ;;  %v6070_v17 = vsel %vm658_vm2, %v6049_v27, %v18613_v58 }
 0x4ec   : > { %23011 = vst [vmem:[#allocation17_spill] sm:$0xff] %v18637_v11  ;;  %12344 = vmatprep.subr.mxu1 %v22910_v12  ;;  %12299 = vmatpush3.msra.mxu0 %v23012_v38  ;;  %v6416_v16 = vsel %vm1036_vm8, %v6395_v63, %v18637_v11  ;;  %v23156_v11 = vld [vmem:[#allocation213_spill] sm:$0xff] }
 0x4ed   : > { %12345 = vmatpush3.msra.mxu1 %v22912_v62  ;;  %6036 = vrot.lane.b32.xlu0 %v5993_v37, %s13209_s21  ;;  %v18660_v62 = vrot.slane %v22838_v26, %v23010_v54  ;;  %v6415_v37 = vsel %vm1036_vm8, %v23022_v50, %v6395_v63 }
 0x4ee   : > { %6034 = vrot.lane.b32.xlu1 %v5992_v29, %s13209_s21  ;;  %7931 = vmatprep.mubr.f32.mxu0 %v18584_v42  ;;  %v6553_v18 = vpop.permute.xlu1 %6552  ;;  %v6166_v42 = vmul.f32 %v18652_v20, %v22841_v28 }
 0x4ef   : > { %12300 = vmatprep.subr.mxu0 %v23013_v53  ;;  %12346 = vmatprep.subr.mxu1 %v22915_v31  ;;  %v18656_v12 = vpop.permute.xlu0 %6554  ;;  %v6069_v31 = vsel %vm658_vm2, %v18034_v45, %v6049_v27  ;;  %v6165_v26 = vmul.f32 %v18660_v62, %v22841_v28  ;;  %v18684_v45 = vrot.slane %v22843_v57, %v23009_v61 }
 0x4f0   : > { %23014 = vst [vmem:[#allocation8_spill] sm:$0xff] %v18656_v12  ;;  %12301 = vmatpush3.msra.mxu0 %v23015_v14  ;;  %12347 = vmatpush3.msra.mxu1 %v22917_v39  ;;  %v6243_v39 = vsel %vm848_vm7, %v6222_v41, %v18623_v0  ;;  %v6105_v27 = vadd.f32 %v6070_v17, %v5916_v7  ;;  %v23024_v17 = vld [vmem:[#allocation90_spill] sm:$0xff] }
 0x4f1   : > { %12302 = vmatprep.subr.mxu0 %v23016_v4  ;;  %12348 = vmatprep.subr.mxu1 %v22920_v19  ;;  %v23017_v19 = vld [vmem:[#allocation460_spill] sm:$0xff]  ;;  %v6572_v53 = vsel %vm432_vm6, %v6553_v18, %v18656_v12  ;;  %v23025_v14 = vld [vmem:[#allocation10_spill] sm:$0xff] }
 0x4f2   : > { %7934 = vmatmul.mubr.f32.gmra.mxu0 %v18599_v25  ;;  %12349 = vmatpush3.msra.mxu1 %v22923_v33  ;;  %v6724_v5 = vpop.permute.xlu1 %6723  ;;  %v6242_v24 = vsel %vm848_vm7, %v23017_v19, %v6222_v41  ;;  %v18694_v25 = vrot.slane %v22843_v57, %v23010_v54  ;;  %v6104_v33 = vadd.f32 %v6069_v31, %v5915_v60  ;;  %v23023_v57 = vld [vmem:[#allocation47_spill] sm:$0xff]  ;;  %v23027_v31 = vld [vmem:[#allocation92_spill] sm:$0xff] }
 0x4f3   : > { %12303 = vmatpush3.msra.mxu0 %v23018_v59  ;;  %6209 = vrot.lane.b32.xlu0 %v6166_v42, %s21916_s14  ;;  %v18690_v34 = vpop.permute.xlu0 %6725  ;;  %v6278_v41 = vadd.f32 %v6243_v39, %v6105_v27  ;;  %v18710_v38 = vrot.slane %v23021_v49, %v23023_v57  ;;  %v6339_v42 = vmul.f32 %v18684_v45, %v23025_v14  ;;  %v23029_v39 = vld [vmem:[#allocation93_spill] sm:$0xff]  ;;  %v23032_v59 = vld [vmem:[#allocation22_spill] sm:$0xff] }
 0x4f4   : > { %23019 = vst [vmem:[#allocation44_spill] sm:$0xff] %v18690_v34  ;;  %6207 = vrot.lane.b32.xlu1 %v6165_v26, %s21916_s14  ;;  %12304 = vmatprep.subr.mxu0 %v23020_v46  ;;  %v6277_v29 = vadd.f32 %v6242_v24, %v6104_v33  ;;  %v6338_v4 = vmul.f32 %v18694_v25, %v23025_v14  ;;  %v23031_v24 = vld [vmem:[#allocation105_spill] sm:$0xff]  ;;  %v23033_v49 = vld [vmem:[#allocation106_spill] sm:$0xff] }
 0x4f5   : > { %8219 = vmatprep.mubr.f32.mxu0 %v18436_v55  ;;  %12350 = vmatprep.subr.mxu1 %v22927_v6  ;;  %v6451_v7 = vadd.f32 %v6416_v16, %v6278_v41  ;;  %v23026_v55 = vld [vmem:[#allocation195_spill] sm:$0xff]  ;;  %v6504_v33 = vmul.f32 %v18702_v44, %v23032_v59  ;;  %v23159_v14 = vld [vmem:[#allocation222_spill] sm:$0xff] }
 0x4f6   : > { %12305 = vmatpush3.msra.mxu0 %v23024_v17  ;;  %12351 = vmatpush3.msra.mxu1 %v22929_v2  ;;  %v6897_v63 = vpop.permute.xlu1 %6896  ;;  %v6571_v6 = vsel %vm432_vm6, %v23026_v55, %v6553_v18  ;;  %v6450_v60 = vadd.f32 %v6415_v37, %v6277_v29  ;;  %v6746_v2 = vsel %vm1391_vm9, %v6724_v5, %v18690_v34  ;;  %v23030_v18 = vld [vmem:[#allocation461_spill] sm:$0xff]  ;;  %v23034_v41 = vld [vmem:[#allocation463_spill] sm:$0xff] }
 0x4f7   : > { %12306 = vmatprep.subr.mxu0 %v23027_v31  ;;  %12352 = vmatprep.subr.mxu1 %v22931_v43  ;;  %v18724_v26 = vpop.permute.xlu0 %6898  ;;  %v6607_v27 = vadd.f32 %v6572_v53, %v6451_v7  ;;  %v6745_v43 = vsel %vm1391_vm9, %v23030_v18, %v6724_v5  ;;  %v6503_v5 = vmul.f32 %v18710_v38, %v23032_v59  ;;  %v23036_v29 = vld [vmem:[#allocation113_spill] sm:$0xff]  ;;  %v23037_v53 = vld [vmem:[#allocation26_spill] sm:$0xff]  ;;  %v23164_v59 = vld [vmem:[#allocation232_spill] sm:$0xff] }
 0x4f8   : > { %23028 = vst [vmem:[#allocation19_spill] sm:$0xff] %v18724_v26  ;;  %12307 = vmatpush3.msra.mxu0 %v23029_v39  ;;  %12353 = vmatpush3.msra.mxu1 %v22934_v52  ;;  %v6606_v19 = vadd.f32 %v6571_v6, %v6450_v60  ;;  %v6919_v52 = vsel %vm1580_vm10, %v6897_v63, %v18724_v26  ;;  %v23039_v55 = vld [vmem:[#allocation465_spill] sm:$0xff]  ;;  %v23041_v60 = vld [vmem:[#allocation134_spill] sm:$0xff] }
 0x4f9   : > { %6382 = vrot.lane.b32.xlu0 %v6339_v42, %s13222_s22  ;;  %6380 = vrot.lane.b32.xlu1 %v6338_v4, %s13222_s22  ;;  %v6782_v46 = vadd.f32 %v6746_v2, %v6607_v27  ;;  %v6918_v50 = vsel %vm1580_vm10, %v23034_v41, %v6897_v63  ;;  %v18752_v17 = vrot.slane %v23037_v53, %v23010_v54  ;;  %v23038_v42 = vld [vmem:[#allocation114_spill] sm:$0xff]  ;;  %v23040_v4 = vld [vmem:[#allocation117_spill] sm:$0xff]  ;;  %v23043_v2 = vld [vmem:[#allocation468_spill] sm:$0xff] }
 0x4fa   : > { %12308 = vmatprep.subr.mxu0 %v23031_v24  ;;  %12354 = vmatprep.subr.mxu1 %v22936_v9  ;;  %v7068_v16 = vpop.permute.xlu1 %7067  ;;  %v6781_v9 = vadd.f32 %v6745_v43, %v6606_v19  ;;  %v18760_v63 = vrot.slane %v23037_v53, %v23023_v57  ;;  %v23044_v18 = vld [vmem:[#allocation126_spill] sm:$0xff]  ;;  %v23045_v43 = vld [vmem:[#allocation143_spill] sm:$0xff]  ;;  %v23049_v41 = vld [vmem:[#allocation129_spill] sm:$0xff] }
 0x4fb   : > { %12309 = vmatpush3.msra.mxu0 %v23033_v49  ;;  %12355 = vmatpush3.msra.mxu1 %v22938_v56  ;;  %v18746_v37 = vpop.permute.xlu0 %7069  ;;  %v6955_v7 = vadd.f32 %v6919_v52, %v6782_v46  ;;  %v7089_v6 = vsel %vm1760_vm11, %v23039_v55, %v7068_v16  ;;  %v23047_v52 = vld [vmem:[#allocation150_spill] sm:$0xff]  ;;  %v23053_v55 = vld [vmem:[#allocation152_spill] sm:$0xff] }
 0x4fc   : > { %23035 = vst [vmem:[#allocation330_spill] sm:$0xff] %v18746_v37  ;;  %12310 = vmatprep.subr.mxu0 %v23036_v29  ;;  %12356 = vmatprep.subr.mxu1 %v22941_v22  ;;  %v7090_v56 = vsel %vm1760_vm11, %v7068_v16, %v18746_v37  ;;  %v6954_v22 = vadd.f32 %v6918_v50, %v6781_v9  ;;  %v23048_v16 = vld [vmem:[#allocation14_spill] sm:$0xff]  ;;  %v23050_v50 = vld [vmem:[#allocation151_spill] sm:$0xff] }
 0x4fd   : > { %12311 = vmatpush3.msra.mxu0 %v23038_v42  ;;  %12357 = vmatpush3.msra.mxu1 %v22943_v23  ;;  %v7126_v39 = vadd.f32 %v7090_v56, %v6955_v7  ;;  %v6669_v46 = vmul.f32 %v18752_v17, %v23048_v16  ;;  %v6668_v49 = vmul.f32 %v18760_v63, %v23048_v16  ;;  %v23051_v9 = vld [vmem:[#allocation27_spill] sm:$0xff]  ;;  %v23052_v7 = vld [vmem:[#allocation136_spill] sm:$0xff] }
 0x4fe   : > { %6542 = vrot.lane.b32.xlu0 %v6504_v33, %s13220_s19  ;;  %6540 = vrot.lane.b32.xlu1 %v6503_v5, %s13220_s19  ;;  %v7241_v31 = vpop.permute.xlu1 %7240  ;;  %v7125_v19 = vadd.f32 %v7089_v6, %v6954_v22  ;;  %v23046_v33 = vld [vmem:[#allocation128_spill] sm:$0xff]  ;;  %v18786_v29 = vrot.slane %v23051_v9, %v23010_v54  ;;  %v18790_v56 = vrot.slane %v23051_v9, %v23023_v57  ;;  %v23054_v6 = vld [vmem:[#allocation139_spill] sm:$0xff] }
 0x4ff   : > { %12312 = vmatprep.subr.mxu0 %v23040_v4  ;;  %12358 = vmatprep.subr.mxu1 %v23041_v60  ;;  %v18768_v23 = vpop.permute.xlu0 %7242  ;;  %v7262_v27 = vsel %vm1949_vm12, %v23043_v2, %v7241_v31  ;;  %v23055_v22 = vld [vmem:[#allocation160_spill] sm:$0xff]  ;;  %v23057_v60 = vld [vmem:[#allocation145_spill] sm:$0xff] }
 0x500   : > { %23042 = vst [vmem:[#allocation9_spill] sm:$0xff] %v18768_v23  ;;  %12313 = vmatpush3.msra.mxu0 %v23044_v18  ;;  %12359 = vmatpush3.msra.mxu1 %v23045_v43  ;;  %v7263_v24 = vsel %vm1949_vm12, %v7241_v31, %v18768_v23  ;;  %v7298_v42 = vadd.f32 %v7262_v27, %v7125_v19  ;;  %v23056_v31 = vld [vmem:[#allocation188_spill] sm:$0xff]  ;;  %v23059_v2 = vld [vmem:[#allocation29_spill] sm:$0xff]  ;;  %v23060_v19 = vld [vmem:[#allocation147_spill] sm:$0xff] }
 0x501   : > { %12314 = vmatprep.subr.mxu0 %v23046_v33  ;;  %12360 = vmatprep.subr.mxu1 %v23047_v52  ;;  %v7299_v5 = vadd.f32 %v7263_v24, %v7126_v39  ;;  %v23058_v39 = vld [vmem:[#allocation161_spill] sm:$0xff]  ;;  %v6842_v27 = vmul.f32 %v18786_v29, %v23059_v2  ;;  %v6841_v18 = vmul.f32 %v18790_v56, %v23059_v2  ;;  %v23061_v24 = vld [vmem:[#allocation162_spill] sm:$0xff]  ;;  %v23062_v52 = vld [vmem:[#allocation148_spill] sm:$0xff] }
 0x502   : > { %12315 = vmatpush3.msra.mxu0 %v23049_v41  ;;  %12361 = vmatpush3.msra.mxu1 %v23050_v50  ;;  %v7316_v43 = vadd.f32 %v7298_v42, %v23056_v31  ;;  %v23065_v41 = vld [vmem:[#allocation178_spill] sm:$0xff]  ;;  %v23066_v50 = vld [vmem:[#allocation163_spill] sm:$0xff]  ;;  %v23067_v42 = vld [vmem:[#allocation20_spill] sm:$0xff] }
 0x503   : > { %6711 = vrot.lane.b32.xlu0 %v6669_v46, %s13223_s23  ;;  %6709 = vrot.lane.b32.xlu1 %v6668_v49, %s13223_s23  ;;  %v7317_v4 = vadd.f32 %v7299_v5, %v23056_v31  ;;  %v23063_v46 = vld [vmem:[#allocation172_spill] sm:$0xff] }
 0x504   : > { %12316 = vmatprep.subr.mxu0 %v23052_v7  ;;  %12362 = vmatprep.subr.mxu1 %v23053_v55  ;;  %v7334_v49 = vmax.f32 %v7316_v43, 0.0  ;;  %v23064_v5 = vld [vmem:[#allocation156_spill] sm:$0xff]  ;;  %v23068_v7 = vld [vmem:[#allocation469_spill] sm:$0xff]  ;;  %v23074_v43 = vld [vmem:[#allocation34_spill] sm:$0xff] }
 0x505   : > { %12317 = vmatpush3.msra.mxu0 %v23054_v6  ;;  %12363 = vmatpush3.msra.mxu1 %v23055_v22  ;;  %v7335_v33 = vmax.f32 %v7317_v4, 0.0  ;;  %v18818_v55 = vrot.slane %v23068_v7, %v23010_v54  ;;  %v23069_v6 = vld [vmem:[#allocation164_spill] sm:$0xff]  ;;  %v18824_v22 = vrot.slane %v23068_v7, %v23023_v57  ;;  %v23070_v4 = vld [vmem:[#allocation165_spill] sm:$0xff]  ;;  %v23080_v7 = vld [vmem:[#allocation235_spill] sm:$0xff] }
 0x506   : > { %12318 = vmatprep.subr.mxu0 %v23057_v60  ;;  %12364 = vmatprep.subr.mxu1 %v23058_v39  ;;  %v23071_v60 = vld [vmem:[#allocation170_spill] sm:$0xff]  ;;  %v23072_v39 = vld [vmem:[#allocation171_spill] sm:$0xff]  ;;  %v23152_v31 = vld [vmem:[#allocation472_spill] sm:$0xff] }
 0x507   : > { %12319 = vmatpush3.msra.mxu0 %v23060_v19  ;;  %12365 = vmatpush3.msra.mxu1 %v23061_v24  ;;  %v18836_v19 = vrot.slane %v23074_v43, %v23010_v54  ;;  %v23075_v24 = vld [vmem:[#allocation176_spill] sm:$0xff] }
 0x508   : > { %6884 = vrot.lane.b32.xlu0 %v6842_v27, %s13224_s29  ;;  %6882 = vrot.lane.b32.xlu1 %v6841_v18, %s13224_s29  ;;  %v23073_v27 = vld [vmem:[#allocation36_spill] sm:$0xff] }
 0x509   : > { %12320 = vmatprep.subr.mxu0 %v23062_v52  ;;  %12366 = vmatprep.subr.mxu1 %v23063_v46  ;;  %v7013_v18 = vmul.f32 %v18818_v55, %v23073_v27  ;;  %v18843_v52 = vrot.slane %v23074_v43, %v23023_v57  ;;  %v23076_v46 = vld [vmem:[#allocation229_spill] sm:$0xff] }
 0x50a   : > { %12321 = vmatpush3.msra.mxu0 %v23064_v5  ;;  %12367 = vmatpush3.msra.mxu1 %v23065_v41  ;;  %v23078_v5 = vld [vmem:[#allocation185_spill] sm:$0xff] }
 0x50b   : > { %12322 = vmatprep.subr.mxu0 %v23066_v50  ;;  %8332 = vmatmul.mubr.f32.vlgmr.msra.gmra.mxu1 %v23067_v42  ;;  %v23079_v41 = vld [vmem:[#allocation37_spill] sm:$0xff] }
 0x50c   : > { %12323 = vmatpush3.msra.mxu0 %v23069_v6  ;;  %8337 = vmatprep.mubr.f32.mxu1 %v18577_v32  ;;  %v7186_v50 = vmul.f32 %v18836_v19, %v23079_v41  ;;  %v7185_v6 = vmul.f32 %v18843_v52, %v23079_v41  ;;  %v23142_v41 = vld [vmem:[#allocation329_spill] sm:$0xff] }
 0x50d   : > { %12324 = vmatprep.subr.mxu0 %v23070_v4  ;;  %7384 = vrot.lane.b32.xlu0 %v7335_v33, %s13216_s16  ;;  %v7012_v33 = vmul.f32 %v18824_v22, %v23073_v27  ;;  %v23081_v4 = vld [vmem:[#allocation239_spill] sm:$0xff]  ;;  %v23149_v43 = vld [vmem:[#allocation301_spill] sm:$0xff] }
 0x50e   : > { %12325 = vmatpush3.msra.mxu0 %v23071_v60  ;;  %7382 = vrot.lane.b32.xlu1 %v7334_v49, %s13216_s16  ;;  %v23077_v49 = vld [vmem:[#allocation182_spill] sm:$0xff]  ;;  %v23082_v60 = vld [vmem:[#allocation245_spill] sm:$0xff] }
 0x50f   : > { %12326 = vmatprep.subr.mxu0 %v23072_v39  ;;  %8339 = vmatmul.mubr.f32.gmra.mxu1 %v18595_v13  ;;  %v23083_v39 = vld [vmem:[#allocation251_spill] sm:$0xff]  ;;  %v23151_v27 = vld [vmem:[#allocation209_spill] sm:$0xff] }
 0x510   : > { %12327 = vmatpush3.msra.mxu0 %v23075_v24  ;;  %12412 = vmatprep.subr.mxu1 %v23076_v46  ;;  %v23085_v24 = vld [vmem:[#allocation254_spill] sm:$0xff] }
 0x511   : > { %12328 = vmatprep.subr.mxu0 %v23077_v49  ;;  %7055 = vrot.lane.b32.xlu0 %v7013_v18, %s13225_s8  ;;  %v23087_v46 = vld [vmem:[#allocation206_spill] sm:$0xff]  ;;  %v23088_v49 = vld [vmem:[#allocation260_spill] sm:$0xff] }
 0x512   : > { %12329 = vmatpush3.msra.mxu0 %v23078_v5  ;;  %7053 = vrot.lane.b32.xlu1 %v7012_v33, %s13225_s8  ;;  %v23086_v33 = vld [vmem:[#allocation257_spill] sm:$0xff]  ;;  %v23089_v5 = vld [vmem:[#allocation263_spill] sm:$0xff] }
 0x513   : > { %8221 = vmatmul.mubr.f32.vlgmr.msra.gmra.mxu0 %v23067_v42  ;;  %12413 = vmatpush3.msra.mxu1 %v23080_v7  ;;  %v23084_v42 = vld [vmem:[#allocation31_spill] sm:$0xff] }
 0x514   : > { %8226 = vmatprep.mubr.f32.mxu0 %v18577_v32  ;;  %12414 = vmatprep.subr.mxu1 %v23081_v4  ;;  %v6002_v18 = vmul.f32 %v18626_v51, %v23084_v42  ;;  %v6001_v32 = vmul.f32 %v18630_v1, %v23084_v42  ;;  %v23092_v7 = vld [vmem:[#allocation267_spill] sm:$0xff]  ;;  %v23094_v4 = vld [vmem:[#allocation270_spill] sm:$0xff]  ;;  %v23126_v42 = vld [vmem:[#allocation244_spill] sm:$0xff] }
 0x515   : > { %7228 = vrot.lane.b32.xlu0 %v7186_v50, %s13226_s13  ;;  %12415 = vmatpush3.msra.mxu1 %v23082_v60  ;;  %v23091_v50 = vld [vmem:[#allocation208_spill] sm:$0xff] }
 0x516   : > { %7226 = vrot.lane.b32.xlu1 %v7185_v6, %s13226_s13  ;;  %12416 = vmatprep.subr.mxu1 %v23083_v39  ;;  %v23093_v6 = vld [vmem:[#allocation210_spill] sm:$0xff]  ;;  %v23095_v60 = vld [vmem:[#allocation212_spill] sm:$0xff]  ;;  %v23096_v39 = vld [vmem:[#allocation273_spill] sm:$0xff] }
 0x517   : > { %8228 = vmatmul.mubr.f32.gmra.mxu0 %v18595_v13  ;;  %12417 = vmatpush3.msra.mxu1 %v23085_v24  ;;  %v23090_v13 = vld [vmem:[#allocation38_spill] sm:$0xff]  ;;  %v23098_v24 = vld [vmem:[#allocation216_spill] sm:$0xff] }
 0x518   : > { %12418 = vmatprep.subr.mxu1 %v23086_v33  ;;  %12374 = vmatprep.subr.mxu0 %v23087_v46  ;;  %v6175_v51 = vmul.f32 %v18652_v20, %v23090_v13  ;;  %v6174_v1 = vmul.f32 %v18660_v62, %v23090_v13  ;;  %v23097_v20 = vld [vmem:[#allocation39_spill] sm:$0xff]  ;;  %v23100_v33 = vld [vmem:[#allocation217_spill] sm:$0xff] }
 0x519   : > { %6054 = vrot.lane.b32.xlu0 %v6002_v18, %s13209_s21  ;;  %12419 = vmatpush3.msra.mxu1 %v23088_v49  ;;  %v6348_v18 = vmul.f32 %v18684_v45, %v23097_v20  ;;  %v6347_v62 = vmul.f32 %v18694_v25, %v23097_v20  ;;  %v23101_v49 = vld [vmem:[#allocation281_spill] sm:$0xff]  ;;  %v23114_v20 = vld [vmem:[#allocation228_spill] sm:$0xff]  ;;  %v23133_v13 = vld [vmem:[#allocation259_spill] sm:$0xff] }
 0x51a   : > { %6052 = vrot.lane.b32.xlu1 %v6001_v32, %s13209_s21  ;;  %12420 = vmatprep.subr.mxu1 %v23089_v5  ;;  %v23099_v32 = vld [vmem:[#allocation278_spill] sm:$0xff]  ;;  %v23102_v5 = vld [vmem:[#allocation219_spill] sm:$0xff]  ;;  %v23104_v45 = vld [vmem:[#allocation33_spill] sm:$0xff] }
 0x51b   : > { %12375 = vmatpush3.msra.mxu0 %v23091_v50  ;;  %12421 = vmatpush3.msra.mxu1 %v23092_v7  ;;  %v6512_v7 = vmul.f32 %v18702_v44, %v23104_v45  ;;  %v6511_v25 = vmul.f32 %v18710_v38, %v23104_v45  ;;  %v23111_v44 = vld [vmem:[#allocation40_spill] sm:$0xff]  ;;  %v23119_v45 = vld [vmem:[#allocation234_spill] sm:$0xff] }
 0x51c   : > { %12376 = vmatprep.subr.mxu0 %v23093_v6  ;;  %12422 = vmatprep.subr.mxu1 %v23094_v4  ;;  %v23106_v4 = vld [vmem:[#allocation287_spill] sm:$0xff]  ;;  %v6677_v38 = vmul.f32 %v18760_v63, %v23111_v44 }
 0x51d   : > { %6227 = vrot.lane.b32.xlu0 %v6175_v51, %s21916_s14  ;;  %12377 = vmatpush3.msra.mxu0 %v23095_v60  ;;  %v23103_v51 = vld [vmem:[#allocation285_spill] sm:$0xff] }
 0x51e   : > { %6225 = vrot.lane.b32.xlu1 %v6174_v1, %s21916_s14  ;;  %12423 = vmatpush3.msra.mxu1 %v23096_v39  ;;  %v23105_v1 = vld [vmem:[#allocation18_spill] sm:$0xff]  ;;  %v23107_v39 = vld [vmem:[#allocation223_spill] sm:$0xff] }
 0x51f   : > { %12378 = vmatprep.subr.mxu0 %v23098_v24  ;;  %12424 = vmatprep.subr.mxu1 %v23099_v32  ;;  %v23108_v32 = vld [vmem:[#allocation290_spill] sm:$0xff] }
 0x520   : > { %12379 = vmatpush3.msra.mxu0 %v23100_v33  ;;  %12425 = vmatpush3.msra.mxu1 %v23101_v49  ;;  %v6678_v49 = vmul.f32 %v18752_v17, %v23111_v44  ;;  %v23118_v17 = vld [vmem:[#allocation41_spill] sm:$0xff]  ;;  %v23121_v44 = vld [vmem:[#allocation238_spill] sm:$0xff] }
 0x521   : > { %6400 = vrot.lane.b32.xlu0 %v6348_v18, %s13222_s22  ;;  %12380 = vmatprep.subr.mxu0 %v23102_v5  ;;  %v23109_v18 = vld [vmem:[#allocation191_spill] sm:$0xff]  ;;  %v6850_v63 = vmul.f32 %v18790_v56, %v23118_v17 }
 0x522   : > { %6398 = vrot.lane.b32.xlu1 %v6347_v62, %s13222_s22  ;;  %12426 = vmatprep.subr.mxu1 %v23103_v51  ;;  %v23110_v62 = vld [vmem:[#allocation23_spill] sm:$0xff]  ;;  %v23112_v51 = vld [vmem:[#allocation226_spill] sm:$0xff] }
 0x523   : > { %12381 = vmatpush3.msra.mxu0 %v23105_v1  ;;  %12427 = vmatpush3.msra.mxu1 %v23106_v4  ;;  %v23113_v4 = vld [vmem:[#allocation299_spill] sm:$0xff] }
 0x524   : > { %12382 = vmatprep.subr.mxu0 %v23107_v39  ;;  %12428 = vmatprep.subr.mxu1 %v23108_v32  ;;  %v23115_v32 = vld [vmem:[#allocation307_spill] sm:$0xff] }
 0x525   : > { %6558 = vrot.lane.b32.xlu0 %v6512_v7, %s13220_s19  ;;  %12383 = vmatpush3.msra.mxu0 %v23109_v18  ;;  %v23116_v7 = vld [vmem:[#allocation89_spill] sm:$0xff] }
 0x526   : > { %6556 = vrot.lane.b32.xlu1 %v6511_v25, %s13220_s19  ;;  %12429 = vmatpush3.msra.mxu1 %v23110_v62  ;;  %v23117_v25 = vld [vmem:[#allocation198_spill] sm:$0xff]  ;;  %v6851_v62 = vmul.f32 %v18786_v29, %v23118_v17 }
 0x527   : > { %12384 = vmatprep.subr.mxu0 %v23112_v51  ;;  %12430 = vmatprep.subr.mxu1 %v23113_v4  ;;  %v23120_v4 = vld [vmem:[#allocation312_spill] sm:$0xff]  ;;  %v23125_v29 = vld [vmem:[#allocation42_spill] sm:$0xff] }
 0x528   : > { %12385 = vmatpush3.msra.mxu0 %v23114_v20  ;;  %12431 = vmatpush3.msra.mxu1 %v23115_v32  ;;  %v23122_v32 = vld [vmem:[#allocation315_spill] sm:$0xff]  ;;  %v7021_v56 = vmul.f32 %v18824_v22, %v23125_v29  ;;  %v23128_v17 = vld [vmem:[#allocation250_spill] sm:$0xff] }
 0x529   : > { %6729 = vrot.lane.b32.xlu0 %v6678_v49, %s13223_s23  ;;  %12386 = vmatprep.subr.mxu0 %v23116_v7  ;;  %v23123_v49 = vld [vmem:[#allocation241_spill] sm:$0xff] }
 0x52a   : > { %6727 = vrot.lane.b32.xlu1 %v6677_v38, %s13223_s23  ;;  %12432 = vmatprep.subr.mxu1 %v23117_v25  ;;  %v23124_v38 = vld [vmem:[#allocation197_spill] sm:$0xff]  ;;  %v7022_v25 = vmul.f32 %v18818_v55, %v23125_v29  ;;  %v23132_v55 = vld [vmem:[#allocation43_spill] sm:$0xff]  ;;  %v23135_v29 = vld [vmem:[#allocation266_spill] sm:$0xff] }
 0x52b   : > { %12387 = vmatpush3.msra.mxu0 %v23119_v45  ;;  %12433 = vmatpush3.msra.mxu1 %v23120_v4  ;;  %v23127_v4 = vld [vmem:[#allocation321_spill] sm:$0xff]  ;;  %v7194_v22 = vmul.f32 %v18843_v52, %v23132_v55  ;;  %v23143_v52 = vld [vmem:[#allocation280_spill] sm:$0xff] }
 0x52c   : > { %12388 = vmatprep.subr.mxu0 %v23121_v44  ;;  %12434 = vmatprep.subr.mxu1 %v23122_v32  ;;  %v23129_v32 = vld [vmem:[#allocation323_spill] sm:$0xff] }
 0x52d   : > { %6902 = vrot.lane.b32.xlu0 %v6851_v62, %s13224_s29  ;;  %12389 = vmatpush3.msra.mxu0 %v23123_v49  ;;  %v23130_v62 = vld [vmem:[#allocation253_spill] sm:$0xff] }
 0x52e   : > { %6900 = vrot.lane.b32.xlu1 %v6850_v63, %s13224_s29  ;;  %12435 = vmatpush3.msra.mxu1 %v23124_v38  ;;  %v23131_v63 = vld [vmem:[#allocation324_spill] sm:$0xff]  ;;  %v7195_v38 = vmul.f32 %v18836_v19, %v23132_v55  ;;  %v23146_v55 = vld [vmem:[#allocation293_spill] sm:$0xff] }
 0x52f   : > { %12390 = vmatprep.subr.mxu0 %v23126_v42  ;;  %12436 = vmatprep.subr.mxu1 %v23127_v4  ;;  %v23134_v4 = vld [vmem:[#allocation193_spill] sm:$0xff]  ;;  %v23139_v19 = vld [vmem:[#allocation272_spill] sm:$0xff] }
 0x530   : > { %12391 = vmatpush3.msra.mxu0 %v23128_v17  ;;  %12437 = vmatpush3.msra.mxu1 %v23129_v32  ;;  %v23136_v32 = vld [vmem:[#allocation326_spill] sm:$0xff] }
 0x531   : > { %7073 = vrot.lane.b32.xlu0 %v7022_v25, %s13225_s8  ;;  %12392 = vmatprep.subr.mxu0 %v23130_v62  ;;  %v23137_v25 = vld [vmem:[#allocation269_spill] sm:$0xff] }
 0x532   : > { %7071 = vrot.lane.b32.xlu1 %v7021_v56, %s13225_s8  ;;  %12438 = vmatprep.subr.mxu1 %v23131_v63  ;;  %v23138_v56 = vld [vmem:[#allocation327_spill] sm:$0xff]  ;;  %v23140_v63 = vld [vmem:[#allocation328_spill] sm:$0xff] }
 0x533   : > { %12393 = vmatpush3.msra.mxu0 %v23133_v13  ;;  %12439 = vmatpush3.msra.mxu1 %v23134_v4  ;;  %v23141_v4 = vld [vmem:[#allocation277_spill] sm:$0xff] }
 0x534   : > { %12394 = vmatprep.subr.mxu0 %v23135_v29  ;;  %12440 = vmatprep.subr.mxu1 %v23136_v32  ;;  %v23144_v32 = vld [vmem:[#allocation284_spill] sm:$0xff] }
 0x535   : > { %7246 = vrot.lane.b32.xlu0 %v7195_v38, %s13226_s13  ;;  %12395 = vmatpush3.msra.mxu0 %v23137_v25  ;;  %v23145_v38 = vld [vmem:[#allocation286_spill] sm:$0xff] }
 0x536   : > { %7244 = vrot.lane.b32.xlu1 %v7194_v22, %s13226_s13  ;;  %12441 = vmatpush3.msra.mxu1 %v23138_v56  ;;  %v23147_v22 = vld [vmem:[#allocation296_spill] sm:$0xff]  ;;  %v23148_v56 = vld [vmem:[#allocation298_spill] sm:$0xff] }
 0x537   : > { %12396 = vmatprep.subr.mxu0 %v23139_v19  ;;  %12442 = vmatprep.subr.mxu1 %v23140_v63  ;;  %v23150_v63 = vld [vmem:[#allocation306_spill] sm:$0xff] }
 0x538   : > { %12397 = vmatpush3.msra.mxu0 %v23141_v4  ;;  %12443 = vmatpush3.msra.mxu1 %v23142_v41 }
 0x539   : > { %12398 = vmatprep.subr.mxu0 %v23143_v52  ;;  %12488 = vmatprep.subr.mxu1 %v23087_v46 }
 0x53a   : > { %12399 = vmatpush3.msra.mxu0 %v23144_v32 }
 0x53b   : > { %12400 = vmatprep.subr.mxu0 %v23145_v38 }
 0x53c   : > { %12401 = vmatpush3.msra.mxu0 %v23146_v55 }
 0x53d   : > { %12402 = vmatprep.subr.mxu0 %v23147_v22 }
 0x53e   : > { %12403 = vmatpush3.msra.mxu0 %v23148_v56 }
 0x53f   : > { %12404 = vmatprep.subr.mxu0 %v23149_v43 }
 0x540   : > { %12405 = vmatpush3.msra.mxu0 %v23150_v63 }
 0x541   : > { %12450 = vmatprep.subr.mxu0 %v23151_v27 }
 0x558   : > { %v7365_v41 = vpop.permute.xlu1 %7364 }
 0x559   : > { %v7396_v23 = vsel %vm1816_vm5, %v23152_v31, %v7365_v41 }
 0x55a   : > { %v18974_v37 = vpop.permute.xlu0 %7366  ;;  %v18976_v2 = vand.u32 4294901760, %v7396_v23 }
 0x55b   : > { %23153 = vst [vmem:[#allocation190_spill] sm:$0xff] %v18974_v37  ;;  %v7397_v26 = vsel %vm1816_vm5, %v7365_v41, %v18974_v37 }
 0x55c   : > { %23154 = vst [vmem:[#allocation13_spill] sm:$0xff] %v18976_v2  ;;  %v18980_v9 = vand.u32 4294901760, %v7397_v26  ;;  %v18983_v34 = vsub.f32 %v7396_v23, %v18976_v2 }
 0x55e   : > { %v18986_v16 = vsub.f32 %v7397_v26, %v18980_v9  ;;  %v21673_v27 = vand.u32 4294901760, %v18983_v34  ;;  %8696 = vmatprep.mubr.f32.mxu1 %v18980_v9 }
 0x55f   : > { %v18990_v31 = vpop.permute.xlu0 %6036  ;;  %8698 = vmatmul.mubr.f32.vlgmr.msra.gmra.mxu1 %v18976_v2 }
 0x560   : > { %23155 = vst [vmem:[#allocation451_spill] sm:$0xff] %v18990_v31  ;;  %v8449_v41 = vsub.f32 %v18983_v34, %v21673_v27  ;;  %v6035_v37 = vpop.permute.xlu1 %6034  ;;  %12489 = vmatpush3.msra.mxu1 %v23091_v50  ;;  %v21676_v23 = vand.u32 4294901760, %v18986_v16 }
 0x561   : > { %12490 = vmatprep.subr.mxu1 %v23093_v6 }
 0x562   : > { %12491 = vmatpush3.msra.mxu1 %v23095_v60  ;;  %v8443_v26 = vsub.f32 %v18986_v16, %v21676_v23  ;;  %v8450_v12 = vand.u32 4294901760, %v8449_v41  ;;  %v23157_v41 = vld [vmem:[#allocation215_spill] sm:$0xff] }
 0x563   : > { %12492 = vmatprep.subr.mxu1 %v23098_v24 }
 0x564   : > { %v8444_v2 = vand.u32 4294901760, %v8443_v26  ;;  %12493 = vmatpush3.msra.mxu1 %v23100_v33  ;;  %v23158_v26 = vld [vmem:[#allocation218_spill] sm:$0xff] }
 0x565   : > { %v19005_v27 = vpop.permute.xlu0 %6209  ;;  %12494 = vmatprep.subr.mxu1 %v23102_v5 }
 0x566   : > { %v6208_v53 = vpop.permute.xlu1 %6207  ;;  %8445 = vmatprep.mubr.f32.mxu0 %v8444_v2  ;;  %12495 = vmatpush3.msra.mxu1 %v23105_v1 }
 0x567   : > { %8451 = vmatmul.mubr.f32.vlgmr.msra.gmra.mxu0 %v8450_v12  ;;  %12496 = vmatprep.subr.mxu1 %v23107_v39  ;;  %v23160_v12 = vld [vmem:[#allocation224_spill] sm:$0xff] }
 0x568   : > { %12451 = vmatpush3.msra.mxu0 %v23156_v11  ;;  %12497 = vmatpush3.msra.mxu1 %v23109_v18  ;;  %v23161_v11 = vld [vmem:[#allocation225_spill] sm:$0xff] }
 0x569   : > { %12452 = vmatprep.subr.mxu0 %v23157_v41  ;;  %12498 = vmatprep.subr.mxu1 %v23112_v51  ;;  %v23162_v41 = vld [vmem:[#allocation227_spill] sm:$0xff] }
 0x56a   : > { %12453 = vmatpush3.msra.mxu0 %v23158_v26  ;;  %12499 = vmatpush3.msra.mxu1 %v23114_v20  ;;  %v23163_v26 = vld [vmem:[#allocation231_spill] sm:$0xff] }
 0x56b   : > { %v19016_v23 = vpop.permute.xlu0 %6382  ;;  %v6381_v2 = vpop.permute.xlu1 %6380  ;;  %12454 = vmatprep.subr.mxu0 %v23159_v14  ;;  %12500 = vmatprep.subr.mxu1 %v23116_v7 }
 0x56c   : > { %12455 = vmatpush3.msra.mxu0 %v23160_v12  ;;  %12501 = vmatpush3.msra.mxu1 %v23119_v45  ;;  %v23165_v12 = vld [vmem:[#allocation233_spill] sm:$0xff] }
 0x56d   : > { %12456 = vmatprep.subr.mxu0 %v23161_v11  ;;  %12502 = vmatprep.subr.mxu1 %v23121_v44  ;;  %v23166_v11 = vld [vmem:[#allocation237_spill] sm:$0xff] }
 0x56e   : > { %12457 = vmatpush3.msra.mxu0 %v23162_v41  ;;  %12503 = vmatpush3.msra.mxu1 %v23123_v49  ;;  %v23167_v41 = vld [vmem:[#allocation243_spill] sm:$0xff] }
 0x56f   : > { %12458 = vmatprep.subr.mxu0 %v23163_v26  ;;  %12504 = vmatprep.subr.mxu1 %v23126_v42  ;;  %v23168_v26 = vld [vmem:[#allocation247_spill] sm:$0xff] }
 0x570   : > { %v19028_v0 = vpop.permute.xlu0 %6542  ;;  %v6541_v14 = vpop.permute.xlu1 %6540  ;;  %12459 = vmatpush3.msra.mxu0 %v23164_v59  ;;  %12505 = vmatpush3.msra.mxu1 %v23128_v17  ;;  %v23169_v59 = vld [vmem:[#allocation456_spill] sm:$0xff] }
 0x571   : > { %12460 = vmatprep.subr.mxu0 %v23165_v12  ;;  %12506 = vmatprep.subr.mxu1 %v23130_v62  ;;  %v19042_v42 = vrot.slane %v23169_v59, %v23023_v57  ;;  %v23170_v12 = vld [vmem:[#allocation249_spill] sm:$0xff]  ;;  %v23173_v57 = vld [vmem:[#allocation15_spill] sm:$0xff] }
 0x572   : > { %12461 = vmatpush3.msra.mxu0 %v23166_v11  ;;  %12507 = vmatpush3.msra.mxu1 %v23133_v13  ;;  %v19050_v11 = vrot.slane %v23169_v59, %v23010_v54  ;;  %v23174_v13 = vld [vmem:[#allocation262_spill] sm:$0xff] }
 0x573   : > { %12462 = vmatprep.subr.mxu0 %v23167_v41  ;;  %12508 = vmatprep.subr.mxu1 %v23135_v29  ;;  %v23171_v29 = vld [vmem:[#allocation252_spill] sm:$0xff]  ;;  %v5908_v54 = vmul.f32 %v19042_v42, %v22998_v48  ;;  %v23176_v59 = vld [vmem:[#allocation450_spill] sm:$0xff] }
 0x574   : > { %12463 = vmatpush3.msra.mxu0 %v23168_v26  ;;  %12509 = vmatpush3.msra.mxu1 %v23137_v25  ;;  %v23172_v26 = vld [vmem:[#allocation256_spill] sm:$0xff]  ;;  %v6063_v25 = vsel %vm658_vm2, %v23173_v57, %v6035_v37  ;;  %v6236_v57 = vsel %vm848_vm7, %v23176_v59, %v6208_v53  ;;  %v23180_v59 = vld [vmem:[#allocation279_spill] sm:$0xff] }
 0x575   : > { %v19044_v17 = vpop.permute.xlu0 %6711  ;;  %12464 = vmatprep.subr.mxu0 %v23170_v12  ;;  %12510 = vmatprep.subr.mxu1 %v23139_v19  ;;  %v6710_v41 = vpop.permute.xlu1 %6709  ;;  %v6064_v12 = vsel %vm658_vm2, %v6035_v37, %v18990_v31  ;;  %v23179_v37 = vld [vmem:[#allocation276_spill] sm:$0xff] }
 0x576   : > { %12465 = vmatpush3.msra.mxu0 %v23171_v29  ;;  %12511 = vmatpush3.msra.mxu1 %v23141_v4  ;;  %v23175_v29 = vld [vmem:[#allocation265_spill] sm:$0xff] }
 0x577   : > { %12466 = vmatprep.subr.mxu0 %v23172_v26  ;;  %12512 = vmatprep.subr.mxu1 %v23143_v52  ;;  %v5909_v26 = vmul.f32 %v19050_v11, %v22998_v48  ;;  %v23177_v52 = vld [vmem:[#allocation271_spill] sm:$0xff]  ;;  %v6409_v48 = vsel %vm1036_vm8, %v18495_v8, %v6381_v2 }
 0x578   : > { %12467 = vmatpush3.msra.mxu0 %v23174_v13  ;;  %12513 = vmatpush3.msra.mxu1 %v23144_v32  ;;  %v6097_v13 = vadd.f32 %v6063_v25, %v5908_v54  ;;  %v6237_v32 = vsel %vm848_vm7, %v6208_v53, %v19005_v27  ;;  %v6410_v25 = vsel %vm1036_vm8, %v6381_v2, %v19016_v23  ;;  %v23181_v53 = vld [vmem:[#allocation283_spill] sm:$0xff] }
 0x579   : > { %12468 = vmatprep.subr.mxu0 %v23175_v29  ;;  %12514 = vmatprep.subr.mxu1 %v23145_v38  ;;  %v6098_v29 = vadd.f32 %v6064_v12, %v5909_v26  ;;  %v6566_v12 = vsel %vm432_vm6, %v18509_v36, %v6541_v14  ;;  %v23182_v26 = vld [vmem:[#allocation289_spill] sm:$0xff]  ;;  %v23184_v36 = vld [vmem:[#allocation295_spill] sm:$0xff] }
 0x57a   : > { %12469 = vmatpush3.msra.mxu0 %v23177_v52  ;;  %12515 = vmatpush3.msra.mxu1 %v23146_v55  ;;  %v19074_v4 = vpop.permute.xlu0 %6884  ;;  %v6883_v31 = vpop.permute.xlu1 %6882  ;;  %v6270_v52 = vadd.f32 %v6236_v57, %v6097_v13  ;;  %v23183_v13 = vld [vmem:[#allocation292_spill] sm:$0xff] }
 0x57b   : > { %23178 = vst [vmem:[#allocation48_spill] sm:$0xff] %v19074_v4  ;;  %12470 = vmatprep.subr.mxu0 %v23179_v37  ;;  %12516 = vmatprep.subr.mxu1 %v23147_v22  ;;  %v6271_v54 = vadd.f32 %v6237_v32, %v6098_v29  ;;  %v6567_v37 = vsel %vm432_vm6, %v6541_v14, %v19028_v0 }
 0x57c   : > { %12471 = vmatpush3.msra.mxu0 %v23180_v59  ;;  %12517 = vmatpush3.msra.mxu1 %v23148_v56  ;;  %v6443_v8 = vadd.f32 %v6409_v48, %v6270_v52  ;;  %v6739_v32 = vsel %vm1391_vm9, %v18527_v10, %v6710_v41  ;;  %v6740_v48 = vsel %vm1391_vm9, %v6710_v41, %v19044_v17  ;;  %v23186_v10 = vld [vmem:[#allocation305_spill] sm:$0xff] }
 0x57d   : > { %12472 = vmatprep.subr.mxu0 %v23181_v53  ;;  %12518 = vmatprep.subr.mxu1 %v23149_v43  ;;  %v6444_v2 = vadd.f32 %v6410_v25, %v6271_v54  ;;  %v23185_v53 = vld [vmem:[#allocation297_spill] sm:$0xff]  ;;  %v6913_v41 = vsel %vm1580_vm10, %v6883_v31, %v19074_v4 }
 0x57e   : > { %12473 = vmatpush3.msra.mxu0 %v23182_v26  ;;  %12519 = vmatpush3.msra.mxu1 %v23150_v63  ;;  %v6599_v59 = vadd.f32 %v6566_v12, %v6443_v8  ;;  %v6912_v12 = vsel %vm1580_vm10, %v18556_v35, %v6883_v31  ;;  %v23188_v8 = vld [vmem:[#allocation309_spill] sm:$0xff] }
 0x57f   : > { %v19092_v57 = vpop.permute.xlu0 %7384  ;;  %12474 = vmatprep.subr.mxu0 %v23183_v13  ;;  %12564 = vmatprep.subr.mxu1 %v23087_v46  ;;  %v6600_v46 = vadd.f32 %v6567_v37, %v6444_v2 }
 0x580   : > { %v7383_v29 = vpop.permute.xlu1 %7382  ;;  %12475 = vmatpush3.msra.mxu0 %v23184_v36  ;;  %v6774_v26 = vadd.f32 %v6739_v32, %v6599_v59  ;;  %v23189_v32 = vld [vmem:[#allocation310_spill] sm:$0xff]  ;;  %v23190_v36 = vld [vmem:[#allocation311_spill] sm:$0xff] }
 0x581   : > { %v7404_v14 = vsel %vm1816_vm5, %v18569_v40, %v7383_v29  ;;  %v7405_v52 = vsel %vm1816_vm5, %v7383_v29, %v19092_v57  ;;  %12476 = vmatprep.subr.mxu0 %v23185_v53  ;;  %v6775_v13 = vadd.f32 %v6740_v48, %v6600_v46  ;;  %v23192_v46 = vld [vmem:[#allocation314_spill] sm:$0xff] }
 0x582   : > { %v19106_v25 = vand.u32 4294901760, %v7405_v52  ;;  %v19108_v54 = vand.u32 4294901760, %v7404_v14  ;;  %12477 = vmatpush3.msra.mxu0 %v23186_v10  ;;  %v6947_v59 = vadd.f32 %v6912_v12, %v6774_v26 }
 0x583   : > { %v19115_v40 = vpop.permute.xlu0 %7055  ;;  %12478 = vmatprep.subr.mxu0 %v23188_v8  ;;  %v6948_v48 = vadd.f32 %v6913_v41, %v6775_v13  ;;  %v23195_v41 = vand.u32 4294901760, %v18983_v34 }
 0x584   : > { %23187 = vst [vmem:[#allocation457_spill] sm:$0xff] %v19115_v40  ;;  %v8456_v37 = vsub.f32 %v7405_v52, %v19106_v25  ;;  %v19120_v2 = vsub.f32 %v7404_v14, %v19108_v54  ;;  %8703 = vmatprep.mubr.f32.mxu1 %v19106_v25  ;;  %v7054_v29 = vpop.permute.xlu1 %7053  ;;  %12479 = vmatpush3.msra.mxu0 %v23189_v32  ;;  %v23191_v14 = vand.u32 4294901760, %v18986_v16 }
 0x585   : > { %v7083_v35 = vsel %vm1760_vm11, %v18587_v21, %v7054_v29  ;;  %v7084_v31 = vsel %vm1760_vm11, %v7054_v29, %v19115_v40  ;;  %8705 = vmatmul.mubr.f32.gmra.mxu1 %v19108_v54  ;;  %12480 = vmatprep.subr.mxu0 %v23190_v36  ;;  %v23194_v21 = vld [vmem:[#allocation214_spill] sm:$0xff] }
 0x586   : > { %8956 = vmatprep.mubr.f32.mxu1 %v23191_v14  ;;  %v8457_v52 = vand.u32 4294901760, %v8456_v37  ;;  %v8463_v53 = vand.u32 4294901760, %v19120_v2  ;;  %12481 = vmatpush3.msra.mxu0 %v23192_v46  ;;  %v7118_v8 = vadd.f32 %v7083_v35, %v6947_v59  ;;  %v7119_v29 = vadd.f32 %v7084_v31, %v6948_v48  ;;  %v19148_v48 = vld [vmem:[#allocation2 + $0x8] sm:$0x1] }
 0x587   : > { %v19134_v10 = vpop.permute.xlu0 %7228  ;;  %12526 = vmatprep.subr.mxu0 %v23194_v21 }
 0x588   : > { %23193 = vst [vmem:[#allocation459_spill] sm:$0xff] %v19134_v10  ;;  %v7227_v32 = vpop.permute.xlu1 %7226  ;;  %v8458_v40 = vsub.f32 %v8456_v37, %v8457_v52  ;;  %v8464_v36 = vsub.f32 %v19120_v2, %v8463_v53 }
 0x589   : > { %v7256_v26 = vsel %vm1949_vm12, %v18601_v15, %v7227_v32  ;;  %v7257_v12 = vsel %vm1949_vm12, %v7227_v32, %v19134_v10  ;;  %8960 = vmatmul.mubr.f32.vlgmr.msra.gmra.mxu1 %v23195_v41  ;;  %v19180_v32 = vld [vmem:[#allocation2 + $0x9] sm:$0x1]  ;;  %v13141_v41 = vld [vmem:[#allocation2 + $0x1] sm:$0xff] }
 0x58a   : > { %v7291_v13 = vadd.f32 %v7256_v26, %v7118_v8  ;;  %v7292_v14 = vadd.f32 %v7257_v12, %v7119_v29  ;;  %12565 = vmatpush3.msra.mxu1 %v23091_v50  ;;  %8967 = vmatprep.mubr.f32.mxu1 %v8457_v52  ;;  %v8459_v35 = vand.u32 4294901760, %v8458_v40  ;;  %v8465_v31 = vand.u32 4294901760, %v8464_v36  ;;  %v23204_v36 = vld [vmem:[#allocation88_spill] sm:$0xff]  ;;  %v23205_v26 = vld [vmem:[#allocation230_spill] sm:$0xff] }
 0x58b   : > { %12566 = vmatprep.subr.mxu1 %v23093_v6  ;;  %v19146_v59 = vpop.permute.xlu0 %6054  ;;  %v23197_v6 = vld [vmem:[#allocation11_spill] sm:$0xff] }
 0x58c   : > { %23196 = vst [vmem:[#allocation72_spill] sm:$0xff] %v19146_v59  ;;  %v7309_v15 = vadd.f32 %v7291_v13, %v22824_v30  ;;  %v7310_v46 = vadd.f32 %v7292_v14, %v22824_v30  ;;  %12567 = vmatpush3.msra.mxu1 %v23095_v60  ;;  %8460 = vmatprep.mubr.f32.mxu0 %v8459_v35  ;;  %v6053_v21 = vpop.permute.xlu1 %6052  ;;  %v23206_v13 = vld [vmem:[#allocation24_spill] sm:$0xff]  ;;  %v23345_v30 = vld [vmem:[#allocation425_spill] sm:$0xff] }
 0x58d   : > { %12568 = vmatprep.subr.mxu1 %v23098_v24  ;;  %8466 = vmatmul.mubr.f32.gmra.mxu0 %v8465_v31  ;;  %v6111_v52 = vmul.f32 %v19148_v48, %v23197_v6  ;;  %v6615_v14 = vmul.f32 %v19180_v32, %v23206_v13  ;;  %v6071_v31 = vsel %vm658_vm2, %v18613_v58, %v6053_v21  ;;  %v23212_v6 = vld [vmem:[#allocation51_spill] sm:$0xff] }
 0x58e   : > { %v7327_v50 = vmax.f32 %v7309_v15, 0.0  ;;  %v7328_v40 = vmax.f32 %v7310_v46, 0.0  ;;  %8971 = vmatmul.mubr.f32.gmra.mxu1 %v8463_v53  ;;  %8840 = vmatprep.mubr.f32.mxu0 %v18986_v16  ;;  %v23199_v16 = vld [vmem:[#allocation21_spill] sm:$0xff]  ;;  %v23209_v15 = vld [vmem:[#allocation194_spill] sm:$0xff]  ;;  %v5918_v46 = vmul.f32 %v19050_v11, %v22873_v3 }
 0x58f   : > { %12569 = vmatpush3.msra.mxu1 %v23100_v33  ;;  %9248 = vmatprep.mubr.f32.mxu1 %v18980_v9  ;;  %v19159_v8 = vpop.permute.xlu0 %6227  ;;  %v19169_v24 = vrot.slane %v19148_v48, %v23199_v16  ;;  %v23200_v33 = vld [vmem:[#allocation220_spill] sm:$0xff]  ;;  %v19176_v53 = vrot.slane %v6111_v52, %v23199_v16  ;;  %v19230_v11 = vrot.slane %v6615_v14, %v23199_v16  ;;  %v23220_v14 = vld [vmem:[#allocation242_spill] sm:$0xff] }
 0x590   : > { %23198 = vst [vmem:[#allocation73_spill] sm:$0xff] %v19159_v8  ;;  %12570 = vmatprep.subr.mxu1 %v23102_v5  ;;  %7370 = vrot.lane.b32.xlu0 %v7328_v40, %s13216_s16  ;;  %v6226_v60 = vpop.permute.xlu1 %6225  ;;  %v23211_v40 = vld [vmem:[#allocation22_spill] sm:$0xff] }
 0x591   : > { %12571 = vmatpush3.msra.mxu1 %v23105_v1  ;;  %7368 = vrot.lane.b32.xlu1 %v7327_v50, %s13216_s16  ;;  %v23202_v1 = vld [vmem:[#allocation16_spill] sm:$0xff]  ;;  %v5994_v12 = vmul.f32 %v19169_v24, %v22833_v47  ;;  %v6245_v52 = vsel %vm848_vm7, %v6226_v60, %v19159_v8 }
 0x592   : > { %12572 = vmatprep.subr.mxu1 %v23107_v39  ;;  %8843 = vmatmul.mubr.f32.vlgmr.msra.gmra.mxu0 %v18983_v34  ;;  %v6284_v29 = vmul.f32 %v19148_v48, %v23202_v1  ;;  %v23203_v34 = vld [vmem:[#allocation221_spill] sm:$0xff]  ;;  %v23210_v50 = vld [vmem:[#allocation200_spill] sm:$0xff] }
 0x593   : > { %12527 = vmatpush3.msra.mxu0 %v23200_v33  ;;  %12573 = vmatpush3.msra.mxu1 %v23109_v18  ;;  %v19173_v5 = vpop.permute.xlu0 %6400  ;;  %v6167_v18 = vmul.f32 %v19176_v53, %v22841_v28  ;;  %v23215_v1 = vld [vmem:[#allocation240_spill] sm:$0xff] }
 0x594   : > { %23201 = vst [vmem:[#allocation74_spill] sm:$0xff] %v19173_v5  ;;  %8849 = vmatprep.mubr.f32.mxu0 %v8456_v37  ;;  %12528 = vmatprep.subr.mxu0 %v23203_v34  ;;  %v6399_v39 = vpop.permute.xlu1 %6398  ;;  %v19192_v37 = vrot.slane %v13141_v41, %v23009_v61  ;;  %v19203_v28 = vrot.slane %v6284_v29, %v23199_v16  ;;  %v23216_v29 = vld [vmem:[#allocation10_spill] sm:$0xff] }
 0x595   : > { %12574 = vmatprep.subr.mxu1 %v23112_v51  ;;  %12529 = vmatpush3.msra.mxu0 %v23204_v36 }
 0x596   : > { %12575 = vmatpush3.msra.mxu1 %v23114_v20  ;;  %12530 = vmatprep.subr.mxu0 %v23205_v26  ;;  %v23208_v20 = vld [vmem:[#allocation25_spill] sm:$0xff]  ;;  %v6505_v58 = vmul.f32 %v19192_v37, %v23211_v40  ;;  %v6340_v34 = vmul.f32 %v19203_v28, %v23216_v29  ;;  %v23218_v26 = vld [vmem:[#allocation244_spill] sm:$0xff] }
 0x597   : > { %12576 = vmatprep.subr.mxu1 %v23116_v7  ;;  %6211 = vrot.lane.b32.xlu0 %v6167_v18, %s21916_s14  ;;  %v19198_v51 = vpop.permute.xlu0 %6558  ;;  %v6788_v35 = vmul.f32 %v19180_v32, %v23208_v20  ;;  %v6072_v7 = vsel %vm658_vm2, %v6053_v21, %v19146_v59  ;;  %v6244_v21 = vsel %vm848_vm7, %v23212_v6, %v6226_v60  ;;  %v23217_v60 = vld [vmem:[#allocation17_spill] sm:$0xff]  ;;  %v23221_v20 = vld [vmem:[#allocation8_spill] sm:$0xff]  ;;  %v23226_v6 = vld [vmem:[#allocation14_spill] sm:$0xff] }
 0x598   : > { %23207 = vst [vmem:[#allocation81_spill] sm:$0xff] %v19198_v51  ;;  %6038 = vrot.lane.b32.xlu1 %v5994_v12, %s13209_s21  ;;  %8852 = vmatmul.mubr.f32.gmra.mxu0 %v19120_v2  ;;  %v6557_v47 = vpop.permute.xlu1 %6556  ;;  %v5917_v2 = vmul.f32 %v19042_v42, %v22873_v3  ;;  %v6418_v18 = vsel %vm1036_vm8, %v6399_v39, %v19173_v5  ;;  %v23219_v12 = vld [vmem:[#allocation26_spill] sm:$0xff]  ;;  %v23343_v59 = vld [vmem:[#allocation420_spill] sm:$0xff] }
 0x599   : > { %12531 = vmatpush3.msra.mxu0 %v23209_v15  ;;  %12577 = vmatpush3.msra.mxu1 %v23119_v45  ;;  %v23213_v45 = vld [vmem:[#allocation236_spill] sm:$0xff]  ;;  %v19244_v41 = vrot.slane %v23219_v12, %v23009_v61  ;;  %v23223_v15 = vld [vmem:[#allocation246_spill] sm:$0xff] }
 0x59a   : > { %12532 = vmatprep.subr.mxu0 %v23210_v50  ;;  %9137 = vmatprep.mubr.f32.mxu0 %v18980_v9  ;;  %v6106_v33 = vadd.f32 %v6071_v31, %v5917_v2  ;;  %v6107_v9 = vadd.f32 %v6072_v7, %v5918_v46  ;;  %v6573_v31 = vsel %vm432_vm6, %v23221_v20, %v6557_v47  ;;  %v23222_v7 = vld [vmem:[#allocation250_spill] sm:$0xff]  ;;  %v23235_v20 = vld [vmem:[#allocation269_spill] sm:$0xff] }
 0x59b   : > { %12578 = vmatprep.subr.mxu1 %v23121_v44  ;;  %12533 = vmatpush3.msra.mxu0 %v23213_v45  ;;  %v19227_v42 = vpop.permute.xlu0 %6729  ;;  %v6417_v44 = vsel %vm1036_vm8, %v23217_v60, %v6399_v39  ;;  %v6574_v39 = vsel %vm432_vm6, %v6557_v47, %v19198_v51  ;;  %v19257_v46 = vrot.slane %v6788_v35, %v23199_v16  ;;  %v23227_v47 = vld [vmem:[#allocation259_spill] sm:$0xff]  ;;  %v23339_v51 = vld [vmem:[#allocation413_spill] sm:$0xff] }
 0x59c   : > { %23214 = vst [vmem:[#allocation85_spill] sm:$0xff] %v19227_v42  ;;  %12579 = vmatpush3.msra.mxu1 %v23123_v49  ;;  %12534 = vmatprep.subr.mxu0 %v23215_v1  ;;  %v6728_v36 = vpop.permute.xlu1 %6727  ;;  %v6279_v49 = vadd.f32 %v6244_v21, %v6106_v33  ;;  %v6280_v13 = vadd.f32 %v6245_v52, %v6107_v9  ;;  %v23228_v45 = vld [vmem:[#allocation255_spill] sm:$0xff]  ;;  %v23229_v9 = vld [vmem:[#allocation44_spill] sm:$0xff] }
 0x59d   : > { %12580 = vmatprep.subr.mxu1 %v23218_v26  ;;  %6544 = vrot.lane.b32.xlu0 %v6505_v58, %s13220_s19  ;;  %v23225_v58 = vld [vmem:[#allocation248_spill] sm:$0xff]  ;;  %v6671_v21 = vmul.f32 %v19230_v11, %v23226_v6  ;;  %v6670_v33 = vmul.f32 %v19244_v41, %v23226_v6  ;;  %v6747_v35 = vsel %vm1391_vm9, %v23229_v9, %v6728_v36  ;;  %v23231_v60 = vld [vmem:[#allocation27_spill] sm:$0xff] }
 0x59e   : > { %6384 = vrot.lane.b32.xlu1 %v6340_v34, %s13222_s22  ;;  %12535 = vmatpush3.msra.mxu0 %v23220_v14  ;;  %v6452_v50 = vadd.f32 %v6417_v44, %v6279_v49  ;;  %v6453_v40 = vadd.f32 %v6418_v18, %v6280_v13  ;;  %v6748_v1 = vsel %vm1391_vm9, %v6728_v36, %v19227_v42  ;;  %v23230_v34 = vld [vmem:[#allocation266_spill] sm:$0xff]  ;;  %v23233_v26 = vld [vmem:[#allocation19_spill] sm:$0xff] }
 0x59f   : > { %12581 = vmatpush3.msra.mxu1 %v23222_v7  ;;  %12536 = vmatprep.subr.mxu0 %v23223_v15  ;;  %v19254_v2 = vpop.permute.xlu0 %6902  ;;  %v19275_v44 = vrot.slane %v23231_v60, %v23009_v61  ;;  %v23232_v18 = vld [vmem:[#allocation258_spill] sm:$0xff]  ;;  %v23237_v7 = vld [vmem:[#allocation264_spill] sm:$0xff]  ;;  %v23238_v15 = vld [vmem:[#allocation29_spill] sm:$0xff] }
 0x5a0   : > { %23224 = vst [vmem:[#allocation55_spill] sm:$0xff] %v19254_v2  ;;  %12582 = vmatprep.subr.mxu1 %v23130_v62  ;;  %12537 = vmatpush3.msra.mxu0 %v23225_v58  ;;  %v6901_v52 = vpop.permute.xlu1 %6900  ;;  %v6608_v62 = vadd.f32 %v6573_v31, %v6452_v50  ;;  %v6609_v29 = vadd.f32 %v6574_v39, %v6453_v40  ;;  %v23236_v31 = vld [vmem:[#allocation261_spill] sm:$0xff]  ;;  %v23239_v40 = vld [vmem:[#allocation330_spill] sm:$0xff]  ;;  %v23246_v60 = vld [vmem:[#allocation275_spill] sm:$0xff] }
 0x5a1   : > { %12583 = vmatpush3.msra.mxu1 %v23227_v47  ;;  %12538 = vmatprep.subr.mxu0 %v23228_v45  ;;  %v6920_v12 = vsel %vm1580_vm10, %v23233_v26, %v6901_v52  ;;  %v6921_v36 = vsel %vm1580_vm10, %v6901_v52, %v19254_v2  ;;  %v6844_v50 = vmul.f32 %v19257_v46, %v23238_v15  ;;  %v23241_v52 = vld [vmem:[#allocation268_spill] sm:$0xff]  ;;  %v23334_v2 = vld [vmem:[#allocation449_spill] sm:$0xff] }
 0x5a2   : > { %12584 = vmatprep.subr.mxu1 %v23230_v34  ;;  %6715 = vrot.lane.b32.xlu0 %v6671_v21, %s13223_s23  ;;  %v6783_v13 = vadd.f32 %v6747_v35, %v6608_v62  ;;  %v6784_v14 = vadd.f32 %v6748_v1, %v6609_v29  ;;  %v23240_v21 = vld [vmem:[#allocation277_spill] sm:$0xff]  ;;  %v6843_v47 = vmul.f32 %v19275_v44, %v23238_v15  ;;  %v23244_v35 = vld [vmem:[#allocation274_spill] sm:$0xff]  ;;  %v23245_v34 = vld [vmem:[#allocation284_spill] sm:$0xff] }
 0x5a3   : > { %6713 = vrot.lane.b32.xlu1 %v6670_v33, %s13223_s23  ;;  %12539 = vmatpush3.msra.mxu0 %v23232_v18  ;;  %v19283_v49 = vpop.permute.xlu0 %7073  ;;  %v23242_v33 = vld [vmem:[#allocation280_spill] sm:$0xff]  ;;  %v23247_v18 = vld [vmem:[#allocation9_spill] sm:$0xff] }
 0x5a4   : > { %23234 = vst [vmem:[#allocation95_spill] sm:$0xff] %v19283_v49  ;;  %12585 = vmatpush3.msra.mxu1 %v23235_v20  ;;  %12540 = vmatprep.subr.mxu0 %v23236_v31  ;;  %v7072_v39 = vpop.permute.xlu1 %7071  ;;  %v6956_v45 = vadd.f32 %v6920_v12, %v6783_v13  ;;  %v23249_v20 = vld [vmem:[#allocation288_spill] sm:$0xff]  ;;  %v23250_v31 = vld [vmem:[#allocation291_spill] sm:$0xff] }
 0x5a5   : > { %12586 = vmatprep.subr.mxu1 %v23139_v19  ;;  %12541 = vmatpush3.msra.mxu0 %v23237_v7  ;;  %v7091_v58 = vsel %vm1760_vm11, %v23239_v40, %v7072_v39  ;;  %v7092_v6 = vsel %vm1760_vm11, %v7072_v39, %v19283_v49  ;;  %v6957_v19 = vadd.f32 %v6921_v36, %v6784_v14  ;;  %v23248_v36 = vld [vmem:[#allocation282_spill] sm:$0xff]  ;;  %v23251_v39 = vld [vmem:[#allocation188_spill] sm:$0xff] }
 0x5a6   : > { %12587 = vmatpush3.msra.mxu1 %v23240_v21  ;;  %12542 = vmatprep.subr.mxu0 %v23241_v52  ;;  %v7127_v1 = vadd.f32 %v7091_v58, %v6956_v45  ;;  %v23255_v58 = vld [vmem:[#allocation32_spill] sm:$0xff]  ;;  %v23256_v21 = vld [vmem:[#allocation13_spill] sm:$0xff] }
 0x5a7   : > { %12588 = vmatprep.subr.mxu1 %v23242_v33  ;;  %6888 = vrot.lane.b32.xlu0 %v6844_v50, %s13224_s29  ;;  %v19301_v9 = vpop.permute.xlu0 %7246  ;;  %v7128_v62 = vadd.f32 %v7092_v6, %v6957_v19  ;;  %v23252_v50 = vld [vmem:[#allocation294_spill] sm:$0xff]  ;;  %v7132_v6 = vmul.f32 %v19180_v32, %v23255_v58  ;;  %v23257_v52 = vld [vmem:[#allocation308_spill] sm:$0xff]  ;;  %v23259_v45 = vld [vmem:[#allocation313_spill] sm:$0xff] }
 0x5a8   : > { %23243 = vst [vmem:[#allocation56_spill] sm:$0xff] %v19301_v9  ;;  %6886 = vrot.lane.b32.xlu1 %v6843_v47, %s13224_s29  ;;  %12543 = vmatpush3.msra.mxu0 %v23244_v35  ;;  %v7245_v29 = vpop.permute.xlu1 %7244  ;;  %v13142_v47 = vld [vmem:[#allocation2 + $0x1] sm:$0xff] }
 0x5a9   : > { %12589 = vmatpush3.msra.mxu1 %v23245_v34  ;;  %12544 = vmatprep.subr.mxu0 %v23246_v60  ;;  %v7264_v26 = vsel %vm1949_vm12, %v23247_v18, %v7245_v29  ;;  %v7265_v12 = vsel %vm1949_vm12, %v7245_v29, %v19301_v9  ;;  %v23260_v19 = vld [vmem:[#allocation316_spill] sm:$0xff]  ;;  %v23264_v34 = vld [vmem:[#allocation34_spill] sm:$0xff]  ;;  %v23276_v58 = vld [vmem:[#allocation377_spill] sm:$0xff] }
 0x5aa   : > { %12590 = vmatprep.subr.mxu1 %v23145_v38  ;;  %12545 = vmatpush3.msra.mxu0 %v23248_v36  ;;  %v7300_v13 = vadd.f32 %v7264_v26, %v7127_v1  ;;  %v7301_v14 = vadd.f32 %v7265_v12, %v7128_v62  ;;  %v23253_v38 = vld [vmem:[#allocation300_spill] sm:$0xff]  ;;  %v19347_v1 = vrot.slane %v7132_v6, %v23199_v16  ;;  %v23266_v26 = vld [vmem:[#allocation322_spill] sm:$0xff]  ;;  %v23267_v12 = vld [vmem:[#allocation37_spill] sm:$0xff] }
 0x5ab   : > { %12591 = vmatpush3.msra.mxu1 %v23146_v55  ;;  %12546 = vmatprep.subr.mxu0 %v23249_v20  ;;  %v23254_v55 = vld [vmem:[#allocation304_spill] sm:$0xff]  ;;  %v19354_v60 = vrot.slane %v23264_v34, %v23009_v61  ;;  %v23269_v20 = vld [vmem:[#allocation363_spill] sm:$0xff]  ;;  %v23277_v6 = vld [vmem:[#allocation202_spill] sm:$0xff] }
 0x5ac   : > { %12592 = vmatprep.subr.mxu1 %v23147_v22  ;;  %12547 = vmatpush3.msra.mxu0 %v23250_v31  ;;  %v7318_v7 = vadd.f32 %v7300_v13, %v23251_v39  ;;  %v7319_v15 = vadd.f32 %v7301_v14, %v23251_v39  ;;  %v23262_v33 = vld [vmem:[#allocation36_spill] sm:$0xff]  ;;  %v7188_v36 = vmul.f32 %v19347_v1, %v23267_v12  ;;  %v23268_v13 = vld [vmem:[#allocation359_spill] sm:$0xff]  ;;  %v23270_v31 = vld [vmem:[#allocation201_spill] sm:$0xff] }
 0x5ad   : > { %12593 = vmatpush3.msra.mxu1 %v23148_v56  ;;  %12548 = vmatprep.subr.mxu0 %v23252_v50  ;;  %v19331_v56 = vrot.slane %v19180_v32, %v23199_v16  ;;  %v23261_v32 = vld [vmem:[#allocation319_spill] sm:$0xff]  ;;  %v23263_v62 = vld [vmem:[#allocation320_spill] sm:$0xff]  ;;  %v7187_v14 = vmul.f32 %v19354_v60, %v23267_v12 }
 0x5ae   : > { %12594 = vmatprep.subr.mxu1 %v23149_v43  ;;  %12549 = vmatpush3.msra.mxu0 %v23253_v38  ;;  %v7337_v40 = vmax.f32 %v7319_v15, 0.0  ;;  %v7336_v22 = vmax.f32 %v7318_v7, 0.0  ;;  %v23258_v43 = vld [vmem:[#allocation120_spill] sm:$0xff]  ;;  %v23271_v7 = vld [vmem:[#allocation367_spill] sm:$0xff]  ;;  %v19371_v15 = vpop.f32.mrf.mxu0  ;;  %v23273_v38 = vld [vmem:[#allocation370_spill] sm:$0xff] }
 0x5af   : > { %12595 = vmatpush3.msra.mxu1 %v23150_v63  ;;  %12550 = vmatprep.subr.mxu0 %v23254_v55  ;;  %v19336_v63 = vrot.slane %v13142_v47, %v23009_v61  ;;  %v7015_v35 = vmul.f32 %v19331_v56, %v23262_v33  ;;  %v23265_v18 = vld [vmem:[#allocation352_spill] sm:$0xff]  ;;  %v23275_v55 = vld [vmem:[#allocation31_spill] sm:$0xff] }
 0x5b0   : > { %9250 = vmatmul.mubr.f32.vlgmr.msra.gmra.mxu1 %v23256_v21  ;;  %12551 = vmatpush3.msra.mxu0 %v23257_v52  ;;  %v19389_v52 = vpop.f32.mrf.mxu1  ;;  %v23289_v12 = vld [vmem:[#allocation400_spill] sm:$0xff] }
 0x5b1   : > { %9255 = vmatprep.mubr.f32.mxu1 %v19106_v25  ;;  %12552 = vmatprep.subr.mxu0 %v23258_v43  ;;  %v7014_v29 = vmul.f32 %v19336_v63, %v23262_v33  ;;  %v23280_v43 = vld [vmem:[#allocation33_spill] sm:$0xff]  ;;  %v23331_v9 = vld [vmem:[#allocation448_spill] sm:$0xff] }
 0x5b2   : > { %12553 = vmatpush3.msra.mxu0 %v23259_v45  ;;  %7388 = vrot.lane.b32.xlu0 %v7337_v40, %s13216_s16  ;;  %v23274_v40 = vld [vmem:[#allocation30_spill] sm:$0xff]  ;;  %v6513_v47 = vmul.f32 %v19192_v37, %v23280_v43  ;;  %v23282_v45 = vld [vmem:[#allocation35_spill] sm:$0xff]  ;;  %v19405_v34 = vpop.f32.mrf.mxu1 }
 0x5b3   : > { %12554 = vmatprep.subr.mxu0 %v23260_v19  ;;  %7386 = vrot.lane.b32.xlu1 %v7336_v22, %s13216_s16  ;;  %v6003_v22 = vmul.f32 %v19169_v24, %v23275_v55  ;;  %v23281_v24 = vld [vmem:[#allocation389_spill] sm:$0xff]  ;;  %v23287_v37 = vld [vmem:[#allocation398_spill] sm:$0xff]  ;;  %v23296_v55 = vld [vmem:[#allocation411_spill] sm:$0xff] }
 0x5b4   : > { %9257 = vmatmul.mubr.f32.gmra.mxu1 %v19108_v54  ;;  %12555 = vmatpush3.msra.mxu0 %v23261_v32  ;;  %v23283_v32 = vld [vmem:[#allocation39_spill] sm:$0xff] }
 0x5b5   : > { %12556 = vmatprep.subr.mxu0 %v23263_v62  ;;  %12640 = vmatprep.subr.mxu1 %v23265_v18  ;;  %v6349_v33 = vmul.f32 %v19203_v28, %v23283_v32  ;;  %v23285_v62 = vld [vmem:[#allocation203_spill] sm:$0xff]  ;;  %v23288_v18 = vld [vmem:[#allocation40_spill] sm:$0xff] }
 0x5b6   : > { %12557 = vmatpush3.msra.mxu0 %v23266_v26  ;;  %7059 = vrot.lane.b32.xlu0 %v7015_v35, %s13225_s8  ;;  %v23284_v35 = vld [vmem:[#allocation392_spill] sm:$0xff]  ;;  %v6680_v26 = vmul.f32 %v19230_v11, %v23288_v18  ;;  %v23290_v28 = vld [vmem:[#allocation207_spill] sm:$0xff]  ;;  %v23294_v11 = vld [vmem:[#allocation338_spill] sm:$0xff] }
 0x5b7   : > { %9139 = vmatmul.mubr.f32.vlgmr.msra.gmra.mxu0 %v23256_v21  ;;  %7057 = vrot.lane.b32.xlu1 %v7014_v29, %s13225_s8  ;;  %v23278_v21 = vld [vmem:[#allocation380_spill] sm:$0xff]  ;;  %v23286_v29 = vld [vmem:[#allocation395_spill] sm:$0xff] }
 0x5b8   : > { %9144 = vmatprep.mubr.f32.mxu0 %v19106_v25  ;;  %12641 = vmatpush3.msra.mxu1 %v23268_v13  ;;  %v23272_v25 = vld [vmem:[#allocation38_spill] sm:$0xff]  ;;  %v6679_v13 = vmul.f32 %v19244_v41, %v23288_v18  ;;  %v23297_v41 = vld [vmem:[#allocation343_spill] sm:$0xff] }
 0x5b9   : > { %12642 = vmatprep.subr.mxu1 %v23269_v20  ;;  %12602 = vmatprep.subr.mxu0 %v23270_v31  ;;  %v6176_v50 = vmul.f32 %v19176_v53, %v23272_v25  ;;  %v23279_v53 = vld [vmem:[#allocation383_spill] sm:$0xff]  ;;  %v23292_v20 = vld [vmem:[#allocation336_spill] sm:$0xff] }
 0x5ba   : > { %7232 = vrot.lane.b32.xlu0 %v7188_v36, %s13226_s13  ;;  %12643 = vmatpush3.msra.mxu1 %v23271_v7  ;;  %v19417_v7 = vpop.f32.mrf.mxu1  ;;  %v23293_v25 = vld [vmem:[#allocation407_spill] sm:$0xff] }
 0x5bb   : > { %9146 = vmatmul.mubr.f32.gmra.mxu0 %v19108_v54  ;;  %7230 = vrot.lane.b32.xlu1 %v7187_v14, %s13226_s13  ;;  %v19385_v54 = vpop.f32.mrf.mxu0  ;;  %v23291_v14 = vld [vmem:[#allocation403_spill] sm:$0xff] }
 0x5bc   : > { %12644 = vmatprep.subr.mxu1 %v23273_v38  ;;  %12603 = vmatpush3.msra.mxu0 %v23274_v40  ;;  %v19433_v43 = vpop.f32.mrf.mxu1  ;;  %v23306_v18 = vld [vmem:[#allocation351_spill] sm:$0xff] }
 0x5bd   : > { %12645 = vmatpush3.msra.mxu1 %v23276_v58  ;;  %12604 = vmatprep.subr.mxu0 %v23277_v6  ;;  %v19395_v19 = vpop.f32.mrf.mxu0 }
 0x5be   : > { %6229 = vrot.lane.b32.xlu0 %v6176_v50, %s21916_s14  ;;  %12646 = vmatprep.subr.mxu1 %v23278_v21  ;;  %v23295_v50 = vld [vmem:[#allocation41_spill] sm:$0xff]  ;;  %v23298_v21 = vld [vmem:[#allocation412_spill] sm:$0xff]  ;;  %s270_s14 = sand.u32 1, %s13195_s25  }
 0x5bf   : > { %6056 = vrot.lane.b32.xlu1 %v6003_v22, %s13209_s21  ;;  %12647 = vmatpush3.msra.mxu1 %v23279_v53  ;;  %v19411_v36 = vpop.f32.mrf.mxu0  ;;  %v6853_v38 = vmul.f32 %v19257_v46, %v23295_v50  ;;  %v6852_v58 = vmul.f32 %v19275_v44, %v23295_v50  ;;  %v23299_v53 = vld [vmem:[#allocation346_spill] sm:$0xff]  ;;  %v23301_v46 = vld [vmem:[#allocation348_spill] sm:$0xff]  ;;  %v23304_v44 = vld [vmem:[#allocation349_spill] sm:$0xff]  ;;  %s11218_s18 = sshll.u32 %s270_s14, 1  ;;  %s20387_s28 = scalar_lea.sflag [#allocation4], %s270_s14 }
 0x5c0   : > { %12648 = vmatprep.subr.mxu1 %v23281_v24  ;;  %12605 = vmatpush3.msra.mxu0 %v23282_v45  ;;  %v23302_v24 = vld [vmem:[#allocation42_spill] sm:$0xff]  ;;  %s20263_s15 = scalar_lea.vmem [#allocation3], %s11218_s18 }
 0x5c1   : > { %12649 = vmatpush3.msra.mxu1 %v23284_v35  ;;  %12606 = vmatprep.subr.mxu0 %v23285_v62  ;;  %v19427_v22 = vpop.f32.mrf.mxu0  ;;  %v7024_v32 = vmul.f32 %v19331_v56, %v23302_v24  ;;  %v23308_v56 = vld [vmem:[#allocation355_spill] sm:$0xff]  ;;  %s11152_s21 = sshll.u32 %s20263_s15, 4  ;;  %s20382_s21 = int_to_ptr.vmem [resolvable:$true] %s11152_s21 }
 0x5c2   : > { %6560 = vrot.lane.b32.xlu0 %v6513_v47, %s13220_s19  ;;  %12650 = vmatprep.subr.mxu1 %v23286_v29  ;;  %v23300_v47 = vld [vmem:[#allocation414_spill] sm:$0xff]  ;;  %v7023_v29 = vmul.f32 %v19336_v63, %v23302_v24 }
 0x5c3   : > { %6402 = vrot.lane.b32.xlu1 %v6349_v33, %s13222_s22  ;;  %12651 = vmatpush3.msra.mxu1 %v23287_v37  ;;  %v23303_v33 = vld [vmem:[#allocation426_spill] sm:$0xff]  ;;  %v19443_v35 = vpop.f32.mrf.mxu0  ;;  %v23305_v37 = vld [vmem:[#allocation429_spill] sm:$0xff]  ;;  %s20380_s22 = scalar_lea.hbm %s20435_s7, %s11233_s9 }
 0x5c4   : > { %12652 = vmatprep.subr.mxu1 %v23289_v12  ;;  %12607 = vmatpush3.msra.mxu0 %v23290_v28  ;;  %v23307_v12 = vld [vmem:[#allocation432_spill] sm:$0xff]  ;;  %v23311_v63 = vld [vmem:[#allocation358_spill] sm:$0xff] }
 0x5c5   : > { %12653 = vmatpush3.msra.mxu1 %v23291_v14  ;;  %12608 = vmatprep.subr.mxu0 %v23292_v20  ;;  %v19459_v50 = vpop.f32.mrf.mxu0  ;;  %v23317_v24 = vld [vmem:[#allocation54_spill] sm:$0xff] }
 0x5c6   : > { %6733 = vrot.lane.b32.xlu0 %v6680_v26, %s13223_s23  ;;  %12654 = vmatprep.subr.mxu1 %v23293_v25  ;;  %v19449_v26 = vpop.f32.mrf.mxu1  ;;  %v23310_v25 = vld [vmem:[#allocation437_spill] sm:$0xff]  ;;  %23312 = vst [vmem:[#allocation96_spill] sm:$0xff] %v19459_v50 }
 0x5c7   : > { %6731 = vrot.lane.b32.xlu1 %v6679_v13, %s13223_s23  ;;  %12609 = vmatpush3.msra.mxu0 %v23294_v11  ;;  %v23309_v13 = vld [vmem:[#allocation43_spill] sm:$0xff]  ;;  %s13143_s23 = scalar_lea.vmem %s20382_s21, 32 }
 0x5c8   : > { %12655 = vmatpush3.msra.mxu1 %v23296_v55  ;;  %12610 = vmatprep.subr.mxu0 %v23297_v41  ;;  %v7197_v14 = vmul.f32 %v19347_v1, %v23309_v13  ;;  %v23313_v55 = vld [vmem:[#allocation439_spill] sm:$0xff]  ;;  %v23316_v1 = vld [vmem:[#allocation362_spill] sm:$0xff]  ;;  %p13144_p11 = scmp.ne.s32.totalorder %s20382_s21, %s13143_s23 }
 0x5c9   : > { %12656 = vmatprep.subr.mxu1 %v23298_v21  ;;  %12611 = vmatpush3.msra.mxu0 %v23299_v53  ;;  %v19465_v21 = vpop.f32.mrf.mxu1 }
 0x5ca   : > { %6906 = vrot.lane.b32.xlu0 %v6853_v38, %s13224_s29  ;;  %12657 = vmatpush3.msra.mxu1 %v23300_v47  ;;  %v7196_v38 = vmul.f32 %v19354_v60, %v23309_v13  ;;  %v23315_v47 = vld [vmem:[#allocation441_spill] sm:$0xff]  ;;  %v23320_v60 = vld [vmem:[#allocation6_spill] sm:$0xff]  ;;  %p13145_p12 = pnand %p13144_p11, %p13307_p5 }
 0x5cb   : > { %6904 = vrot.lane.b32.xlu1 %v6852_v58, %s13224_s29  ;;  %12612 = vmatprep.subr.mxu0 %v23301_v46  ;;  %v23314_v58 = vld [vmem:[#allocation361_spill] sm:$0xff]  ;;  %v23323_v13 = vld [vmem:[#allocation382_spill] sm:$0xff]  ;;  %s13227_s29 = smov [#allocation3]  }
 0x5cc   : > { %12658 = vmatprep.subr.mxu1 %v23303_v33  ;;  %12613 = vmatpush3.msra.mxu0 %v23304_v44  ;;  %v19473_v33 = vpop.f32.mrf.mxu0  ;;  %p13146_p13 = pneg %p13145_p12 }
 0x5cd   : > { %12659 = vmatpush3.msra.mxu1 %v23305_v37  ;;  %12614 = vmatprep.subr.mxu0 %v23306_v18  ;;  %23319 = vst [vmem:[#allocation99_spill] sm:$0xff] %v19473_v33  ;;  %v19477_v37 = vpop.f32.mrf.mxu1 }
 0x5ce   : > { %7077 = vrot.lane.b32.xlu0 %v7024_v32, %s13225_s8  ;;  %12660 = vmatprep.subr.mxu1 %v23307_v12  ;;  %v23318_v32 = vld [vmem:[#allocation366_spill] sm:$0xff]  ;;  %v23322_v12 = vld [vmem:[#allocation444_spill] sm:$0xff] }
 0x5cf   : > { %7075 = vrot.lane.b32.xlu1 %v7023_v29, %s13225_s8  ;;  %12615 = vmatpush3.msra.mxu0 %v23308_v56  ;;  %v23321_v29 = vld [vmem:[#allocation376_spill] sm:$0xff]  ;;  %v19489_v39 = vpop.f32.mrf.mxu1  ;;  %s13147_s8 = sshll.u32 %s13227_s29, 4  ;;  %s13148_s8 = int_to_ptr.vmem [resolvable:$false] %s13147_s8 }
 0x5d0   : > { %12661 = vmatpush3.msra.mxu1 %v23310_v25  ;;  %12616 = vmatprep.subr.mxu0 %v23311_v63  ;;  %v23325_v25 = vld [vmem:[#allocation445_spill] sm:$0xff]  ;;  %p13150_p0 = scmp.lt.s32.totalorder %s20382_s21, %s13148_s8 }
 0x5d1   : > { %12662 = vmatprep.subr.mxu1 %v23313_v55  ;;  %12617 = vmatpush3.msra.mxu0 %v23314_v58  ;;  %v23327_v55 = vld [vmem:[#allocation446_spill] sm:$0xff]  ;;  %v19497_v42 = vpop.f32.mrf.mxu1 }
 0x5d2   : > { %7250 = vrot.lane.b32.xlu0 %v7197_v14, %s13226_s13  ;;  %12663 = vmatpush3.msra.mxu1 %v23315_v47  ;;  %v19481_v14 = vpop.f32.mrf.mxu0  ;;  %v23328_v47 = vld [vmem:[#allocation391_spill] sm:$0xff]  ;;  %23336 = vst [vmem:[#allocation62_spill] sm:$0xff] %v19497_v42  ;;  %v23347_v42 = vld [vmem:[#allocation204_spill] sm:$0xff] }
 0x5d3   : > { %7248 = vrot.lane.b32.xlu1 %v7196_v38, %s13226_s13  ;;  %12618 = vmatprep.subr.mxu0 %v23316_v1  ;;  %23324 = vst [vmem:[#allocation57_spill] sm:$0xff] %v19481_v14  ;;  %v23326_v38 = vld [vmem:[#allocation385_spill] sm:$0xff]  ;;  %v19506_v8 = vpop.f32.mrf.mxu1  ;;  %s13149_s13 = scalar_lea.vmem %s13148_s8, 64 }
 0x5d4   : > { %12664 = vmatprep.subr.mxu1 %v23317_v24  ;;  %12619 = vmatpush3.msra.mxu0 %v23318_v32  ;;  %v23329_v24 = vld [vmem:[#allocation447_spill] sm:$0xff]  ;;  %v19493_v49 = vpop.f32.mrf.mxu0  ;;  %23342 = vst [vmem:[#allocation65_spill] sm:$0xff] %v19506_v8  ;;  %p13151_p1 = scmp.lt.s32.totalorder %s13149_s13, %s13143_s23 }
 0x5d5   : > { %12665 = vmatpush3.msra.mxu1 %v23320_v60  ;;  %12620 = vmatprep.subr.mxu0 %v23321_v29  ;;  %v23330_v60 = vld [vmem:[#allocation394_spill] sm:$0xff]  ;;  %23333 = vst [vmem:[#allocation103_spill] sm:$0xff] %v19493_v49 }
 0x5d6   : > { %12666 = vmatprep.subr.mxu1 %v23322_v12  ;;  %12621 = vmatpush3.msra.mxu0 %v23323_v13  ;;  %v23332_v12 = vld [vmem:[#allocation397_spill] sm:$0xff]  ;;  %v19503_v5 = vpop.f32.mrf.mxu0  ;;  %p13152_p2 = por %p13151_p1, %p13150_p0 }
 0x5d7   : > { %12667 = vmatpush3.msra.mxu1 %v23325_v25  ;;  %12622 = vmatprep.subr.mxu0 %v23326_v38  ;;  %v23335_v25 = vld [vmem:[#allocation402_spill] sm:$0xff]  ;;  %23340 = vst [vmem:[#allocation104_spill] sm:$0xff] %v19503_v5 }
 0x5d8   : > { %12668 = vmatprep.subr.mxu1 %v23327_v55  ;;  %12623 = vmatpush3.msra.mxu0 %v23328_v47  ;;  %v23337_v55 = vld [vmem:[#allocation406_spill] sm:$0xff]  ;;  %v19511_v10 = vpop.f32.mrf.mxu0  ;;  %p13153_p3 = pnand %p13152_p2, %p13146_p13 }
 0x5d9   : > { %12669 = vmatpush3.msra.mxu1 %v23329_v24  ;;  %12624 = vmatprep.subr.mxu0 %v23330_v60  ;;  %v23338_v24 = vld [vmem:[#allocation410_spill] sm:$0xff]  ;;  %23346 = vst [vmem:[#allocation115_spill] sm:$0xff] %v19511_v10 }
 0x5da   : > { %12670 = vmatprep.subr.mxu1 %v23331_v9  ;;  %12625 = vmatpush3.msra.mxu0 %v23332_v12  ;;  %v23341_v9 = vld [vmem:[#allocation417_spill] sm:$0xff]  ;;  %v19516_v4 = vpop.f32.mrf.mxu0 }
 0x5db   : > { %12671 = vmatpush3.msra.mxu1 %v23334_v2  ;;  %12626 = vmatprep.subr.mxu0 %v23335_v25  ;;  %v23344_v2 = vld [vmem:[#allocation423_spill] sm:$0xff]  ;;  %23349 = vst [vmem:[#allocation116_spill] sm:$0xff] %v19516_v4 }
 0x5dc   : > { %12627 = vmatpush3.msra.mxu0 %v23337_v55  ;;  %12716 = vmatprep.subr.mxu1 %v23270_v31  ;;  %v19514_v31 = vpop.f32.mrf.mxu1  ;;  %v19520_v5 = vpop.f32.mrf.mxu0 }
 0x5dd   : > { %12628 = vmatprep.subr.mxu0 %v23338_v24  ;;  %23348 = vst [vmem:[#allocation68_spill] sm:$0xff] %v19514_v31  ;;  %23351 = vst [vmem:[#allocation124_spill] sm:$0xff] %v19520_v5 }
 0x5de   : > { %12629 = vmatpush3.msra.mxu0 %v23339_v51  ;;  %v19518_v49 = vpop.f32.mrf.mxu1  ;;  %v19524_v8 = vpop.f32.mrf.mxu0 }
 0x5df   : > { %12630 = vmatprep.subr.mxu0 %v23341_v9  ;;  %23350 = vst [vmem:[#allocation70_spill] sm:$0xff] %v19518_v49  ;;  %23353 = vst [vmem:[#allocation125_spill] sm:$0xff] %v19524_v8 }
 0x5e0   : > { %12631 = vmatpush3.msra.mxu0 %v23343_v59  ;;  %v19522_v14 = vpop.f32.mrf.mxu1  ;;  %v19528_v50 = vpop.f32.mrf.mxu0 }
 0x5e1   : > { %12632 = vmatprep.subr.mxu0 %v23344_v2  ;;  %23352 = vst [vmem:[#allocation78_spill] sm:$0xff] %v19522_v14  ;;  %23355 = vst [vmem:[#allocation127_spill] sm:$0xff] %v19528_v50 }
 0x5e2   : > { %12633 = vmatpush3.msra.mxu0 %v23345_v30  ;;  %v19526_v33 = vpop.f32.mrf.mxu1  ;;  %v19532_v10 = vpop.f32.mrf.mxu0 }
 0x5e3   : > { %12678 = vmatprep.subr.mxu0 %v23347_v42  ;;  %23354 = vst [vmem:[#allocation79_spill] sm:$0xff] %v19526_v33  ;;  %23357 = vst [vmem:[#allocation135_spill] sm:$0xff] %v19532_v10 }
 0x5e4   : > { %v19530_v30 = vpop.f32.mrf.mxu1  ;;  %v19536_v31 = vpop.f32.mrf.mxu0 }
 0x5e5   : > { %23356 = vst [vmem:[#allocation80_spill] sm:$0xff] %v19530_v30  ;;  %23359 = vst [vmem:[#allocation137_spill] sm:$0xff] %v19536_v31 }
 0x5e6   : > { %v19534_v42 = vpop.f32.mrf.mxu1  ;;  %v19540_v49 = vpop.f32.mrf.mxu0 }
 0x5e7   : > { %23358 = vst [vmem:[#allocation91_spill] sm:$0xff] %v19534_v42  ;;  %23361 = vst [vmem:[#allocation138_spill] sm:$0xff] %v19540_v49  ;;  %v23368_v42 = vld [vmem:[#allocation190_spill] sm:$0xff] }
 0x5e8   : > { %v19538_v4 = vpop.f32.mrf.mxu1  ;;  %v19544_v14 = vpop.f32.mrf.mxu0 }
 0x5e9   : > { %23360 = vst [vmem:[#allocation94_spill] sm:$0xff] %v19538_v4  ;;  %23363 = vst [vmem:[#allocation100_spill] sm:$0xff] %v19544_v14 }
 0x5ea   : > { %v19542_v5 = vpop.f32.mrf.mxu1  ;;  %v19548_v33 = vpop.f32.mrf.mxu0 }
 0x5eb   : > { %23362 = vst [vmem:[#allocation144_spill] sm:$0xff] %v19542_v5  ;;  %23365 = vst [vmem:[#allocation101_spill] sm:$0xff] %v19548_v33 }
 0x5ec   : > { %v19546_v8 = vpop.f32.mrf.mxu1  ;;  %v19558_v49 = vpop.f32.mrf.mxu0 }
 0x5ed   : > { %23364 = vst [vmem:[#allocation146_spill] sm:$0xff] %v19546_v8  ;;  %23369 = vst [vmem:[#allocation102_spill] sm:$0xff] %v19558_v49 }
 0x5ee   : > { %v19552_v10 = vpop.f32.mrf.mxu1 }
 0x5ef   : > { %23367 = vst [vmem:[#allocation154_spill] sm:$0xff] %v19552_v10 }
 0x5f0   : > { %v19564_v8 = vpop.f32.mrf.mxu1 }
 0x5f1   : > { %23372 = vst [vmem:[#allocation168_spill] sm:$0xff] %v19564_v8 }
 0x5f2   : > { %v19579_v10 = vpop.f32.mrf.mxu1 }
 0x5f3   : > { %23374 = vst [vmem:[#allocation173_spill] sm:$0xff] %v19579_v10 }
 0x5f4   : > { %v19593_v10 = vpop.f32.mrf.mxu1 }
 0x5f5   : > { %23376 = vst [vmem:[#allocation174_spill] sm:$0xff] %v19593_v10 }
 0x602   : > { %v19550_v50 = vpop.permute.xlu0 %7370 }
 0x603   : > { %23366 = vst [vmem:[#allocation153_spill] sm:$0xff] %v19550_v50  ;;  %v7369_v30 = vpop.permute.xlu1 %7368 }
 0x604   : > { %v7398_v31 = vsel %vm1816_vm5, %v23368_v42, %v7369_v30  ;;  %v7399_v4 = vsel %vm1816_vm5, %v7369_v30, %v19550_v50  ;;  %v19574_v42 = vpop.f32.mrf.mxu0 }
 0x605   : > { %v19560_v5 = vand.u32 4294901760, %v7399_v4  ;;  %v19562_v14 = vand.u32 4294901760, %v7398_v31  ;;  %23373 = vst [vmem:[#allocation111_spill] sm:$0xff] %v19574_v42 }
 0x607   : > { %23370 = vst [vmem:[#allocation155_spill] sm:$0xff] %v19560_v5  ;;  %23371 = vst [vmem:[#allocation110_spill] sm:$0xff] %v19562_v14  ;;  %v19567_v33 = vsub.f32 %v7399_v4, %v19560_v5  ;;  %v19570_v2 = vsub.f32 %v7398_v31, %v19562_v14  ;;  %9614 = vmatprep.mubr.f32.mxu1 %v19560_v5  ;;  %v23378_v5 = vld [vmem:[#allocation50_spill] sm:$0xff] }
 0x608   : > { %9616 = vmatmul.mubr.f32.vlgmr.msra.gmra.mxu1 %v19562_v14  ;;  %v19590_v14 = vpop.f32.mrf.mxu0 }
 0x609   : > { %v21708_v30 = vand.u32 4294901760, %v19570_v2  ;;  %12717 = vmatpush3.msra.mxu1 %v23274_v40  ;;  %v21713_v50 = vand.u32 4294901760, %v19567_v33  ;;  %23375 = vst [vmem:[#allocation112_spill] sm:$0xff] %v19590_v14  ;;  %v6212_v49 = vpop.permute.xlu0 %6211  ;;  %v23392_v14 = vld [vmem:[#allocation347_spill] sm:$0xff] }
 0x60a   : > { %12718 = vmatprep.subr.mxu1 %v23277_v6  ;;  %v6039_v6 = vpop.permute.xlu1 %6038 }
 0x60b   : > { %v9367_v4 = vsub.f32 %v19570_v2, %v21708_v30  ;;  %12719 = vmatpush3.msra.mxu1 %v23282_v45  ;;  %v9361_v31 = vsub.f32 %v19567_v33, %v21713_v50  ;;  %v19596_v30 = vpop.f32.mrf.mxu0  ;;  %v5855_v45 = vmul.f32 %v19148_v48, %v23378_v5  ;;  %v23381_v50 = vld [vmem:[#allocation456_spill] sm:$0xff]  ;;  %v23384_v5 = vld [vmem:[#allocation211_spill] sm:$0xff] }
 0x60c   : > { %12720 = vmatprep.subr.mxu1 %v23285_v62  ;;  %23377 = vst [vmem:[#allocation122_spill] sm:$0xff] %v19596_v30  ;;  %v19608_v10 = vrot.slane %v23381_v50, %v23009_v61  ;;  %v23382_v30 = vld [vmem:[#allocation332_spill] sm:$0xff]  ;;  %v23388_v50 = vld [vmem:[#allocation451_spill] sm:$0xff] }
 0x60d   : > { %v9368_v42 = vand.u32 4294901760, %v9367_v4  ;;  %v9362_v8 = vand.u32 4294901760, %v9361_v31  ;;  %12721 = vmatpush3.msra.mxu1 %v23290_v28  ;;  %v23379_v4 = vld [vmem:[#allocation205_spill] sm:$0xff]  ;;  %v19604_v31 = vpop.f32.mrf.mxu1  ;;  %v19612_v48 = vpop.f32.mrf.mxu0 }
 0x60e   : > { %12722 = vmatprep.subr.mxu1 %v23292_v20  ;;  %23380 = vst [vmem:[#allocation175_spill] sm:$0xff] %v19604_v31  ;;  %23383 = vst [vmem:[#allocation123_spill] sm:$0xff] %v19612_v48  ;;  %v23386_v31 = vld [vmem:[#allocation333_spill] sm:$0xff] }
 0x60f   : > { %9363 = vmatprep.mubr.f32.mxu0 %v9362_v8  ;;  %12723 = vmatpush3.msra.mxu1 %v23294_v11  ;;  %v19615_v8 = vrot.slane %v5855_v45, %v23199_v16  ;;  %v19625_v61 = vpop.f32.mrf.mxu0  ;;  %v23389_v16 = vld [vmem:[#allocation335_spill] sm:$0xff]  ;;  %v23390_v45 = vld [vmem:[#allocation45_spill] sm:$0xff] }
 0x610   : > { %9369 = vmatmul.mubr.f32.vlgmr.msra.gmra.mxu0 %v9368_v42  ;;  %12724 = vmatprep.subr.mxu1 %v23297_v41  ;;  %v19619_v42 = vpop.f32.mrf.mxu1  ;;  %23387 = vst [vmem:[#allocation132_spill] sm:$0xff] %v19625_v61  ;;  %v6385_v48 = vpop.permute.xlu1 %6384 }
 0x611   : > { %12679 = vmatpush3.msra.mxu0 %v23379_v4  ;;  %12725 = vmatpush3.msra.mxu1 %v23299_v53  ;;  %23385 = vst [vmem:[#allocation180_spill] sm:$0xff] %v19619_v42  ;;  %v19621_v4 = vpop.permute.xlu0 %6544  ;;  %v23391_v42 = vld [vmem:[#allocation345_spill] sm:$0xff] }
 0x612   : > { %12680 = vmatprep.subr.mxu0 %v23382_v30  ;;  %12726 = vmatprep.subr.mxu1 %v23301_v46  ;;  %v6065_v30 = vsel %vm658_vm2, %v23388_v50, %v6039_v6  ;;  %v19639_v50 = vpop.f32.mrf.mxu1 }
 0x613   : > { %12681 = vmatpush3.msra.mxu0 %v23384_v5  ;;  %12727 = vmatpush3.msra.mxu1 %v23304_v44  ;;  %v5910_v5 = vmul.f32 %v19608_v10, %v23390_v45  ;;  %23393 = vst [vmem:[#allocation181_spill] sm:$0xff] %v19639_v50  ;;  %v23400_v50 = vld [vmem:[#allocation369_spill] sm:$0xff] }
 0x614   : > { %12682 = vmatprep.subr.mxu0 %v23386_v31  ;;  %12728 = vmatprep.subr.mxu1 %v23306_v18  ;;  %v5911_v31 = vmul.f32 %v19615_v8, %v23390_v45 }
 0x615   : > { %12683 = vmatpush3.msra.mxu0 %v23389_v16  ;;  %12729 = vmatpush3.msra.mxu1 %v23308_v56  ;;  %v6099_v61 = vadd.f32 %v6065_v30, %v5910_v5  ;;  %v23394_v16 = vld [vmem:[#allocation350_spill] sm:$0xff]  ;;  %v19643_v56 = vpop.f32.mrf.mxu0  ;;  %v6716_v45 = vpop.permute.xlu0 %6715  ;;  %v6238_v30 = vsel %vm848_vm7, %v19005_v27, %v6212_v49 }
 0x616   : > { %12684 = vmatprep.subr.mxu0 %v23391_v42  ;;  %12730 = vmatprep.subr.mxu1 %v23311_v63  ;;  %v6100_v18 = vadd.f32 %v6039_v6, %v5911_v31  ;;  %v23395_v42 = vld [vmem:[#allocation354_spill] sm:$0xff]  ;;  %v19647_v63 = vpop.f32.mrf.mxu1  ;;  %v6714_v5 = vpop.permute.xlu1 %6713  ;;  %v23399_v31 = vld [vmem:[#allocation365_spill] sm:$0xff] }
 0x617   : > { %12685 = vmatpush3.msra.mxu0 %v23392_v14  ;;  %12731 = vmatpush3.msra.mxu1 %v23314_v58  ;;  %23396 = vst [vmem:[#allocation133_spill] sm:$0xff] %v19647_v63  ;;  %v23397_v14 = vld [vmem:[#allocation357_spill] sm:$0xff]  ;;  %v6272_v6 = vadd.f32 %v6238_v30, %v6099_v61  ;;  %v11268_v61 = vadd.f32 %v19385_v54, %v19371_v15  ;;  %v23403_v30 = vld [vmem:[#allocation374_spill] sm:$0xff] }
 0x618   : > { %12686 = vmatprep.subr.mxu0 %v23394_v16  ;;  %12732 = vmatprep.subr.mxu1 %v23316_v1  ;;  %v23398_v16 = vld [vmem:[#allocation360_spill] sm:$0xff]  ;;  %v6273_v63 = vadd.f32 %v6212_v49, %v6100_v18  ;;  %v19663_v27 = vpop.f32.mrf.mxu1 }
 0x619   : > { %12687 = vmatpush3.msra.mxu0 %v23395_v42  ;;  %12733 = vmatpush3.msra.mxu1 %v23318_v32  ;;  %v19657_v42 = vpop.f32.mrf.mxu0  ;;  %23401 = vst [vmem:[#allocation184_spill] sm:$0xff] %v19663_v27  ;;  %v6889_v18 = vpop.permute.xlu0 %6888  ;;  %v23405_v27 = vld [vmem:[#allocation379_spill] sm:$0xff] }
 0x61a   : > { %12688 = vmatprep.subr.mxu0 %v23397_v14  ;;  %12734 = vmatprep.subr.mxu1 %v23321_v29  ;;  %v6411_v14 = vsel %vm1036_vm8, %v19016_v23, %v6385_v48  ;;  %v11271_v23 = vadd.f32 %v19411_v36, %v19395_v19  ;;  %v6446_v54 = vadd.f32 %v6385_v48, %v6273_v63  ;;  %v19685_v36 = vpop.f32.mrf.mxu1  ;;  %v23407_v63 = vld [vmem:[#allocation393_spill] sm:$0xff] }
 0x61b   : > { %12689 = vmatpush3.msra.mxu0 %v23398_v16  ;;  %12735 = vmatpush3.msra.mxu1 %v23323_v13  ;;  %v23402_v16 = vld [vmem:[#allocation372_spill] sm:$0xff]  ;;  %v6445_v49 = vadd.f32 %v6411_v14, %v6272_v6  ;;  %v19679_v15 = vpop.f32.mrf.mxu0  ;;  %v11309_v19 = vadd.f32 %v19433_v43, %v19417_v7  ;;  %v19702_v43 = vadd.f32 %v19489_v39, %v19477_v37 }
 0x61c   : > { %12690 = vmatprep.subr.mxu0 %v23399_v31  ;;  %12736 = vmatprep.subr.mxu1 %v23326_v38  ;;  %v11306_v31 = vadd.f32 %v19405_v34, %v19389_v52  ;;  %v23406_v6 = vld [vmem:[#allocation388_spill] sm:$0xff]  ;;  %v19691_v52 = vmul.f32 %v19608_v10, %v22873_v3  ;;  %v19715_v39 = vpop.f32.mrf.mxu1  ;;  %v6742_v37 = vsel %vm1391_vm9, %v6714_v5, %v6716_v45  ;;  %v23419_v45 = vld [vmem:[#allocation409_spill] sm:$0xff] }
 0x61d   : > { %12691 = vmatpush3.msra.mxu0 %v23400_v50  ;;  %12737 = vmatpush3.msra.mxu1 %v23328_v47  ;;  %v23404_v50 = vld [vmem:[#allocation375_spill] sm:$0xff]  ;;  %v2497_v7 = vadd.f32 %v11309_v19, %v11271_v23  ;;  %v23409_v14 = vld [vmem:[#allocation396_spill] sm:$0xff]  ;;  %v23410_v23 = vld [vmem:[#allocation401_spill] sm:$0xff] }
 0x61e   : > { %12692 = vmatprep.subr.mxu0 %v23402_v16  ;;  %12738 = vmatprep.subr.mxu1 %v23330_v60  ;;  %v11344_v16 = vadd.f32 %v19443_v35, %v19427_v22  ;;  %v2490_v34 = vadd.f32 %v11306_v31, %v11268_v61  ;;  %v11382_v22 = vadd.f32 %v19465_v21, %v19449_v26  ;;  %v19708_v21 = vpop.f32.mrf.mxu0  ;;  %v23411_v31 = vld [vmem:[#allocation405_spill] sm:$0xff] }
 0x61f   : > { %12693 = vmatpush3.msra.mxu0 %v23403_v30  ;;  %12739 = vmatpush3.msra.mxu1 %v23332_v12  ;;  %v6887_v30 = vpop.permute.xlu1 %6886  ;;  %v6568_v35 = vsel %vm432_vm6, %v19028_v0, %v19621_v4  ;;  %v6602_v0 = vadd.f32 %v19621_v4, %v6446_v54  ;;  %v23412_v4 = vld [vmem:[#allocation423_spill] sm:$0xff]  ;;  %v23415_v19 = vld [vmem:[#allocation57_spill] sm:$0xff] }
 0x620   : > { %12694 = vmatprep.subr.mxu0 %v23404_v50  ;;  %12740 = vmatprep.subr.mxu1 %v23335_v25  ;;  %v6601_v48 = vadd.f32 %v6568_v35, %v6445_v49  ;;  %v2635_v26 = vadd.f32 %v11344_v16, %v2490_v34  ;;  %v23414_v16 = vld [vmem:[#allocation99_spill] sm:$0xff] }
 0x621   : > { %12695 = vmatpush3.msra.mxu0 %v23405_v27  ;;  %12741 = vmatpush3.msra.mxu1 %v23337_v55  ;;  %v6741_v27 = vsel %vm1391_vm9, %v19044_v17, %v6714_v5  ;;  %v23413_v17 = vld [vmem:[#allocation96_spill] sm:$0xff] }
 0x622   : > { %12696 = vmatprep.subr.mxu0 %v23406_v6  ;;  %12742 = vmatprep.subr.mxu1 %v23338_v24  ;;  %v11347_v54 = vadd.f32 %v23414_v16, %v23413_v17  ;;  %v23416_v6 = vld [vmem:[#allocation103_spill] sm:$0xff]  ;;  %v6776_v5 = vadd.f32 %v6741_v27, %v6601_v48  ;;  %v23423_v17 = vld [vmem:[#allocation201_spill] sm:$0xff]  ;;  %v19739_v16 = vpop.f32.mrf.mxu0 }
 0x623   : > { %12697 = vmatpush3.msra.mxu0 %v23407_v63  ;;  %12743 = vmatpush3.msra.mxu1 %v23339_v51  ;;  %v11420_v34 = vadd.f32 %v23416_v6, %v23415_v19  ;;  %v6777_v19 = vadd.f32 %v6742_v37, %v6602_v0  ;;  %v23424_v27 = vld [vmem:[#allocation419_spill] sm:$0xff]  ;;  %v23427_v0 = vld [vmem:[#allocation422_spill] sm:$0xff] }
 0x624   : > { %v19704_v10 = vpop.permute.xlu0 %7388  ;;  %12698 = vmatprep.subr.mxu0 %v23409_v14  ;;  %12744 = vmatprep.subr.mxu1 %v23341_v9  ;;  %v23421_v14 = vld [vmem:[#allocation48_spill] sm:$0xff]  ;;  %v19756_v37 = vpop.f32.mrf.mxu0 }
 0x625   : > { %23408 = vst [vmem:[#allocation186_spill] sm:$0xff] %v19704_v10  ;;  %v7387_v61 = vpop.permute.xlu1 %7386  ;;  %12699 = vmatpush3.msra.mxu0 %v23410_v23  ;;  %12745 = vmatpush3.msra.mxu1 %v23343_v59  ;;  %v6915_v23 = vsel %vm1580_vm10, %v6887_v30, %v6889_v18  ;;  %v2752_v18 = vadd.f32 %v11382_v22, %v2635_v26  ;;  %23428 = vst [vmem:[#allocation61_spill] sm:$0xff] %v19756_v37  ;;  %v23430_v26 = vld [vmem:[#allocation424_spill] sm:$0xff]  ;;  %v23436_v37 = vld [vmem:[#allocation431_spill] sm:$0xff] }
 0x626   : > { %v7406_v49 = vsel %vm1816_vm5, %v19092_v57, %v7387_v61  ;;  %v7407_v50 = vsel %vm1816_vm5, %v7387_v61, %v19704_v10  ;;  %12700 = vmatprep.subr.mxu0 %v23411_v31  ;;  %12746 = vmatprep.subr.mxu1 %v23412_v4  ;;  %v23420_v57 = vld [vmem:[#allocation425_spill] sm:$0xff]  ;;  %v6914_v61 = vsel %vm1580_vm10, %v23421_v14, %v6887_v30  ;;  %v23422_v10 = vld [vmem:[#allocation416_spill] sm:$0xff]  ;;  %v19749_v30 = vpop.f32.mrf.mxu1 }
 0x627   : > { %v19728_v35 = vand.u32 4294901760, %v7407_v50  ;;  %v19730_v63 = vand.u32 4294901760, %v7406_v49  ;;  %12701 = vmatpush3.msra.mxu0 %v23419_v45  ;;  %12747 = vmatpush3.msra.mxu1 %v23420_v57  ;;  %23425 = vst [vmem:[#allocation60_spill] sm:$0xff] %v19749_v30  ;;  %v23431_v30 = vld [vmem:[#allocation62_spill] sm:$0xff]  ;;  %v23433_v57 = vld [vmem:[#allocation104_spill] sm:$0xff] }
 0x628   : > { %v7060_v31 = vpop.permute.xlu0 %7059  ;;  %12702 = vmatprep.subr.mxu0 %v23422_v10  ;;  %12792 = vmatprep.subr.mxu1 %v23423_v17  ;;  %v23426_v10 = vld [vmem:[#allocation457_spill] sm:$0xff] }
 0x629   : > { %23417 = vst [vmem:[#allocation187_spill] sm:$0xff] %v19728_v35  ;;  %23418 = vst [vmem:[#allocation59_spill] sm:$0xff] %v19730_v63  ;;  %v19742_v6 = vsub.f32 %v7407_v50, %v19728_v35  ;;  %v19745_v45 = vsub.f32 %v7406_v49, %v19730_v63  ;;  %9621 = vmatprep.mubr.f32.mxu1 %v19728_v35  ;;  %v7058_v48 = vpop.permute.xlu1 %7057  ;;  %12703 = vmatpush3.msra.mxu0 %v23424_v27  ;;  %v23429_v35 = vand.u32 4294901760, %v19567_v33 }
 0x62a   : > { %v7085_v14 = vsel %vm1760_vm11, %v23426_v10, %v7058_v48  ;;  %v7086_v17 = vsel %vm1760_vm11, %v7058_v48, %v7060_v31  ;;  %9623 = vmatmul.mubr.f32.gmra.mxu1 %v19730_v63  ;;  %12704 = vmatprep.subr.mxu0 %v23427_v0  ;;  %v6949_v49 = vadd.f32 %v6914_v61, %v6776_v5  ;;  %v23432_v31 = vld [vmem:[#allocation65_spill] sm:$0xff]  ;;  %v23434_v0 = vld [vmem:[#allocation115_spill] sm:$0xff]  ;;  %v23435_v5 = vld [vmem:[#allocation428_spill] sm:$0xff] }
 0x62b   : > { %v6950_v50 = vadd.f32 %v6915_v23, %v6777_v19  ;;  %9874 = vmatprep.mubr.f32.mxu1 %v23429_v35  ;;  %v9375_v22 = vand.u32 4294901760, %v19742_v6  ;;  %12705 = vmatpush3.msra.mxu0 %v23430_v26  ;;  %v9381_v27 = vand.u32 4294901760, %v19745_v45  ;;  %v2644_v10 = vadd.f32 %v11347_v54, %v2497_v7  ;;  %v23437_v7 = vld [vmem:[#allocation116_spill] sm:$0xff] }
 0x62c   : > { %v11458_v48 = vadd.f32 %v23432_v31, %v23431_v30  ;;  %v2931_v63 = vadd.f32 %v11420_v34, %v2752_v18  ;;  %v11423_v4 = vadd.f32 %v23434_v0, %v23433_v57  ;;  %v7233_v59 = vpop.permute.xlu0 %7232  ;;  %12706 = vmatprep.subr.mxu0 %v23435_v5  ;;  %v7120_v61 = vadd.f32 %v7085_v14, %v6949_v49  ;;  %v23438_v54 = vld [vmem:[#allocation124_spill] sm:$0xff]  ;;  %v19773_v30 = vpop.f32.mrf.mxu1  ;;  %v23439_v34 = vld [vmem:[#allocation459_spill] sm:$0xff] }
 0x62d   : > { %v7121_v23 = vadd.f32 %v7086_v17, %v6950_v50  ;;  %v7231_v35 = vpop.permute.xlu1 %7230  ;;  %v9376_v19 = vsub.f32 %v19742_v6, %v9375_v22  ;;  %v9382_v26 = vsub.f32 %v19745_v45, %v9381_v27  ;;  %12707 = vmatpush3.msra.mxu0 %v23436_v37  ;;  %v11496_v9 = vadd.f32 %v23438_v54, %v23437_v7  ;;  %v23441_v17 = vld [vmem:[#allocation434_spill] sm:$0xff]  ;;  %v19781_v49 = vpop.f32.mrf.mxu0  ;;  %v23442_v5 = vld [vmem:[#allocation68_spill] sm:$0xff] }
 0x62e   : > { %v7258_v57 = vsel %vm1949_vm12, %v23439_v34, %v7231_v35  ;;  %v7259_v18 = vsel %vm1949_vm12, %v7231_v35, %v7233_v59  ;;  %v23440_v14 = vand.u32 4294901760, %v19570_v2  ;;  %12708 = vmatprep.subr.mxu0 %v23441_v17  ;;  %v23443_v7 = vld [vmem:[#allocation70_spill] sm:$0xff]  ;;  %v2763_v34 = vadd.f32 %v19702_v43, %v2644_v10  ;;  %v19787_v59 = vpop.f32.mrf.mxu1  ;;  %v23448_v10 = vld [vmem:[#allocation72_spill] sm:$0xff] }
 0x62f   : > { %v7293_v50 = vadd.f32 %v7258_v57, %v7120_v61  ;;  %v7294_v31 = vadd.f32 %v7259_v18, %v7121_v23  ;;  %v9377_v37 = vand.u32 4294901760, %v9376_v19  ;;  %v9383_v0 = vand.u32 4294901760, %v9382_v26  ;;  %v23444_v35 = vld [vmem:[#allocation202_spill] sm:$0xff]  ;;  %v23445_v61 = vld [vmem:[#allocation436_spill] sm:$0xff]  ;;  %v23447_v26 = vld [vmem:[#allocation35_spill] sm:$0xff] }
 0x630   : > { %9878 = vmatmul.mubr.f32.vlgmr.msra.gmra.mxu1 %v23440_v14  ;;  %v11461_v54 = vadd.f32 %v23443_v7, %v23442_v5  ;;  %v6230_v14 = vpop.permute.xlu0 %6229  ;;  %v5920_v17 = vmul.f32 %v19615_v8, %v22873_v3  ;;  %12709 = vmatpush3.msra.mxu0 %v23445_v61  ;;  %v3042_v23 = vadd.f32 %v11458_v48, %v2931_v63  ;;  %v19799_v8 = vpop.f32.mrf.mxu0  ;;  %v23451_v7 = vld [vmem:[#allocation125_spill] sm:$0xff] }
 0x631   : > { %12793 = vmatpush3.msra.mxu1 %v23274_v40  ;;  %9885 = vmatprep.mubr.f32.mxu1 %v9375_v22  ;;  %v23446_v40 = vld [vmem:[#allocation46_spill] sm:$0xff]  ;;  %v6057_v57 = vpop.permute.xlu1 %6056  ;;  %v2938_v43 = vadd.f32 %v11423_v4, %v2763_v34 }
 0x632   : > { %12794 = vmatprep.subr.mxu1 %v23444_v35  ;;  %v7311_v22 = vadd.f32 %v7293_v50, %v23446_v40  ;;  %v7312_v19 = vadd.f32 %v7294_v31, %v23446_v40  ;;  %9378 = vmatprep.mubr.f32.mxu0 %v9377_v37  ;;  %v6073_v18 = vsel %vm658_vm2, %v23448_v10, %v6057_v57  ;;  %v23449_v31 = vld [vmem:[#allocation78_spill] sm:$0xff]  ;;  %v23450_v37 = vld [vmem:[#allocation79_spill] sm:$0xff]  ;;  %v19807_v35 = vpop.f32.mrf.mxu1 }
 0x633   : > { %12795 = vmatpush3.msra.mxu1 %v23447_v26  ;;  %v6109_v5 = vadd.f32 %v6057_v57, %v5920_v17  ;;  %9384 = vmatmul.mubr.f32.gmra.mxu0 %v9383_v0  ;;  %v3161_v3 = vadd.f32 %v11496_v9, %v3042_v23  ;;  %v6108_v50 = vadd.f32 %v6073_v18, %v19691_v52  ;;  %v23453_v17 = vld [vmem:[#allocation73_spill] sm:$0xff]  ;;  %v23454_v0 = vld [vmem:[#allocation155_spill] sm:$0xff]  ;;  %v23458_v57 = vld [vmem:[#allocation74_spill] sm:$0xff]  ;;  %v19821_v18 = vpop.f32.mrf.mxu0 }
 0x634   : > { %12796 = vmatprep.subr.mxu1 %v23285_v62  ;;  %v7329_v63 = vmax.f32 %v7311_v22, 0.0  ;;  %v7330_v48 = vmax.f32 %v7312_v19, 0.0  ;;  %9889 = vmatmul.mubr.f32.gmra.mxu1 %v9381_v27  ;;  %v11534_v4 = vadd.f32 %v23450_v37, %v23449_v31  ;;  %v23452_v62 = vld [vmem:[#allocation127_spill] sm:$0xff]  ;;  %v6246_v9 = vsel %vm848_vm7, %v23453_v17, %v6230_v14  ;;  %v6561_v61 = vpop.permute.xlu0 %6560  ;;  %v23456_v27 = vld [vmem:[#allocation137_spill] sm:$0xff]  ;;  %v19825_v31 = vpop.f32.mrf.mxu1  ;;  %v23462_v37 = vld [vmem:[#allocation138_spill] sm:$0xff] }
 0x635   : > { %9758 = vmatprep.mubr.f32.mxu0 %v19567_v33  ;;  %v11499_v34 = vadd.f32 %v23452_v62, %v23451_v7  ;;  %12797 = vmatpush3.msra.mxu1 %v23290_v28  ;;  %v23455_v52 = vld [vmem:[#allocation135_spill] sm:$0xff]  ;;  %v23457_v33 = vld [vmem:[#allocation334_spill] sm:$0xff]  ;;  %v6281_v40 = vadd.f32 %v6246_v9, %v6108_v50  ;;  %v6282_v22 = vadd.f32 %v6230_v14, %v6109_v5  ;;  %v6403_v19 = vpop.permute.xlu1 %6402  ;;  %v19829_v14 = vpop.f32.mrf.mxu0  ;;  %v23466_v62 = vld [vmem:[#allocation144_spill] sm:$0xff] }
 0x636   : > { %10166 = vmatprep.mubr.f32.mxu1 %v23454_v0  ;;  %v11572_v23 = vadd.f32 %v23456_v27, %v23455_v52  ;;  %12798 = vmatprep.subr.mxu1 %v23292_v20  ;;  %v3049_v26 = vadd.f32 %v11461_v54, %v2938_v43  ;;  %v6419_v28 = vsel %vm1036_vm8, %v23458_v57, %v6403_v19  ;;  %v23467_v17 = vld [vmem:[#allocation101_spill] sm:$0xff]  ;;  %v23468_v9 = vld [vmem:[#allocation102_spill] sm:$0xff] }
 0x637   : > { %12754 = vmatprep.subr.mxu0 %v23457_v33  ;;  %12799 = vmatpush3.msra.mxu1 %v23294_v11  ;;  %v3408_v10 = vadd.f32 %v11534_v4, %v3161_v3  ;;  %v6454_v43 = vadd.f32 %v6419_v28, %v6281_v40  ;;  %v6455_v5 = vadd.f32 %v6403_v19, %v6282_v22  ;;  %v23459_v3 = vld [vmem:[#allocation339_spill] sm:$0xff]  ;;  %v23463_v4 = vld [vmem:[#allocation100_spill] sm:$0xff]  ;;  %v23469_v27 = vld [vmem:[#allocation341_spill] sm:$0xff]  ;;  %v19851_v57 = vpop.f32.mrf.mxu0 }
 0x638   : > { %7374 = vrot.lane.b32.xlu0 %v7330_v48, %s13216_s16  ;;  %12800 = vmatprep.subr.mxu1 %v23297_v41  ;;  %v3176_v20 = vadd.f32 %v11499_v34, %v3049_v26  ;;  %v6734_v11 = vpop.permute.xlu0 %6733  ;;  %v23460_v48 = vld [vmem:[#allocation80_spill] sm:$0xff]  ;;  %v11575_v7 = vadd.f32 %v23463_v4, %v23462_v37  ;;  %v11648_v52 = vadd.f32 %v23468_v9, %v23467_v17  ;;  %v23470_v33 = vld [vmem:[#allocation81_spill] sm:$0xff]  ;;  %v23471_v22 = vld [vmem:[#allocation342_spill] sm:$0xff] }
 0x639   : > { %7372 = vrot.lane.b32.xlu1 %v7329_v63, %s13216_s16  ;;  %9761 = vmatmul.mubr.f32.vlgmr.msra.gmra.mxu0 %v19570_v2  ;;  %v3553_v54 = vadd.f32 %v11572_v23, %v3408_v10  ;;  %v6732_v41 = vpop.permute.xlu1 %6731  ;;  %v23461_v63 = vld [vmem:[#allocation91_spill] sm:$0xff]  ;;  %v23464_v2 = vld [vmem:[#allocation340_spill] sm:$0xff]  ;;  %v19845_v23 = vpop.f32.mrf.mxu1  ;;  %v6575_v40 = vsel %vm432_vm6, %v23470_v33, %v6561_v61  ;;  %v6611_v28 = vadd.f32 %v6561_v61, %v6455_v5  ;;  %v23477_v4 = vld [vmem:[#allocation154_spill] sm:$0xff] }
 0x63a   : > { %12801 = vmatpush3.msra.mxu1 %v23299_v53  ;;  %12755 = vmatpush3.msra.mxu0 %v23459_v3  ;;  %v11537_v50 = vadd.f32 %v23461_v63, %v23460_v48  ;;  %v23465_v53 = vld [vmem:[#allocation94_spill] sm:$0xff]  ;;  %v23472_v19 = vld [vmem:[#allocation351_spill] sm:$0xff]  ;;  %v6610_v10 = vadd.f32 %v6575_v40, %v6454_v43  ;;  %v23474_v48 = vld [vmem:[#allocation85_spill] sm:$0xff] }
 0x63b   : > { %9767 = vmatprep.mubr.f32.mxu0 %v19742_v6  ;;  %12756 = vmatprep.subr.mxu0 %v23464_v2  ;;  %v11610_v34 = vadd.f32 %v23466_v62, %v23465_v53  ;;  %v23473_v3 = vld [vmem:[#allocation355_spill] sm:$0xff]  ;;  %v6749_v63 = vsel %vm1391_vm9, %v23474_v48, %v6732_v41  ;;  %v23475_v37 = vld [vmem:[#allocation344_spill] sm:$0xff]  ;;  %v23479_v43 = vld [vmem:[#allocation173_spill] sm:$0xff]  ;;  %v19864_v53 = vpop.f32.mrf.mxu1  ;;  %v19866_v62 = vpop.f32.mrf.mxu0 }
 0x63c   : > { %12802 = vmatprep.subr.mxu1 %v23301_v46  ;;  %12757 = vmatpush3.msra.mxu0 %v23469_v27  ;;  %v3415_v6 = vadd.f32 %v11537_v50, %v3176_v20  ;;  %v6907_v46 = vpop.permute.xlu0 %6906  ;;  %v6750_v50 = vsel %vm1391_vm9, %v6732_v41, %v6734_v11  ;;  %v23478_v61 = vld [vmem:[#allocation168_spill] sm:$0xff]  ;;  %v23482_v11 = vld [vmem:[#allocation111_spill] sm:$0xff]  ;;  %v23486_v33 = vld [vmem:[#allocation122_spill] sm:$0xff] }
 0x63d   : > { %12803 = vmatpush3.msra.mxu1 %v23304_v44  ;;  %12758 = vmatprep.subr.mxu0 %v23471_v22  ;;  %v3670_v26 = vadd.f32 %v11610_v34, %v3553_v54  ;;  %v6905_v44 = vpop.permute.xlu1 %6904  ;;  %v23476_v54 = vld [vmem:[#allocation146_spill] sm:$0xff]  ;;  %v11686_v5 = vadd.f32 %v23479_v43, %v23478_v61  ;;  %v23483_v41 = vld [vmem:[#allocation112_spill] sm:$0xff]  ;;  %v23487_v40 = vld [vmem:[#allocation123_spill] sm:$0xff]  ;;  %v19886_v61 = vpop.f32.mrf.mxu1 }
 0x63e   : > { %12804 = vmatprep.subr.mxu1 %v23472_v19  ;;  %9770 = vmatmul.mubr.f32.gmra.mxu0 %v19745_v45  ;;  %v3562_v20 = vadd.f32 %v11575_v7, %v3415_v6  ;;  %v11613_v2 = vadd.f32 %v23477_v4, %v23476_v54  ;;  %v23480_v7 = vld [vmem:[#allocation353_spill] sm:$0xff]  ;;  %v23481_v34 = vld [vmem:[#allocation358_spill] sm:$0xff]  ;;  %v11651_v17 = vadd.f32 %v23483_v41, %v23482_v11  ;;  %v23484_v9 = vld [vmem:[#allocation356_spill] sm:$0xff] }
 0x63f   : > { %12805 = vmatpush3.msra.mxu1 %v23473_v3  ;;  %12759 = vmatpush3.msra.mxu0 %v23475_v37  ;;  %v3849_v45 = vadd.f32 %v11648_v52, %v3670_v26  ;;  %v6923_v52 = vsel %vm1580_vm10, %v6905_v44, %v6907_v46  ;;  %v11724_v22 = vadd.f32 %v23487_v40, %v23486_v33  ;;  %v23488_v3 = vld [vmem:[#allocation364_spill] sm:$0xff]  ;;  %v23494_v43 = vld [vmem:[#allocation373_spill] sm:$0xff] }
 0x640   : > { %10055 = vmatprep.mubr.f32.mxu0 %v23454_v0  ;;  %12760 = vmatprep.subr.mxu0 %v23480_v7  ;;  %v23485_v0 = vld [vmem:[#allocation55_spill] sm:$0xff]  ;;  %v7078_v6 = vpop.permute.xlu0 %7077  ;;  %v6785_v19 = vadd.f32 %v6749_v63, %v6610_v10  ;;  %v6786_v26 = vadd.f32 %v6750_v50, %v6611_v28  ;;  %v3681_v37 = vadd.f32 %v11613_v2, %v3562_v20  ;;  %v23489_v54 = vld [vmem:[#allocation368_spill] sm:$0xff]  ;;  %v19888_v10 = vpop.f32.mrf.mxu0  ;;  %v23500_v33 = vld [vmem:[#allocation181_spill] sm:$0xff] }
 0x641   : > { %12806 = vmatprep.subr.mxu1 %v23481_v34  ;;  %12761 = vmatpush3.msra.mxu0 %v23484_v9  ;;  %v6922_v27 = vsel %vm1580_vm10, %v23485_v0, %v6905_v44  ;;  %v7076_v48 = vpop.permute.xlu1 %7075  ;;  %v3960_v44 = vadd.f32 %v11686_v5, %v3849_v45  ;;  %v23491_v50 = vld [vmem:[#allocation371_spill] sm:$0xff]  ;;  %v19896_v45 = vpop.f32.mrf.mxu1  ;;  %v23495_v34 = vld [vmem:[#allocation378_spill] sm:$0xff] }
 0x642   : > { %12807 = vmatpush3.msra.mxu1 %v23314_v58  ;;  %12762 = vmatprep.subr.mxu0 %v23488_v3  ;;  %v23490_v58 = vld [vmem:[#allocation95_spill] sm:$0xff]  ;;  %v7094_v46 = vsel %vm1760_vm11, %v7076_v48, %v7078_v6  ;;  %v6958_v28 = vadd.f32 %v6922_v27, %v6785_v19  ;;  %v6959_v63 = vadd.f32 %v6923_v52, %v6786_v26  ;;  %v23497_v27 = vld [vmem:[#allocation381_spill] sm:$0xff]  ;;  %v23499_v6 = vld [vmem:[#allocation180_spill] sm:$0xff] }
 0x643   : > { %12808 = vmatprep.subr.mxu1 %v23316_v1  ;;  %12763 = vmatpush3.msra.mxu0 %v23489_v54  ;;  %v7093_v4 = vsel %vm1760_vm11, %v23490_v58, %v7076_v48  ;;  %v23492_v1 = vld [vmem:[#allocation174_spill] sm:$0xff]  ;;  %v23493_v20 = vld [vmem:[#allocation175_spill] sm:$0xff]  ;;  %v4079_v5 = vadd.f32 %v11724_v22, %v3960_v44  ;;  %v11762_v40 = vadd.f32 %v23500_v33, %v23499_v6  ;;  %v19909_v22 = vpop.f32.mrf.mxu0 }
 0x644   : > { %12809 = vmatpush3.msra.mxu1 %v23318_v32  ;;  %12764 = vmatprep.subr.mxu0 %v23491_v50  ;;  %v11689_v2 = vadd.f32 %v23493_v20, %v23492_v1  ;;  %v3856_v32 = vadd.f32 %v11651_v17, %v3681_v37  ;;  %v7251_v7 = vpop.permute.xlu0 %7250  ;;  %v7129_v11 = vadd.f32 %v7093_v4, %v6958_v28  ;;  %v23498_v17 = vld [vmem:[#allocation56_spill] sm:$0xff]  ;;  %v23502_v3 = vld [vmem:[#allocation386_spill] sm:$0xff]  ;;  %v19917_v37 = vpop.f32.mrf.mxu1  ;;  %v23503_v54 = vld [vmem:[#allocation387_spill] sm:$0xff] }
 0x645   : > { %12810 = vmatprep.subr.mxu1 %v23321_v29  ;;  %12765 = vmatpush3.msra.mxu0 %v23494_v43  ;;  %v7130_v41 = vadd.f32 %v7094_v46, %v6959_v63  ;;  %v7249_v9 = vpop.permute.xlu1 %7248  ;;  %v23496_v29 = vld [vmem:[#allocation132_spill] sm:$0xff]  ;;  %v4326_v48 = vadd.f32 %v11762_v40, %v4079_v5  ;;  %v23505_v44 = vld [vmem:[#allocation390_spill] sm:$0xff]  ;;  %v11838_v20 = vadd.f32 %v19715_v39, %v19685_v36  ;;  %v23512_v43 = vld [vmem:[#allocation61_spill] sm:$0xff] }
 0x646   : > { %12811 = vmatpush3.msra.mxu1 %v23323_v13  ;;  %12766 = vmatprep.subr.mxu0 %v23495_v34  ;;  %v11727_v0 = vadd.f32 %v19643_v56, %v23496_v29  ;;  %v7266_v13 = vsel %vm1949_vm12, %v23498_v17, %v7249_v9  ;;  %v7267_v52 = vsel %vm1949_vm12, %v7249_v9, %v7251_v7  ;;  %v23504_v4 = vld [vmem:[#allocation188_spill] sm:$0xff]  ;;  %v23516_v36 = vld [vmem:[#allocation423_spill] sm:$0xff]  ;;  %v23517_v9 = vld [vmem:[#allocation421_spill] sm:$0xff] }
 0x647   : > { %12812 = vmatprep.subr.mxu1 %v23326_v38  ;;  %12767 = vmatpush3.msra.mxu0 %v23497_v27  ;;  %v23501_v38 = vld [vmem:[#allocation384_spill] sm:$0xff]  ;;  %v7302_v19 = vadd.f32 %v7266_v13, %v7129_v11  ;;  %v7303_v56 = vadd.f32 %v7267_v52, %v7130_v41  ;;  %v3967_v26 = vadd.f32 %v11689_v2, %v3856_v32  ;;  %v23511_v32 = vld [vmem:[#allocation417_spill] sm:$0xff]  ;;  %v23515_v11 = vld [vmem:[#allocation418_spill] sm:$0xff] }
 0x648   : > { %12813 = vmatpush3.msra.mxu1 %v23328_v47  ;;  %12768 = vmatprep.subr.mxu0 %v23501_v38  ;;  %v11800_v47 = vadd.f32 %v19679_v15, %v19657_v42  ;;  %v12027_v42 = vpop.f32.mrf.mxu0  ;;  %v23506_v15 = vld [vmem:[#allocation399_spill] sm:$0xff]  ;;  %v23508_v28 = vld [vmem:[#allocation184_spill] sm:$0xff]  ;;  %v11876_v7 = vadd.f32 %v19781_v49, %v23512_v43  ;;  %v23518_v29 = vld [vmem:[#allocation425_spill] sm:$0xff]  ;;  %v11879_v6 = vadd.f32 %v19821_v18, %v19799_v8 }
 0x649   : > { %12814 = vmatprep.subr.mxu1 %v23330_v60  ;;  %12769 = vmatpush3.msra.mxu0 %v23502_v3  ;;  %v4094_v58 = vadd.f32 %v11727_v0, %v3967_v26  ;;  %v7320_v60 = vadd.f32 %v7302_v19, %v23504_v4  ;;  %v7321_v46 = vadd.f32 %v7303_v56, %v23504_v4  ;;  %v23509_v1 = vld [vmem:[#allocation404_spill] sm:$0xff]  ;;  %v23519_v27 = vld [vmem:[#allocation427_spill] sm:$0xff]  ;;  %v23520_v49 = vld [vmem:[#allocation110_spill] sm:$0xff] }
 0x64a   : > { %12815 = vmatpush3.msra.mxu1 %v23332_v12  ;;  %12770 = vmatprep.subr.mxu0 %v23503_v54  ;;  %v23507_v12 = vld [vmem:[#allocation133_spill] sm:$0xff]  ;;  %v4471_v50 = vadd.f32 %v11800_v47, %v4326_v48  ;;  %v23510_v2 = vld [vmem:[#allocation408_spill] sm:$0xff]  ;;  %v23522_v40 = vld [vmem:[#allocation430_spill] sm:$0xff]  ;;  %v11914_v19 = vadd.f32 %v19807_v35, %v19787_v59 }
 0x64b   : > { %12816 = vmatprep.subr.mxu1 %v23335_v25  ;;  %12771 = vmatpush3.msra.mxu0 %v23505_v44  ;;  %v11765_v63 = vadd.f32 %v23508_v28, %v23507_v12  ;;  %v11803_v25 = vadd.f32 %v19739_v16, %v19708_v21  ;;  %v7338_v5 = vmax.f32 %v7320_v60, 0.0  ;;  %v7339_v34 = vmax.f32 %v7321_v46, 0.0  ;;  %v23513_v21 = vld [vmem:[#allocation415_spill] sm:$0xff]  ;;  %v23514_v16 = vld [vmem:[#allocation420_spill] sm:$0xff]  ;;  %v23524_v26 = vld [vmem:[#allocation433_spill] sm:$0xff] }
 0x64c   : > { %12817 = vmatpush3.msra.mxu1 %v23337_v55  ;;  %12772 = vmatprep.subr.mxu0 %v23506_v15  ;;  %v19935_v55 = vpop.f32.mrf.mxu1  ;;  %v4588_v41 = vadd.f32 %v11838_v20, %v4471_v50  ;;  %v23521_v17 = vld [vmem:[#allocation60_spill] sm:$0xff]  ;;  %v23523_v38 = vld [vmem:[#allocation187_spill] sm:$0xff]  ;;  %v23528_v4 = vld [vmem:[#allocation438_spill] sm:$0xff]  ;;  %v11955_v46 = vadd.f32 %v19888_v10, %v19866_v62 }
 0x64d   : > { %12818 = vmatprep.subr.mxu1 %v23338_v24  ;;  %12773 = vmatpush3.msra.mxu0 %v23509_v1  ;;  %v4333_v24 = vadd.f32 %v11765_v63, %v4094_v58  ;;  %v11841_v13 = vadd.f32 %v19773_v30, %v23521_v17  ;;  %v11952_v30 = vadd.f32 %v19851_v57, %v19829_v14  ;;  %v23525_v47 = vld [vmem:[#allocation487_spill] sm:$0xff]  ;;  %v23529_v60 = vld [vmem:[#allocation494_spill] sm:$0xff]  ;;  %v23530_v59 = vld [vmem:[#allocation440_spill] sm:$0xff] }
 0x64e   : > { %12819 = vmatpush3.msra.mxu1 %v23339_v51  ;;  %12774 = vmatprep.subr.mxu0 %v23510_v2  ;;  %v12029_v51 = vpop.f32.mrf.mxu0  ;;  %v12065_v0 = vpop.f32.mrf.mxu1  ;;  %v4767_v52 = vadd.f32 %v11876_v7, %v4588_v41  ;;  %v23526_v3 = vld [vmem:[#allocation435_spill] sm:$0xff]  ;;  %v11917_v14 = vadd.f32 %v19845_v23, %v19825_v31  ;;  %v23532_v44 = vld [vmem:[#allocation442_spill] sm:$0xff]  ;;  %v23535_v50 = vld [vmem:[#allocation325_spill] sm:$0xff]  ;;  %v12028_v31 = vadd.f32 %v12027_v42, %v19909_v22 }
 0x64f   : > { %12820 = vmatprep.subr.mxu1 %v23511_v32  ;;  %12775 = vmatpush3.msra.mxu0 %v23513_v21  ;;  %v4480_v39 = vadd.f32 %v11803_v25, %v4333_v24  ;;  %v23527_v48 = vld [vmem:[#allocation59_spill] sm:$0xff]  ;;  %v23533_v15 = vld [vmem:[#allocation502_spill] sm:$0xff]  ;;  %v11990_v25 = vadd.f32 %v19886_v61, %v19864_v53  ;;  %v23536_v23 = vld [vmem:[#allocation505_spill] sm:$0xff]  ;;  %v11993_v22 = vadd.f32 %v19917_v37, %v19896_v45 }
 0x650   : > { %12821 = vmatpush3.msra.mxu1 %v23514_v16  ;;  %12776 = vmatprep.subr.mxu0 %v23515_v11  ;;  %v12030_v33 = vpop.f32.mrf.mxu0  ;;  %v12067_v8 = vpop.f32.mrf.mxu1  ;;  %v4878_v58 = vadd.f32 %v11914_v19, %v4767_v52  ;;  %v23531_v35 = vld [vmem:[#allocation499_spill] sm:$0xff]  ;;  %v23537_v10 = vld [vmem:[#allocation58_spill] sm:$0xff]  ;;  %v23540_v53 = vld [vmem:[#allocation28_spill] sm:$0xff]  ;;  %v12066_v11 = vadd.f32 %v12065_v0, %v19935_v55 }
 0x651   : > { %12822 = vmatprep.subr.mxu1 %v23516_v36  ;;  %12777 = vmatpush3.msra.mxu0 %v23517_v9  ;;  %v4599_v56 = vadd.f32 %v11841_v13, %v4480_v39  ;;  %v23534_v63 = vld [vmem:[#allocation443_spill] sm:$0xff]  ;;  %v23538_v32 = vld [vmem:[#allocation510_spill] sm:$0xff]  ;;  %v12031_v7 = vadd.f32 %v12030_v33, %v12029_v51  ;;  %v23543_v21 = vld [vmem:[#allocation464_spill] sm:$0xff] }
 0x652   : > { %12823 = vmatpush3.msra.mxu1 %v23518_v29  ;;  %12778 = vmatprep.subr.mxu0 %v23519_v27  ;;  %v12102_v18 = vpop.f32.mrf.mxu0  ;;  %v4997_v57 = vadd.f32 %v11952_v30, %v4878_v58  ;;  %v12068_v12 = vpop.f32.mrf.mxu1  ;;  %v23539_v24 = vld [vmem:[#allocation458_spill] sm:$0xff]  ;;  %v23544_v16 = vld [vmem:[#allocation525_spill] sm:$0xff]  ;;  %v23545_v41 = vld [vmem:[#allocation467_spill] sm:$0xff] }
 0x653   : > { %10168 = vmatmul.mubr.f32.vlgmr.msra.gmra.mxu1 %v23520_v49  ;;  %7392 = vrot.lane.b32.xlu0 %v7339_v34, %s13216_s16  ;;  %v4774_v54 = vadd.f32 %v11879_v6, %v4599_v56  ;;  %v23541_v61 = vld [vmem:[#allocation462_spill] sm:$0xff]  ;;  %v23546_v9 = vld [vmem:[#allocation527_spill] sm:$0xff]  ;;  %v23548_v51 = vld [vmem:[#allocation533_spill] sm:$0xff]  ;;  %v12069_v0 = vadd.f32 %v12068_v12, %v12067_v8 }
 0x654   : > { %7390 = vrot.lane.b32.xlu1 %v7338_v5, %s13216_s16  ;;  %12779 = vmatpush3.msra.mxu0 %v23522_v40  ;;  %v12103_v28 = vpop.f32.mrf.mxu0  ;;  %v12140_v62 = vpop.f32.mrf.mxu1  ;;  %v5244_v2 = vadd.f32 %v11990_v25, %v4997_v57  ;;  %v23542_v5 = vld [vmem:[#allocation523_spill] sm:$0xff]  ;;  %v23550_v17 = vld [vmem:[#allocation536_spill] sm:$0xff]  ;;  %v23556_v56 = vld [vmem:[#allocation550_spill] sm:$0xff] }
 0x655   : > { %10173 = vmatprep.mubr.f32.mxu1 %v23523_v38  ;;  %12780 = vmatprep.subr.mxu0 %v23524_v26  ;;  %v4885_v1 = vadd.f32 %v11917_v14, %v4774_v54  ;;  %v12104_v39 = vadd.f32 %v12103_v28, %v12102_v18  ;;  %v23547_v37 = vld [vmem:[#allocation471_spill] sm:$0xff]  ;;  %v23551_v52 = vld [vmem:[#allocation476_spill] sm:$0xff]  ;;  %v23560_v8 = vld [vmem:[#allocation553_spill] sm:$0xff] }
 0x656   : > { %12868 = vmatprep.subr.mxu1 %v23525_v47  ;;  %12781 = vmatpush3.msra.mxu0 %v23526_v3  ;;  %v12105_v43 = vpop.f32.mrf.mxu0  ;;  %v5389_v42 = vadd.f32 %v12028_v31, %v5244_v2  ;;  %v12141_v34 = vpop.f32.mrf.mxu1  ;;  %v23552_v55 = vld [vmem:[#allocation539_spill] sm:$0xff]  ;;  %v23555_v19 = vld [vmem:[#allocation480_spill] sm:$0xff]  ;;  %v23557_v47 = vld [vmem:[#allocation482_spill] sm:$0xff] }
 0x657   : > { %10175 = vmatmul.mubr.f32.gmra.mxu1 %v23527_v48  ;;  %12782 = vmatprep.subr.mxu0 %v23528_v4  ;;  %v5012_v20 = vadd.f32 %v11955_v46, %v4885_v1  ;;  %v23553_v40 = vld [vmem:[#allocation479_spill] sm:$0xff]  ;;  %v12142_v30 = vadd.f32 %v12141_v34, %v12140_v62  ;;  %v23558_v18 = vld [vmem:[#allocation452_spill] sm:$0xff]  ;;  %v23561_v4 = vld [vmem:[#allocation493_spill] sm:$0xff] }
 0x658   : > { %12869 = vmatpush3.msra.mxu1 %v23529_v60  ;;  %12783 = vmatpush3.msra.mxu0 %v23530_v59  ;;  %v12106_v45 = vpop.f32.mrf.mxu0  ;;  %v5506_v27 = vadd.f32 %v12066_v11, %v5389_v42  ;;  %v12143_v13 = vpop.f32.mrf.mxu1  ;;  %v23562_v60 = vld [vmem:[#allocation196_spill] sm:$0xff]  ;;  %v20016_v59 = vld [vmem:[%s20433_s5 + $0x10] sm:$0xff]  ;;  %v23565_v14 = vld [vmem:[#allocation473_spill] sm:$0xff] }
 0x659   : > { %12870 = vmatprep.subr.mxu1 %v23531_v35  ;;  %12784 = vmatprep.subr.mxu0 %v23532_v44  ;;  %v5251_v36 = vadd.f32 %v11993_v22, %v5012_v20  ;;  %v12107_v33 = vadd.f32 %v12106_v45, %v12105_v43  ;;  %23563 = vst [vmem:[#allocation67_spill] sm:$0xff] %v20016_v59  ;;  %v23564_v35 = vld [vmem:[#allocation500_spill] sm:$0xff]  ;;  %v23566_v46 = vld [vmem:[#allocation501_spill] sm:$0xff]  ;;  %v23569_v12 = vld [vmem:[#allocation567_spill] sm:$0xff] }
 0x65a   : > { %12871 = vmatpush3.msra.mxu1 %v23533_v15  ;;  %12785 = vmatpush3.msra.mxu0 %v23534_v63  ;;  %v5685_v6 = vadd.f32 %v12104_v39, %v5506_v27  ;;  %v12144_v3 = vpop.f32.mrf.mxu1  ;;  %v23567_v44 = vld [vmem:[#allocation564_spill] sm:$0xff]  ;;  %v23568_v15 = vld [vmem:[#allocation503_spill] sm:$0xff]  ;;  %v23571_v25 = vld [vmem:[#allocation570_spill] sm:$0xff] }
 0x65b   : > { %12872 = vmatprep.subr.mxu1 %v23535_v50  ;;  %10057 = vmatmul.mubr.f32.vlgmr.msra.gmra.mxu0 %v23520_v49  ;;  %v5398_v29 = vadd.f32 %v12031_v7, %v5251_v36  ;;  %v23549_v49 = vld [vmem:[#allocation474_spill] sm:$0xff]  ;;  %v12145_v57 = vadd.f32 %v12144_v3, %v12143_v13  ;;  %v23570_v50 = vld [vmem:[#allocation504_spill] sm:$0xff]  ;;  %v23573_v31 = vld [vmem:[#allocation513_spill] sm:$0xff] }
 0x65c   : > { %12873 = vmatpush3.msra.mxu1 %v23536_v23  ;;  %10062 = vmatprep.mubr.f32.mxu0 %v23523_v38  ;;  %v23554_v38 = vld [vmem:[#allocation542_spill] sm:$0xff]  ;;  %v5796_v54 = vadd.f32 %v12142_v30, %v5685_v6  ;;  %v23574_v23 = vld [vmem:[#allocation572_spill] sm:$0xff]  ;;  %v23580_v22 = vld [vmem:[#allocation519_spill] sm:$0xff] }
 0x65d   : > { %12874 = vmatprep.subr.mxu1 %v23537_v10  ;;  %12830 = vmatprep.subr.mxu0 %v23539_v24  ;;  %v5517_v26 = vadd.f32 %v12069_v0, %v5398_v29  ;;  %v20030_v1 = vld [vmem:[%s20433_s5 + $0x8] sm:$0xff]  ;;  %v20037_v62 = vld [vmem:[%s20433_s5] sm:$0xff]  ;;  %v23576_v10 = vld [vmem:[#allocation179_spill] sm:$0xff] }
 0x65e   : > { %12875 = vmatpush3.msra.mxu1 %v23538_v32  ;;  %12831 = vmatpush3.msra.mxu0 %v23541_v61  ;;  %v5830_v63 = vmul.f32 %v20016_v59, %v5796_v54  ;;  %23572 = vst [vmem:[#allocation69_spill] sm:$0xff] %v20030_v1  ;;  %23575 = vst [vmem:[#allocation76_spill] sm:$0xff] %v20037_v62  ;;  %v23577_v20 = vld [vmem:[#allocation574_spill] sm:$0xff]  ;;  %v23579_v32 = vld [vmem:[#allocation303_spill] sm:$0xff]  ;;  %v5808_v7 = vmul.f32 %v20037_v62, %v5796_v54 }
 0x65f   : > { %12876 = vmatprep.subr.mxu1 %v23540_v53  ;;  %10064 = vmatmul.mubr.f32.gmra.mxu0 %v23527_v48  ;;  %v23559_v48 = vld [vmem:[#allocation492_spill] sm:$0xff]  ;;  %v5692_v58 = vadd.f32 %v12107_v33, %v5517_v26  ;;  %v23578_v2 = vld [vmem:[#allocation514_spill] sm:$0xff]  ;;  %v23586_v36 = vld [vmem:[#allocation331_spill] sm:$0xff] }
 0x660   : > { %12877 = vmatpush3.msra.mxu1 %v23542_v5  ;;  %12832 = vmatprep.subr.mxu0 %v23543_v21  ;;  %v5832_v43 = vsel %vm5810_vm13, %v5830_v63, 0.0  ;;  %v23581_v42 = vld [vmem:[#allocation318_spill] sm:$0xff]  ;;  %v20052_v34 = vld [vmem:[%s20433_s5 + $0x18] sm:$0xff]  ;;  %v5811_v29 = vsel %vm5810_vm13, %v5808_v7, 0.0  ;;  %v23594_v33 = vld [vmem:[#allocation549_spill] sm:$0xff] }
 0x661   : > { %12878 = vmatprep.subr.mxu1 %v23544_v16  ;;  %12833 = vmatpush3.msra.mxu0 %v23545_v41  ;;  %v5803_v28 = vadd.f32 %v12145_v57, %v5692_v58  ;;  %v23582_v5 = vld [vmem:[#allocation522_spill] sm:$0xff]  ;;  %23583 = vst [vmem:[#allocation77_spill] sm:$0xff] %v20052_v34  ;;  %v23584_v16 = vld [vmem:[#allocation576_spill] sm:$0xff]  ;;  %v23597_v30 = vld [vmem:[#allocation559_spill] sm:$0xff] }
 0x662   : > { %12879 = vmatpush3.msra.mxu1 %v23546_v9  ;;  %12834 = vmatprep.subr.mxu0 %v23547_v37  ;;  %v23585_v11 = vld [vmem:[#allocation524_spill] sm:$0xff]  ;;  %v23587_v39 = vld [vmem:[#allocation526_spill] sm:$0xff]  ;;  %v23600_v54 = vld [vmem:[#allocation153_spill] sm:$0xff] }
 0x663   : > { %12880 = vmatprep.subr.mxu1 %v23548_v51  ;;  %12835 = vmatpush3.msra.mxu0 %v23549_v49  ;;  %v5809_v53 = vmul.f32 %v20030_v1, %v5803_v28  ;;  %v23588_v45 = vld [vmem:[#allocation302_spill] sm:$0xff]  ;;  %v23589_v51 = vld [vmem:[#allocation535_spill] sm:$0xff]  ;;  %v5831_v27 = vmul.f32 %v20052_v34, %v5803_v28 }
 0x664   : > { %12881 = vmatpush3.msra.mxu1 %v23550_v17  ;;  %12836 = vmatprep.subr.mxu0 %v23551_v52  ;;  %v23590_v17 = vld [vmem:[#allocation577_spill] sm:$0xff]  ;;  %v23591_v13 = vld [vmem:[#allocation538_spill] sm:$0xff]  ;;  %v23604_v7 = vld [vmem:[#allocation199_spill] sm:$0xff] }
 0x665   : > { %12882 = vmatprep.subr.mxu1 %v23552_v55  ;;  %12837 = vmatpush3.msra.mxu0 %v23553_v40  ;;  %v5814_v9 = vsel %vm5810_vm13, %v5809_v53, 0.0  ;;  %v23592_v55 = vld [vmem:[#allocation541_spill] sm:$0xff]  ;;  %v23593_v0 = vld [vmem:[#allocation546_spill] sm:$0xff]  ;;  %v5835_v6 = vsel %vm5810_vm13, %v5831_v27, 0.0  ;;  %v23602_v53 = vld [vmem:[#allocation475_spill] sm:$0xff] }
 0x666   : > { %12883 = vmatpush3.msra.mxu1 %v23554_v38  ;;  %12838 = vmatprep.subr.mxu0 %v23555_v19  ;;  %v23595_v38 = vld [vmem:[#allocation552_spill] sm:$0xff]  ;;  %v23598_v26 = vld [vmem:[#allocation562_spill] sm:$0xff]  ;;  %v23610_v27 = vld [vmem:[#allocation497_spill] sm:$0xff] }
 0x667   : > { %12884 = vmatprep.subr.mxu1 %v23556_v56  ;;  %12839 = vmatpush3.msra.mxu0 %v23557_v47  ;;  %v23596_v56 = vld [vmem:[#allocation556_spill] sm:$0xff] }
 0x668   : > { %12885 = vmatpush3.msra.mxu1 %v23558_v18  ;;  %12840 = vmatprep.subr.mxu0 %v23559_v48  ;;  %v23599_v18 = vld [vmem:[#allocation53_spill] sm:$0xff] }
 0x669   : > { %12886 = vmatprep.subr.mxu1 %v23560_v8  ;;  %12841 = vmatpush3.msra.mxu0 %v23561_v4 }
 0x66a   : > { %12887 = vmatpush3.msra.mxu1 %v23562_v60  ;;  %12842 = vmatprep.subr.mxu0 %v23564_v35 }
 0x66b   : > { %12888 = vmatprep.subr.mxu1 %v23565_v14  ;;  %12843 = vmatpush3.msra.mxu0 %v23566_v46 }
 0x66c   : > { %12889 = vmatpush3.msra.mxu1 %v23567_v44  ;;  %12844 = vmatprep.subr.mxu0 %v23568_v15 }
 0x66d   : > { %12890 = vmatprep.subr.mxu1 %v23569_v12  ;;  %12845 = vmatpush3.msra.mxu0 %v23570_v50 }
 0x66e   : > { %12891 = vmatpush3.msra.mxu1 %v23571_v25  ;;  %12846 = vmatprep.subr.mxu0 %v23573_v31 }
 0x66f   : > { %12892 = vmatprep.subr.mxu1 %v23574_v23  ;;  %12847 = vmatpush3.msra.mxu0 %v23576_v10 }
 0x670   : > { %12893 = vmatpush3.msra.mxu1 %v23577_v20  ;;  %12848 = vmatprep.subr.mxu0 %v23578_v2 }
 0x671   : > { %12894 = vmatprep.subr.mxu1 %v23579_v32  ;;  %12849 = vmatpush3.msra.mxu0 %v23580_v22 }
 0x672   : > { %12895 = vmatpush3.msra.mxu1 %v23581_v42  ;;  %5833 = vadd.xlane.f32.xlu0 %v5832_v43  ;;  %v23601_v43 = vld [vmem:[#allocation466_spill] sm:$0xff] }
 0x673   : > { %12850 = vmatprep.subr.mxu0 %v23582_v5  ;;  %12896 = vmatprep.subr.mxu1 %v23584_v16  ;;  %v23603_v42 = vld [vmem:[#allocation478_spill] sm:$0xff]  ;;  %v23605_v16 = vld [vmem:[#allocation481_spill] sm:$0xff] }
 0x674   : > { %12851 = vmatpush3.msra.mxu0 %v23585_v11  ;;  %12897 = vmatpush3.msra.mxu1 %v23586_v36  ;;  %v23606_v36 = vld [vmem:[#allocation484_spill] sm:$0xff] }
 0x675   : > { %12852 = vmatprep.subr.mxu0 %v23587_v39  ;;  %12898 = vmatprep.subr.mxu1 %v23588_v45  ;;  %v23608_v45 = vld [vmem:[#allocation489_spill] sm:$0xff] }
 0x676   : > { %12853 = vmatpush3.msra.mxu0 %v23589_v51  ;;  %5815 = vadd.xlane.f32.xlu0 %v5814_v9  ;;  %v23607_v9 = vld [vmem:[#allocation486_spill] sm:$0xff] }
 0x677   : > { %12899 = vmatpush3.msra.mxu1 %v23590_v17  ;;  %12854 = vmatprep.subr.mxu0 %v23591_v13  ;;  %v23611_v17 = vld [vmem:[#allocation498_spill] sm:$0xff] }
 0x678   : > { %5812 = vadd.xlane.f32.xlu1 %v5811_v29  ;;  %12944 = vmatprep.subr.mxu1 %v23539_v24  ;;  %v23609_v29 = vld [vmem:[#allocation491_spill] sm:$0xff] }
 0x679   : > { %12855 = vmatpush3.msra.mxu0 %v23592_v55 }
 0x67a   : > { %12856 = vmatprep.subr.mxu0 %v23593_v0 }
 0x67b   : > { %12857 = vmatpush3.msra.mxu0 %v23594_v33 }
 0x67c   : > { %5836 = vadd.xlane.f32.xlu1 %v5835_v6  ;;  %12858 = vmatprep.subr.mxu0 %v23595_v38  ;;  %v23612_v6 = vld [vmem:[#allocation508_spill] sm:$0xff] }
 0x67d   : > { %12859 = vmatpush3.msra.mxu0 %v23596_v56 }
 0x67e   : > { %12860 = vmatprep.subr.mxu0 %v23597_v30 }
 0x67f   : > { %12861 = vmatpush3.msra.mxu0 %v23598_v26 }
 0x680   : > { %12906 = vmatprep.subr.mxu0 %v23599_v18  ;;  %v23613_v18 = vld [vmem:[#allocation509_spill] sm:$0xff] }
 0x6aa   : > { %v7375_v3 = vpop.permute.xlu0 %7374 }
 0x6ab   : > { %v7373_v8 = vpop.permute.xlu1 %7372 }
 0x6ac   : > { %v7400_v58 = vsel %vm1816_vm5, %v23600_v54, %v7373_v8  ;;  %v7401_v60 = vsel %vm1816_vm5, %v7373_v8, %v7375_v3  ;;  %v23614_v54 = vld [vmem:[#allocation511_spill] sm:$0xff] }
 0x6ad   : > { %v20078_v14 = vand.u32 4294901760, %v7401_v60  ;;  %v20080_v57 = vand.u32 4294901760, %v7400_v58 }
 0x6af   : > { %v20083_v44 = vsub.f32 %v7401_v60, %v20078_v14  ;;  %v20086_v12 = vsub.f32 %v7400_v58, %v20080_v57  ;;  %10532 = vmatprep.mubr.f32.mxu1 %v20078_v14  ;;  %v23615_v58 = vld [vmem:[#allocation186_spill] sm:$0xff] }
 0x6b0   : > { %10534 = vmatmul.mubr.f32.vlgmr.msra.gmra.mxu1 %v20080_v57 }
 0x6b1   : > { %v10284_v28 = vand.u32 4294901760, %v20086_v12  ;;  %12945 = vmatpush3.msra.mxu1 %v23541_v61  ;;  %v10278_v63 = vand.u32 4294901760, %v20083_v44 }
 0x6b2   : > { %12946 = vmatprep.subr.mxu1 %v23543_v21 }
 0x6b3   : > { %v10285_v25 = vsub.f32 %v20086_v12, %v10284_v28  ;;  %12947 = vmatpush3.msra.mxu1 %v23545_v41  ;;  %v10279_v23 = vsub.f32 %v20083_v44, %v10278_v63 }
 0x6b4   : > { %12948 = vmatprep.subr.mxu1 %v23547_v37 }
 0x6b5   : > { %v10286_v20 = vand.u32 4294901760, %v10285_v25  ;;  %12949 = vmatpush3.msra.mxu1 %v23549_v49  ;;  %v10280_v32 = vand.u32 4294901760, %v10279_v23  ;;  %v23616_v23 = vld [vmem:[#allocation512_spill] sm:$0xff] }
 0x6b6   : > { %12950 = vmatprep.subr.mxu1 %v23551_v52 }
 0x6b7   : > { %12951 = vmatpush3.msra.mxu1 %v23553_v40  ;;  %10281 = vmatprep.mubr.f32.mxu0 %v10280_v32 }
 0x6b8   : > { %12952 = vmatprep.subr.mxu1 %v23555_v19  ;;  %10287 = vmatmul.mubr.f32.vlgmr.msra.gmra.mxu0 %v10286_v20 }
 0x6b9   : > { %12907 = vmatpush3.msra.mxu0 %v23601_v43  ;;  %12953 = vmatpush3.msra.mxu1 %v23557_v47  ;;  %v23617_v43 = vld [vmem:[#allocation518_spill] sm:$0xff] }
 0x6ba   : > { %12908 = vmatprep.subr.mxu0 %v23602_v53  ;;  %12954 = vmatprep.subr.mxu1 %v23559_v48  ;;  %v23618_v53 = vld [vmem:[#allocation520_spill] sm:$0xff] }
 0x6bb   : > { %12909 = vmatpush3.msra.mxu0 %v23603_v42  ;;  %12955 = vmatpush3.msra.mxu1 %v23561_v4 }
 0x6bc   : > { %12910 = vmatprep.subr.mxu0 %v23604_v7  ;;  %12956 = vmatprep.subr.mxu1 %v23564_v35 }
 0x6bd   : > { %12911 = vmatpush3.msra.mxu0 %v23605_v16  ;;  %12957 = vmatpush3.msra.mxu1 %v23566_v46  ;;  %v23619_v16 = vld [vmem:[#allocation521_spill] sm:$0xff] }
 0x6be   : > { %12912 = vmatprep.subr.mxu0 %v23606_v36  ;;  %12958 = vmatprep.subr.mxu1 %v23568_v15  ;;  %v23620_v36 = vld [vmem:[#allocation529_spill] sm:$0xff] }
 0x6bf   : > { %12913 = vmatpush3.msra.mxu0 %v23607_v9  ;;  %12959 = vmatpush3.msra.mxu1 %v23570_v50 }
 0x6c0   : > { %12914 = vmatprep.subr.mxu0 %v23608_v45  ;;  %12960 = vmatprep.subr.mxu1 %v23573_v31 }
 0x6c1   : > { %12915 = vmatpush3.msra.mxu0 %v23609_v29  ;;  %12961 = vmatpush3.msra.mxu1 %v23576_v10  ;;  %v23621_v29 = vld [vmem:[#allocation532_spill] sm:$0xff] }
 0x6c2   : > { %12916 = vmatprep.subr.mxu0 %v23610_v27  ;;  %12962 = vmatprep.subr.mxu1 %v23578_v2  ;;  %v23622_v27 = vld [vmem:[#allocation534_spill] sm:$0xff] }
 0x6c3   : > { %12917 = vmatpush3.msra.mxu0 %v23611_v17  ;;  %12963 = vmatpush3.msra.mxu1 %v23580_v22 }
 0x6c4   : > { %12918 = vmatprep.subr.mxu0 %v23612_v6  ;;  %12964 = vmatprep.subr.mxu1 %v23582_v5 }
 0x6c5   : > { %12919 = vmatpush3.msra.mxu0 %v23613_v18  ;;  %12965 = vmatpush3.msra.mxu1 %v23585_v11  ;;  %v7393_v3 = vpop.permute.xlu0 %7392  ;;  %v23623_v18 = vld [vmem:[#allocation537_spill] sm:$0xff] }
 0x6c6   : > { %v7391_v8 = vpop.permute.xlu1 %7390  ;;  %12920 = vmatprep.subr.mxu0 %v23614_v54  ;;  %12966 = vmatprep.subr.mxu1 %v23587_v39  ;;  %v23625_v54 = vld [vmem:[#allocation548_spill] sm:$0xff] }
 0x6c7   : > { %v7408_v60 = vsel %vm1816_vm5, %v23615_v58, %v7391_v8  ;;  %v7409_v25 = vsel %vm1816_vm5, %v7391_v8, %v7393_v3  ;;  %12921 = vmatpush3.msra.mxu0 %v23616_v23  ;;  %12967 = vmatpush3.msra.mxu1 %v23589_v51  ;;  %v23626_v58 = vld [vmem:[#allocation551_spill] sm:$0xff]  ;;  %v23629_v23 = vld [vmem:[#allocation561_spill] sm:$0xff] }
 0x6c8   : > { %v20137_v20 = vand.u32 4294901760, %v7409_v25  ;;  %v20139_v32 = vand.u32 4294901760, %v7408_v60  ;;  %12922 = vmatprep.subr.mxu0 %v23617_v43  ;;  %12968 = vmatprep.subr.mxu1 %v23591_v13 }
 0x6c9   : > { %12923 = vmatpush3.msra.mxu0 %v23618_v53  ;;  %12969 = vmatpush3.msra.mxu1 %v23592_v55 }
 0x6ca   : > { %v10292_v42 = vsub.f32 %v7409_v25, %v20137_v20  ;;  %v10298_v7 = vsub.f32 %v7408_v60, %v20139_v32  ;;  %10539 = vmatprep.mubr.f32.mxu1 %v20137_v20  ;;  %12924 = vmatprep.subr.mxu0 %v23619_v16  ;;  %v23627_v60 = vld [vmem:[#allocation555_spill] sm:$0xff]  ;;  %v23628_v25 = vld [vmem:[#allocation558_spill] sm:$0xff] }
 0x6cb   : > { %10541 = vmatmul.mubr.f32.gmra.mxu1 %v20139_v32  ;;  %12970 = vmatprep.subr.mxu1 %v23593_v0 }
 0x6cc   : > { %10792 = vmatprep.mubr.f32.mxu1 %v10278_v63  ;;  %12925 = vmatpush3.msra.mxu0 %v23620_v36  ;;  %v10293_v9 = vand.u32 4294901760, %v10292_v42  ;;  %v10299_v45 = vand.u32 4294901760, %v10298_v7  ;;  %v23624_v63 = vld [vmem:[#allocation545_spill] sm:$0xff] }
 0x6cd   : > { %12971 = vmatpush3.msra.mxu1 %v23594_v33  ;;  %12926 = vmatprep.subr.mxu0 %v23621_v29 }
 0x6ce   : > { %12972 = vmatprep.subr.mxu1 %v23595_v38  ;;  %12927 = vmatpush3.msra.mxu0 %v23622_v27  ;;  %v10294_v17 = vsub.f32 %v10292_v42, %v10293_v9  ;;  %v10300_v6 = vsub.f32 %v10298_v7, %v10299_v45  ;;  %v23665_v27 = vlaneseq }
 0x6cf   : > { %12973 = vmatpush3.msra.mxu1 %v23596_v56  ;;  %12928 = vmatprep.subr.mxu0 %v23623_v18 }
 0x6d0   : > { %12974 = vmatprep.subr.mxu1 %v23597_v30  ;;  %12929 = vmatpush3.msra.mxu0 %v23624_v63  ;;  %v10295_v3 = vand.u32 4294901760, %v10294_v17  ;;  %v10301_v8 = vand.u32 4294901760, %v10300_v6  ;;  %v20246_v17 = vand.u32 127, %v23665_v27 }
 0x6d1   : > { %12975 = vmatpush3.msra.mxu1 %v23598_v26  ;;  %12930 = vmatprep.subr.mxu0 %v23625_v54 }
 0x6d2   : > { %10296 = vmatprep.mubr.f32.mxu0 %v10295_v3  ;;  %10796 = vmatmul.mubr.f32.vlgmr.msra.gmra.mxu1 %v10284_v28  ;;  %v23664_v28 = vld [vmem:[#allocation575_spill] sm:$0xff]  ;;  %23666 = vst [vmem:[#allocation84_spill] sm:$0xff] %v20246_v17  ;;  %vm5824_vm14 = vcmp.eq.s32.totalorder %v20246_v17, 0  ;;  %vm5845_vm15 = vcmp.eq.s32.totalorder %v20246_v17, 1 }
 0x6d3   : > { %13020 = vmatprep.subr.mxu1 %v23539_v24  ;;  %10302 = vmatmul.mubr.f32.gmra.mxu0 %v10301_v8  ;;  %v23630_v24 = vld [vmem:[#allocation563_spill] sm:$0xff] }
 0x6d4   : > { %12931 = vmatpush3.msra.mxu0 %v23626_v58  ;;  %10803 = vmatprep.mubr.f32.mxu1 %v10293_v9 }
 0x6d5   : > { %13021 = vmatpush3.msra.mxu1 %v23541_v61  ;;  %12932 = vmatprep.subr.mxu0 %v23627_v60  ;;  %v23631_v61 = vld [vmem:[#allocation566_spill] sm:$0xff] }
 0x6d6   : > { %10676 = vmatprep.mubr.f32.mxu0 %v20083_v44  ;;  %13022 = vmatprep.subr.mxu1 %v23543_v21  ;;  %v23632_v21 = vld [vmem:[#allocation569_spill] sm:$0xff]  ;;  %v23638_v44 = vld [vmem:[#allocation490_spill] sm:$0xff] }
 0x6d7   : > { %12933 = vmatpush3.msra.mxu0 %v23628_v25  ;;  %13023 = vmatpush3.msra.mxu1 %v23545_v41  ;;  %v23633_v41 = vld [vmem:[#allocation470_spill] sm:$0xff] }
 0x6d8   : > { %12934 = vmatprep.subr.mxu0 %v23629_v23  ;;  %10807 = vmatmul.mubr.f32.gmra.mxu1 %v10299_v45 }
 0x6d9   : > { %13024 = vmatprep.subr.mxu1 %v23547_v37  ;;  %12935 = vmatpush3.msra.mxu0 %v23630_v24  ;;  %v23634_v37 = vld [vmem:[#allocation477_spill] sm:$0xff]  ;;  %v12216_v24 = vpop.f32.mrf.mxu1 }
 0x6da   : > { %13025 = vmatpush3.msra.mxu1 %v23549_v49  ;;  %11084 = vmatprep.mubr.f32.mxu1 %v20078_v14  ;;  %v23635_v49 = vld [vmem:[#allocation483_spill] sm:$0xff] }
 0x6db   : > { %12936 = vmatprep.subr.mxu0 %v23631_v61  ;;  %13026 = vmatprep.subr.mxu1 %v23551_v52  ;;  %v23636_v52 = vld [vmem:[#allocation485_spill] sm:$0xff]  ;;  %v12217_v61 = vpop.f32.mrf.mxu1 }
 0x6dc   : > { %12937 = vmatpush3.msra.mxu0 %v23632_v21  ;;  %13027 = vmatpush3.msra.mxu1 %v23553_v40  ;;  %v23637_v40 = vld [vmem:[#allocation488_spill] sm:$0xff]  ;;  %v12178_v21 = vpop.f32.mrf.mxu0 }
 0x6dd   : > { %10679 = vmatmul.mubr.f32.vlgmr.msra.gmra.mxu0 %v20086_v12  ;;  %12982 = vmatprep.subr.mxu0 %v23633_v41  ;;  %v12219_v41 = vpop.f32.mrf.mxu1 }
 0x6de   : > { %13028 = vmatprep.subr.mxu1 %v23555_v19  ;;  %10685 = vmatprep.mubr.f32.mxu0 %v10292_v42  ;;  %v23639_v19 = vld [vmem:[#allocation49_spill] sm:$0xff] }
 0x6df   : > { %12983 = vmatpush3.msra.mxu0 %v23634_v37  ;;  %13029 = vmatpush3.msra.mxu1 %v23557_v47  ;;  %v23640_v47 = vld [vmem:[#allocation495_spill] sm:$0xff]  ;;  %v12179_v37 = vpop.f32.mrf.mxu0 }
 0x6e0   : > { %12984 = vmatprep.subr.mxu0 %v23635_v49  ;;  %13030 = vmatprep.subr.mxu1 %v23559_v48  ;;  %v23641_v48 = vld [vmem:[#allocation52_spill] sm:$0xff]  ;;  %v12220_v49 = vpop.f32.mrf.mxu1 }
 0x6e1   : > { %12985 = vmatpush3.msra.mxu0 %v23636_v52  ;;  %13031 = vmatpush3.msra.mxu1 %v23561_v4  ;;  %v23642_v4 = vld [vmem:[#allocation496_spill] sm:$0xff]  ;;  %v12181_v52 = vpop.f32.mrf.mxu0 }
 0x6e2   : > { %10688 = vmatmul.mubr.f32.gmra.mxu0 %v10298_v7  ;;  %12986 = vmatprep.subr.mxu0 %v23637_v40  ;;  %v12292_v40 = vpop.f32.mrf.mxu1 }
 0x6e3   : > { %13032 = vmatprep.subr.mxu1 %v23564_v35  ;;  %12987 = vmatpush3.msra.mxu0 %v23638_v44  ;;  %v23643_v35 = vld [vmem:[#allocation506_spill] sm:$0xff]  ;;  %v12182_v44 = vpop.f32.mrf.mxu0 }
 0x6e4   : > { %10973 = vmatprep.mubr.f32.mxu0 %v20078_v14  ;;  %13033 = vmatpush3.msra.mxu1 %v23566_v46  ;;  %v23644_v46 = vld [vmem:[#allocation507_spill] sm:$0xff]  ;;  %v23660_v14 = vld [vmem:[#allocation565_spill] sm:$0xff]  ;;  %v12183_v1 = vadd.f32 %v12182_v44, %v12181_v52 }
 0x6e5   : > { %12988 = vmatprep.subr.mxu0 %v23639_v19  ;;  %13034 = vmatprep.subr.mxu1 %v23568_v15  ;;  %v23645_v15 = vld [vmem:[#allocation515_spill] sm:$0xff]  ;;  %v12293_v19 = vpop.f32.mrf.mxu1 }
 0x6e6   : > { %12989 = vmatpush3.msra.mxu0 %v23640_v47  ;;  %13035 = vmatpush3.msra.mxu1 %v23570_v50  ;;  %v23646_v50 = vld [vmem:[#allocation516_spill] sm:$0xff]  ;;  %v12254_v47 = vpop.f32.mrf.mxu0 }
 0x6e7   : > { %12990 = vmatprep.subr.mxu0 %v23641_v48  ;;  %13036 = vmatprep.subr.mxu1 %v23573_v31  ;;  %v23647_v31 = vld [vmem:[#allocation337_spill] sm:$0xff]  ;;  %v20266_v48 = vpop.f32.mrf.mxu1 }
 0x6e8   : > { %12991 = vmatpush3.msra.mxu0 %v23642_v4  ;;  %13037 = vmatpush3.msra.mxu1 %v23576_v10  ;;  %v23648_v10 = vld [vmem:[#allocation517_spill] sm:$0xff]  ;;  %v12255_v4 = vpop.f32.mrf.mxu0 }
 0x6e9   : > { %12992 = vmatprep.subr.mxu0 %v23643_v35  ;;  %13038 = vmatprep.subr.mxu1 %v23578_v2  ;;  %v23649_v2 = vld [vmem:[#allocation528_spill] sm:$0xff]  ;;  %v12296_v35 = vpop.f32.mrf.mxu1  ;;  %v12256_v17 = vadd.f32 %v12255_v4, %v12254_v47 }
 0x6ea   : > { %12993 = vmatpush3.msra.mxu0 %v23644_v46  ;;  %13039 = vmatpush3.msra.mxu1 %v23580_v22  ;;  %v23650_v22 = vld [vmem:[#allocation530_spill] sm:$0xff]  ;;  %v12257_v46 = vpop.f32.mrf.mxu0 }
 0x6eb   : > { %12994 = vmatprep.subr.mxu0 %v23645_v15  ;;  %13040 = vmatprep.subr.mxu1 %v23582_v5  ;;  %v23651_v5 = vld [vmem:[#allocation531_spill] sm:$0xff]  ;;  %v20268_v15 = vpop.f32.mrf.mxu1 }
 0x6ec   : > { %12995 = vmatpush3.msra.mxu0 %v23646_v50  ;;  %13041 = vmatpush3.msra.mxu1 %v23585_v11  ;;  %v23652_v11 = vld [vmem:[#allocation540_spill] sm:$0xff]  ;;  %v12258_v50 = vpop.f32.mrf.mxu0 }
 0x6ed   : > { %12996 = vmatprep.subr.mxu0 %v23647_v31  ;;  %13042 = vmatprep.subr.mxu1 %v23587_v39  ;;  %v23653_v39 = vld [vmem:[#allocation543_spill] sm:$0xff]  ;;  %v12369_v31 = vpop.f32.mrf.mxu1 }
 0x6ee   : > { %12997 = vmatpush3.msra.mxu0 %v23648_v10  ;;  %13043 = vmatpush3.msra.mxu1 %v23589_v51  ;;  %v23654_v51 = vld [vmem:[#allocation544_spill] sm:$0xff]  ;;  %v12330_v10 = vpop.f32.mrf.mxu0  ;;  %v12370_v47 = vadd.f32 %v12369_v31, %v20268_v15 }
 0x6ef   : > { %12998 = vmatprep.subr.mxu0 %v23649_v2  ;;  %13044 = vmatprep.subr.mxu1 %v23591_v13  ;;  %v23655_v13 = vld [vmem:[#allocation547_spill] sm:$0xff]  ;;  %v20270_v2 = vpop.f32.mrf.mxu1 }
 0x6f0   : > { %12999 = vmatpush3.msra.mxu0 %v23650_v22  ;;  %13045 = vmatpush3.msra.mxu1 %v23592_v55  ;;  %v23656_v55 = vld [vmem:[#allocation554_spill] sm:$0xff]  ;;  %v12331_v22 = vpop.f32.mrf.mxu0 }
 0x6f1   : > { %13000 = vmatprep.subr.mxu0 %v23651_v5  ;;  %13046 = vmatprep.subr.mxu1 %v23593_v0  ;;  %v23657_v0 = vld [vmem:[#allocation557_spill] sm:$0xff]  ;;  %v20272_v5 = vpop.f32.mrf.mxu1 }
 0x6f2   : > { %13001 = vmatpush3.msra.mxu0 %v23652_v11  ;;  %13047 = vmatpush3.msra.mxu1 %v23594_v33  ;;  %v23658_v33 = vld [vmem:[#allocation560_spill] sm:$0xff]  ;;  %v12333_v11 = vpop.f32.mrf.mxu0 }
 0x6f3   : > { %13002 = vmatprep.subr.mxu0 %v23653_v39  ;;  %13048 = vmatprep.subr.mxu1 %v23595_v38  ;;  %v23659_v38 = vld [vmem:[#allocation12_spill] sm:$0xff]  ;;  %v20274_v39 = vpop.f32.mrf.mxu1 }
 0x6f4   : > { %13003 = vmatpush3.msra.mxu0 %v23654_v51  ;;  %13049 = vmatpush3.msra.mxu1 %v23596_v56  ;;  %v23661_v56 = vld [vmem:[#allocation568_spill] sm:$0xff]  ;;  %v12334_v51 = vpop.f32.mrf.mxu0 }
 0x6f5   : > { %13004 = vmatprep.subr.mxu0 %v23655_v13  ;;  %13050 = vmatprep.subr.mxu1 %v23597_v30  ;;  %v23662_v30 = vld [vmem:[#allocation571_spill] sm:$0xff]  ;;  %v20276_v13 = vpop.f32.mrf.mxu1 }
 0x6f6   : > { %13005 = vmatpush3.msra.mxu0 %v23656_v55  ;;  %13051 = vmatpush3.msra.mxu1 %v23598_v26  ;;  %v23663_v26 = vld [vmem:[#allocation573_spill] sm:$0xff]  ;;  %v12406_v55 = vpop.f32.mrf.mxu0 }
 0x6f7   : > { %13006 = vmatprep.subr.mxu0 %v23657_v0  ;;  %11086 = vmatmul.mubr.f32.vlgmr.msra.gmra.mxu1 %v20080_v57  ;;  %v20278_v0 = vpop.f32.mrf.mxu1 }
 0x6f8   : > { %13007 = vmatpush3.msra.mxu0 %v23658_v33  ;;  %11091 = vmatprep.mubr.f32.mxu1 %v20137_v20  ;;  %v12407_v33 = vpop.f32.mrf.mxu0 }
 0x6f9   : > { %13008 = vmatprep.subr.mxu0 %v23659_v38  ;;  %v20280_v38 = vpop.f32.mrf.mxu1 }
 0x6fa   : > { %13009 = vmatpush3.msra.mxu0 %v23660_v14  ;;  %v12409_v14 = vpop.f32.mrf.mxu0 }
 0x6fb   : > { %13010 = vmatprep.subr.mxu0 %v23661_v56  ;;  %11093 = vmatmul.mubr.f32.gmra.mxu1 %v20139_v32  ;;  %v5834_v12 = vpop.xlane.xlu0 %5833  ;;  %v20282_v56 = vpop.f32.mrf.mxu1 }
 0x6fc   : > { %13011 = vmatpush3.msra.mxu0 %v23662_v30  ;;  %v12410_v30 = vpop.f32.mrf.mxu0 }
 0x6fd   : > { %13012 = vmatprep.subr.mxu0 %v23663_v26 }
 0x6fe   : > { %13013 = vmatpush3.msra.mxu0 %v23664_v28  ;;  %v12482_v26 = vpop.f32.mrf.mxu0 }
 0x6ff   : > { %10975 = vmatmul.mubr.f32.vlgmr.msra.gmra.mxu0 %v20080_v57  ;;  %v5816_v43 = vpop.xlane.xlu0 %5815 }
 0x700   : > { %10980 = vmatprep.mubr.f32.mxu0 %v20137_v20 }
 0x701   : > { %v5813_v53 = vpop.xlane.xlu1 %5812 }
 0x702   : > { %v5817_v42 = vadd.f32 %v5816_v43, %v5813_v53  ;;  %v12483_v43 = vpop.f32.mrf.mxu0 }
 0x703   : > { %10982 = vmatmul.mubr.f32.gmra.mxu0 %v20139_v32  ;;  %v20253_v32 = vld [vmem:[%s20434_s6] sm:$0x1] }
 0x704   : > { %v5818_v7 = vrot.slane %v5817_v42, 4  ;;  %23667 = vst [vmem:[#allocation86_spill] sm:$0xff] %v20253_v32 }
 0x705   : > { %v5837_v16 = vpop.xlane.xlu1 %5836 }
 0x706   : > { %v5819_v36 = vadd.f32 %v5818_v7, %v5817_v42  ;;  %v5838_v9 = vadd.f32 %v5837_v16, %v5834_v12  ;;  %v20284_v12 = vpop.f32.mrf.mxu1  ;;  %v12485_v42 = vpop.f32.mrf.mxu0 }
 0x708   : > { %v5820_v45 = vrot.slane %v5819_v36, 2  ;;  %v5839_v29 = vrot.slane %v5838_v9, 4  ;;  %v20286_v28 = vpop.f32.mrf.mxu1  ;;  %v12486_v16 = vpop.f32.mrf.mxu0 }
 0x70a   : > { %v5821_v6 = vadd.f32 %v5820_v45, %v5819_v36  ;;  %v5840_v57 = vadd.f32 %v5839_v29, %v5838_v9  ;;  %v20288_v53 = vpop.f32.mrf.mxu1  ;;  %v12558_v9 = vpop.f32.mrf.mxu0 }
 0x70c   : > { %v5822_v18 = vrot.slane %v5821_v6, 1  ;;  %v5841_v20 = vrot.slane %v5840_v57, 2  ;;  %v20290_v7 = vpop.f32.mrf.mxu1  ;;  %v12559_v29 = vpop.f32.mrf.mxu0 }
 0x70e   : > { %v5823_v63 = vadd.f32 %v5822_v18, %v5821_v6  ;;  %v5842_v3 = vadd.f32 %v5841_v20, %v5840_v57  ;;  %v20292_v36 = vpop.f32.mrf.mxu1  ;;  %v20298_v6 = vpop.f32.mrf.mxu0 }
 0x710   : > { %v5825_v8 = vsel %vm5824_vm14, %v5823_v63, 0.0  ;;  %v5843_v54 = vrot.slane %v5842_v3, 1  ;;  %v20294_v45 = vpop.f32.mrf.mxu1  ;;  %v20302_v18 = vpop.f32.mrf.mxu0 }
 0x711   : > { %v5826_v60 = vadd.f32 %v5825_v8, %v20253_v32  ;;  %23668 = vst [vmem:[#allocation87_spill] sm:$0xff] %v20294_v45  ;;  %v12218_v32 = vadd.f32 %v12217_v61, %v12216_v24  ;;  %v12332_v45 = vadd.f32 %v12331_v22, %v12330_v10  ;;  %v12297_v24 = vadd.f32 %v12296_v35, %v20266_v48 }
 0x712   : > { %v5844_v58 = vadd.f32 %v5843_v54, %v5842_v3  ;;  %v20296_v27 = vpop.f32.mrf.mxu1  ;;  %v20306_v63 = vpop.f32.mrf.mxu0  ;;  %v12484_v22 = vadd.f32 %v12483_v43, %v12482_v26  ;;  %v12525_v26 = vadd.f32 %v20288_v53, %v20286_v28 }
 0x713   : > { %23669 = vst [vmem:[#allocation97_spill] sm:$0xff] %v20296_v27  ;;  %v12294_v27 = vadd.f32 %v12293_v19, %v12292_v40  ;;  %v12373_v19 = vadd.f32 %v20272_v5, %v20270_v2  ;;  %v12522_v2 = vadd.f32 %v20284_v12, %v20282_v56 }
 0x714   : > { %v5846_v25 = vsel %vm5845_vm15, %v5844_v58, 0.0  ;;  %v20300_v57 = vpop.f32.mrf.mxu1  ;;  %v20310_v8 = vpop.f32.mrf.mxu0 }
 0x715   : > { %v5847_v23 = vadd.f32 %v5846_v25, %v5826_v60  ;;  %23670 = vst [vmem:[#allocation98_spill] sm:$0xff] %v20300_v57  ;;  %v12180_v60 = vadd.f32 %v12179_v37, %v12178_v21  ;;  %v12259_v57 = vadd.f32 %v12258_v50, %v12257_v46  ;;  %v12411_v46 = vadd.f32 %v12410_v30, %v12409_v14 }
 0x716   : > { %v20304_v20 = vpop.f32.mrf.mxu1  ;;  %v20314_v58 = vpop.f32.mrf.mxu0  ;;  %v12446_v50 = vadd.f32 %v20276_v13, %v20274_v39  ;;  %v12560_v14 = vadd.f32 %v12559_v29, %v12558_v9  ;;  %v12636_v56 = vadd.f32 %v20310_v8, %v20306_v63 }
 0x717   : > { %5848 = vst [vmem:[%s20263_s15] sm:$0x1] %v5847_v23  ;;  %23671 = vst [vmem:[#allocation107_spill] sm:$0xff] %v20304_v20  ;;  %v7782_v34 = vadd.f32 %v12218_v32, %v12180_v60  ;;  %v12335_v32 = vadd.f32 %v12334_v51, %v12333_v11 }
 0x718   : > { %v20308_v3 = vpop.f32.mrf.mxu1  ;;  %23674 = vst [vmem:[#allocation118_spill] sm:$0xff] %v20314_v58  ;;  %v20318_v23 = vpop.f32.mrf.mxu0 }
 0x719   : > { %23672 = vst [vmem:[#allocation108_spill] sm:$0xff] %v20308_v3  ;;  %v12221_v3 = vadd.f32 %v12220_v49, %v12219_v41  ;;  %v7927_v20 = vadd.f32 %v12256_v17, %v7782_v34  ;;  %v12408_v34 = vadd.f32 %v12407_v33, %v12406_v55  ;;  %v12449_v55 = vadd.f32 %v20280_v38, %v20278_v0 }
 0x71a   : > { %v20312_v54 = vpop.f32.mrf.mxu1  ;;  %v20322_v62 = vpop.f32.mrf.mxu0  ;;  %v12598_v38 = vadd.f32 %v20292_v36, %v20290_v7  ;;  %v23677_v60 = vld [vmem:[#allocation97_spill] sm:$0xff] }
 0x71b   : > { %23673 = vst [vmem:[#allocation109_spill] sm:$0xff] %v20312_v54  ;;  %v7789_v54 = vadd.f32 %v12221_v3, %v12183_v1 }
 0x71c   : > { %v20316_v25 = vpop.f32.mrf.mxu1  ;;  %v12711_v21 = vpop.f32.mrf.mxu0 }
 0x71d   : > { %23675 = vst [vmem:[#allocation119_spill] sm:$0xff] %v20316_v25  ;;  %v7936_v37 = vadd.f32 %v12259_v57, %v7789_v54  ;;  %v8044_v25 = vadd.f32 %v12294_v27, %v7927_v20  ;;  %v12563_v20 = vadd.f32 %v20302_v18, %v20298_v6  ;;  %v23676_v54 = vld [vmem:[#allocation87_spill] sm:$0xff] }
 0x71e   : > { %v20320_v59 = vpop.f32.mrf.mxu1  ;;  %v12713_v44 = vpop.f32.mrf.mxu0  ;;  %v12601_v28 = vadd.f32 %v23677_v60, %v23676_v54 }
 0x71f   : > { %v8223_v61 = vadd.f32 %v12332_v45, %v8044_v25  ;;  %v8055_v41 = vadd.f32 %v12297_v24, %v7936_v37  ;;  %v12487_v45 = vadd.f32 %v12486_v16, %v12485_v42  ;;  %v23678_v25 = vld [vmem:[#allocation118_spill] sm:$0xff]  ;;  %v23680_v24 = vld [vmem:[#allocation107_spill] sm:$0xff] }
 0x720   : > { %v20324_v58 = vpop.f32.mrf.mxu1  ;;  %v12714_v40 = vpop.f32.mrf.mxu0  ;;  %v12639_v6 = vadd.f32 %v20318_v23, %v23678_v25  ;;  %v23679_v37 = vld [vmem:[#allocation98_spill] sm:$0xff] }
 0x721   : > { %v8230_v1 = vadd.f32 %v12335_v32, %v8055_v41  ;;  %v8334_v49 = vadd.f32 %v12370_v47, %v8223_v61  ;;  %v12674_v7 = vadd.f32 %v23680_v24, %v23679_v37  ;;  %v12712_v61 = vadd.f32 %v12711_v21, %v20322_v62 }
 0x722   : > { %v20327_v52 = vpop.f32.mrf.mxu1  ;;  %v12786_v35 = vpop.f32.mrf.mxu0 }
 0x723   : > { %v8453_v4 = vadd.f32 %v12408_v34, %v8334_v49  ;;  %v8341_v10 = vadd.f32 %v12373_v19, %v8230_v1  ;;  %v23681_v34 = vld [vmem:[#allocation108_spill] sm:$0xff]  ;;  %v23682_v1 = vld [vmem:[#allocation109_spill] sm:$0xff]  ;;  %v12753_v21 = vadd.f32 %v20327_v52, %v20324_v58 }
 0x724   : > { %v20330_v17 = vpop.f32.mrf.mxu1  ;;  %v12787_v51 = vpop.f32.mrf.mxu0  ;;  %v12677_v49 = vadd.f32 %v23682_v1, %v23681_v34  ;;  %v23686_v1 = vld [vmem:[#allocation69_spill] sm:$0xff] }
 0x725   : > { %v8468_v15 = vadd.f32 %v12411_v46, %v8341_v10  ;;  %v8700_v31 = vadd.f32 %v12446_v50, %v8453_v4  ;;  %v12715_v4 = vadd.f32 %v12714_v40, %v12713_v44  ;;  %v23683_v50 = vld [vmem:[#allocation119_spill] sm:$0xff] }
 0x726   : > { %v12825_v48 = vpop.f32.mrf.mxu1  ;;  %v12789_v27 = vpop.f32.mrf.mxu0  ;;  %v12750_v23 = vadd.f32 %v20320_v59, %v23683_v50 }
 0x727   : > { %v8845_v33 = vadd.f32 %v12484_v22, %v8700_v31  ;;  %v8707_v5 = vadd.f32 %v12449_v55, %v8468_v15  ;;  %v12788_v22 = vadd.f32 %v12787_v51, %v12786_v35 }
 0x728   : > { %v12827_v11 = vpop.f32.mrf.mxu1  ;;  %v12790_v0 = vpop.f32.mrf.mxu0 }
 0x729   : > { %v8854_v57 = vadd.f32 %v12487_v45, %v8707_v5  ;;  %v8962_v39 = vadd.f32 %v12522_v2, %v8845_v33  ;;  %v12791_v45 = vadd.f32 %v12790_v0, %v12789_v27 }
 0x72a   : > { %v12828_v30 = vpop.f32.mrf.mxu1 }
 0x72b   : > { %v9141_v43 = vadd.f32 %v12560_v14, %v8962_v39  ;;  %v8973_v42 = vadd.f32 %v12525_v26, %v8854_v57  ;;  %v12826_v14 = vadd.f32 %v12825_v48, %v20330_v17  ;;  %v12829_v35 = vadd.f32 %v12828_v30, %v12827_v11 }
 0x72d   : > { %v9148_v9 = vadd.f32 %v12563_v20, %v8973_v42  ;;  %v9252_v29 = vadd.f32 %v12598_v38, %v9141_v43 }
 0x72f   : > { %v9371_v53 = vadd.f32 %v12636_v56, %v9252_v29  ;;  %v9259_v36 = vadd.f32 %v12601_v28, %v9148_v9 }
 0x731   : > { %v9386_v32 = vadd.f32 %v12639_v6, %v9259_v36  ;;  %v9618_v47 = vadd.f32 %v12674_v7, %v9371_v53 }
 0x733   : > { %v9763_v19 = vadd.f32 %v12712_v61, %v9618_v47  ;;  %v9625_v10 = vadd.f32 %v12677_v49, %v9386_v32 }
 0x735   : > { %v9772_v55 = vadd.f32 %v12715_v4, %v9625_v10  ;;  %v9880_v62 = vadd.f32 %v12750_v23, %v9763_v19 }
 0x737   : > { %v10059_v33 = vadd.f32 %v12788_v22, %v9880_v62  ;;  %v9891_v44 = vadd.f32 %v12753_v21, %v9772_v55 }
 0x739   : > { %v10066_v57 = vadd.f32 %v12791_v45, %v9891_v44  ;;  %v10170_v39 = vadd.f32 %v12826_v14, %v10059_v33 }
 0x73b   : > { %v10177_v42 = vadd.f32 %v12829_v35, %v10066_v57 }
 0x770   : > { %v12900_v13 = vpop.f32.mrf.mxu1 }
 0x772   : > { %v12901_v12 = vpop.f32.mrf.mxu1 }
 0x773   : > { %v12902_v38 = vadd.f32 %v12901_v12, %v12900_v13 }
 0x778   : > { %v12862_v16 = vpop.f32.mrf.mxu0 }
 0x77a   : > { %v12863_v18 = vpop.f32.mrf.mxu0 }
 0x77b   : > { %v12864_v40 = vadd.f32 %v12863_v18, %v12862_v16 }
 0x77d   : > { %v10289_v51 = vadd.f32 %v12864_v40, %v10170_v39 }
 0x77f   : > { %v10536_v27 = vadd.f32 %v12902_v38, %v10289_v51 }
 0x78b   : > { %v12903_v3 = vpop.f32.mrf.mxu1 }
 0x78d   : > { %v12904_v63 = vpop.f32.mrf.mxu1 }
 0x78e   : > { %v12905_v9 = vadd.f32 %v12904_v63, %v12903_v3  ;;  %v23684_v63 = vld [vmem:[#allocation76_spill] sm:$0xff] }
 0x792   : > { %v12976_v41 = vpop.f32.mrf.mxu1 }
 0x793   : > { %v12865_v8 = vpop.f32.mrf.mxu0 }
 0x794   : > { %v12977_v15 = vpop.f32.mrf.mxu1 }
 0x795   : > { %v12866_v46 = vpop.f32.mrf.mxu0  ;;  %v12978_v16 = vadd.f32 %v12977_v15, %v12976_v41  ;;  %v23685_v41 = vld [vmem:[#allocation67_spill] sm:$0xff] }
 0x796   : > { %v12867_v43 = vadd.f32 %v12866_v46, %v12865_v8  ;;  %v23687_v46 = vld [vmem:[#allocation77_spill] sm:$0xff] }
 0x798   : > { %v12979_v2 = vpop.f32.mrf.mxu1  ;;  %v10304_v52 = vadd.f32 %v12867_v43, %v10177_v42  ;;  %v23689_v43 = vld [vmem:[#allocation86_spill] sm:$0xff] }
 0x79a   : > { %v12980_v59 = vpop.f32.mrf.mxu1  ;;  %v10543_v54 = vadd.f32 %v12905_v9, %v10304_v52 }
 0x79b   : > { %v12981_v6 = vadd.f32 %v12980_v59, %v12979_v2 }
 0x79d   : > { %v12938_v31 = vpop.f32.mrf.mxu0 }
 0x79f   : > { %v12939_v5 = vpop.f32.mrf.mxu0 }
 0x7a0   : > { %v12940_v56 = vadd.f32 %v12939_v5, %v12938_v31 }
 0x7a2   : > { %v12941_v26 = vpop.f32.mrf.mxu0  ;;  %v10681_v29 = vadd.f32 %v12940_v56, %v10536_v27 }
 0x7a4   : > { %v12942_v58 = vpop.f32.mrf.mxu0  ;;  %v10798_v11 = vadd.f32 %v12978_v16, %v10681_v29 }
 0x7a5   : > { %v12943_v17 = vadd.f32 %v12942_v58, %v12941_v26 }
 0x7a7   : > { %v10690_v53 = vadd.f32 %v12943_v17, %v10543_v54 }
 0x7a9   : > { %v10809_v7 = vadd.f32 %v12981_v6, %v10690_v53 }
 0x7b7   : > { %v13052_v20 = vpop.f32.mrf.mxu1 }
 0x7b9   : > { %v13053_v0 = vpop.f32.mrf.mxu1 }
 0x7ba   : > { %v13054_v13 = vadd.f32 %v13053_v0, %v13052_v20 }
 0x7bb   : > { %v13055_v60 = vpop.f32.mrf.mxu1 }
 0x7bd   : > { %v13056_v18 = vpop.f32.mrf.mxu1 }
 0x7be   : > { %v13057_v3 = vadd.f32 %v13056_v18, %v13055_v60 }
 0x7bf   : > { %v13014_v48 = vpop.f32.mrf.mxu0 }
 0x7c1   : > { %v13015_v28 = vpop.f32.mrf.mxu0 }
 0x7c2   : > { %v13016_v30 = vadd.f32 %v13015_v28, %v13014_v48 }
 0x7c3   : > { %v13017_v25 = vpop.f32.mrf.mxu0 }
 0x7c4   : > { %v10977_v12 = vadd.f32 %v13016_v30, %v10798_v11 }
 0x7c5   : > { %v13018_v37 = vpop.f32.mrf.mxu0 }
 0x7c6   : > { %v11088_v24 = vadd.f32 %v13054_v13, %v10977_v12  ;;  %v13019_v36 = vadd.f32 %v13018_v37, %v13017_v25 }
 0x7c8   : > { %v10984_v61 = vadd.f32 %v13019_v36, %v10809_v7  ;;  %v11100_v8 = vmul.f32 %v11088_v24, %v23684_v63  ;;  %v11119_v34 = vmul.f32 %v23685_v41, %v11088_v24 }
 0x7ca   : > { %v11095_v32 = vadd.f32 %v13057_v3, %v10984_v61  ;;  %v11102_v47 = vsel %vm5810_vm13, %v11100_v8, 0.0  ;;  %v11121_v19 = vsel %vm5810_vm13, %v11119_v34, 0.0 }
 0x7cb   : > { %11103 = vadd.xlane.f32.xlu0 %v11102_v47 }
 0x7cc   : > { %v11101_v49 = vmul.f32 %v11095_v32, %v23686_v1  ;;  %v11120_v50 = vmul.f32 %v23687_v46, %v11095_v32 }
 0x7ce   : > { %v11105_v4 = vsel %vm5810_vm13, %v11101_v49, 0.0  ;;  %v11124_v23 = vsel %vm5810_vm13, %v11120_v50, 0.0 }
 0x7cf   : > { %11122 = vadd.xlane.f32.xlu0 %v11121_v19  ;;  %11106 = vadd.xlane.f32.xlu1 %v11105_v4 }
 0x7d3   : > { %11125 = vadd.xlane.f32.xlu1 %v11124_v23 }
 0x854   : > { %v11104_v10 = vpop.xlane.xlu0 %11103 }
 0x858   : > { %v11107_v22 = vpop.xlane.xlu1 %11106  ;;  %v11123_v55 = vpop.xlane.xlu0 %11122 }
 0x859   : > { %v11108_v15 = vadd.f32 %v11107_v22, %v11104_v10 }
 0x85b   : > { %v11109_v31 = vrot.slane %v11108_v15, 4 }
 0x85c   : > { %v11126_v62 = vpop.xlane.xlu1 %11125 }
 0x85d   : > { %v11110_v21 = vadd.f32 %v11109_v31, %v11108_v15  ;;  %v11127_v33 = vadd.f32 %v11126_v62, %v11123_v55 }
 0x85f   : > { %v11111_v45 = vrot.slane %v11110_v21, 2  ;;  %v11128_v2 = vrot.slane %v11127_v33, 4 }
 0x861   : > { %v11112_v5 = vadd.f32 %v11111_v45, %v11110_v21  ;;  %v11129_v14 = vadd.f32 %v11128_v2, %v11127_v33 }
 0x863   : > { %v11113_v44 = vrot.slane %v11112_v5, 1  ;;  %v11130_v40 = vrot.slane %v11129_v14, 2 }
 0x865   : > { %v11114_v57 = vadd.f32 %v11113_v44, %v11112_v5  ;;  %v11131_v39 = vadd.f32 %v11130_v40, %v11129_v14 }
 0x867   : > { %v11115_v26 = vsel %vm5824_vm14, %v11114_v57, 0.0  ;;  %v11132_v35 = vrot.slane %v11131_v39, 1 }
 0x868   : > { %v11116_v20 = vadd.f32 %v11115_v26, %v23689_v43 }
 0x869   : > { %v11133_v51 = vadd.f32 %v11132_v35, %v11131_v39 }
 0x86b   : > { %v11134_v38 = vsel %vm5845_vm15, %v11133_v51, 0.0 }
 0x86c   : > { %v11135_v42 = vadd.f32 %v11134_v38, %v11116_v20 }
 0x86e   : > { %11227 = vst [vmem:[%s20263_s15 + $0x1] sm:$0x1] %v11135_v42 }
 0x86f   : > { %13156 = shalt.err (!%p13153_p3)
}
 0x870   : > { %s13157_s14 = scalar_lea.hbm %s20380_s22, 32  ;;  %s13161_s18 = scalar_lea.hbm %s20435_s7, 64 }
 0x871   : > { %p13158_p4 = scmp.ne.s32.totalorder %s20380_s22, %s13157_s14  ;;  %p13162_p9 = scmp.lt.s32.totalorder %s20380_s22, %s20435_s7 }
 0x872   : > { %p13163_p10 = scmp.lt.s32.totalorder %s13161_s18, %s13157_s14 }
 0x873   : > { %p13159_p7 = pnand %p13158_p4, %p13307_p5 }
 0x874   : > { %p13164_p11 = por %p13163_p10, %p13162_p9 }
 0x875   : > { %p13160_p8 = pneg %p13159_p7 }
 0x877   : > { %p13165_p12 = pnand %p13164_p11, %p13160_p8 }
 0x879   : > { %13168 = shalt.err (!%p13165_p12)
}
 0x87a   : > { %s13228_s16 = smov 16   ;;  %s23690_s19 = smov 1  }
 0x87b   : > { %13058 = dma.vmem_to_hbm [thread:$0]  (%p13307_p5), %s20382_s21, 32, %s20380_s22, %s20387_s28, %s13228_s16, %s13228_s16, %s23690_s19  }
 0x87c PF: > { %p13064_p13 = scmp.ge.s32.totalorder %s13203_s27, 2  ;;  %s11167_s23 = sand.u32 1, %s13191_s24  }
 0x87d   : > { %s11168_s29 = scalar_lea.sflag [#allocation4], %s11167_s23 }
 0x87e   : > { %p13061_p0 = pnand %p13064_p13, %p13311_p6 }
 0x880   : > { %p13062_p1 = pneg %p13061_p0 }
 0x882   : > { %13186 = dma.done.wait (%p13062_p1), %s11168_s29, 32  }
 0x883   : > { %13188 = vsyncadd (%p13062_p1), %s11168_s29, 4294967264  ;;  %p17_p2 = scmp.ge.s32.totalorder %s13294_s30, 4   ;;  %s23691_s24 = smov %s13195_s25 }
 0x884   : > { %s23692_s25 = smov %s13199_s26  ;;  %s23693_s26 = smov %s13305_s10 }
 0x885   : > { %s23694_s27 = smov %s13294_s30  ;;  %19 = sbr.rel (!%p17_p2) target bundleno = 3 (0x3), region = 87 }
 0x88a   :  { %11173 = vsyncpa [#allocation4], 1 }
 0x88b   :  { %11175 = vsyncpa [#allocation4 + $0x1], 1 }

</bundles_post_ra>
